<compile_context>
chip_gen: v5e
topology: v5e:2x2
jax: 0.10.0
libtpu: 0.0.40
codegen_flags: <defaults>
</compile_context>

<pallas_src>
import math
from functools import partial

import jax
import jax.numpy as jnp
import numpy as np
from jax.experimental import pallas as pl
from jax.experimental.pallas import tpu as pltpu

_LN_EPS = 1e-5


def _layer_norm(x, gamma, beta):
    mean = jnp.mean(x, axis=-1, keepdims=True)
    var = jnp.mean(jnp.square(x - mean), axis=-1, keepdims=True)
    return (x - mean) * jax.lax.rsqrt(var + _LN_EPS) * gamma + beta


# --------------------------------------------------------------------------
# Kernel: one fused encoder layer + row_fc for a (T, TN, E) tile of rows.
# --------------------------------------------------------------------------
def _encoder_pool_kernel(nhead, x_ref, wqkvo_ref, w1_ref, w2_ref, vec_ref,
                         b1_ref, out_ref):
    T, TN, E = x_ref.shape
    rows = T * TN
    dh = E // nhead
    scale = 1.0 / math.sqrt(dh)
    bf16 = jnp.bfloat16

    # Packed per-E vectors (one DMA instead of 11).
    vec = vec_ref[...]                                   # (11, E) f32
    bq, bk, bv, bo = vec[0:1], vec[1:2], vec[2:3], vec[3:4]
    g1, be1 = vec[4:5], vec[5:6]
    b2 = vec[6:7]
    g2, be2 = vec[7:8], vec[8:9]
    wfc = vec[9:10]                                      # (1, E) row_fc weight
    bfc = vec[10:11, 0:1]                                # (1, 1) row_fc bias

    # x tile in the original HBM layout, flattened t-major: row r = t*TN + n.
    x3 = x_ref[...]                                      # (T, TN, E) f32
    x2 = x3.reshape(rows, E)
    x_b = x2.astype(bf16)

    # ---- fused full-width QKV projections (heads concatenated on lanes) ----
    q = jnp.dot(x_b, wqkvo_ref[0], preferred_element_type=jnp.float32) + bq
    k = jnp.dot(x_b, wqkvo_ref[1], preferred_element_type=jnp.float32) + bk
    v = jnp.dot(x_b, wqkvo_ref[2], preferred_element_type=jnp.float32) + bv

    # Rearrange to (TN, T, E) so the tiny attention is batched over TN rows.
    to_batch = lambda a: jnp.transpose(a.reshape(T, TN, E), (1, 0, 2)).astype(bf16)
    qn = to_batch(q * scale)                             # scale applied in f32
    kn = to_batch(k)
    vn = to_batch(v)

    # ---- per-head score / softmax / context, batched over TN rows ----------
    ctx_heads = []
    for h in range(nhead):                               # static, unrolled
        sl = slice(h * dh, (h + 1) * dh)
        s = jnp.einsum("ntd,nsd->nts", qn[:, :, sl], kn[:, :, sl],
                       preferred_element_type=jnp.float32)        # (TN, T, T)
        s = s - jnp.max(s, axis=-1, keepdims=True)
        e = jnp.exp(s)
        p = e * pl.reciprocal(jnp.sum(e, axis=-1, keepdims=True), approx=True)
        ctx_heads.append(
            jnp.einsum("nts,nsd->ntd", p.astype(bf16), vn[:, :, sl],
                       preferred_element_type=jnp.float32))       # (TN, T, dh)
    ctx = jnp.concatenate(ctx_heads, axis=-1)                     # (TN, T, E)
    ctx = jnp.transpose(ctx, (1, 0, 2)).reshape(rows, E)          # back to t-major

    # ---- single full-width out-projection + residual + LayerNorm1 ----------
    attn = jnp.dot(ctx.astype(bf16), wqkvo_ref[3],
                   preferred_element_type=jnp.float32) + bo
    y = _layer_norm(x2 + attn, g1, be1)                           # f32

    # ---- feed-forward (ReLU), bf16 operands into MXU, f32 accumulation -----
    h1 = jnp.dot(y.astype(bf16), w1_ref[...],
                 preferred_element_type=jnp.float32) + b1_ref[...]
    h1 = jnp.maximum(h1, 0.0)
    h2 = jnp.dot(h1.astype(bf16), w2_ref[...],
                 preferred_element_type=jnp.float32) + b2

    # ---- residual + LayerNorm2 ----------------------------------------------
    z = _layer_norm(y + h2, g2, be2)

    # ---- row_fc on the VPU/XLU: sum_E(z * wfc) + b; lane-dense (T, TN) out --
    logits = jnp.sum(z.reshape(T, TN, E) * wfc, axis=-1) + bfc    # (T, TN)
    out_ref[...] = logits


# --------------------------------------------------------------------------
# Wrapper / tiling.
# --------------------------------------------------------------------------
def _round_up(x, m):
    return ((x + m - 1) // m) * m


def _choose_tn(N, T):
    """Rows-per-step TN: fill the MXU M dim (TN*T ~ 256) and keep the output
    block lane-dense (TN multiple of 128 unless it covers all of padded N).
    On v7x (64 MiB VMEM, 2 TCs) keep N/TN >= 2 and re-derive the budget."""
    if N <= 128:
        return _round_up(N, 8)           # single step; block == full padded N
    target = max(128, _round_up(max(1, 256 // max(T, 1)), 128))
    return min(target, _round_up(N, 128))


def _pack_params(params):
    """Stack the 4 (E,E) projection weights (bf16) and pack every E-length
    vector (biases, LN gammas/betas, row_fc weight, row_fc bias) into a single
    (11, E) f32 array: 6 kernel inputs instead of 19 DMA descriptors."""
    bf16 = jnp.bfloat16
    E = params["wq"].shape[0]
    wqkvo = jnp.stack([params["wq"], params["wk"],
                       params["wv"], params["wo"]]).astype(bf16)      # (4,E,E)
    vec = jnp.stack([
        params["bq"], params["bk"], params["bv"], params["bo"],
        params["g1"], params["be1"], params["b2"],
        params["g2"], params["be2"], params["wfc"],
        jnp.full((E,), params["bfc"], jnp.float32),
    ]).astype(jnp.float32)                                            # (11,E)
    return (wqkvo, params["w1"].astype(bf16), params["w2"].astype(bf16),
            vec, params["b1"].reshape(1, -1).astype(jnp.float32))


def _encoder_pool_call(x, packed, nhead, *, single_buffer):
    wqkvo, w1, w2, vec, b1 = packed
    T, N, E = x.shape        # (B, S, H): attention over axis 0, S independent rows
    F = w1.shape[1]
    TN = _choose_tn(N, T)
    n_pad = _round_up(N, TN)
    if n_pad != N:           # pad independent rows; padded rows sliced off below
        x = jnp.pad(x, ((0, 0), (0, n_pad - N), (0, 0)))
    grid = (n_pad // TN,)
    rows = T * TN
    rows_total = T * n_pad

    def const(shape):
        zeros = (0,) * len(shape)
        idx = lambda n: zeros
        if single_buffer:
            # Grid-invariant weights: single-buffer so they are not duplicated.
            return pl.BlockSpec(shape, idx, pipeline_mode=pl.Buffered(1))
        return pl.BlockSpec(shape, idx)

    # VMEM budget from the actual resident set: single-buffered bf16 weights +
    # packed vectors + double-buffered x/out tiles + f32 activations
    # (dominated by the (rows, F) FFN intermediate), plus headroom.
    weight_bytes = 2 * (4 * E * E + 2 * E * F) + 4 * (11 * E + F)
    io_bytes = 2 * 4 * rows * E + 2 * 4 * rows
    act_bytes = 4 * rows * (6 * E + 2 * F)
    vmem_limit = min(int(weight_bytes + io_bytes + act_bytes) + (8 << 20),
                     120 << 20)

    cost = pl.CostEstimate(
        flops=int(2 * rows_total * (4 * E * E + 2 * E * F)
                  + 4 * n_pad * T * T * E),
        transcendentals=int(n_pad * nhead * T * T),
        bytes_accessed=int(4 * rows_total * E + 4 * rows_total + weight_bytes),
    )

    grid_spec = pltpu.PrefetchScalarGridSpec(
        num_scalar_prefetch=0,
        grid=grid,
        in_specs=[
            # Activations read in their original (B, S, H) layout -- no
            # wrapper-side HBM transpose.
            pl.BlockSpec((T, TN, E), lambda n: (0, n, 0)),
            const((4, E, E)),        # stacked wq|wk|wv|wo (bf16)
            const((E, F)),           # ffn w1 (bf16)
            const((F, E)),           # ffn w2 (bf16)
            const((11, E)),          # packed biases / LN params / row_fc
            const((1, F)),           # ffn b1 (f32)
        ],
        # Lane-dense (T, TN) output block: logits land directly as (B, S).
        out_specs=pl.BlockSpec((T, TN), lambda n: (0, n)),
    )

    out = pl.pallas_call(
        partial(_encoder_pool_kernel, nhead),
        out_shape=jax.ShapeDtypeStruct((T, n_pad), jnp.float32),
        grid_spec=grid_spec,
        compiler_params=pltpu.CompilerParams(
            dimension_semantics=("parallel",),
            vmem_limit_bytes=vmem_limit),
        cost_estimate=cost,
    )(x.astype(jnp.float32), wqkvo, w1, w2, vec, b1)
    return out[:, :N]                                   # drop row padding -> (B, S)


def transformer_pooling_v1(outputs, params, nhead):
    """Matches TransformerPoolingV1.forward (eval mode, num_layers=1).

    batch_first=False => attention runs over the HF batch axis and sequence
    positions are independent rows (quirk of the original module, kept)."""
    x = outputs["last_hidden_state"]                    # (B, S, H)
    packed = _pack_params(params)
    try:
        return _encoder_pool_call(x, packed, nhead, single_buffer=True)
    except Exception:
        # Fallback for jax builds whose TPU pipeline rejects Buffered(1);
        # identical semantics, default double-buffered constant weights.
        return _encoder_pool_call(x, packed, nhead, single_buffer=False)
    # TODO(synk): num_layers > 1 would simply chain this fused layer kernel.


# --------------------------------------------------------------------------
# Pure-JAX f32 reference of the PyTorch forward (eval / dropout off).
# --------------------------------------------------------------------------
def _reference(outputs, params, nhead):
    x = outputs["last_hidden_state"].astype(jnp.float32)   # (T=B, N=S, E=H)
    T, N, E = x.shape
    dh = E // nhead
    q = x @ params["wq"] + params["bq"]
    k = x @ params["wk"] + params["bk"]
    v = x @ params["wv"] + params["bv"]
    split = lambda a: a.reshape(T, N, nhead, dh).transpose(1, 2, 0, 3)  # (N,h,T,d)
    qh, kh, vh = split(q), split(k), split(v)
    s = jnp.einsum("nhtd,nhsd->nhts", qh, kh) / math.sqrt(dh)
    p = jax.nn.softmax(s, axis=-1)
    ctx = jnp.einsum("nhts,nhsd->nhtd", p, vh)
    ctx = ctx.transpose(2, 0, 1, 3).reshape(T, N, E)
    attn = ctx @ params["wo"] + params["bo"]
    y = _layer_norm(x + attn, params["g1"], params["be1"])
    h1 = jax.nn.relu(y @ params["w1"] + params["b1"])
    h2 = h1 @ params["w2"] + params["b2"]
    z = _layer_norm(y + h2, params["g2"], params["be2"])
    return z @ params["wfc"] + params["bfc"]                # (B, S)


def make_params(key, E, F):
    ks = jax.random.split(key, 14)
    std = 0.02
    f32 = jnp.float32
    rnd = lambda k, shape: jax.random.normal(k, shape, f32) * std
    return {
        "wq": rnd(ks[0], (E, E)), "bq": rnd(ks[1], (E,)),
        "wk": rnd(ks[2], (E, E)), "bk": rnd(ks[3], (E,)),
        "wv": rnd(ks[4], (E, E)), "bv": rnd(ks[5], (E,)),
        "wo": rnd(ks[6], (E, E)), "bo": rnd(ks[7], (E,)),
        "g1": jnp.ones((E,), f32), "be1": jnp.zeros((E,), f32),
        "w1": rnd(ks[8], (E, F)), "b1": rnd(ks[9], (F,)),
        "w2": rnd(ks[10], (F, E)), "b2": rnd(ks[11], (E,)),
        "g2": jnp.ones((E,), f32), "be2": jnp.zeros((E,), f32),
        "wfc": rnd(ks[12], (E,)), "bfc": rnd(ks[13], ())[()] * 0.0 + 0.01,
    }


if __name__ == "__main__":
    B, S, H = 2, 8, 32        # last_hidden_state: (batch, seq, hidden); d_model=32
    nhead = 4                 # must divide d_model
    F = 2048                  # nn.TransformerEncoderLayer default dim_feedforward

    key = jax.random.PRNGKey(0)
    k_x, k_p = jax.random.split(key)
    outputs = {"last_hidden_state": jax.random.normal(k_x, (B, S, H), jnp.float32)}
    params = make_params(k_p, H, F)

    out = transformer_pooling_v1(outputs, params, nhead)     # (B, S)
    out = jax.block_until_ready(out)
    assert out.shape == (B, S)

    ref = _reference(outputs, params, nhead)
    # bf16 MXU operands (f32 accumulation) + approx softmax reciprocal
    # vs the full-f32 reference.
    np.testing.assert_allclose(np.asarray(out), np.asarray(ref),
                               rtol=1e-2, atol=1e-2)

    print("KERNEL_OK")
</pallas_src>

<mosaic_0001>
module attributes {stable_mosaic.version = 11 : i64} {
  func.func @_encoder_pool_kernel(%arg0: i32, %arg1: memref<2x8x32xf32, #tpu.memory_space<vmem>>, %arg2: memref<4x32x32xbf16, #tpu.memory_space<vmem>>, %arg3: memref<32x2048xbf16, #tpu.memory_space<vmem>>, %arg4: memref<2048x32xbf16, #tpu.memory_space<vmem>>, %arg5: memref<11x32xf32, #tpu.memory_space<vmem>>, %arg6: memref<1x2048xf32, #tpu.memory_space<vmem>>, %arg7: memref<2x8xf32, #tpu.memory_space<vmem>>) attributes {dimension_semantics = [#tpu.dimension_semantics<parallel>], iteration_bounds = array<i64: 1>, scalar_prefetch = 0 : i64, scratch_operands = 0 : i64, tpu.core_type = #tpu.core_type<tc>, window_params = [{transform_indices = @transform_0, window_bounds = array<i64: 2, 8, 32>}, {pipeline_mode = #tpu.pipeline_mode<synchronous>, transform_indices = @transform_1, window_bounds = array<i64: 4, 32, 32>}, {pipeline_mode = #tpu.pipeline_mode<synchronous>, transform_indices = @transform_2, window_bounds = array<i64: 32, 2048>}, {pipeline_mode = #tpu.pipeline_mode<synchronous>, transform_indices = @transform_3, window_bounds = array<i64: 2048, 32>}, {pipeline_mode = #tpu.pipeline_mode<synchronous>, transform_indices = @transform_4, window_bounds = array<i64: 11, 32>}, {pipeline_mode = #tpu.pipeline_mode<synchronous>, transform_indices = @transform_5, window_bounds = array<i64: 1, 2048>}, {transform_indices = @transform_6, window_bounds = array<i64: 2, 8>}]} {
    %c0 = arith.constant 0 : index
    %c0_0 = arith.constant 0 : index
    %0 = vector.load %arg5[%c0, %c0_0] : memref<11x32xf32, #tpu.memory_space<vmem>>, vector<11x32xf32>
    %1 = vector.extract_strided_slice %0 {offsets = [0, 0], sizes = [1, 32], strides = [1, 1]} : vector<11x32xf32> to vector<1x32xf32>
    %2 = vector.extract_strided_slice %0 {offsets = [1, 0], sizes = [1, 32], strides = [1, 1]} : vector<11x32xf32> to vector<1x32xf32>
    %3 = vector.extract_strided_slice %0 {offsets = [2, 0], sizes = [1, 32], strides = [1, 1]} : vector<11x32xf32> to vector<1x32xf32>
    %4 = vector.extract_strided_slice %0 {offsets = [3, 0], sizes = [1, 32], strides = [1, 1]} : vector<11x32xf32> to vector<1x32xf32>
    %5 = vector.extract_strided_slice %0 {offsets = [4, 0], sizes = [1, 32], strides = [1, 1]} : vector<11x32xf32> to vector<1x32xf32>
    %6 = vector.extract_strided_slice %0 {offsets = [5, 0], sizes = [1, 32], strides = [1, 1]} : vector<11x32xf32> to vector<1x32xf32>
    %7 = vector.extract_strided_slice %0 {offsets = [6, 0], sizes = [1, 32], strides = [1, 1]} : vector<11x32xf32> to vector<1x32xf32>
    %8 = vector.extract_strided_slice %0 {offsets = [7, 0], sizes = [1, 32], strides = [1, 1]} : vector<11x32xf32> to vector<1x32xf32>
    %9 = vector.extract_strided_slice %0 {offsets = [8, 0], sizes = [1, 32], strides = [1, 1]} : vector<11x32xf32> to vector<1x32xf32>
    %10 = vector.extract_strided_slice %0 {offsets = [9, 0], sizes = [1, 32], strides = [1, 1]} : vector<11x32xf32> to vector<1x32xf32>
    %11 = vector.extract_strided_slice %0 {offsets = [10, 0], sizes = [1, 1], strides = [1, 1]} : vector<11x32xf32> to vector<1x1xf32>
    %c0_1 = arith.constant 0 : index
    %c0_2 = arith.constant 0 : index
    %c0_3 = arith.constant 0 : index
    %12 = vector.load %arg1[%c0_1, %c0_2, %c0_3] : memref<2x8x32xf32, #tpu.memory_space<vmem>>, vector<2x8x32xf32>
    %13 = vector.shape_cast %12 : vector<2x8x32xf32> to vector<16x32xf32>
    %14 = arith.truncf %13 : vector<16x32xf32> to vector<16x32xbf16>
    %c0_4 = arith.constant 0 : index
    %c0_5 = arith.constant 0 : index
    %c0_6 = arith.constant 0 : index
    %15 = vector.load %arg2[%c0_4, %c0_5, %c0_6] : memref<4x32x32xbf16, #tpu.memory_space<vmem>>, vector<1x32x32xbf16>
    %16 = vector.shape_cast %15 : vector<1x32x32xbf16> to vector<32x32xbf16>
    %cst = arith.constant dense<0.000000e+00> : vector<16x32xf32>
    %17 = tpu.matmul %14, %16, %cst {dimension_numbers = #tpu.dot_dimension_numbers<[1], [0], [0], [1], [0, 0, 1, 1], [], []>} : vector<16x32xbf16>, vector<32x32xbf16>, vector<16x32xf32> -> vector<16x32xf32>
    %18 = vector.broadcast %1 : vector<1x32xf32> to vector<16x32xf32>
    %19 = arith.addf %17, %18 : vector<16x32xf32>
    %c1 = arith.constant 1 : index
    %c0_7 = arith.constant 0 : index
    %c0_8 = arith.constant 0 : index
    %20 = vector.load %arg2[%c1, %c0_7, %c0_8] : memref<4x32x32xbf16, #tpu.memory_space<vmem>>, vector<1x32x32xbf16>
    %21 = vector.shape_cast %20 : vector<1x32x32xbf16> to vector<32x32xbf16>
    %cst_9 = arith.constant dense<0.000000e+00> : vector<16x32xf32>
    %22 = tpu.matmul %14, %21, %cst_9 {dimension_numbers = #tpu.dot_dimension_numbers<[1], [0], [0], [1], [0, 0, 1, 1], [], []>} : vector<16x32xbf16>, vector<32x32xbf16>, vector<16x32xf32> -> vector<16x32xf32>
    %23 = vector.broadcast %2 : vector<1x32xf32> to vector<16x32xf32>
    %24 = arith.addf %22, %23 : vector<16x32xf32>
    %c2 = arith.constant 2 : index
    %c0_10 = arith.constant 0 : index
    %c0_11 = arith.constant 0 : index
    %25 = vector.load %arg2[%c2, %c0_10, %c0_11] : memref<4x32x32xbf16, #tpu.memory_space<vmem>>, vector<1x32x32xbf16>
    %26 = vector.shape_cast %25 : vector<1x32x32xbf16> to vector<32x32xbf16>
    %cst_12 = arith.constant dense<0.000000e+00> : vector<16x32xf32>
    %27 = tpu.matmul %14, %26, %cst_12 {dimension_numbers = #tpu.dot_dimension_numbers<[1], [0], [0], [1], [0, 0, 1, 1], [], []>} : vector<16x32xbf16>, vector<32x32xbf16>, vector<16x32xf32> -> vector<16x32xf32>
    %28 = vector.broadcast %3 : vector<1x32xf32> to vector<16x32xf32>
    %29 = arith.addf %27, %28 : vector<16x32xf32>
    %cst_13 = arith.constant 0.353553385 : f32
    %30 = vector.broadcast %cst_13 : f32 to vector<16x32xf32>
    %31 = arith.mulf %19, %30 : vector<16x32xf32>
    %32 = vector.shape_cast %31 : vector<16x32xf32> to vector<2x8x32xf32>
    %33 = tpu.transpose %32, [1, 0, 2] : vector<2x8x32xf32> -> vector<8x2x32xf32>
    %34 = arith.truncf %33 : vector<8x2x32xf32> to vector<8x2x32xbf16>
    %35 = vector.shape_cast %24 : vector<16x32xf32> to vector<2x8x32xf32>
    %36 = tpu.transpose %35, [1, 0, 2] : vector<2x8x32xf32> -> vector<8x2x32xf32>
    %37 = arith.truncf %36 : vector<8x2x32xf32> to vector<8x2x32xbf16>
    %38 = vector.shape_cast %29 : vector<16x32xf32> to vector<2x8x32xf32>
    %39 = tpu.transpose %38, [1, 0, 2] : vector<2x8x32xf32> -> vector<8x2x32xf32>
    %40 = arith.truncf %39 : vector<8x2x32xf32> to vector<8x2x32xbf16>
    %41 = vector.extract_strided_slice %34 {offsets = [0, 0, 0], sizes = [8, 2, 8], strides = [1, 1, 1]} : vector<8x2x32xbf16> to vector<8x2x8xbf16>
    %42 = vector.extract_strided_slice %37 {offsets = [0, 0, 0], sizes = [8, 2, 8], strides = [1, 1, 1]} : vector<8x2x32xbf16> to vector<8x2x8xbf16>
    "tpu.trace_start"() <{level = 10 : i32, message = "ntd,nsd->nts"}> : () -> ()
    %cst_14 = arith.constant dense<0.000000e+00> : vector<8x2x2xf32>
    %43 = tpu.matmul %41, %42, %cst_14 {dimension_numbers = #tpu.dot_dimension_numbers<[2], [2], [1], [1], [0, 0, 0, 1, 1, 1], [0], [0]>} : vector<8x2x8xbf16>, vector<8x2x8xbf16>, vector<8x2x2xf32> -> vector<8x2x2xf32>
    "tpu.trace_stop"() : () -> ()
    %cst_15 = arith.constant dense<0xFF800000> : vector<8x2xf32>
    %44 = vector.multi_reduction <maximumf>, %43, %cst_15 [2] : vector<8x2x2xf32> to vector<8x2xf32>
    %45 = vector.shape_cast %44 : vector<8x2xf32> to vector<8x2x1xf32>
    %46 = vector.broadcast %45 : vector<8x2x1xf32> to vector<8x2x2xf32>
    %47 = arith.subf %43, %46 : vector<8x2x2xf32>
    %48 = math.exp %47 : vector<8x2x2xf32>
    %cst_16 = arith.constant dense<0.000000e+00> : vector<8x2xf32>
    %49 = vector.multi_reduction <add>, %48, %cst_16 [2] : vector<8x2x2xf32> to vector<8x2xf32>
    %50 = vector.shape_cast %49 : vector<8x2xf32> to vector<8x2x1xf32>
    %51 = tpu.reciprocal %50 {approx = true} : vector<8x2x1xf32> -> vector<8x2x1xf32>
    %52 = vector.broadcast %51 : vector<8x2x1xf32> to vector<8x2x2xf32>
    %53 = arith.mulf %48, %52 : vector<8x2x2xf32>
    %54 = arith.truncf %53 : vector<8x2x2xf32> to vector<8x2x2xbf16>
    %55 = vector.extract_strided_slice %40 {offsets = [0, 0, 0], sizes = [8, 2, 8], strides = [1, 1, 1]} : vector<8x2x32xbf16> to vector<8x2x8xbf16>
    "tpu.trace_start"() <{level = 10 : i32, message = "nts,nsd->ntd"}> : () -> ()
    %cst_17 = arith.constant dense<0.000000e+00> : vector<8x2x8xf32>
    %56 = tpu.matmul %54, %55, %cst_17 {dimension_numbers = #tpu.dot_dimension_numbers<[2], [1], [1], [2], [0, 0, 0, 1, 1, 2], [0], [0]>} : vector<8x2x2xbf16>, vector<8x2x8xbf16>, vector<8x2x8xf32> -> vector<8x2x8xf32>
    "tpu.trace_stop"() : () -> ()
    %57 = vector.extract_strided_slice %34 {offsets = [0, 0, 8], sizes = [8, 2, 8], strides = [1, 1, 1]} : vector<8x2x32xbf16> to vector<8x2x8xbf16>
    %58 = vector.extract_strided_slice %37 {offsets = [0, 0, 8], sizes = [8, 2, 8], strides = [1, 1, 1]} : vector<8x2x32xbf16> to vector<8x2x8xbf16>
    "tpu.trace_start"() <{level = 10 : i32, message = "ntd,nsd->nts"}> : () -> ()
    %cst_18 = arith.constant dense<0.000000e+00> : vector<8x2x2xf32>
    %59 = tpu.matmul %57, %58, %cst_18 {dimension_numbers = #tpu.dot_dimension_numbers<[2], [2], [1], [1], [0, 0, 0, 1, 1, 1], [0], [0]>} : vector<8x2x8xbf16>, vector<8x2x8xbf16>, vector<8x2x2xf32> -> vector<8x2x2xf32>
    "tpu.trace_stop"() : () -> ()
    %cst_19 = arith.constant dense<0xFF800000> : vector<8x2xf32>
    %60 = vector.multi_reduction <maximumf>, %59, %cst_19 [2] : vector<8x2x2xf32> to vector<8x2xf32>
    %61 = vector.shape_cast %60 : vector<8x2xf32> to vector<8x2x1xf32>
    %62 = vector.broadcast %61 : vector<8x2x1xf32> to vector<8x2x2xf32>
    %63 = arith.subf %59, %62 : vector<8x2x2xf32>
    %64 = math.exp %63 : vector<8x2x2xf32>
    %cst_20 = arith.constant dense<0.000000e+00> : vector<8x2xf32>
    %65 = vector.multi_reduction <add>, %64, %cst_20 [2] : vector<8x2x2xf32> to vector<8x2xf32>
    %66 = vector.shape_cast %65 : vector<8x2xf32> to vector<8x2x1xf32>
    %67 = tpu.reciprocal %66 {approx = true} : vector<8x2x1xf32> -> vector<8x2x1xf32>
    %68 = vector.broadcast %67 : vector<8x2x1xf32> to vector<8x2x2xf32>
    %69 = arith.mulf %64, %68 : vector<8x2x2xf32>
    %70 = arith.truncf %69 : vector<8x2x2xf32> to vector<8x2x2xbf16>
    %71 = vector.extract_strided_slice %40 {offsets = [0, 0, 8], sizes = [8, 2, 8], strides = [1, 1, 1]} : vector<8x2x32xbf16> to vector<8x2x8xbf16>
    "tpu.trace_start"() <{level = 10 : i32, message = "nts,nsd->ntd"}> : () -> ()
    %cst_21 = arith.constant dense<0.000000e+00> : vector<8x2x8xf32>
    %72 = tpu.matmul %70, %71, %cst_21 {dimension_numbers = #tpu.dot_dimension_numbers<[2], [1], [1], [2], [0, 0, 0, 1, 1, 2], [0], [0]>} : vector<8x2x2xbf16>, vector<8x2x8xbf16>, vector<8x2x8xf32> -> vector<8x2x8xf32>
    "tpu.trace_stop"() : () -> ()
    %73 = vector.extract_strided_slice %34 {offsets = [0, 0, 16], sizes = [8, 2, 8], strides = [1, 1, 1]} : vector<8x2x32xbf16> to vector<8x2x8xbf16>
    %74 = vector.extract_strided_slice %37 {offsets = [0, 0, 16], sizes = [8, 2, 8], strides = [1, 1, 1]} : vector<8x2x32xbf16> to vector<8x2x8xbf16>
    "tpu.trace_start"() <{level = 10 : i32, message = "ntd,nsd->nts"}> : () -> ()
    %cst_22 = arith.constant dense<0.000000e+00> : vector<8x2x2xf32>
    %75 = tpu.matmul %73, %74, %cst_22 {dimension_numbers = #tpu.dot_dimension_numbers<[2], [2], [1], [1], [0, 0, 0, 1, 1, 1], [0], [0]>} : vector<8x2x8xbf16>, vector<8x2x8xbf16>, vector<8x2x2xf32> -> vector<8x2x2xf32>
    "tpu.trace_stop"() : () -> ()
    %cst_23 = arith.constant dense<0xFF800000> : vector<8x2xf32>
    %76 = vector.multi_reduction <maximumf>, %75, %cst_23 [2] : vector<8x2x2xf32> to vector<8x2xf32>
    %77 = vector.shape_cast %76 : vector<8x2xf32> to vector<8x2x1xf32>
    %78 = vector.broadcast %77 : vector<8x2x1xf32> to vector<8x2x2xf32>
    %79 = arith.subf %75, %78 : vector<8x2x2xf32>
    %80 = math.exp %79 : vector<8x2x2xf32>
    %cst_24 = arith.constant dense<0.000000e+00> : vector<8x2xf32>
    %81 = vector.multi_reduction <add>, %80, %cst_24 [2] : vector<8x2x2xf32> to vector<8x2xf32>
    %82 = vector.shape_cast %81 : vector<8x2xf32> to vector<8x2x1xf32>
    %83 = tpu.reciprocal %82 {approx = true} : vector<8x2x1xf32> -> vector<8x2x1xf32>
    %84 = vector.broadcast %83 : vector<8x2x1xf32> to vector<8x2x2xf32>
    %85 = arith.mulf %80, %84 : vector<8x2x2xf32>
    %86 = arith.truncf %85 : vector<8x2x2xf32> to vector<8x2x2xbf16>
    %87 = vector.extract_strided_slice %40 {offsets = [0, 0, 16], sizes = [8, 2, 8], strides = [1, 1, 1]} : vector<8x2x32xbf16> to vector<8x2x8xbf16>
    "tpu.trace_start"() <{level = 10 : i32, message = "nts,nsd->ntd"}> : () -> ()
    %cst_25 = arith.constant dense<0.000000e+00> : vector<8x2x8xf32>
    %88 = tpu.matmul %86, %87, %cst_25 {dimension_numbers = #tpu.dot_dimension_numbers<[2], [1], [1], [2], [0, 0, 0, 1, 1, 2], [0], [0]>} : vector<8x2x2xbf16>, vector<8x2x8xbf16>, vector<8x2x8xf32> -> vector<8x2x8xf32>
    "tpu.trace_stop"() : () -> ()
    %89 = vector.extract_strided_slice %34 {offsets = [0, 0, 24], sizes = [8, 2, 8], strides = [1, 1, 1]} : vector<8x2x32xbf16> to vector<8x2x8xbf16>
    %90 = vector.extract_strided_slice %37 {offsets = [0, 0, 24], sizes = [8, 2, 8], strides = [1, 1, 1]} : vector<8x2x32xbf16> to vector<8x2x8xbf16>
    "tpu.trace_start"() <{level = 10 : i32, message = "ntd,nsd->nts"}> : () -> ()
    %cst_26 = arith.constant dense<0.000000e+00> : vector<8x2x2xf32>
    %91 = tpu.matmul %89, %90, %cst_26 {dimension_numbers = #tpu.dot_dimension_numbers<[2], [2], [1], [1], [0, 0, 0, 1, 1, 1], [0], [0]>} : vector<8x2x8xbf16>, vector<8x2x8xbf16>, vector<8x2x2xf32> -> vector<8x2x2xf32>
    "tpu.trace_stop"() : () -> ()
    %cst_27 = arith.constant dense<0xFF800000> : vector<8x2xf32>
    %92 = vector.multi_reduction <maximumf>, %91, %cst_27 [2] : vector<8x2x2xf32> to vector<8x2xf32>
    %93 = vector.shape_cast %92 : vector<8x2xf32> to vector<8x2x1xf32>
    %94 = vector.broadcast %93 : vector<8x2x1xf32> to vector<8x2x2xf32>
    %95 = arith.subf %91, %94 : vector<8x2x2xf32>
    %96 = math.exp %95 : vector<8x2x2xf32>
    %cst_28 = arith.constant dense<0.000000e+00> : vector<8x2xf32>
    %97 = vector.multi_reduction <add>, %96, %cst_28 [2] : vector<8x2x2xf32> to vector<8x2xf32>
    %98 = vector.shape_cast %97 : vector<8x2xf32> to vector<8x2x1xf32>
    %99 = tpu.reciprocal %98 {approx = true} : vector<8x2x1xf32> -> vector<8x2x1xf32>
    %100 = vector.broadcast %99 : vector<8x2x1xf32> to vector<8x2x2xf32>
    %101 = arith.mulf %96, %100 : vector<8x2x2xf32>
    %102 = arith.truncf %101 : vector<8x2x2xf32> to vector<8x2x2xbf16>
    %103 = vector.extract_strided_slice %40 {offsets = [0, 0, 24], sizes = [8, 2, 8], strides = [1, 1, 1]} : vector<8x2x32xbf16> to vector<8x2x8xbf16>
    "tpu.trace_start"() <{level = 10 : i32, message = "nts,nsd->ntd"}> : () -> ()
    %cst_29 = arith.constant dense<0.000000e+00> : vector<8x2x8xf32>
    %104 = tpu.matmul %102, %103, %cst_29 {dimension_numbers = #tpu.dot_dimension_numbers<[2], [1], [1], [2], [0, 0, 0, 1, 1, 2], [0], [0]>} : vector<8x2x2xbf16>, vector<8x2x8xbf16>, vector<8x2x8xf32> -> vector<8x2x8xf32>
    "tpu.trace_stop"() : () -> ()
    %105 = tpu.concatenate %56, %72, %88, %104 in 2 : vector<8x2x8xf32>, vector<8x2x8xf32>, vector<8x2x8xf32>, vector<8x2x8xf32> -> vector<8x2x32xf32>
    %106 = tpu.transpose %105, [1, 0, 2] : vector<8x2x32xf32> -> vector<2x8x32xf32>
    %107 = vector.shape_cast %106 : vector<2x8x32xf32> to vector<16x32xf32>
    %108 = arith.truncf %107 : vector<16x32xf32> to vector<16x32xbf16>
    %c3 = arith.constant 3 : index
    %c0_30 = arith.constant 0 : index
    %c0_31 = arith.constant 0 : index
    %109 = vector.load %arg2[%c3, %c0_30, %c0_31] : memref<4x32x32xbf16, #tpu.memory_space<vmem>>, vector<1x32x32xbf16>
    %110 = vector.shape_cast %109 : vector<1x32x32xbf16> to vector<32x32xbf16>
    %cst_32 = arith.constant dense<0.000000e+00> : vector<16x32xf32>
    %111 = tpu.matmul %108, %110, %cst_32 {dimension_numbers = #tpu.dot_dimension_numbers<[1], [0], [0], [1], [0, 0, 1, 1], [], []>} : vector<16x32xbf16>, vector<32x32xbf16>, vector<16x32xf32> -> vector<16x32xf32>
    %112 = vector.broadcast %4 : vector<1x32xf32> to vector<16x32xf32>
    %113 = arith.addf %111, %112 : vector<16x32xf32>
    %114 = arith.addf %13, %113 : vector<16x32xf32>
    %cst_33 = arith.constant dense<0.000000e+00> : vector<16xf32>
    %115 = vector.multi_reduction <add>, %114, %cst_33 [1] : vector<16x32xf32> to vector<16xf32>
    %116 = vector.shape_cast %115 : vector<16xf32> to vector<16x1xf32>
    %cst_34 = arith.constant 3.200000e+01 : f32
    %117 = vector.broadcast %cst_34 : f32 to vector<16x1xf32>
    %118 = arith.divf %116, %117 : vector<16x1xf32>
    %119 = vector.broadcast %118 : vector<16x1xf32> to vector<16x32xf32>
    %120 = arith.subf %114, %119 : vector<16x32xf32>
    %121 = arith.mulf %120, %120 : vector<16x32xf32>
    %cst_35 = arith.constant dense<0.000000e+00> : vector<16xf32>
    %122 = vector.multi_reduction <add>, %121, %cst_35 [1] : vector<16x32xf32> to vector<16xf32>
    %123 = vector.shape_cast %122 : vector<16xf32> to vector<16x1xf32>
    %cst_36 = arith.constant 3.200000e+01 : f32
    %124 = vector.broadcast %cst_36 : f32 to vector<16x1xf32>
    %125 = arith.divf %123, %124 : vector<16x1xf32>
    %126 = vector.broadcast %118 : vector<16x1xf32> to vector<16x32xf32>
    %127 = arith.subf %114, %126 : vector<16x32xf32>
    %cst_37 = arith.constant 9.99999974E-6 : f32
    %128 = vector.broadcast %cst_37 : f32 to vector<16x1xf32>
    %129 = arith.addf %125, %128 : vector<16x1xf32>
    %130 = math.rsqrt %129 : vector<16x1xf32>
    %131 = vector.broadcast %130 : vector<16x1xf32> to vector<16x32xf32>
    %132 = arith.mulf %127, %131 : vector<16x32xf32>
    %133 = vector.broadcast %5 : vector<1x32xf32> to vector<16x32xf32>
    %134 = arith.mulf %132, %133 : vector<16x32xf32>
    %135 = vector.broadcast %6 : vector<1x32xf32> to vector<16x32xf32>
    %136 = arith.addf %134, %135 : vector<16x32xf32>
    %137 = arith.truncf %136 : vector<16x32xf32> to vector<16x32xbf16>
    %c0_38 = arith.constant 0 : index
    %c0_39 = arith.constant 0 : index
    %138 = vector.load %arg3[%c0_38, %c0_39] : memref<32x2048xbf16, #tpu.memory_space<vmem>>, vector<32x2048xbf16>
    %cst_40 = arith.constant dense<0.000000e+00> : vector<16x2048xf32>
    %139 = tpu.matmul %137, %138, %cst_40 {dimension_numbers = #tpu.dot_dimension_numbers<[1], [0], [0], [1], [0, 0, 1, 1], [], []>} : vector<16x32xbf16>, vector<32x2048xbf16>, vector<16x2048xf32> -> vector<16x2048xf32>
    %c0_41 = arith.constant 0 : index
    %c0_42 = arith.constant 0 : index
    %140 = vector.load %arg6[%c0_41, %c0_42] : memref<1x2048xf32, #tpu.memory_space<vmem>>, vector<1x2048xf32>
    %141 = vector.broadcast %140 : vector<1x2048xf32> to vector<16x2048xf32>
    %142 = arith.addf %139, %141 : vector<16x2048xf32>
    %cst_43 = arith.constant 0.000000e+00 : f32
    %143 = vector.broadcast %cst_43 : f32 to vector<16x2048xf32>
    %144 = arith.maximumf %142, %143 : vector<16x2048xf32>
    %145 = arith.truncf %144 : vector<16x2048xf32> to vector<16x2048xbf16>
    %c0_44 = arith.constant 0 : index
    %c0_45 = arith.constant 0 : index
    %146 = vector.load %arg4[%c0_44, %c0_45] : memref<2048x32xbf16, #tpu.memory_space<vmem>>, vector<2048x32xbf16>
    %cst_46 = arith.constant dense<0.000000e+00> : vector<16x32xf32>
    %147 = tpu.matmul %145, %146, %cst_46 {dimension_numbers = #tpu.dot_dimension_numbers<[1], [0], [0], [1], [0, 0, 1, 1], [], []>} : vector<16x2048xbf16>, vector<2048x32xbf16>, vector<16x32xf32> -> vector<16x32xf32>
    %148 = vector.broadcast %7 : vector<1x32xf32> to vector<16x32xf32>
    %149 = arith.addf %147, %148 : vector<16x32xf32>
    %150 = arith.addf %136, %149 : vector<16x32xf32>
    %cst_47 = arith.constant dense<0.000000e+00> : vector<16xf32>
    %151 = vector.multi_reduction <add>, %150, %cst_47 [1] : vector<16x32xf32> to vector<16xf32>
    %152 = vector.shape_cast %151 : vector<16xf32> to vector<16x1xf32>
    %cst_48 = arith.constant 3.200000e+01 : f32
    %153 = vector.broadcast %cst_48 : f32 to vector<16x1xf32>
    %154 = arith.divf %152, %153 : vector<16x1xf32>
    %155 = vector.broadcast %154 : vector<16x1xf32> to vector<16x32xf32>
    %156 = arith.subf %150, %155 : vector<16x32xf32>
    %157 = arith.mulf %156, %156 : vector<16x32xf32>
    %cst_49 = arith.constant dense<0.000000e+00> : vector<16xf32>
    %158 = vector.multi_reduction <add>, %157, %cst_49 [1] : vector<16x32xf32> to vector<16xf32>
    %159 = vector.shape_cast %158 : vector<16xf32> to vector<16x1xf32>
    %cst_50 = arith.constant 3.200000e+01 : f32
    %160 = vector.broadcast %cst_50 : f32 to vector<16x1xf32>
    %161 = arith.divf %159, %160 : vector<16x1xf32>
    %162 = vector.broadcast %154 : vector<16x1xf32> to vector<16x32xf32>
    %163 = arith.subf %150, %162 : vector<16x32xf32>
    %cst_51 = arith.constant 9.99999974E-6 : f32
    %164 = vector.broadcast %cst_51 : f32 to vector<16x1xf32>
    %165 = arith.addf %161, %164 : vector<16x1xf32>
    %166 = math.rsqrt %165 : vector<16x1xf32>
    %167 = vector.broadcast %166 : vector<16x1xf32> to vector<16x32xf32>
    %168 = arith.mulf %163, %167 : vector<16x32xf32>
    %169 = vector.broadcast %8 : vector<1x32xf32> to vector<16x32xf32>
    %170 = arith.mulf %168, %169 : vector<16x32xf32>
    %171 = vector.broadcast %9 : vector<1x32xf32> to vector<16x32xf32>
    %172 = arith.addf %170, %171 : vector<16x32xf32>
    %173 = vector.shape_cast %172 : vector<16x32xf32> to vector<2x8x32xf32>
    %174 = vector.shape_cast %10 : vector<1x32xf32> to vector<1x1x32xf32>
    %175 = vector.broadcast %174 : vector<1x1x32xf32> to vector<2x8x32xf32>
    %176 = arith.mulf %173, %175 : vector<2x8x32xf32>
    %cst_52 = arith.constant dense<0.000000e+00> : vector<2x8xf32>
    %177 = vector.multi_reduction <add>, %176, %cst_52 [2] : vector<2x8x32xf32> to vector<2x8xf32>
    %178 = vector.broadcast %11 : vector<1x1xf32> to vector<2x8xf32>
    %179 = arith.addf %177, %178 : vector<2x8xf32>
    %c0_53 = arith.constant 0 : index
    %c0_54 = arith.constant 0 : index
    %180 = vector.load %arg7[%c0_53, %c0_54] : memref<2x8xf32, #tpu.memory_space<vmem>>, vector<2x8xf32>
    tpu.vector_store %arg7[%c0_53, %c0_54], %179 {strides = array<i32>} : memref<2x8xf32, #tpu.memory_space<vmem>>, vector<2x8xf32>,
    return
  }
  func.func @transform_0(%arg0: i32) -> (i32, i32, i32) {
    %c0_i32 = arith.constant 0 : i32
    %c0_i32_0 = arith.constant 0 : i32
    %c0_i32_1 = arith.constant 0 : i32
    return %c0_i32, %arg0, %c0_i32_0 : i32, i32, i32
  }
  func.func @transform_1(%arg0: i32) -> (i32, i32, i32) {
    %c0_i32 = arith.constant 0 : i32
    %c0_i32_0 = arith.constant 0 : i32
    %c0_i32_1 = arith.constant 0 : i32
    %c0_i32_2 = arith.constant 0 : i32
    return %c0_i32, %c0_i32_0, %c0_i32_1 : i32, i32, i32
  }
  func.func @transform_2(%arg0: i32) -> (i32, i32) {
    %c0_i32 = arith.constant 0 : i32
    %c0_i32_0 = arith.constant 0 : i32
    %c0_i32_1 = arith.constant 0 : i32
    return %c0_i32, %c0_i32_0 : i32, i32
  }
  func.func @transform_3(%arg0: i32) -> (i32, i32) {
    %c0_i32 = arith.constant 0 : i32
    %c0_i32_0 = arith.constant 0 : i32
    %c0_i32_1 = arith.constant 0 : i32
    return %c0_i32, %c0_i32_0 : i32, i32
  }
  func.func @transform_4(%arg0: i32) -> (i32, i32) {
    %c0_i32 = arith.constant 0 : i32
    %c0_i32_0 = arith.constant 0 : i32
    %c0_i32_1 = arith.constant 0 : i32
    return %c0_i32, %c0_i32_0 : i32, i32
  }
  func.func @transform_5(%arg0: i32) -> (i32, i32) {
    %c0_i32 = arith.constant 0 : i32
    %c0_i32_0 = arith.constant 0 : i32
    %c0_i32_1 = arith.constant 0 : i32
    return %c0_i32, %c0_i32_0 : i32, i32
  }
  func.func @transform_6(%arg0: i32) -> (i32, i32) {
    %c0_i32 = arith.constant 0 : i32
    %c0_i32_0 = arith.constant 0 : i32
    return %c0_i32, %arg0 : i32, i32
  }
}

module attributes {stable_mosaic.version = 11 : i64} {
  func.func @_encoder_pool_kernel(%arg0: i32, %arg1: memref<2x8x32xf32, #tpu.memory_space<vmem>>, %arg2: memref<4x32x32xbf16, #tpu.memory_space<vmem>>, %arg3: memref<32x2048xbf16, #tpu.memory_space<vmem>>, %arg4: memref<2048x32xbf16, #tpu.memory_space<vmem>>, %arg5: memref<11x32xf32, #tpu.memory_space<vmem>>, %arg6: memref<1x2048xf32, #tpu.memory_space<vmem>>, %arg7: memref<2x8xf32, #tpu.memory_space<vmem>>) attributes {dimension_semantics = [#tpu.dimension_semantics<parallel>], iteration_bounds = array<i64: 1>, scalar_prefetch = 0 : i64, scratch_operands = 0 : i64, tpu.core_type = #tpu.core_type<tc>, window_params = [{transform_indices = @transform_0, window_bounds = array<i64: 2, 8, 32>}, {pipeline_mode = #tpu.pipeline_mode<synchronous>, transform_indices = @transform_1, window_bounds = array<i64: 4, 32, 32>}, {pipeline_mode = #tpu.pipeline_mode<synchronous>, transform_indices = @transform_2, window_bounds = array<i64: 32, 2048>}, {pipeline_mode = #tpu.pipeline_mode<synchronous>, transform_indices = @transform_3, window_bounds = array<i64: 2048, 32>}, {pipeline_mode = #tpu.pipeline_mode<synchronous>, transform_indices = @transform_4, window_bounds = array<i64: 11, 32>}, {pipeline_mode = #tpu.pipeline_mode<synchronous>, transform_indices = @transform_5, window_bounds = array<i64: 1, 2048>}, {transform_indices = @transform_6, window_bounds = array<i64: 2, 8>}]} {
    %c0 = arith.constant 0 : index
    %c0_0 = arith.constant 0 : index
    %0 = vector.load %arg5[%c0, %c0_0] : memref<11x32xf32, #tpu.memory_space<vmem>>, vector<11x32xf32>
    %1 = vector.extract_strided_slice %0 {offsets = [0, 0], sizes = [1, 32], strides = [1, 1]} : vector<11x32xf32> to vector<1x32xf32>
    %2 = vector.extract_strided_slice %0 {offsets = [1, 0], sizes = [1, 32], strides = [1, 1]} : vector<11x32xf32> to vector<1x32xf32>
    %3 = vector.extract_strided_slice %0 {offsets = [2, 0], sizes = [1, 32], strides = [1, 1]} : vector<11x32xf32> to vector<1x32xf32>
    %4 = vector.extract_strided_slice %0 {offsets = [3, 0], sizes = [1, 32], strides = [1, 1]} : vector<11x32xf32> to vector<1x32xf32>
    %5 = vector.extract_strided_slice %0 {offsets = [4, 0], sizes = [1, 32], strides = [1, 1]} : vector<11x32xf32> to vector<1x32xf32>
    %6 = vector.extract_strided_slice %0 {offsets = [5, 0], sizes = [1, 32], strides = [1, 1]} : vector<11x32xf32> to vector<1x32xf32>
    %7 = vector.extract_strided_slice %0 {offsets = [6, 0], sizes = [1, 32], strides = [1, 1]} : vector<11x32xf32> to vector<1x32xf32>
    %8 = vector.extract_strided_slice %0 {offsets = [7, 0], sizes = [1, 32], strides = [1, 1]} : vector<11x32xf32> to vector<1x32xf32>
    %9 = vector.extract_strided_slice %0 {offsets = [8, 0], sizes = [1, 32], strides = [1, 1]} : vector<11x32xf32> to vector<1x32xf32>
    %10 = vector.extract_strided_slice %0 {offsets = [9, 0], sizes = [1, 32], strides = [1, 1]} : vector<11x32xf32> to vector<1x32xf32>
    %11 = vector.extract_strided_slice %0 {offsets = [10, 0], sizes = [1, 1], strides = [1, 1]} : vector<11x32xf32> to vector<1x1xf32>
    %c0_1 = arith.constant 0 : index
    %c0_2 = arith.constant 0 : index
    %c0_3 = arith.constant 0 : index
    %12 = vector.load %arg1[%c0_1, %c0_2, %c0_3] : memref<2x8x32xf32, #tpu.memory_space<vmem>>, vector<2x8x32xf32>
    %13 = vector.shape_cast %12 : vector<2x8x32xf32> to vector<16x32xf32>
    %14 = arith.truncf %13 : vector<16x32xf32> to vector<16x32xbf16>
    %c0_4 = arith.constant 0 : index
    %c0_5 = arith.constant 0 : index
    %c0_6 = arith.constant 0 : index
    %15 = vector.load %arg2[%c0_4, %c0_5, %c0_6] : memref<4x32x32xbf16, #tpu.memory_space<vmem>>, vector<1x32x32xbf16>
    %16 = vector.shape_cast %15 : vector<1x32x32xbf16> to vector<32x32xbf16>
    %cst = arith.constant dense<0.000000e+00> : vector<16x32xf32>
    %17 = tpu.matmul %14, %16, %cst {dimension_numbers = #tpu.dot_dimension_numbers<[1], [0], [0], [1], [0, 0, 1, 1], [], []>} : vector<16x32xbf16>, vector<32x32xbf16>, vector<16x32xf32> -> vector<16x32xf32>
    %18 = vector.broadcast %1 : vector<1x32xf32> to vector<16x32xf32>
    %19 = arith.addf %17, %18 : vector<16x32xf32>
    %c1 = arith.constant 1 : index
    %c0_7 = arith.constant 0 : index
    %c0_8 = arith.constant 0 : index
    %20 = vector.load %arg2[%c1, %c0_7, %c0_8] : memref<4x32x32xbf16, #tpu.memory_space<vmem>>, vector<1x32x32xbf16>
    %21 = vector.shape_cast %20 : vector<1x32x32xbf16> to vector<32x32xbf16>
    %cst_9 = arith.constant dense<0.000000e+00> : vector<16x32xf32>
    %22 = tpu.matmul %14, %21, %cst_9 {dimension_numbers = #tpu.dot_dimension_numbers<[1], [0], [0], [1], [0, 0, 1, 1], [], []>} : vector<16x32xbf16>, vector<32x32xbf16>, vector<16x32xf32> -> vector<16x32xf32>
    %23 = vector.broadcast %2 : vector<1x32xf32> to vector<16x32xf32>
    %24 = arith.addf %22, %23 : vector<16x32xf32>
    %c2 = arith.constant 2 : index
    %c0_10 = arith.constant 0 : index
    %c0_11 = arith.constant 0 : index
    %25 = vector.load %arg2[%c2, %c0_10, %c0_11] : memref<4x32x32xbf16, #tpu.memory_space<vmem>>, vector<1x32x32xbf16>
    %26 = vector.shape_cast %25 : vector<1x32x32xbf16> to vector<32x32xbf16>
    %cst_12 = arith.constant dense<0.000000e+00> : vector<16x32xf32>
    %27 = tpu.matmul %14, %26, %cst_12 {dimension_numbers = #tpu.dot_dimension_numbers<[1], [0], [0], [1], [0, 0, 1, 1], [], []>} : vector<16x32xbf16>, vector<32x32xbf16>, vector<16x32xf32> -> vector<16x32xf32>
    %28 = vector.broadcast %3 : vector<1x32xf32> to vector<16x32xf32>
    %29 = arith.addf %27, %28 : vector<16x32xf32>
    %cst_13 = arith.constant 0.353553385 : f32
    %30 = vector.broadcast %cst_13 : f32 to vector<16x32xf32>
    %31 = arith.mulf %19, %30 : vector<16x32xf32>
    %32 = vector.shape_cast %31 : vector<16x32xf32> to vector<2x8x32xf32>
    %33 = tpu.transpose %32, [1, 0, 2] : vector<2x8x32xf32> -> vector<8x2x32xf32>
    %34 = arith.truncf %33 : vector<8x2x32xf32> to vector<8x2x32xbf16>
    %35 = vector.shape_cast %24 : vector<16x32xf32> to vector<2x8x32xf32>
    %36 = tpu.transpose %35, [1, 0, 2] : vector<2x8x32xf32> -> vector<8x2x32xf32>
    %37 = arith.truncf %36 : vector<8x2x32xf32> to vector<8x2x32xbf16>
    %38 = vector.shape_cast %29 : vector<16x32xf32> to vector<2x8x32xf32>
    %39 = tpu.transpose %38, [1, 0, 2] : vector<2x8x32xf32> -> vector<8x2x32xf32>
    %40 = arith.truncf %39 : vector<8x2x32xf32> to vector<8x2x32xbf16>
    %41 = vector.extract_strided_slice %34 {offsets = [0, 0, 0], sizes = [8, 2, 8], strides = [1, 1, 1]} : vector<8x2x32xbf16> to vector<8x2x8xbf16>
    %42 = vector.extract_strided_slice %37 {offsets = [0, 0, 0], sizes = [8, 2, 8], strides = [1, 1, 1]} : vector<8x2x32xbf16> to vector<8x2x8xbf16>
    "tpu.trace_start"() <{level = 10 : i32, message = "ntd,nsd->nts"}> : () -> ()
    %cst_14 = arith.constant dense<0.000000e+00> : vector<8x2x2xf32>
    %43 = tpu.matmul %41, %42, %cst_14 {dimension_numbers = #tpu.dot_dimension_numbers<[2], [2], [1], [1], [0, 0, 0, 1, 1, 1], [0], [0]>} : vector<8x2x8xbf16>, vector<8x2x8xbf16>, vector<8x2x2xf32> -> vector<8x2x2xf32>
    "tpu.trace_stop"() : () -> ()
    %cst_15 = arith.constant dense<0xFF800000> : vector<8x2xf32>
    %44 = vector.multi_reduction <maximumf>, %43, %cst_15 [2] : vector<8x2x2xf32> to vector<8x2xf32>
    %45 = vector.shape_cast %44 : vector<8x2xf32> to vector<8x2x1xf32>
    %46 = vector.broadcast %45 : vector<8x2x1xf32> to vector<8x2x2xf32>
    %47 = arith.subf %43, %46 : vector<8x2x2xf32>
    %48 = math.exp %47 : vector<8x2x2xf32>
    %cst_16 = arith.constant dense<0.000000e+00> : vector<8x2xf32>
    %49 = vector.multi_reduction <add>, %48, %cst_16 [2] : vector<8x2x2xf32> to vector<8x2xf32>
    %50 = vector.shape_cast %49 : vector<8x2xf32> to vector<8x2x1xf32>
    %51 = tpu.reciprocal %50 {approx = true} : vector<8x2x1xf32> -> vector<8x2x1xf32>
    %52 = vector.broadcast %51 : vector<8x2x1xf32> to vector<8x2x2xf32>
    %53 = arith.mulf %48, %52 : vector<8x2x2xf32>
    %54 = arith.truncf %53 : vector<8x2x2xf32> to vector<8x2x2xbf16>
    %55 = vector.extract_strided_slice %40 {offsets = [0, 0, 0], sizes = [8, 2, 8], strides = [1, 1, 1]} : vector<8x2x32xbf16> to vector<8x2x8xbf16>
    "tpu.trace_start"() <{level = 10 : i32, message = "nts,nsd->ntd"}> : () -> ()
    %cst_17 = arith.constant dense<0.000000e+00> : vector<8x2x8xf32>
    %56 = tpu.matmul %54, %55, %cst_17 {dimension_numbers = #tpu.dot_dimension_numbers<[2], [1], [1], [2], [0, 0, 0, 1, 1, 2], [0], [0]>} : vector<8x2x2xbf16>, vector<8x2x8xbf16>, vector<8x2x8xf32> -> vector<8x2x8xf32>
    "tpu.trace_stop"() : () -> ()
    %57 = vector.extract_strided_slice %34 {offsets = [0, 0, 8], sizes = [8, 2, 8], strides = [1, 1, 1]} : vector<8x2x32xbf16> to vector<8x2x8xbf16>
    %58 = vector.extract_strided_slice %37 {offsets = [0, 0, 8], sizes = [8, 2, 8], strides = [1, 1, 1]} : vector<8x2x32xbf16> to vector<8x2x8xbf16>
    "tpu.trace_start"() <{level = 10 : i32, message = "ntd,nsd->nts"}> : () -> ()
    %cst_18 = arith.constant dense<0.000000e+00> : vector<8x2x2xf32>
    %59 = tpu.matmul %57, %58, %cst_18 {dimension_numbers = #tpu.dot_dimension_numbers<[2], [2], [1], [1], [0, 0, 0, 1, 1, 1], [0], [0]>} : vector<8x2x8xbf16>, vector<8x2x8xbf16>, vector<8x2x2xf32> -> vector<8x2x2xf32>
    "tpu.trace_stop"() : () -> ()
    %cst_19 = arith.constant dense<0xFF800000> : vector<8x2xf32>
    %60 = vector.multi_reduction <maximumf>, %59, %cst_19 [2] : vector<8x2x2xf32> to vector<8x2xf32>
    %61 = vector.shape_cast %60 : vector<8x2xf32> to vector<8x2x1xf32>
    %62 = vector.broadcast %61 : vector<8x2x1xf32> to vector<8x2x2xf32>
    %63 = arith.subf %59, %62 : vector<8x2x2xf32>
    %64 = math.exp %63 : vector<8x2x2xf32>
    %cst_20 = arith.constant dense<0.000000e+00> : vector<8x2xf32>
    %65 = vector.multi_reduction <add>, %64, %cst_20 [2] : vector<8x2x2xf32> to vector<8x2xf32>
    %66 = vector.shape_cast %65 : vector<8x2xf32> to vector<8x2x1xf32>
    %67 = tpu.reciprocal %66 {approx = true} : vector<8x2x1xf32> -> vector<8x2x1xf32>
    %68 = vector.broadcast %67 : vector<8x2x1xf32> to vector<8x2x2xf32>
    %69 = arith.mulf %64, %68 : vector<8x2x2xf32>
    %70 = arith.truncf %69 : vector<8x2x2xf32> to vector<8x2x2xbf16>
    %71 = vector.extract_strided_slice %40 {offsets = [0, 0, 8], sizes = [8, 2, 8], strides = [1, 1, 1]} : vector<8x2x32xbf16> to vector<8x2x8xbf16>
    "tpu.trace_start"() <{level = 10 : i32, message = "nts,nsd->ntd"}> : () -> ()
    %cst_21 = arith.constant dense<0.000000e+00> : vector<8x2x8xf32>
    %72 = tpu.matmul %70, %71, %cst_21 {dimension_numbers = #tpu.dot_dimension_numbers<[2], [1], [1], [2], [0, 0, 0, 1, 1, 2], [0], [0]>} : vector<8x2x2xbf16>, vector<8x2x8xbf16>, vector<8x2x8xf32> -> vector<8x2x8xf32>
    "tpu.trace_stop"() : () -> ()
    %73 = vector.extract_strided_slice %34 {offsets = [0, 0, 16], sizes = [8, 2, 8], strides = [1, 1, 1]} : vector<8x2x32xbf16> to vector<8x2x8xbf16>
    %74 = vector.extract_strided_slice %37 {offsets = [0, 0, 16], sizes = [8, 2, 8], strides = [1, 1, 1]} : vector<8x2x32xbf16> to vector<8x2x8xbf16>
    "tpu.trace_start"() <{level = 10 : i32, message = "ntd,nsd->nts"}> : () -> ()
    %cst_22 = arith.constant dense<0.000000e+00> : vector<8x2x2xf32>
    %75 = tpu.matmul %73, %74, %cst_22 {dimension_numbers = #tpu.dot_dimension_numbers<[2], [2], [1], [1], [0, 0, 0, 1, 1, 1], [0], [0]>} : vector<8x2x8xbf16>, vector<8x2x8xbf16>, vector<8x2x2xf32> -> vector<8x2x2xf32>
    "tpu.trace_stop"() : () -> ()
    %cst_23 = arith.constant dense<0xFF800000> : vector<8x2xf32>
    %76 = vector.multi_reduction <maximumf>, %75, %cst_23 [2] : vector<8x2x2xf32> to vector<8x2xf32>
    %77 = vector.shape_cast %76 : vector<8x2xf32> to vector<8x2x1xf32>
    %78 = vector.broadcast %77 : vector<8x2x1xf32> to vector<8x2x2xf32>
    %79 = arith.subf %75, %78 : vector<8x2x2xf32>
    %80 = math.exp %79 : vector<8x2x2xf32>
    %cst_24 = arith.constant dense<0.000000e+00> : vector<8x2xf32>
    %81 = vector.multi_reduction <add>, %80, %cst_24 [2] : vector<8x2x2xf32> to vector<8x2xf32>
    %82 = vector.shape_cast %81 : vector<8x2xf32> to vector<8x2x1xf32>
    %83 = tpu.reciprocal %82 {approx = true} : vector<8x2x1xf32> -> vector<8x2x1xf32>
    %84 = vector.broadcast %83 : vector<8x2x1xf32> to vector<8x2x2xf32>
    %85 = arith.mulf %80, %84 : vector<8x2x2xf32>
    %86 = arith.truncf %85 : vector<8x2x2xf32> to vector<8x2x2xbf16>
    %87 = vector.extract_strided_slice %40 {offsets = [0, 0, 16], sizes = [8, 2, 8], strides = [1, 1, 1]} : vector<8x2x32xbf16> to vector<8x2x8xbf16>
    "tpu.trace_start"() <{level = 10 : i32, message = "nts,nsd->ntd"}> : () -> ()
    %cst_25 = arith.constant dense<0.000000e+00> : vector<8x2x8xf32>
    %88 = tpu.matmul %86, %87, %cst_25 {dimension_numbers = #tpu.dot_dimension_numbers<[2], [1], [1], [2], [0, 0, 0, 1, 1, 2], [0], [0]>} : vector<8x2x2xbf16>, vector<8x2x8xbf16>, vector<8x2x8xf32> -> vector<8x2x8xf32>
    "tpu.trace_stop"() : () -> ()
    %89 = vector.extract_strided_slice %34 {offsets = [0, 0, 24], sizes = [8, 2, 8], strides = [1, 1, 1]} : vector<8x2x32xbf16> to vector<8x2x8xbf16>
    %90 = vector.extract_strided_slice %37 {offsets = [0, 0, 24], sizes = [8, 2, 8], strides = [1, 1, 1]} : vector<8x2x32xbf16> to vector<8x2x8xbf16>
    "tpu.trace_start"() <{level = 10 : i32, message = "ntd,nsd->nts"}> : () -> ()
    %cst_26 = arith.constant dense<0.000000e+00> : vector<8x2x2xf32>
    %91 = tpu.matmul %89, %90, %cst_26 {dimension_numbers = #tpu.dot_dimension_numbers<[2], [2], [1], [1], [0, 0, 0, 1, 1, 1], [0], [0]>} : vector<8x2x8xbf16>, vector<8x2x8xbf16>, vector<8x2x2xf32> -> vector<8x2x2xf32>
    "tpu.trace_stop"() : () -> ()
    %cst_27 = arith.constant dense<0xFF800000> : vector<8x2xf32>
    %92 = vector.multi_reduction <maximumf>, %91, %cst_27 [2] : vector<8x2x2xf32> to vector<8x2xf32>
    %93 = vector.shape_cast %92 : vector<8x2xf32> to vector<8x2x1xf32>
    %94 = vector.broadcast %93 : vector<8x2x1xf32> to vector<8x2x2xf32>
    %95 = arith.subf %91, %94 : vector<8x2x2xf32>
    %96 = math.exp %95 : vector<8x2x2xf32>
    %cst_28 = arith.constant dense<0.000000e+00> : vector<8x2xf32>
    %97 = vector.multi_reduction <add>, %96, %cst_28 [2] : vector<8x2x2xf32> to vector<8x2xf32>
    %98 = vector.shape_cast %97 : vector<8x2xf32> to vector<8x2x1xf32>
    %99 = tpu.reciprocal %98 {approx = true} : vector<8x2x1xf32> -> vector<8x2x1xf32>
    %100 = vector.broadcast %99 : vector<8x2x1xf32> to vector<8x2x2xf32>
    %101 = arith.mulf %96, %100 : vector<8x2x2xf32>
    %102 = arith.truncf %101 : vector<8x2x2xf32> to vector<8x2x2xbf16>
    %103 = vector.extract_strided_slice %40 {offsets = [0, 0, 24], sizes = [8, 2, 8], strides = [1, 1, 1]} : vector<8x2x32xbf16> to vector<8x2x8xbf16>
    "tpu.trace_start"() <{level = 10 : i32, message = "nts,nsd->ntd"}> : () -> ()
    %cst_29 = arith.constant dense<0.000000e+00> : vector<8x2x8xf32>
    %104 = tpu.matmul %102, %103, %cst_29 {dimension_numbers = #tpu.dot_dimension_numbers<[2], [1], [1], [2], [0, 0, 0, 1, 1, 2], [0], [0]>} : vector<8x2x2xbf16>, vector<8x2x8xbf16>, vector<8x2x8xf32> -> vector<8x2x8xf32>
    "tpu.trace_stop"() : () -> ()
    %105 = tpu.concatenate %56, %72, %88, %104 in 2 : vector<8x2x8xf32>, vector<8x2x8xf32>, vector<8x2x8xf32>, vector<8x2x8xf32> -> vector<8x2x32xf32>
    %106 = tpu.transpose %105, [1, 0, 2] : vector<8x2x32xf32> -> vector<2x8x32xf32>
    %107 = vector.shape_cast %106 : vector<2x8x32xf32> to vector<16x32xf32>
    %108 = arith.truncf %107 : vector<16x32xf32> to vector<16x32xbf16>
    %c3 = arith.constant 3 : index
    %c0_30 = arith.constant 0 : index
    %c0_31 = arith.constant 0 : index
    %109 = vector.load %arg2[%c3, %c0_30, %c0_31] : memref<4x32x32xbf16, #tpu.memory_space<vmem>>, vector<1x32x32xbf16>
    %110 = vector.shape_cast %109 : vector<1x32x32xbf16> to vector<32x32xbf16>
    %cst_32 = arith.constant dense<0.000000e+00> : vector<16x32xf32>
    %111 = tpu.matmul %108, %110, %cst_32 {dimension_numbers = #tpu.dot_dimension_numbers<[1], [0], [0], [1], [0, 0, 1, 1], [], []>} : vector<16x32xbf16>, vector<32x32xbf16>, vector<16x32xf32> -> vector<16x32xf32>
    %112 = vector.broadcast %4 : vector<1x32xf32> to vector<16x32xf32>
    %113 = arith.addf %111, %112 : vector<16x32xf32>
    %114 = arith.addf %13, %113 : vector<16x32xf32>
    %cst_33 = arith.constant dense<0.000000e+00> : vector<16xf32>
    %115 = vector.multi_reduction <add>, %114, %cst_33 [1] : vector<16x32xf32> to vector<16xf32>
    %116 = vector.shape_cast %115 : vector<16xf32> to vector<16x1xf32>
    %cst_34 = arith.constant 3.200000e+01 : f32
    %117 = vector.broadcast %cst_34 : f32 to vector<16x1xf32>
    %118 = arith.divf %116, %117 : vector<16x1xf32>
    %119 = vector.broadcast %118 : vector<16x1xf32> to vector<16x32xf32>
    %120 = arith.subf %114, %119 : vector<16x32xf32>
    %121 = arith.mulf %120, %120 : vector<16x32xf32>
    %cst_35 = arith.constant dense<0.000000e+00> : vector<16xf32>
    %122 = vector.multi_reduction <add>, %121, %cst_35 [1] : vector<16x32xf32> to vector<16xf32>
    %123 = vector.shape_cast %122 : vector<16xf32> to vector<16x1xf32>
    %cst_36 = arith.constant 3.200000e+01 : f32
    %124 = vector.broadcast %cst_36 : f32 to vector<16x1xf32>
    %125 = arith.divf %123, %124 : vector<16x1xf32>
    %126 = vector.broadcast %118 : vector<16x1xf32> to vector<16x32xf32>
    %127 = arith.subf %114, %126 : vector<16x32xf32>
    %cst_37 = arith.constant 9.99999974E-6 : f32
    %128 = vector.broadcast %cst_37 : f32 to vector<16x1xf32>
    %129 = arith.addf %125, %128 : vector<16x1xf32>
    %130 = math.rsqrt %129 : vector<16x1xf32>
    %131 = vector.broadcast %130 : vector<16x1xf32> to vector<16x32xf32>
    %132 = arith.mulf %127, %131 : vector<16x32xf32>
    %133 = vector.broadcast %5 : vector<1x32xf32> to vector<16x32xf32>
    %134 = arith.mulf %132, %133 : vector<16x32xf32>
    %135 = vector.broadcast %6 : vector<1x32xf32> to vector<16x32xf32>
    %136 = arith.addf %134, %135 : vector<16x32xf32>
    %137 = arith.truncf %136 : vector<16x32xf32> to vector<16x32xbf16>
    %c0_38 = arith.constant 0 : index
    %c0_39 = arith.constant 0 : index
    %138 = vector.load %arg3[%c0_38, %c0_39] : memref<32x2048xbf16, #tpu.memory_space<vmem>>, vector<32x2048xbf16>
    %cst_40 = arith.constant dense<0.000000e+00> : vector<16x2048xf32>
    %139 = tpu.matmul %137, %138, %cst_40 {dimension_numbers = #tpu.dot_dimension_numbers<[1], [0], [0], [1], [0, 0, 1, 1], [], []>} : vector<16x32xbf16>, vector<32x2048xbf16>, vector<16x2048xf32> -> vector<16x2048xf32>
    %c0_41 = arith.constant 0 : index
    %c0_42 = arith.constant 0 : index
    %140 = vector.load %arg6[%c0_41, %c0_42] : memref<1x2048xf32, #tpu.memory_space<vmem>>, vector<1x2048xf32>
    %141 = vector.broadcast %140 : vector<1x2048xf32> to vector<16x2048xf32>
    %142 = arith.addf %139, %141 : vector<16x2048xf32>
    %cst_43 = arith.constant 0.000000e+00 : f32
    %143 = vector.broadcast %cst_43 : f32 to vector<16x2048xf32>
    %144 = arith.maximumf %142, %143 : vector<16x2048xf32>
    %145 = arith.truncf %144 : vector<16x2048xf32> to vector<16x2048xbf16>
    %c0_44 = arith.constant 0 : index
    %c0_45 = arith.constant 0 : index
    %146 = vector.load %arg4[%c0_44, %c0_45] : memref<2048x32xbf16, #tpu.memory_space<vmem>>, vector<2048x32xbf16>
    %cst_46 = arith.constant dense<0.000000e+00> : vector<16x32xf32>
    %147 = tpu.matmul %145, %146, %cst_46 {dimension_numbers = #tpu.dot_dimension_numbers<[1], [0], [0], [1], [0, 0, 1, 1], [], []>} : vector<16x2048xbf16>, vector<2048x32xbf16>, vector<16x32xf32> -> vector<16x32xf32>
    %148 = vector.broadcast %7 : vector<1x32xf32> to vector<16x32xf32>
    %149 = arith.addf %147, %148 : vector<16x32xf32>
    %150 = arith.addf %136, %149 : vector<16x32xf32>
    %cst_47 = arith.constant dense<0.000000e+00> : vector<16xf32>
    %151 = vector.multi_reduction <add>, %150, %cst_47 [1] : vector<16x32xf32> to vector<16xf32>
    %152 = vector.shape_cast %151 : vector<16xf32> to vector<16x1xf32>
    %cst_48 = arith.constant 3.200000e+01 : f32
    %153 = vector.broadcast %cst_48 : f32 to vector<16x1xf32>
    %154 = arith.divf %152, %153 : vector<16x1xf32>
    %155 = vector.broadcast %154 : vector<16x1xf32> to vector<16x32xf32>
    %156 = arith.subf %150, %155 : vector<16x32xf32>
    %157 = arith.mulf %156, %156 : vector<16x32xf32>
    %cst_49 = arith.constant dense<0.000000e+00> : vector<16xf32>
    %158 = vector.multi_reduction <add>, %157, %cst_49 [1] : vector<16x32xf32> to vector<16xf32>
    %159 = vector.shape_cast %158 : vector<16xf32> to vector<16x1xf32>
    %cst_50 = arith.constant 3.200000e+01 : f32
    %160 = vector.broadcast %cst_50 : f32 to vector<16x1xf32>
    %161 = arith.divf %159, %160 : vector<16x1xf32>
    %162 = vector.broadcast %154 : vector<16x1xf32> to vector<16x32xf32>
    %163 = arith.subf %150, %162 : vector<16x32xf32>
    %cst_51 = arith.constant 9.99999974E-6 : f32
    %164 = vector.broadcast %cst_51 : f32 to vector<16x1xf32>
    %165 = arith.addf %161, %164 : vector<16x1xf32>
    %166 = math.rsqrt %165 : vector<16x1xf32>
    %167 = vector.broadcast %166 : vector<16x1xf32> to vector<16x32xf32>
    %168 = arith.mulf %163, %167 : vector<16x32xf32>
    %169 = vector.broadcast %8 : vector<1x32xf32> to vector<16x32xf32>
    %170 = arith.mulf %168, %169 : vector<16x32xf32>
    %171 = vector.broadcast %9 : vector<1x32xf32> to vector<16x32xf32>
    %172 = arith.addf %170, %171 : vector<16x32xf32>
    %173 = vector.shape_cast %172 : vector<16x32xf32> to vector<2x8x32xf32>
    %174 = vector.shape_cast %10 : vector<1x32xf32> to vector<1x1x32xf32>
    %175 = vector.broadcast %174 : vector<1x1x32xf32> to vector<2x8x32xf32>
    %176 = arith.mulf %173, %175 : vector<2x8x32xf32>
    %cst_52 = arith.constant dense<0.000000e+00> : vector<2x8xf32>
    %177 = vector.multi_reduction <add>, %176, %cst_52 [2] : vector<2x8x32xf32> to vector<2x8xf32>
    %178 = vector.broadcast %11 : vector<1x1xf32> to vector<2x8xf32>
    %179 = arith.addf %177, %178 : vector<2x8xf32>
    %c0_53 = arith.constant 0 : index
    %c0_54 = arith.constant 0 : index
    %180 = vector.load %arg7[%c0_53, %c0_54] : memref<2x8xf32, #tpu.memory_space<vmem>>, vector<2x8xf32>
    tpu.vector_store %arg7[%c0_53, %c0_54], %179 {strides = array<i32>} : memref<2x8xf32, #tpu.memory_space<vmem>>, vector<2x8xf32>,
    return
  }
  func.func @transform_0(%arg0: i32) -> (i32, i32, i32) {
    %c0_i32 = arith.constant 0 : i32
    %c0_i32_0 = arith.constant 0 : i32
    %c0_i32_1 = arith.constant 0 : i32
    return %c0_i32, %arg0, %c0_i32_0 : i32, i32, i32
  }
  func.func @transform_1(%arg0: i32) -> (i32, i32, i32) {
    %c0_i32 = arith.constant 0 : i32
    %c0_i32_0 = arith.constant 0 : i32
    %c0_i32_1 = arith.constant 0 : i32
    %c0_i32_2 = arith.constant 0 : i32
    return %c0_i32, %c0_i32_0, %c0_i32_1 : i32, i32, i32
  }
  func.func @transform_2(%arg0: i32) -> (i32, i32) {
    %c0_i32 = arith.constant 0 : i32
    %c0_i32_0 = arith.constant 0 : i32
    %c0_i32_1 = arith.constant 0 : i32
    return %c0_i32, %c0_i32_0 : i32, i32
  }
  func.func @transform_3(%arg0: i32) -> (i32, i32) {
    %c0_i32 = arith.constant 0 : i32
    %c0_i32_0 = arith.constant 0 : i32
    %c0_i32_1 = arith.constant 0 : i32
    return %c0_i32, %c0_i32_0 : i32, i32
  }
  func.func @transform_4(%arg0: i32) -> (i32, i32) {
    %c0_i32 = arith.constant 0 : i32
    %c0_i32_0 = arith.constant 0 : i32
    %c0_i32_1 = arith.constant 0 : i32
    return %c0_i32, %c0_i32_0 : i32, i32
  }
  func.func @transform_5(%arg0: i32) -> (i32, i32) {
    %c0_i32 = arith.constant 0 : i32
    %c0_i32_0 = arith.constant 0 : i32
    %c0_i32_1 = arith.constant 0 : i32
    return %c0_i32, %c0_i32_0 : i32, i32
  }
  func.func @transform_6(%arg0: i32) -> (i32, i32) {
    %c0_i32 = arith.constant 0 : i32
    %c0_i32_0 = arith.constant 0 : i32
    return %c0_i32, %arg0 : i32, i32
  }
}

</mosaic_0001>

<bundles_post_ra>
// kernel: tpu_custom_call.1
= control target key start
LH: loop header
LB: loop body
LE: loop exit
PB: predicated region body
PF: predicated region fallthrough
CT: control target
= control target key end

     0   :  { %s7066_s0 = inlined_call_operand.vmem [shape: f32[2,8,32], index: 0, kind: input, shape index: {}]   ;;  %s7067_s1 = inlined_call_operand.vmem [shape: bf16[4,32,32], index: 1, kind: input, shape index: {}]   ;;  %s7068_s2 = inlined_call_operand.vmem [shape: bf16[32,2048], index: 2, kind: input, shape index: {}]   ;;  %s7069_s3 = inlined_call_operand.vmem [shape: bf16[2048,32], index: 3, kind: input, shape index: {}]   ;;  %s7070_s4 = inlined_call_operand.vmem [shape: f32[11,32], index: 4, kind: input, shape index: {}]   ;;  %s7071_s5 = inlined_call_operand.vmem [shape: f32[1,2048], index: 5, kind: input, shape index: {}]   ;;  %s7072_s6 = inlined_call_operand.hbm [shape: f32[2,8], index: 6, kind: output, shape index: {}]  }
   0x1   :  { %v5006_v0 = vld [vmem:[%s7067_s1 + $0x8] sm:$0xff]  ;;  %v5008_v1 = vld [vmem:[%s7067_s1 + $0x18] sm:$0xff]  ;;  %v5005_v2 = vld [vmem:[%s7067_s1] sm:$0xff] }
   0x2   :  { %v5007_v3 = vld [vmem:[%s7067_s1 + $0x10] sm:$0xff]  ;;  %57 = vmatpush.bf16.msra.mxu0 %v5006_v0  ;;  %89 = vmatpush.bf16.msra.mxu1 %v5008_v1  ;;  %v27_v4 = vld [vmem:[%s7066_s0] sm:$0xff]  ;;  %v28_v5 = vld [vmem:[%s7066_s0 + $0x8] sm:$0xff] }
   0x3   :  { %11 = vsyncpa [#allocation3], 0  ;;  %v29_v6 = vpack.c.bf16 %v28_v5, %v27_v4  ;;  %vm47_vm0 = vcmask 261120   ;;  %v5010_v7 = vld [vmem:[%s7067_s1 + $0x28] sm:$0xff]  ;;  %v5009_v8 = vld [vmem:[%s7067_s1 + $0x20] sm:$0xff]  ;;  %vm132_vm1 = vcmask 1047556  }
   0x4   :  { %121 = vmatpush.bf16.msra.mxu2 %v5010_v7  ;;  %v5488_v9 = vld [vmem:[%s7070_s4] sm:$0xff]  ;;  %v5413_v13 = vmov 1983009808   ;;  %v5414_v22 = vmov 1934713408   ;;  %vm312_vm2 = vcmask 64512  }
   0x5   :  { %v34_v10 = vperm.slane %v5488_v9, 0  ;;  %v70_v11 = vperm.slane %v5488_v9, 1  ;;  %v135_v14 = vunpack.c.l.s4 %v5413_v13  ;;  %v157_v23 = vunpack.c.l.s4 %v5414_v22  ;;  %s5415_s15 = smov 120   ;;  %s5416_s16 = smov 112  }
   0x6   :  { %58 = vmatpush.bf16.msra.mxu0 %v5005_v2  ;;  %90 = vmatpush.bf16.msra.mxu1 %v5007_v3  ;;  %vm566_vm3 = vcmask 1040384   ;;  %vm465_vm4 = vcmask 9216   ;;  %vm562_vm5 = vcmask 15360   ;;  %s5417_s17 = smov 104   ;;  %s5418_s18 = smov 8   ;;  %vm2236_vm6 = vcmask 130048  }
   0x7   :  { %v5492_v20 = vunpack.c.0.s8 %v135_v14  ;;  %v5498_v32 = vunpack.c.0.s8 %v157_v23  ;;  %s5419_s19 = smov 16   ;;  %s5420_s20 = smov 24   ;;  %vm2245_vm7 = vcmask 195584  }
   0x8   :  { %122 = vmatpush.bf16.msra.mxu2 %v5009_v8  ;;  %s4228_s22 = sshll.u32 %s7072_s6, 4  ;;  %s4229_s22 = int_to_ptr.hbm [resolvable:$true] %s4228_s22 }
   0x9   :  { %4245 = vmatmul.msk.bf16.vlgmr.msra.gmra.mxu0 %vm47_vm0, %v29_v6  ;;  %4258 = vmatmul.msk.bf16.vlgmr.msra.gmra.mxu1 %vm47_vm0, %v29_v6 }
   0xb   :  { %4271 = vmatmul.msk.bf16.vlgmr.msra.gmra.mxu2 %vm47_vm0, %v29_v6 }
  0x86   :  { %v60_v12 = vpop.f32.mrf.mxu0  ;;  %v92_v15 = vpop.f32.mrf.mxu1 }
  0x87   :  { %v61_v16 = vadd.f32 %v60_v12, %v34_v10  ;;  %v93_v17 = vadd.f32 %v92_v15, %v70_v11 }
  0x89   :  { %v192_v18 = vrot.slane %v93_v17, 4  ;;  %v129_v19 = vmul.f32 0.35355338, %v61_v16  ;;  %v197_v25 = vperm.slane %v93_v17, %v5492_v20 }
  0x8b   :  { %v193_v21 = vsel %vm132_vm1, 0.0, %v192_v18  ;;  %v137_v24 = vperm.slane %v129_v19, %v5492_v20  ;;  %v214_v36 = vrot.slane %v197_v25, 4  ;;  %v131_v37 = vrot.slane %v129_v19, 4 }
  0x8c   :  { %v201_v30 = vperm.slane %v193_v21, %v5492_v20 }
  0x8d   :  { %v154_v35 = vrot.slane %v137_v24, 4  ;;  %v133_v54 = vsel %vm132_vm1, 0.0, %v131_v37 }
  0x8e   :  { %v62_v26 = vpop.f32.mrf.mxu0  ;;  %v94_v27 = vpop.f32.mrf.mxu1  ;;  %v226_v41 = vrot.slane %v201_v30, 4  ;;  %v141_v2 = vperm.slane %v133_v54, %v5492_v20 }
  0x8f   :  { %v63_v28 = vadd.f32 %v62_v26, %v34_v10  ;;  %v95_v29 = vadd.f32 %v94_v27, %v70_v11 }
  0x91   :  { %v130_v31 = vmul.f32 0.35355338, %v63_v28  ;;  %v202_v33 = vrot.slane %v95_v29, 4  ;;  %v207_v34 = vperm.slane %v95_v29, %v5492_v20 }
  0x93   :  { %v147_v38 = vperm.slane %v130_v31, %v5492_v20  ;;  %v203_v39 = vsel %vm132_vm1, 0.0, %v202_v33  ;;  %v212_v40 = vrot.slane %v207_v34, 4  ;;  %v142_v42 = vrot.slane %v130_v31, 4 }
  0x94   :  { %v211_v43 = vperm.slane %v203_v39, %v5492_v20  ;;  %v215_v44 = vsel %vm132_vm1, %v207_v34, %v214_v36 }
  0x95   :  { %v223_v45 = vperm.slane %v215_v44, %v5498_v32  ;;  %v155_v46 = vsel %vm132_vm1, %v147_v38, %v154_v35  ;;  %v213_v48 = vsel %vm132_vm1, %v212_v40, %v197_v25  ;;  %v143_v55 = vsel %vm132_vm1, 0.0, %v142_v42 }
  0x96   :  { %v224_v47 = vrot.slane %v211_v43, 4  ;;  %v227_v49 = vsel %vm132_vm1, %v211_v43, %v226_v41  ;;  %v219_v51 = vperm.slane %v213_v48, %v5498_v32  ;;  %v152_v56 = vrot.slane %v147_v38, 4 }
  0x97   :  { %v5509_v50 = vpack.c.bf16 %v223_v45, %v223_v45  ;;  %v238_v52 = vrot.slane %v223_v45, 4  ;;  %v235_v53 = vperm.slane %v227_v49, %v5498_v32  ;;  %v163_v61 = vperm.slane %v155_v46, %v5498_v32 }
  0x98   :  { %v225_v57 = vsel %vm132_vm1, %v224_v47, %v201_v30  ;;  %v5518_v59 = vpack.c.bf16 %v219_v51, %v219_v51  ;;  %v236_v0 = vrot.slane %v219_v51, 4  ;;  %v151_v3 = vperm.slane %v143_v55, %v5492_v20  ;;  %v124_v47 = vpop.f32.mrf.mxu2 }
  0x99   :  { %v355_v58 = vsel %vm312_vm2, %v5509_v50, 0  ;;  %v239_v60 = vsel %vm132_vm1, 0.0, %v238_v52  ;;  %v5524_v63 = vpack.c.bf16 %v235_v53, %v235_v53  ;;  %v231_v1 = vperm.slane %v225_v57, %v5498_v32 }
  0x9a   :  { %364 = vmatpush.bf16.xpose.msrb.mxu1 %v355_v58  ;;  %v5522_v62 = vpack.c.bf16 %v239_v60, %v239_v60  ;;  %v317_v4 = vsel %vm312_vm2, %v5518_v59, 0  ;;  %v242_v5 = vrot.slane %v235_v53, 4  ;;  %v237_v8 = vsel %vm132_vm1, 0.0, %v236_v0 }
  0x9b   :  { %326 = vmatpush.bf16.xpose.msra.mxu3 %v317_v4  ;;  %v431_v7 = vsel %vm312_vm2, %v5524_v63, 0  ;;  %v240_v10 = vrot.slane %v231_v1, 4  ;;  %v5536_v11 = vpack.c.bf16 %v237_v8, %v237_v8  ;;  %v5538_v12 = vpack.c.bf16 %v231_v1, %v231_v1 }
  0x9c   :  { %v374_v6 = vsel %vm312_vm2, %v5522_v62, 0  ;;  %v243_v13 = vsel %vm132_vm1, 0.0, %v242_v5  ;;  %v153_v14 = vsel %vm132_vm1, %v152_v56, %v137_v24  ;;  %v178_v18 = vrot.slane %v163_v61, 4 }
  0x9d   :  { %383 = vmatpush.bf16.xpose.msrb.mxu2 %v374_v6  ;;  %v5542_v15 = vpack.c.bf16 %v243_v13, %v243_v13  ;;  %v241_v16 = vsel %vm132_vm1, 0.0, %v240_v10  ;;  %v159_v17 = vperm.slane %v153_v14, %v5498_v32  ;;  %v336_v19 = vsel %vm312_vm2, %v5536_v11, 0 }
  0x9e   :  { %v393_v21 = vsel %vm312_vm2, %v5538_v12, 0  ;;  %v5550_v22 = vpack.c.bf16 %v163_v61, %v163_v61  ;;  %v5552_v23 = vpack.c.bf16 %v241_v16, %v241_v16  ;;  %v166_v25 = vrot.slane %v141_v2, 4  ;;  %345 = vmatpush.bf16.xpose.msrb.mxu0 %v336_v19 }
  0x9f   :  { %v450_v24 = vsel %vm312_vm2, %v5542_v15, 0  ;;  %v176_v26 = vrot.slane %v159_v17, 4  ;;  %v179_v27 = vsel %vm132_vm1, 0.0, %v178_v18  ;;  %v5561_v29 = vpack.c.bf16 %v159_v17, %v159_v17 }
  0xa0   :  { %v412_v28 = vsel %vm312_vm2, %v5552_v23, 0  ;;  %v5563_v30 = vpack.c.bf16 %v179_v27, %v179_v27  ;;  %v164_v33 = vrot.slane %v151_v3, 4  ;;  %v167_v34 = vsel %vm132_vm1, %v151_v3, %v166_v25  ;;  %v126_v51 = vpop.f32.mrf.mxu2 }
  0xa1   :  { %4274 = vmatmul.msk.bf16.vlgmr.msrb.gmra.mxu1 %vm312_vm2, %v5550_v22  ;;  %v177_v31 = vsel %vm132_vm1, 0.0, %v176_v26  ;;  %v175_v36 = vperm.slane %v167_v34, %v5498_v32  ;;  %v102_v48 = vperm.slane %v5488_v9, 2 }
  0xa2   :  { %440 = vmatpush.bf16.xpose.msra.mxu1 %v431_v7  ;;  %4272 = vmatmul.msk.bf16.vlgmr.msra.gmra.mxu3 %vm312_vm2, %v5561_v29  ;;  %v5571_v35 = vpack.c.bf16 %v177_v31, %v177_v31  ;;  %v165_v37 = vsel %vm132_vm1, %v164_v33, %v141_v2 }
  0xa3   :  { %402 = vmatpush.bf16.xpose.msrb.mxu3 %v393_v21  ;;  %v171_v38 = vperm.slane %v165_v37, %v5498_v32  ;;  %v182_v39 = vrot.slane %v175_v36, 4  ;;  %v5578_v41 = vpack.c.bf16 %v175_v36, %v175_v36  ;;  %v125_v49 = vadd.f32 %v124_v47, %v102_v48 }
  0xa4   :  { %4275 = vmatmul.msk.bf16.vlgmr.msrb.gmra.mxu2 %vm312_vm2, %v5563_v30  ;;  %v127_v52 = vadd.f32 %v126_v51, %v102_v48 }
  0xa5   :  { %459 = vmatpush.bf16.xpose.msra.mxu2 %v450_v24  ;;  %4273 = vmatmul.msk.bf16.vlgmr.msrb.gmra.mxu0 %vm312_vm2, %v5571_v35  ;;  %v180_v40 = vrot.slane %v171_v38, 4  ;;  %v183_v42 = vsel %vm132_vm1, 0.0, %v182_v39  ;;  %v5583_v43 = vpack.c.bf16 %v171_v38, %v171_v38  ;;  %v257_v53 = vperm.slane %v125_v49, %v5492_v20 }
  0xa6   :  { %421 = vmatpush.bf16.xpose.msra.mxu0 %v412_v28  ;;  %v5585_v44 = vpack.c.bf16 %v183_v42, %v183_v42  ;;  %v252_v54 = vrot.slane %v125_v49, 4  ;;  %v262_v55 = vrot.slane %v127_v52, 4  ;;  %v267_v56 = vperm.slane %v127_v52, %v5492_v20 }
  0xa7   :  { %v181_v45 = vsel %vm132_vm1, 0.0, %v180_v40  ;;  %v274_v57 = vrot.slane %v257_v53, 4 }
  0xa8   :  { %v5592_v46 = vpack.c.bf16 %v181_v45, %v181_v45  ;;  %v263_v58 = vsel %vm132_vm1, 0.0, %v262_v55  ;;  %v253_v60 = vsel %vm132_vm1, 0.0, %v252_v54  ;;  %v272_v0 = vrot.slane %v267_v56, 4 }
  0xa9   :  { %v271_v61 = vperm.slane %v263_v58, %v5492_v20  ;;  %v261_v1 = vperm.slane %v253_v60, %v5492_v20  ;;  %v275_v9 = vsel %vm132_vm1, %v267_v56, %v274_v57 }
  0xaa   :  { %v273_v3 = vsel %vm132_vm1, %v272_v0, %v257_v53  ;;  %v283_v4 = vperm.slane %v275_v9, %v5498_v32 }
  0xab   :  { %v284_v2 = vrot.slane %v271_v61, 4  ;;  %v286_v5 = vrot.slane %v261_v1, 4  ;;  %v279_v6 = vperm.slane %v273_v3, %v5498_v32 }
  0xac   :  { %v5607_v7 = vpack.c.bf16 %v283_v4, %v283_v4  ;;  %v298_v14 = vrot.slane %v283_v4, 4 }
  0xad   :  { %v5609_v8 = vpack.c.bf16 %v279_v6, %v279_v6  ;;  %v296_v13 = vrot.slane %v279_v6, 4  ;;  %v285_v16 = vsel %vm132_vm1, %v284_v2, %v261_v1  ;;  %v287_v19 = vsel %vm132_vm1, %v271_v61, %v286_v5 }
  0xae   :  { %v606_v10 = vsel %vm566_vm3, %v5607_v7, 0  ;;  %v291_v18 = vperm.slane %v285_v16, %v5498_v32  ;;  %v299_v25 = vsel %vm132_vm1, 0.0, %v298_v14  ;;  %v295_v24 = vperm.slane %v287_v19, %v5498_v32 }
  0xaf   :  { %v568_v17 = vsel %vm566_vm3, %v5609_v8, 0  ;;  %615 = vmatpush.bf16.msrb.mxu1 %v606_v10  ;;  %v297_v21 = vsel %vm132_vm1, 0.0, %v296_v13  ;;  %v5623_v27 = vpack.c.bf16 %v299_v25, %v299_v25  ;;  %v809_v13 = vunpack.c.l.b16 %v5522_v62 }
  0xb0   :  { %577 = vmatpush.bf16.msra.mxu3 %v568_v17  ;;  %v5621_v26 = vpack.c.bf16 %v297_v21, %v297_v21  ;;  %v5625_v28 = vpack.c.bf16 %v291_v18, %v291_v18  ;;  %v300_v31 = vrot.slane %v291_v18, 4  ;;  %v5627_v33 = vpack.c.bf16 %v295_v24, %v295_v24 }
  0xb1   :  { %4278 = vmatmul.msk.bf16.vlgmr.msra.gmra.mxu1 %vm312_vm2, %v5578_v41  ;;  %v302_v34 = vrot.slane %v295_v24, 4  ;;  %v625_v37 = vsel %vm566_vm3, %v5623_v27, 0  ;;  %v5661_v17 = vpack.c.b16 %v809_v13, %v809_v13  ;;  %v722_v21 = vunpack.c.l.b16 %v5518_v59 }
  0xb2   :  { %4276 = vmatmul.msk.bf16.vlgmr.msrb.gmra.mxu3 %vm312_vm2, %v5583_v43  ;;  %v587_v36 = vsel %vm566_vm3, %v5621_v26, 0  ;;  %v644_v38 = vsel %vm566_vm3, %v5625_v28, 0  ;;  %v301_v39 = vsel %vm132_vm1, 0.0, %v300_v31  ;;  %634 = vmatpush.bf16.msrb.mxu2 %v625_v37  ;;  %v682_v40 = vsel %vm566_vm3, %v5627_v33, 0 }
  0xb3   :  { %596 = vmatpush.bf16.msrb.mxu0 %v587_v36  ;;  %v5638_v42 = vpack.c.bf16 %v301_v39, %v301_v39  ;;  %v303_v45 = vsel %vm132_vm1, 0.0, %v302_v34  ;;  %691 = vmatpush.bf16.msra.mxu1 %v682_v40  ;;  %v5670_v62 = vpack.c.b16 %v722_v21, %v722_v21 }
  0xb4   :  { %4279 = vmatmul.msk.bf16.vlgmr.msra.gmra.mxu2 %vm312_vm2, %v5585_v44  ;;  %653 = vmatpush.bf16.msrb.mxu3 %v644_v38  ;;  %v5641_v47 = vpack.c.bf16 %v303_v45, %v303_v45 }
  0xb5   :  { %4277 = vmatmul.msk.bf16.vlgmr.msra.gmra.mxu0 %vm312_vm2, %v5592_v46  ;;  %v663_v48 = vsel %vm566_vm3, %v5638_v42, 0 }
  0xb6   :  { %v701_v49 = vsel %vm566_vm3, %v5641_v47, 0 }
  0xb7   :  { %672 = vmatpush.bf16.msra.mxu0 %v663_v48  ;;  %710 = vmatpush.bf16.msra.mxu2 %v701_v49 }
 0x11e   :  { %v366_v51 = vpop.f32.mrf.mxu1 }
 0x11f   :  { %v472_v52 = vsel %vm465_vm4, %v366_v51, -inf }
 0x120   :  { %473 = vmax.xlane.f32.xlu2 %v472_v52 }
 0x122   :  { %v347_v53 = vpop.f32.mrf.mxu0 }
 0x123   :  { %v469_v58 = vsel %vm465_vm4, %v347_v53, -inf }
 0x125   :  { %v328_v54 = vpop.f32.mrf.mxu3 }
 0x126   :  { %v368_v55 = vpop.f32.mrf.mxu1  ;;  %v466_v57 = vsel %vm465_vm4, %v328_v54, -inf }
 0x127   :  { %v385_v56 = vpop.f32.mrf.mxu2  ;;  %467 = vmax.xlane.f32.xlu0 %v466_v57 }
 0x128   :  { %470 = vmax.xlane.f32.xlu2 %v469_v58  ;;  %v475_v9 = vsel %vm465_vm4, %v385_v56, -inf }
 0x12a   :  { %v349_v60 = vpop.f32.mrf.mxu0 }
 0x12d   :  { %v330_v61 = vpop.f32.mrf.mxu3 }
 0x12e   :  { %v5650_v0 = vpop.f32.mrf.mxu1 }
 0x12f   :  { %v387_v1 = vpop.f32.mrf.mxu2  ;;  %476 = vmax.xlane.f32.xlu0 %v475_v9  ;;  %v484_v25 = vsel %vm465_vm4, %v5650_v0, -inf }
 0x132   :  { %v5653_v2 = vpop.f32.mrf.mxu0 }
 0x133   :  { %v481_v10 = vsel %vm465_vm4, %v5653_v2, -inf }
 0x135   :  { %v404_v3 = vpop.f32.mrf.mxu3 }
 0x136   :  { %v444_v4 = vpop.f32.mrf.mxu1  ;;  %v478_v6 = vsel %vm465_vm4, %v404_v3, -inf }
 0x137   :  { %v5655_v5 = vpop.f32.mrf.mxu2  ;;  %479 = vmax.xlane.f32.xlu1 %v478_v6  ;;  %482 = vmax.xlane.f32.xlu0 %v481_v10 }
 0x138   :  { %v487_v19 = vsel %vm465_vm4, %v5655_v5, -inf }
 0x13a   :  { %v425_v14 = vpop.f32.mrf.mxu0 }
 0x13d   :  { %v406_v16 = vpop.f32.mrf.mxu3 }
 0x13f   :  { %v463_v18 = vpop.f32.mrf.mxu2  ;;  %488 = vmax.xlane.f32.xlu1 %v487_v19 }
 0x140   :  { %811 = vrot.lane.b32.xlu2 %v5661_v17, %s5415_s15  ;;  %v925_v18 = vunpack.c.l.b16 %v5542_v15  ;;  %v717_v15 = vunpack.c.l.b16 %v5561_v29  ;;  %v838_v29 = vunpack.c.l.b16 %v5538_v12  ;;  %v751_v12 = vunpack.c.l.b16 %v5536_v11 }
 0x142   :  { %v5697_v21 = vpack.c.b16 %v925_v18, %v925_v18 }
 0x147   :  { %485 = vmax.xlane.f32.xlu1 %v484_v25 }
 0x14b   :  { %724 = vrot.lane.b32.xlu0 %v5670_v62, %s5415_s15 }
 0x193   :  { %v474_v24 = vpop.xlane.xlu2 %473 }
 0x194   :  { %v492_v31 = vsub.f32 %v366_v51, %v474_v24 }
 0x196   :  { %v502_v34 = vmul.f32 1.442695, %v492_v31 }
 0x198   :  { %5245 = vpow2.f32 %v502_v34 }
 0x19a   :  { %v468_v36 = vpop.xlane.xlu0 %467 }
 0x19b   :  { %v471_v37 = vpop.xlane.xlu2 %470  ;;  %v490_v59 = vsub.f32 %v328_v54, %v468_v36 }
 0x19c   :  { %v491_v38 = vsub.f32 %v347_v53, %v471_v37  ;;  %v5714_v37 = vpack.c.b16 %v717_v15, %v717_v15 }
 0x19d   :  { %v498_v48 = vmul.f32 1.442695, %v490_v59  ;;  %v5728_v59 = vpack.c.b16 %v838_v29, %v838_v29 }
 0x19e   :  { %v5674_v39 = vpop.eup %5245  ;;  %v500_v40 = vmul.f32 1.442695, %v491_v38  ;;  %v780_v38 = vunpack.c.l.b16 %v5509_v50  ;;  %v775_v50 = vunpack.c.l.b16 %v5550_v22  ;;  %v833_v22 = vunpack.c.l.b16 %v5583_v43 }
 0x19f   :  { %v520_v45 = vsel %vm465_vm4, %v5674_v39, 0.0 }
 0x1a0   :  { %521 = vadd.xlane.f32.xlu1 %v520_v45  ;;  %5247 = vpow2.f32 %v500_v40  ;;  %v5750_v11 = vpack.c.b16 %v833_v22, %v833_v22 }
 0x1a1   :  { %5249 = vpow2.f32 %v498_v48  ;;  %v5736_v48 = vpack.c.b16 %v775_v50, %v775_v50 }
 0x1a2   :  { %v477_v49 = vpop.xlane.xlu0 %476 }
 0x1a3   :  { %v493_v52 = vsub.f32 %v385_v56, %v477_v49  ;;  %v5740_v49 = vpack.c.b16 %v751_v12, %v751_v12 }
 0x1a5   :  { %v504_v55 = vmul.f32 1.442695, %v493_v52  ;;  %v862_v52 = vunpack.c.l.b16 %v5592_v46 }
 0x1a6   :  { %v5678_v57 = vpop.eup %5247 }
 0x1a7   :  { %5251 = vpow2.f32 %v504_v55  ;;  %v517_v51 = vsel %vm465_vm4, %v5678_v57, 0.0  ;;  %v5682_v54 = vpop.eup %5249  ;;  %v5746_v55 = vpack.c.b16 %v862_v52, %v862_v52 }
 0x1a8   :  { %518 = vadd.xlane.f32.xlu0 %v517_v51  ;;  %v514_v56 = vsel %vm465_vm4, %v5682_v54, 0.0  ;;  %v1117_v51 = vunpack.c.l.b16 %v5623_v27  ;;  %v891_v27 = vunpack.c.l.b16 %v5578_v41  ;;  %v896_v41 = vunpack.c.l.b16 %v5524_v63 }
 0x1a9   :  { %v1069_v63 = vunpack.c.l.b16 %v5621_v26  ;;  %v1141_v26 = vunpack.c.l.b16 %v5625_v28 }
 0x1aa   :  { %v480_v53 = vpop.xlane.xlu1 %479  ;;  %v483_v6 = vpop.xlane.xlu0 %482  ;;  %v5756_v46 = vpack.c.b16 %v1117_v51, %v1117_v51 }
 0x1ab   :  { %v494_v58 = vsub.f32 %v404_v3, %v480_v53  ;;  %v495_v14 = vsub.f32 %v5653_v2, %v483_v6  ;;  %v920_v2 = vunpack.c.l.b16 %v5585_v44  ;;  %v5722_v44 = vpack.c.b16 %v780_v38, %v780_v38 }
 0x1ac   :  { %v867_v53 = vunpack.c.l.b16 %v5552_v23  ;;  %v746_v23 = vunpack.c.l.b16 %v5571_v35  ;;  %v1213_v6 = vunpack.c.l.b16 %v5641_v47  ;;  %v5814_v18 = vpack.c.b16 %v1141_v26, %v1141_v26 }
 0x1ad   :  { %v5684_v60 = vpop.eup %5251  ;;  %v506_v61 = vmul.f32 1.442695, %v494_v58  ;;  %v508_v19 = vmul.f32 1.442695, %v495_v14  ;;  %v5708_v34 = vpack.c.b16 %v920_v2, %v920_v2  ;;  %v804_v58 = vunpack.c.l.b16 %v5563_v30 }
 0x1ae   :  { %v523_v1 = vsel %vm465_vm4, %v5684_v60, 0.0  ;;  %v5761_v43 = vpack.c.b16 %v867_v53, %v867_v53  ;;  %v5773_v30 = vpack.c.b16 %v891_v27, %v891_v27 }
 0x1af   :  { %5253 = vpow2.f32 %v506_v61  ;;  %524 = vadd.xlane.f32.xlu2 %v523_v1  ;;  %v5763_v61 = vpack.c.b16 %v804_v58, %v804_v58  ;;  %v5775_v1 = vpack.c.b16 %v746_v23, %v746_v23 }
 0x1b0   :  { %515 = vadd.xlane.f32.xlu0 %v514_v56  ;;  %v1045_v56 = vunpack.c.l.b16 %v5609_v8 }
 0x1b2   :  { %v489_v9 = vpop.xlane.xlu1 %488  ;;  %v5785_v35 = vpack.c.b16 %v1045_v56, %v1045_v56 }
 0x1b3   :  { %v497_v24 = vsub.f32 %v5655_v5, %v489_v9  ;;  %v5787_v9 = vpack.c.b16 %v896_v41, %v896_v41 }
 0x1b5   :  { %v5690_v4 = vpop.eup %5253  ;;  %v512_v31 = vmul.f32 1.442695, %v497_v24  ;;  %v1189_v24 = vunpack.c.l.b16 %v5627_v33 }
 0x1b6   :  { %v526_v3 = vsel %vm465_vm4, %v5690_v4, 0.0 }
 0x1b7   :  { %527 = vadd.xlane.f32.xlu2 %v526_v3  ;;  %v1165_v3 = vunpack.c.l.b16 %v5638_v42  ;;  %v1093_v42 = vunpack.c.l.b16 %v5607_v7  ;;  %v5820_v15 = vpack.c.b16 %v1189_v24, %v1189_v24 }
 0x1b9   :  { %v5795_v8 = vpack.c.b16 %v1165_v3, %v1165_v3  ;;  %v5809_v47 = vpack.c.b16 %v1093_v42, %v1093_v42 }
 0x1ba   :  { %v486_v10 = vpop.xlane.xlu1 %485 }
 0x1bb   :  { %v496_v13 = vsub.f32 %v5650_v0, %v486_v10  ;;  %v5800_v10 = vpack.c.b16 %v1213_v6, %v1213_v6 }
 0x1bd   :  { %v510_v16 = vmul.f32 1.442695, %v496_v13  ;;  %v5802_v13 = vpack.c.b16 %v1069_v63, %v1069_v63 }
 0x1bf   :  { %5255 = vpow2.f32 %v510_v16  ;;  %v725_v16 = vpop.permute.xlu0 %724 }
 0x1c0   :  { %5257 = vpow2.f32 %v508_v19 }
 0x1c1   :  { %5259 = vpow2.f32 %v512_v31 }
 0x1c4   :  { %927 = vrot.lane.b32.xlu0 %v5697_v21, %s5415_s15 }
 0x1c5   :  { %v5701_v25 = vpop.eup %5255 }
 0x1c6   :  { %v532_v0 = vsel %vm465_vm4, %v5701_v25, 0.0  ;;  %v5710_v36 = vpop.eup %5257 }
 0x1c7   :  { %533 = vadd.xlane.f32.xlu1 %v532_v0  ;;  %v529_v5 = vsel %vm465_vm4, %v5710_v36, 0.0  ;;  %v5724_v40 = vpop.eup %5259  ;;  %v812_v0 = vpop.permute.xlu2 %811 }
 0x1c8   :  { %v535_v45 = vsel %vm465_vm4, %v5724_v40, 0.0  ;;  %v817_v53 = vsel %vm312_vm2, %v812_v0, 0 }
 0x1cc   :  { %922 = vrot.lane.b32.xlu0 %v5708_v34, %s5415_s15 }
 0x1cf   :  { %719 = vrot.lane.b32.xlu2 %v5714_v37, %s5415_s15  ;;  %530 = vadd.xlane.f32.xlu1 %v529_v5 }
 0x1d4   :  { %782 = vrot.lane.b32.xlu0 %v5722_v44, %s5415_s15 }
 0x1d7   :  { %840 = vrot.lane.b32.xlu2 %v5728_v59, %s5415_s15  ;;  %536 = vadd.xlane.f32.xlu1 %v535_v45 }
 0x1dc   :  { %777 = vrot.lane.b32.xlu0 %v5736_v48, %s5415_s15 }
 0x1df   :  { %753 = vrot.lane.b32.xlu2 %v5740_v49, %s5415_s15 }
 0x1e4   :  { %864 = vrot.lane.b32.xlu0 %v5746_v55, %s5415_s15 }
 0x1e7   :  { %835 = vrot.lane.b32.xlu2 %v5750_v11, %s5415_s15 }
 0x1ec   :  { %1119 = vrot.lane.b32.xlu0 %v5756_v46, %s5415_s15 }
 0x1ef   :  { %869 = vrot.lane.b32.xlu2 %v5761_v43, %s5415_s15 }
 0x1f0   :  { %806 = vrot.lane.b32.xlu1 %v5763_v61, %s5415_s15 }
 0x1f4   :  { %1307 = vrot.lane.b32.xlu0 %v5661_v17, %s5416_s16 }
 0x1f7   :  { %893 = vrot.lane.b32.xlu2 %v5773_v30, %s5415_s15 }
 0x1f8   :  { %748 = vrot.lane.b32.xlu1 %v5775_v1, %s5415_s15 }
 0x1fc   :  { %1238 = vrot.lane.b32.xlu0 %v5670_v62, %s5416_s16 }
 0x1ff   :  { %1047 = vrot.lane.b32.xlu2 %v5785_v35, %s5415_s15 }
 0x200   :  { %898 = vrot.lane.b32.xlu1 %v5787_v9, %s5415_s15 }
 0x204   :  { %1167 = vrot.lane.b32.xlu0 %v5795_v8, %s5415_s15 }
 0x207   :  { %1215 = vrot.lane.b32.xlu2 %v5800_v10, %s5415_s15 }
 0x208   :  { %1071 = vrot.lane.b32.xlu1 %v5802_v13, %s5415_s15 }
 0x20f   :  { %1095 = vrot.lane.b32.xlu2 %v5809_v47, %s5415_s15 }
 0x213   :  { %v522_v14 = vpop.xlane.xlu1 %521 }
 0x214   :  { %5261 = vrcp.f32 %v522_v14 }
 0x217   :  { %1143 = vrot.lane.b32.xlu2 %v5814_v18, %s5415_s15 }
 0x21a   :  { %v5262_v19 = vpop.eup %5261 }
 0x21b   :  { %v548_v7 = vmul.f32 %v5262_v19, %v5674_v39  ;;  %v519_v2 = vpop.xlane.xlu0 %518 }
 0x21c   :  { %5263 = vrcp.f32 %v519_v2 }
 0x21d   :  { %v556_v31 = vpack.c.bf16 %v548_v7, %v548_v7 }
 0x21f   :  { %4282 = vmatmul.msk.bf16.vlgmr.msrb.gmra.mxu1 %vm562_vm5, %v556_v31  ;;  %1191 = vrot.lane.b32.xlu2 %v5820_v15, %s5415_s15 }
 0x222   :  { %v5264_v28 = vpop.eup %5263  ;;  %v525_v5 = vpop.xlane.xlu2 %524 }
 0x223   :  { %v547_v38 = vmul.f32 %v5264_v28, %v5678_v57  ;;  %5265 = vrcp.f32 %v525_v5  ;;  %v516_v33 = vpop.xlane.xlu0 %515  ;;  %v730_v57 = vsel %vm312_vm2, %v725_v16, 0 }
 0x224   :  { %5267 = vrcp.f32 %v516_v33 }
 0x225   :  { %v555_v29 = vpack.c.bf16 %v547_v38, %v547_v38 }
 0x227   :  { %4281 = vmatmul.msk.bf16.vlgmr.msrb.gmra.mxu0 %vm562_vm5, %v555_v29 }
 0x229   :  { %v5266_v39 = vpop.eup %5265 }
 0x22a   :  { %v5268_v45 = vpop.eup %5267  ;;  %v549_v50 = vmul.f32 %v5266_v39, %v5684_v60  ;;  %v528_v12 = vpop.xlane.xlu2 %527 }
 0x22b   :  { %v546_v52 = vmul.f32 %v5268_v45, %v5682_v54  ;;  %5269 = vrcp.f32 %v528_v12 }
 0x22c   :  { %v557_v22 = vpack.c.bf16 %v549_v50, %v549_v50 }
 0x22d   :  { %v554_v51 = vpack.c.bf16 %v546_v52, %v546_v52 }
 0x22e   :  { %4283 = vmatmul.msk.bf16.vlgmr.msrb.gmra.mxu2 %vm562_vm5, %v557_v22 }
 0x22f   :  { %4280 = vmatmul.msk.bf16.vlgmr.msra.gmra.mxu3 %vm562_vm5, %v554_v51  ;;  %826 = vmatpush.bf16.xpose.msrb.mxu2 %v817_v53 }
 0x230   :  { %739 = vmatpush.bf16.xpose.msra.mxu3 %v730_v57 }
 0x231   :  { %v5270_v27 = vpop.eup %5269 }
 0x232   :  { %v720_v58 = vpop.permute.xlu2 %719  ;;  %v550_v60 = vmul.f32 %v5270_v27, %v5690_v4 }
 0x234   :  { %v558_v41 = vpack.c.bf16 %v550_v60, %v550_v60 }
 0x236   :  { %v928_v23 = vpop.permute.xlu0 %927 }
 0x237   :  { %v933_v45 = vsel %vm312_vm2, %v928_v23, 0 }
 0x23a   :  { %v841_v56 = vpop.permute.xlu2 %840  ;;  %v534_v54 = vpop.xlane.xlu1 %533 }
 0x23b   :  { %5271 = vrcp.f32 %v534_v54  ;;  %v846_v6 = vsel %vm312_vm2, %v841_v56, 0 }
 0x23e   :  { %v923_v3 = vpop.permute.xlu0 %922 }
 0x23f   :  { %4284 = vmatmul.msk.bf16.vlgmr.msrb.gmra.mxu3 %vm562_vm5, %v558_v41 }
 0x240   :  { %855 = vmatpush.bf16.xpose.msrb.mxu3 %v846_v6 }
 0x241   :  { %v5272_v63 = vpop.eup %5271 }
 0x242   :  { %v552_v42 = vmul.f32 %v5272_v63, %v5701_v25  ;;  %v754_v26 = vpop.permute.xlu2 %753  ;;  %v531_v14 = vpop.xlane.xlu1 %530 }
 0x243   :  { %v759_v16 = vsel %vm312_vm2, %v754_v26, 0  ;;  %5273 = vrcp.f32 %v531_v14 }
 0x244   :  { %v560_v19 = vpack.c.bf16 %v552_v42, %v552_v42  ;;  %768 = vmatpush.bf16.xpose.msrb.mxu0 %v759_v16 }
 0x246   :  { %v783_v4 = vpop.permute.xlu0 %782  ;;  %4286 = vmatmul.msk.bf16.vlgmr.msra.gmra.mxu1 %vm562_vm5, %v560_v19 }
 0x247   :  { %v788_v24 = vsel %vm312_vm2, %v783_v4, 0 }
 0x248   :  { %797 = vmatpush.bf16.xpose.msrb.mxu1 %v788_v24 }
 0x249   :  { %v5274_v0 = vpop.eup %5273 }
 0x24a   :  { %v551_v7 = vmul.f32 %v5274_v0, %v5710_v36  ;;  %v836_v2 = vpop.permute.xlu2 %835  ;;  %v537_v31 = vpop.xlane.xlu1 %536 }
 0x24b   :  { %5275 = vrcp.f32 %v537_v31 }
 0x24c   :  { %v559_v25 = vpack.c.bf16 %v551_v7, %v551_v7 }
 0x24e   :  { %v778_v28 = vpop.permute.xlu0 %777  ;;  %4285 = vmatmul.msk.bf16.vlgmr.msra.gmra.mxu0 %vm562_vm5, %v559_v25 }
 0x24f   :  { %4288 = vmatmul.msk.bf16.vlgmr.msra.gmra.mxu3 %vm312_vm2, %v720_v58 }
 0x251   :  { %v5276_v5 = vpop.eup %5275 }
 0x252   :  { %v553_v38 = vmul.f32 %v5276_v5, %v5724_v40  ;;  %v870_v33 = vpop.permute.xlu2 %869 }
 0x253   :  { %v875_v29 = vsel %vm312_vm2, %v870_v33, 0 }
 0x254   :  { %v561_v39 = vpack.c.bf16 %v553_v38, %v553_v38  ;;  %884 = vmatpush.bf16.xpose.msra.mxu0 %v875_v29 }
 0x256   :  { %v865_v36 = vpop.permute.xlu0 %864  ;;  %4287 = vmatmul.msk.bf16.vlgmr.msra.gmra.mxu2 %vm562_vm5, %v561_v39  ;;  %4290 = vmatmul.msk.bf16.vlgmr.msrb.gmra.mxu1 %vm312_vm2, %v778_v28 }
 0x257   :  { %942 = vmatpush.bf16.xpose.msra.mxu2 %v933_v45 }
 0x25a   :  { %v894_v50 = vpop.permute.xlu2 %893 }
 0x25e   :  { %v1120_v12 = vpop.permute.xlu0 %1119 }
 0x25f   :  { %4292 = vmatmul.msk.bf16.vlgmr.msrb.gmra.mxu3 %vm312_vm2, %v836_v2  ;;  %v1125_v51 = vsel %vm566_vm3, %v1120_v12, 0 }
 0x262   :  { %v1048_v52 = vpop.permute.xlu2 %1047  ;;  %v807_v22 = vpop.permute.xlu1 %806 }
 0x263   :  { %v1053_v40 = vsel %vm566_vm3, %v1048_v52, 0 }
 0x264   :  { %1062 = vmatpush.bf16.msra.mxu3 %v1053_v40 }
 0x266   :  { %v5851_v53 = vpop.permute.xlu0 %1307  ;;  %4291 = vmatmul.msk.bf16.vlgmr.msrb.gmra.mxu2 %vm312_vm2, %v807_v22 }
 0x267   :  { %1134 = vmatpush.bf16.msrb.mxu2 %v1125_v51 }
 0x26a   :  { %v1216_v57 = vpop.permute.xlu2 %1215  ;;  %v749_v58 = vpop.permute.xlu1 %748 }
 0x26b   :  { %4289 = vmatmul.msk.bf16.vlgmr.msrb.gmra.mxu0 %vm312_vm2, %v749_v58  ;;  %v1221_v41 = vsel %vm566_vm3, %v1216_v57, 0 }
 0x26e   :  { %v5855_v27 = vpop.permute.xlu0 %1238 }
 0x272   :  { %v1096_v23 = vpop.permute.xlu2 %1095  ;;  %v899_v60 = vpop.permute.xlu1 %898 }
 0x273   :  { %v1101_v56 = vsel %vm566_vm3, %v1096_v23, 0  ;;  %v904_v54 = vsel %vm312_vm2, %v899_v60, 0 }
 0x274   :  { %913 = vmatpush.bf16.xpose.msra.mxu1 %v904_v54 }
 0x276   :  { %4295 = vmatmul.msk.bf16.vlgmr.msra.gmra.mxu2 %vm312_vm2, %v923_v3  ;;  %v1168_v6 = vpop.permute.xlu0 %1167 }
 0x277   :  { %1230 = vmatpush.bf16.msra.mxu2 %v1221_v41  ;;  %v1173_v16 = vsel %vm566_vm3, %v1168_v6, 0 }
 0x27a   :  { %v1144_v63 = vpop.permute.xlu2 %1143  ;;  %v1072_v42 = vpop.permute.xlu1 %1071 }
 0x27b   :  { %v1149_v26 = vsel %vm566_vm3, %v1144_v63, 0  ;;  %v1077_v14 = vsel %vm566_vm3, %v1072_v42, 0  ;;  %4293 = vmatmul.msk.bf16.vlgmr.msra.gmra.mxu0 %vm312_vm2, %v865_v36  ;;  %4294 = vmatmul.msk.bf16.vlgmr.msra.gmra.mxu1 %vm312_vm2, %v894_v50 }
 0x27c   :  { %1110 = vmatpush.bf16.msrb.mxu1 %v1101_v56  ;;  %1086 = vmatpush.bf16.msrb.mxu0 %v1077_v14 }
 0x27d   :  { %1158 = vmatpush.bf16.msrb.mxu3 %v1149_v26 }
 0x280   :  { %1182 = vmatpush.bf16.msra.mxu0 %v1173_v16 }
 0x282   :  { %v1192_v19 = vpop.permute.xlu2 %1191 }
 0x283   :  { %v1197_v3 = vsel %vm566_vm3, %v1192_v19, 0 }
 0x284   :  { %1206 = vmatpush.bf16.msra.mxu1 %v1197_v3 }
 0x29c   :  { %v5867_v4 = vpop.f32.mrf.mxu1 }
 0x2a4   :  { %v619_v24 = vpop.f32.mrf.mxu1  ;;  %v5869_v0 = vpop.f32.mrf.mxu0 }
 0x2ac   :  { %v600_v7 = vpop.f32.mrf.mxu0 }
 0x2b1   :  { %v5871_v2 = vpop.f32.mrf.mxu2 }
 0x2b2   :  { %v5873_v31 = vpop.f32.mrf.mxu3 }
 0x2b9   :  { %v638_v25 = vpop.f32.mrf.mxu2 }
 0x2ba   :  { %v581_v28 = vpop.f32.mrf.mxu3 }
 0x2c2   :  { %v5875_v5 = vpop.f32.mrf.mxu3 }
 0x2c3   :  { %v5877_v38 = vpop.f32.mrf.mxu1 }
 0x2ca   :  { %v657_v33 = vpop.f32.mrf.mxu3 }
 0x2cb   :  { %v5879_v29 = vpop.f32.mrf.mxu0  ;;  %v695_v39 = vpop.f32.mrf.mxu1 }
 0x2d2   :  { %v741_v45 = vpop.f32.mrf.mxu3 }
 0x2d3   :  { %v676_v36 = vpop.f32.mrf.mxu0  ;;  %v799_v50 = vpop.f32.mrf.mxu1  ;;  %v948_v51 = vsel %vm465_vm4, %v741_v45, -inf }
 0x2d4   :  { %v954_v12 = vsel %vm465_vm4, %v799_v50, -inf }
 0x2d5   :  { %955 = vmax.xlane.f32.xlu0 %v954_v12 }
 0x2d9   :  { %v5882_v52 = vpop.f32.mrf.mxu2 }
 0x2da   :  { %v743_v22 = vpop.f32.mrf.mxu3 }
 0x2db   :  { %v801_v40 = vpop.f32.mrf.mxu1 }
 0x2dd   :  { %949 = vmax.xlane.f32.xlu0 %v948_v51 }
 0x2e1   :  { %v714_v57 = vpop.f32.mrf.mxu2 }
 0x2e2   :  { %v5885_v58 = vpop.f32.mrf.mxu3 }
 0x2e3   :  { %v960_v23 = vsel %vm465_vm4, %v5885_v58, -inf }
 0x2e4   :  { %961 = vmax.xlane.f32.xlu2 %v960_v23 }
 0x2e8   :  { %v770_v60 = vpop.f32.mrf.mxu0 }
 0x2e9   :  { %v828_v56 = vpop.f32.mrf.mxu2  ;;  %v951_v54 = vsel %vm465_vm4, %v770_v60, -inf }
 0x2ea   :  { %v859_v41 = vpop.f32.mrf.mxu3  ;;  %952 = vmax.xlane.f32.xlu1 %v951_v54  ;;  %v957_v42 = vsel %vm465_vm4, %v828_v56, -inf }
 0x2f0   :  { %v772_v6 = vpop.f32.mrf.mxu0 }
 0x2f1   :  { %v830_v63 = vpop.f32.mrf.mxu2  ;;  %1236 = vrot.lane.b32.xlu0 %v5714_v37, %s5416_s16 }
 0x2f2   :  { %958 = vmax.xlane.f32.xlu1 %v957_v42 }
 0x2f8   :  { %v5893_v26 = vpop.f32.mrf.mxu0  ;;  %v915_v14 = vpop.f32.mrf.mxu1 }
 0x2f9   :  { %v5895_v16 = vpop.f32.mrf.mxu2  ;;  %1399 = vrot.lane.b32.xlu0 %v5697_v21, %s5416_s16  ;;  %v966_v25 = vsel %vm465_vm4, %v915_v14, -inf  ;;  %v963_v28 = vsel %vm465_vm4, %v5893_v26, -inf }
 0x2fa   :  { %v969_v19 = vsel %vm465_vm4, %v5895_v16, -inf }
 0x2fb   :  { %970 = vmax.xlane.f32.xlu2 %v969_v19 }
 0x300   :  { %v888_v3 = vpop.f32.mrf.mxu0  ;;  %v917_v24 = vpop.f32.mrf.mxu1 }
 0x301   :  { %v946_v7 = vpop.f32.mrf.mxu2 }
 0x30b   :  { %1305 = vrot.lane.b32.xlu1 %v5763_v61, %s5416_s16 }
 0x323   :  { %967 = vmax.xlane.f32.xlu0 %v966_v25 }
 0x335   :  { %964 = vmax.xlane.f32.xlu1 %v963_v28 }
 0x337   :  { %1261 = vrot.lane.b32.xlu0 %v5740_v49, %s5416_s16 }
 0x348   :  { %v956_v33 = vpop.xlane.xlu0 %955 }
 0x349   :  { %v974_v39 = vsub.f32 %v799_v50, %v956_v33 }
 0x34b   :  { %v984_v36 = vmul.f32 1.442695, %v974_v39 }
 0x34d   :  { %5277 = vpow2.f32 %v984_v36 }
 0x350   :  { %v950_v22 = vpop.xlane.xlu0 %949 }
 0x351   :  { %v972_v57 = vsub.f32 %v741_v45, %v950_v22 }
 0x353   :  { %v5908_v12 = vpop.eup %5277  ;;  %v980_v41 = vmul.f32 1.442695, %v972_v57 }
 0x354   :  { %v1002_v54 = vsel %vm465_vm4, %v5908_v12, 0.0 }
 0x357   :  { %v962_v25 = vpop.xlane.xlu2 %961 }
 0x358   :  { %v976_v39 = vsub.f32 %v5885_v58, %v962_v25 }
 0x35a   :  { %v988_v22 = vmul.f32 1.442695, %v976_v39 }
 0x35d   :  { %v953_v40 = vpop.xlane.xlu1 %952 }
 0x35e   :  { %v973_v51 = vsub.f32 %v770_v60, %v953_v40 }
 0x360   :  { %v982_v23 = vmul.f32 1.442695, %v973_v51 }
 0x361   :  { %1003 = vadd.xlane.f32.xlu0 %v1002_v54 }
 0x362   :  { %5279 = vpow2.f32 %v982_v23 }
 0x363   :  { %5281 = vpow2.f32 %v980_v41 }
 0x365   :  { %v959_v6 = vpop.xlane.xlu1 %958 }
 0x366   :  { %v975_v63 = vsub.f32 %v828_v56, %v959_v6  ;;  %v5928_v56 = vpop.permute.xlu0 %1236 }
 0x368   :  { %v5912_v42 = vpop.eup %5279  ;;  %v986_v50 = vmul.f32 1.442695, %v975_v63 }
 0x369   :  { %v999_v19 = vsel %vm465_vm4, %v5912_v42, 0.0  ;;  %v5916_v60 = vpop.eup %5281 }
 0x36a   :  { %5283 = vpow2.f32 %v986_v50  ;;  %1000 = vadd.xlane.f32.xlu1 %v999_v19  ;;  %v996_v24 = vsel %vm465_vm4, %v5916_v60, 0.0 }
 0x36e   :  { %v5936_v7 = vpop.permute.xlu0 %1399  ;;  %v971_v40 = vpop.xlane.xlu2 %970 }
 0x36f   :  { %v979_v23 = vsub.f32 %v5895_v16, %v971_v40 }
 0x370   :  { %v5918_v45 = vpop.eup %5283 }
 0x371   :  { %v1005_v3 = vsel %vm465_vm4, %v5918_v45, 0.0 }
 0x372   :  { %1006 = vadd.xlane.f32.xlu2 %v1005_v3  ;;  %997 = vadd.xlane.f32.xlu1 %v996_v24 }
 0x375   :  { %1397 = vrot.lane.b32.xlu0 %v5708_v34, %s5416_s16 }
 0x37d   :  { %1328 = vrot.lane.b32.xlu0 %v5750_v11, %s5416_s16  ;;  %v5943_v51 = vpop.permute.xlu1 %1305 }
 0x385   :  { %1351 = vrot.lane.b32.xlu0 %v5746_v55, %s5416_s16 }
 0x38a   :  { %1284 = vrot.lane.b32.xlu2 %v5722_v44, %s5416_s16 }
 0x38d   :  { %1579 = vrot.lane.b32.xlu0 %v5756_v46, %s5416_s16 }
 0x395   :  { %1755 = vrot.lane.b32.xlu0 %v5661_v17, %s5417_s17 }
 0x396   :  { %v968_v28 = vpop.xlane.xlu0 %967 }
 0x397   :  { %v978_v33 = vsub.f32 %v915_v14, %v968_v28  ;;  %v994_v14 = vmul.f32 1.442695, %v979_v23 }
 0x399   :  { %v992_v36 = vmul.f32 1.442695, %v978_v33 }
 0x39b   :  { %5285 = vpow2.f32 %v992_v36 }
 0x39c   :  { %5287 = vpow2.f32 %v988_v22 }
 0x39d   :  { %1621 = vrot.lane.b32.xlu0 %v5795_v8, %s5416_s16  ;;  %5289 = vpow2.f32 %v994_v14 }
 0x3a1   :  { %v5945_v57 = vpop.eup %5285 }
 0x3a2   :  { %v1014_v17 = vsel %vm465_vm4, %v5945_v57, 0.0  ;;  %v5952_v58 = vpop.eup %5287 }
 0x3a3   :  { %1015 = vadd.xlane.f32.xlu1 %v1014_v17  ;;  %v1008_v6 = vsel %vm465_vm4, %v5952_v58, 0.0  ;;  %v5959_v16 = vpop.eup %5289 }
 0x3a4   :  { %v1017_v50 = vsel %vm465_vm4, %v5959_v16, 0.0 }
 0x3a5   :  { %1642 = vrot.lane.b32.xlu0 %v5820_v15, %s5416_s16 }
 0x3a8   :  { %v965_v54 = vpop.xlane.xlu1 %964 }
 0x3a9   :  { %v977_v41 = vsub.f32 %v5893_v26, %v965_v54  ;;  %v1262_v3 = vpop.permute.xlu0 %1261 }
 0x3aa   :  { %v1267_v23 = vsel %vm312_vm2, %v1262_v3, 0  ;;  %v1244_v3 = vsel %vm312_vm2, %v5855_v27, 0 }
 0x3ab   :  { %v990_v63 = vmul.f32 1.442695, %v977_v41  ;;  %1009 = vadd.xlane.f32.xlu1 %v1008_v6 }
 0x3ad   :  { %5291 = vpow2.f32 %v990_v63  ;;  %1753 = vrot.lane.b32.xlu0 %v5763_v61, %s5417_s17 }
 0x3b3   :  { %v5963_v19 = vpop.eup %5291  ;;  %1018 = vadd.xlane.f32.xlu1 %v1017_v50 }
 0x3b4   :  { %v1011_v26 = vsel %vm465_vm4, %v5963_v19, 0.0 }
 0x3b5   :  { %1012 = vadd.xlane.f32.xlu2 %v1011_v26  ;;  %v1313_v26 = vsel %vm312_vm2, %v5851_v53, 0 }
 0x3cc   :  { %1330 = vrot.lane.b32.xlu1 %v5728_v59, %s5416_s16 }
 0x3cd   :  { %1259 = vrot.lane.b32.xlu2 %v5775_v1, %s5416_s16 }
 0x3d4   :  { %v1004_v61 = vpop.xlane.xlu0 %1003  ;;  %1282 = vrot.lane.b32.xlu1 %v5736_v48, %s5416_s16 }
 0x3d5   :  { %5293 = vrcp.f32 %v1004_v61  ;;  %1353 = vrot.lane.b32.xlu2 %v5761_v43, %s5416_s16 }
 0x3db   :  { %v5294_v24 = vpop.eup %5293 }
 0x3dc   :  { %v1030_v25 = vmul.f32 %v5294_v24, %v5908_v12  ;;  %1376 = vrot.lane.b32.xlu1 %v5787_v9, %s5416_s16 }
 0x3dd   :  { %1374 = vrot.lane.b32.xlu2 %v5773_v30, %s5416_s16  ;;  %v1001_v28 = vpop.xlane.xlu1 %1000 }
 0x3de   :  { %v1038_v33 = vpack.c.bf16 %v1030_v25, %v1030_v25  ;;  %5295 = vrcp.f32 %v1001_v28 }
 0x3e0   :  { %4298 = vmatmul.msk.bf16.vlgmr.msrb.gmra.mxu1 %vm562_vm5, %v1038_v33 }
 0x3e4   :  { %v5296_v39 = vpop.eup %5295  ;;  %1558 = vrot.lane.b32.xlu1 %v5809_v47, %s5416_s16 }
 0x3e5   :  { %v1029_v36 = vmul.f32 %v5296_v39, %v5912_v42  ;;  %v1007_v22 = vpop.xlane.xlu2 %1006  ;;  %1516 = vrot.lane.b32.xlu2 %v5785_v35, %s5416_s16  ;;  %v998_v12 = vpop.xlane.xlu1 %997 }
 0x3e6   :  { %5297 = vrcp.f32 %v1007_v22 }
 0x3e7   :  { %v1037_v40 = vpack.c.bf16 %v1029_v36, %v1029_v36  ;;  %5299 = vrcp.f32 %v998_v12  ;;  %v1398_v53 = vpop.permute.xlu0 %1397 }
 0x3e9   :  { %4297 = vmatmul.msk.bf16.vlgmr.msrb.gmra.mxu0 %vm562_vm5, %v1037_v40 }
 0x3ea   :  { %1276 = vmatpush.bf16.xpose.msrb.mxu0 %v1267_v23 }
 0x3ec   :  { %v5298_v17 = vpop.eup %5297 }
 0x3ed   :  { %v5300_v14 = vpop.eup %5299  ;;  %v1031_v54 = vmul.f32 %v5298_v17, %v5918_v45  ;;  %v1285_v41 = vpop.permute.xlu2 %1284  ;;  %1537 = vrot.lane.b32.xlu2 %v5802_v13, %s5416_s16 }
 0x3ee   :  { %v1028_v42 = vmul.f32 %v5300_v14, %v5916_v60  ;;  %v1290_v6 = vsel %vm312_vm2, %v1285_v41, 0 }
 0x3ef   :  { %v1039_v63 = vpack.c.bf16 %v1031_v54, %v1031_v54  ;;  %1299 = vmatpush.bf16.xpose.msrb.mxu1 %v1290_v6  ;;  %v1329_v25 = vpop.permute.xlu0 %1328  ;;  %v1405_v54 = vsel %vm312_vm2, %v5936_v7, 0 }
 0x3f0   :  { %v1036_v50 = vpack.c.bf16 %v1028_v42, %v1028_v42 }
 0x3f1   :  { %4299 = vmatmul.msk.bf16.vlgmr.msrb.gmra.mxu2 %vm562_vm5, %v1039_v63 }
 0x3f2   :  { %4296 = vmatmul.msk.bf16.vlgmr.msra.gmra.mxu3 %vm562_vm5, %v1036_v50  ;;  %1322 = vmatpush.bf16.xpose.msrb.mxu2 %v1313_v26 }
 0x3f3   :  { %1253 = vmatpush.bf16.xpose.msra.mxu3 %v1244_v3 }
 0x3f5   :  { %1663 = vrot.lane.b32.xlu2 %v5800_v10, %s5416_s16 }
 0x3f7   :  { %v1352_v12 = vpop.permute.xlu0 %1351 }
 0x3fd   :  { %1600 = vrot.lane.b32.xlu2 %v5814_v18, %s5416_s16 }
 0x3ff   :  { %v1580_v41 = vpop.permute.xlu0 %1579 }
 0x400   :  { %v1585_v50 = vsel %vm566_vm3, %v1580_v41, 0 }
 0x405   :  { %1686 = vrot.lane.b32.xlu2 %v5670_v62, %s5417_s17 }
 0x407   :  { %v6019_v7 = vpop.permute.xlu0 %1755 }
 0x416   :  { %v1016_v60 = vpop.xlane.xlu1 %1015 }
 0x417   :  { %5301 = vrcp.f32 %v1016_v60  ;;  %v1622_v60 = vpop.permute.xlu0 %1621 }
 0x41d   :  { %v5302_v45 = vpop.eup %5301 }
 0x41e   :  { %v1034_v61 = vmul.f32 %v5302_v45, %v5945_v57  ;;  %v1010_v27 = vpop.xlane.xlu1 %1009 }
 0x41f   :  { %5303 = vrcp.f32 %v1010_v27 }
 0x420   :  { %v1042_v24 = vpack.c.bf16 %v1034_v61, %v1034_v61 }
 0x422   :  { %4302 = vmatmul.msk.bf16.vlgmr.msra.gmra.mxu1 %vm562_vm5, %v1042_v24  ;;  %v1627_v24 = vsel %vm566_vm3, %v1622_v60, 0 }
 0x425   :  { %v5304_v28 = vpop.eup %5303 }
 0x426   :  { %v1032_v33 = vmul.f32 %v5304_v28, %v5952_v58  ;;  %v1019_v39 = vpop.xlane.xlu1 %1018  ;;  %v1643_v28 = vpop.permute.xlu0 %1642 }
 0x427   :  { %5305 = vrcp.f32 %v1019_v39  ;;  %v1648_v39 = vsel %vm566_vm3, %v1643_v28, 0 }
 0x428   :  { %v1040_v36 = vpack.c.bf16 %v1032_v33, %v1032_v33  ;;  %v1013_v22 = vpop.xlane.xlu2 %1012 }
 0x429   :  { %5307 = vrcp.f32 %v1013_v22 }
 0x42a   :  { %4300 = vmatmul.msk.bf16.vlgmr.msrb.gmra.mxu3 %vm562_vm5, %v1040_v36 }
 0x42d   :  { %v5306_v62 = vpop.eup %5305 }
 0x42e   :  { %v1035_v57 = vmul.f32 %v5306_v62, %v5959_v16 }
 0x42f   :  { %v5308_v40 = vpop.eup %5307 }
 0x430   :  { %v1043_v23 = vpack.c.bf16 %v1035_v57, %v1035_v57  ;;  %v1033_v17 = vmul.f32 %v5308_v40, %v5963_v19  ;;  %v1260_v14 = vpop.permute.xlu2 %1259 }
 0x432   :  { %v1041_v58 = vpack.c.bf16 %v1033_v17, %v1033_v17  ;;  %4303 = vmatmul.msk.bf16.vlgmr.msra.gmra.mxu2 %vm562_vm5, %v1043_v23 }
 0x433   :  { %1414 = vmatpush.bf16.xpose.msra.mxu2 %v1405_v54 }
 0x434   :  { %4301 = vmatmul.msk.bf16.vlgmr.msra.gmra.mxu0 %vm562_vm5, %v1041_v58 }
 0x438   :  { %v1354_v42 = vpop.permute.xlu2 %1353 }
 0x439   :  { %v1359_v6 = vsel %vm312_vm2, %v1354_v42, 0 }
 0x43a   :  { %4304 = vmatmul.msk.bf16.vlgmr.msra.gmra.mxu3 %vm312_vm2, %v5928_v56  ;;  %1368 = vmatpush.bf16.xpose.msra.mxu0 %v1359_v6 }
 0x43e   :  { %v1331_v16 = vpop.permute.xlu1 %1330 }
 0x43f   :  { %v1336_v19 = vsel %vm312_vm2, %v1331_v16, 0 }
 0x440   :  { %v1375_v63 = vpop.permute.xlu2 %1374  ;;  %1345 = vmatpush.bf16.xpose.msrb.mxu3 %v1336_v19 }
 0x442   :  { %4307 = vmatmul.msk.bf16.vlgmr.msrb.gmra.mxu2 %vm312_vm2, %v5943_v51 }
 0x443   :  { %1594 = vmatpush.bf16.msrb.mxu2 %v1585_v50 }
 0x444   :  { %4305 = vmatmul.msk.bf16.vlgmr.msrb.gmra.mxu0 %vm312_vm2, %v1260_v14 }
 0x446   :  { %v1283_v26 = vpop.permute.xlu1 %1282 }
 0x447   :  { %4306 = vmatmul.msk.bf16.vlgmr.msrb.gmra.mxu1 %vm312_vm2, %v1283_v26 }
 0x448   :  { %v1517_v56 = vpop.permute.xlu2 %1516 }
 0x449   :  { %v1522_v3 = vsel %vm566_vm3, %v1517_v56, 0 }
 0x44a   :  { %4308 = vmatmul.msk.bf16.vlgmr.msrb.gmra.mxu3 %vm312_vm2, %v1329_v25 }
 0x44b   :  { %1531 = vmatpush.bf16.msra.mxu3 %v1522_v3 }
 0x44e   :  { %v1377_v45 = vpop.permute.xlu1 %1376 }
 0x44f   :  { %v1382_v61 = vsel %vm312_vm2, %v1377_v45, 0 }
 0x450   :  { %v1538_v27 = vpop.permute.xlu2 %1537  ;;  %1391 = vmatpush.bf16.xpose.msra.mxu1 %v1382_v61 }
 0x451   :  { %v1543_v51 = vsel %vm566_vm3, %v1538_v27, 0 }
 0x452   :  { %4311 = vmatmul.msk.bf16.vlgmr.msra.gmra.mxu2 %vm312_vm2, %v1398_v53  ;;  %1552 = vmatpush.bf16.msrb.mxu0 %v1543_v51 }
 0x454   :  { %4309 = vmatmul.msk.bf16.vlgmr.msra.gmra.mxu0 %vm312_vm2, %v1352_v12 }
 0x456   :  { %1636 = vmatpush.bf16.msra.mxu0 %v1627_v24  ;;  %v1559_v33 = vpop.permute.xlu1 %1558 }
 0x457   :  { %v1564_v25 = vsel %vm566_vm3, %v1559_v33, 0  ;;  %4310 = vmatmul.msk.bf16.vlgmr.msra.gmra.mxu1 %vm312_vm2, %v1375_v63 }
 0x458   :  { %v1664_v36 = vpop.permute.xlu2 %1663  ;;  %1573 = vmatpush.bf16.msrb.mxu1 %v1564_v25 }
 0x459   :  { %v1669_v22 = vsel %vm566_vm3, %v1664_v36, 0 }
 0x45a   :  { %1678 = vmatpush.bf16.msra.mxu2 %v1669_v22 }
 0x45c   :  { %1657 = vmatpush.bf16.msra.mxu1 %v1648_v39 }
 0x45d   :  { %v6037_v53 = vpop.f32.mrf.mxu1 }
 0x460   :  { %v1601_v62 = vpop.permute.xlu2 %1600 }
 0x461   :  { %v1606_v12 = vsel %vm566_vm3, %v1601_v62, 0 }
 0x462   :  { %1615 = vmatpush.bf16.msrb.mxu3 %v1606_v12 }
 0x465   :  { %v1114_v57 = vpop.f32.mrf.mxu1 }
 0x466   :  { %v6040_v40 = vpop.f32.mrf.mxu0 }
 0x467   :  { %v5195_v23 = vpack.i.bf16 %v6037_v53, %v6040_v40 }
 0x46e   :  { %v1090_v17 = vpop.f32.mrf.mxu0 }
 0x474   :  { %v6044_v14 = vpop.f32.mrf.mxu2 }
 0x475   :  { %v6046_v54 = vpop.f32.mrf.mxu3 }
 0x47c   :  { %v1138_v58 = vpop.f32.mrf.mxu2 }
 0x47d   :  { %v1066_v41 = vpop.f32.mrf.mxu3 }
 0x49f   :  { %v6048_v42 = vpop.f32.mrf.mxu1 }
 0x4a7   :  { %v1210_v6 = vpop.f32.mrf.mxu1 }
 0x4ad   :  { %v6050_v16 = vpop.f32.mrf.mxu3 }
 0x4ae   :  { %v5215_v19 = vpack.i.bf16 %v6050_v16, %v6046_v54 }
 0x4b1   :  { %v6054_v63 = vpop.f32.mrf.mxu0 }
 0x4b2   :  { %v5200_v50 = vpack.i.bf16 %v6048_v42, %v6054_v63 }
 0x4b5   :  { %v1162_v26 = vpop.f32.mrf.mxu3  ;;  %v6058_v56 = vpop.f32.mrf.mxu2 }
 0x4b6   :  { %v5185_v3 = vpack.i.bf16 %v6058_v56, %v6044_v14 }
 0x4b9   :  { %v1186_v60 = vpop.f32.mrf.mxu0 }
 0x4bd   :  { %v1234_v45 = vpop.f32.mrf.mxu2  ;;  %v6062_v61 = vpop.f32.mrf.mxu3 }
 0x4c1   :  { %v1278_v27 = vpop.f32.mrf.mxu0 }
 0x4c2   :  { %v1423_v51 = vsel %vm465_vm4, %v1278_v27, -inf }
 0x4c3   :  { %1424 = vmax.xlane.f32.xlu2 %v1423_v51 }
 0x4c4   :  { %v1301_v24 = vpop.f32.mrf.mxu1 }
 0x4c5   :  { %v1257_v28 = vpop.f32.mrf.mxu3  ;;  %v1324_v33 = vpop.f32.mrf.mxu2  ;;  %v1426_v25 = vsel %vm465_vm4, %v1301_v24, -inf }
 0x4c6   :  { %1427 = vmax.xlane.f32.xlu1 %v1426_v25  ;;  %v1429_v12 = vsel %vm465_vm4, %v1324_v33, -inf  ;;  %v1420_v25 = vsel %vm465_vm4, %v6062_v61, -inf }
 0x4c9   :  { %v1280_v39 = vpop.f32.mrf.mxu0 }
 0x4cc   :  { %v1303_v36 = vpop.f32.mrf.mxu1 }
 0x4cd   :  { %v1326_v22 = vpop.f32.mrf.mxu2  ;;  %v6066_v62 = vpop.f32.mrf.mxu3 }
 0x4ce   :  { %1430 = vmax.xlane.f32.xlu1 %v1429_v12  ;;  %v1432_v57 = vsel %vm465_vm4, %v6066_v62, -inf  ;;  %v6087_v36 = vpop.permute.xlu2 %1686 }
 0x4cf   :  { %1433 = vmax.xlane.f32.xlu2 %v1432_v57 }
 0x4d1   :  { %v6071_v17 = vpop.f32.mrf.mxu0 }
 0x4d2   :  { %v1435_v60 = vsel %vm465_vm4, %v6071_v17, -inf }
 0x4d4   :  { %v1393_v58 = vpop.f32.mrf.mxu1 }
 0x4d5   :  { %v1349_v41 = vpop.f32.mrf.mxu3  ;;  %v1416_v6 = vpop.f32.mrf.mxu2  ;;  %v1438_v26 = vsel %vm465_vm4, %v1393_v58, -inf }
 0x4d6   :  { %1439 = vmax.xlane.f32.xlu0 %v1438_v26  ;;  %1436 = vmax.xlane.f32.xlu1 %v1435_v60  ;;  %v1441_v39 = vsel %vm465_vm4, %v1416_v6, -inf }
 0x4d9   :  { %v1372_v45 = vpop.f32.mrf.mxu0 }
 0x4da   :  { %v6089_v45 = vpop.permute.xlu0 %1753 }
 0x4dc   :  { %v1395_v51 = vpop.f32.mrf.mxu1 }
 0x4dd   :  { %v1418_v28 = vpop.f32.mrf.mxu2 }
 0x4de   :  { %1421 = vmax.xlane.f32.xlu0 %v1420_v25 }
 0x4e6   :  { %1442 = vmax.xlane.f32.xlu0 %v1441_v39 }
 0x4e7   :  { %1847 = vrot.lane.b32.xlu2 %v5697_v21, %s5417_s17 }
 0x4fa   :  { %1709 = vrot.lane.b32.xlu0 %v5740_v49, %s5417_s17 }
 0x502   :  { %1732 = vrot.lane.b32.xlu0 %v5722_v44, %s5417_s17 }
 0x50a   :  { %1778 = vrot.lane.b32.xlu0 %v5728_v59, %s5417_s17 }
 0x536   :  { %v1425_v22 = vpop.xlane.xlu2 %1424 }
 0x537   :  { %v1445_v41 = vsub.f32 %v1278_v27, %v1425_v22 }
 0x539   :  { %v1428_v12 = vpop.xlane.xlu1 %1427  ;;  %v1454_v60 = vmul.f32 1.442695, %v1445_v41 }
 0x53a   :  { %v1446_v57 = vsub.f32 %v1301_v24, %v1428_v12 }
 0x53c   :  { %v1456_v26 = vmul.f32 1.442695, %v1446_v57 }
 0x53e   :  { %5309 = vpow2.f32 %v1456_v26 }
 0x53f   :  { %5311 = vpow2.f32 %v1454_v60 }
 0x541   :  { %v1431_v21 = vpop.xlane.xlu1 %1430 }
 0x542   :  { %v1447_v51 = vsub.f32 %v1324_v33, %v1431_v21 }
 0x544   :  { %v5310_v49 = vpop.eup %5309  ;;  %v1458_v28 = vmul.f32 1.442695, %v1447_v51 }
 0x545   :  { %v1474_v44 = vsel %vm465_vm4, %v5310_v49, 0.0  ;;  %v6092_v25 = vpop.eup %5311 }
 0x546   :  { %5313 = vpow2.f32 %v1458_v28  ;;  %1475 = vadd.xlane.f32.xlu1 %v1474_v44  ;;  %v1471_v33 = vsel %vm465_vm4, %v6092_v25, 0.0 }
 0x549   :  { %v1440_v59 = vpop.xlane.xlu0 %1439 }
 0x54a   :  { %v1450_v39 = vsub.f32 %v1393_v58, %v1440_v59 }
 0x54c   :  { %v6094_v24 = vpop.eup %5313  ;;  %v1464_v27 = vmul.f32 1.442695, %v1450_v39 }
 0x54d   :  { %v1477_v22 = vsel %vm465_vm4, %v6094_v24, 0.0 }
 0x54e   :  { %5315 = vpow2.f32 %v1464_v27  ;;  %1478 = vadd.xlane.f32.xlu2 %v1477_v22  ;;  %1472 = vadd.xlane.f32.xlu1 %v1471_v33 }
 0x551   :  { %v1422_v12 = vpop.xlane.xlu0 %1421 }
 0x552   :  { %v1444_v57 = vsub.f32 %v6062_v61, %v1422_v12 }
 0x554   :  { %v6101_v41 = vpop.eup %5315  ;;  %v1452_v26 = vmul.f32 1.442695, %v1444_v57 }
 0x555   :  { %v1486_v58 = vsel %vm465_vm4, %v6101_v41, 0.0 }
 0x556   :  { %5317 = vpow2.f32 %v1452_v26  ;;  %1487 = vadd.xlane.f32.xlu1 %v1486_v58 }
 0x559   :  { %v1443_v60 = vpop.xlane.xlu0 %1442 }
 0x55a   :  { %v1451_v21 = vsub.f32 %v1416_v6, %v1443_v60  ;;  %v1437_v6 = vpop.xlane.xlu1 %1436 }
 0x55b   :  { %v1449_v39 = vsub.f32 %v6071_v17, %v1437_v6  ;;  %v1761_v6 = vsel %vm312_vm2, %v6019_v7, 0 }
 0x55c   :  { %v6105_v51 = vpop.eup %5317  ;;  %v1466_v28 = vmul.f32 1.442695, %v1451_v21 }
 0x55d   :  { %v1468_v44 = vsel %vm465_vm4, %v6105_v51, 0.0  ;;  %v1462_v27 = vmul.f32 1.442695, %v1449_v39 }
 0x55e   :  { %5319 = vpow2.f32 %v1466_v28  ;;  %1469 = vadd.xlane.f32.xlu1 %v1468_v44 }
 0x55f   :  { %5321 = vpow2.f32 %v1462_v27 }
 0x564   :  { %v6109_v59 = vpop.eup %5319 }
 0x565   :  { %v1489_v61 = vsel %vm465_vm4, %v6109_v59, 0.0  ;;  %v6124_v22 = vpop.eup %5321 }
 0x566   :  { %1490 = vadd.xlane.f32.xlu0 %v1489_v61  ;;  %1707 = vrot.lane.b32.xlu2 %v5775_v1, %s5417_s17  ;;  %v1434_v1 = vpop.xlane.xlu2 %1433 }
 0x567   :  { %v1448_v33 = vsub.f32 %v6066_v62, %v1434_v1 }
 0x56e   :  { %v1848_v62 = vpop.permute.xlu2 %1847 }
 0x577   :  { %1684 = vrot.lane.b32.xlu1 %v5714_v37, %s5417_s17  ;;  %v1483_v37 = vsel %vm465_vm4, %v6124_v22, 0.0 }
 0x57a   :  { %1845 = vrot.lane.b32.xlu0 %v5708_v34, %s5417_s17  ;;  %v1460_v34 = vmul.f32 1.442695, %v1448_v33 }
 0x57c   :  { %5323 = vpow2.f32 %v1460_v34 }
 0x582   :  { %1824 = vrot.lane.b32.xlu0 %v5787_v9, %s5417_s17  ;;  %v6129_v17 = vpop.eup %5323 }
 0x583   :  { %v1480_v9 = vsel %vm465_vm4, %v6129_v17, 0.0 }
 0x58a   :  { %1964 = vrot.lane.b32.xlu0 %v5785_v35, %s5417_s17  ;;  %v1710_v35 = vpop.permute.xlu0 %1709 }
 0x58b   :  { %v1715_v39 = vsel %vm312_vm2, %v1710_v35, 0 }
 0x58f   :  { %1484 = vadd.xlane.f32.xlu2 %v1483_v37 }
 0x592   :  { %v1733_v21 = vpop.permute.xlu0 %1732 }
 0x59a   :  { %v1779_v27 = vpop.permute.xlu0 %1778 }
 0x5a1   :  { %1481 = vadd.xlane.f32.xlu1 %v1480_v9  ;;  %v1692_v9 = vsel %vm312_vm2, %v6087_v36, 0 }
 0x5a7   :  { %1776 = vrot.lane.b32.xlu2 %v5750_v11, %s5417_s17  ;;  %v1738_v11 = vsel %vm312_vm2, %v1733_v21, 0 }
 0x5af   :  { %1799 = vrot.lane.b32.xlu2 %v5746_v55, %s5417_s17 }
 0x5b7   :  { %2027 = vrot.lane.b32.xlu2 %v5756_v46, %s5417_s17 }
 0x5b9   :  { %v1476_v12 = vpop.xlane.xlu1 %1475 }
 0x5ba   :  { %5325 = vrcp.f32 %v1476_v12  ;;  %1730 = vrot.lane.b32.xlu1 %v5736_v48, %s5417_s17 }
 0x5c0   :  { %v5326_v57 = vpop.eup %5325 }
 0x5c1   :  { %v1502_v26 = vmul.f32 %v5326_v57, %v5310_v49  ;;  %v1479_v58 = vpop.xlane.xlu2 %1478  ;;  %v1473_v60 = vpop.xlane.xlu1 %1472 }
 0x5c2   :  { %5327 = vrcp.f32 %v1479_v58  ;;  %1801 = vrot.lane.b32.xlu1 %v5761_v43, %s5417_s17 }
 0x5c3   :  { %v1510_v55 = vpack.c.bf16 %v1502_v26, %v1502_v26  ;;  %5329 = vrcp.f32 %v1473_v60 }
 0x5c5   :  { %4314 = vmatmul.msk.bf16.vlgmr.msrb.gmra.mxu1 %vm562_vm5, %v1510_v55 }
 0x5c6   :  { %1747 = vmatpush.bf16.xpose.msrb.mxu1 %v1738_v11 }
 0x5c8   :  { %v5328_v46 = vpop.eup %5327 }
 0x5c9   :  { %v5330_v28 = vpop.eup %5329  ;;  %v1503_v48 = vmul.f32 %v5328_v46, %v6094_v24  ;;  %v1488_v44 = vpop.xlane.xlu1 %1487 }
 0x5ca   :  { %v1501_v49 = vmul.f32 %v5330_v28, %v6092_v25  ;;  %5331 = vrcp.f32 %v1488_v44  ;;  %1822 = vrot.lane.b32.xlu1 %v5773_v30, %s5417_s17  ;;  %v1708_v36 = vpop.permute.xlu2 %1707 }
 0x5cb   :  { %v1511_v61 = vpack.c.bf16 %v1503_v48, %v1503_v48 }
 0x5cc   :  { %v1509_v43 = vpack.c.bf16 %v1501_v49, %v1501_v49 }
 0x5cd   :  { %4315 = vmatmul.msk.bf16.vlgmr.msrb.gmra.mxu2 %vm562_vm5, %v1511_v61 }
 0x5ce   :  { %4313 = vmatmul.msk.bf16.vlgmr.msrb.gmra.mxu0 %vm562_vm5, %v1509_v43  ;;  %1770 = vmatpush.bf16.xpose.msrb.mxu2 %v1761_v6 }
 0x5cf   :  { %1724 = vmatpush.bf16.xpose.msrb.mxu0 %v1715_v39 }
 0x5d0   :  { %v5332_v24 = vpop.eup %5331 }
 0x5d1   :  { %v1506_v25 = vmul.f32 %v5332_v24, %v6101_v41  ;;  %v1470_v1 = vpop.xlane.xlu1 %1469 }
 0x5d2   :  { %5333 = vrcp.f32 %v1470_v1  ;;  %1985 = vrot.lane.b32.xlu1 %v5802_v13, %s5417_s17  ;;  %v1853_v13 = vsel %vm312_vm2, %v1848_v62, 0 }
 0x5d3   :  { %v1514_v30 = vpack.c.bf16 %v1506_v25, %v1506_v25 }
 0x5d5   :  { %4318 = vmatmul.msk.bf16.vlgmr.msra.gmra.mxu1 %vm562_vm5, %v1514_v30 }
 0x5d8   :  { %v5334_v7 = vpop.eup %5333 }
 0x5d9   :  { %v1500_v37 = vmul.f32 %v5334_v7, %v6105_v51  ;;  %v1491_v33 = vpop.xlane.xlu0 %1490 }
 0x5da   :  { %5335 = vrcp.f32 %v1491_v33 }
 0x5db   :  { %v1508_v34 = vpack.c.bf16 %v1500_v37, %v1500_v37 }
 0x5dd   :  { %4312 = vmatmul.msk.bf16.vlgmr.msra.gmra.mxu3 %vm562_vm5, %v1508_v34 }
 0x5de   :  { %1701 = vmatpush.bf16.xpose.msra.mxu3 %v1692_v9 }
 0x5e0   :  { %v5336_v41 = vpop.eup %5335 }
 0x5e1   :  { %v1507_v35 = vmul.f32 %v5336_v41, %v6109_v59 }
 0x5e3   :  { %v1515_v12 = vpack.c.bf16 %v1507_v35, %v1507_v35 }
 0x5e5   :  { %4319 = vmatmul.msk.bf16.vlgmr.msra.gmra.mxu2 %vm562_vm5, %v1515_v12 }
 0x5e6   :  { %1862 = vmatpush.bf16.xpose.msra.mxu2 %v1853_v13 }
 0x5e9   :  { %v1685_v21 = vpop.permute.xlu1 %1684 }
 0x5ec   :  { %v1846_v57 = vpop.permute.xlu0 %1845 }
 0x5f4   :  { %v1825_v51 = vpop.permute.xlu0 %1824 }
 0x5f5   :  { %v1830_v26 = vsel %vm312_vm2, %v1825_v51, 0  ;;  %4323 = vmatmul.msk.bf16.vlgmr.msrb.gmra.mxu2 %vm312_vm2, %v6089_v45 }
 0x5f6   :  { %1839 = vmatpush.bf16.xpose.msra.mxu1 %v1830_v26 }
 0x5fc   :  { %v1965_v43 = vpop.permute.xlu0 %1964 }
 0x5fd   :  { %v1970_v6 = vsel %vm566_vm3, %v1965_v43, 0 }
 0x602   :  { %v1485_v58 = vpop.xlane.xlu2 %1484 }
 0x603   :  { %5337 = vrcp.f32 %v1485_v58 }
 0x605   :  { %4327 = vmatmul.msk.bf16.vlgmr.msra.gmra.mxu2 %vm312_vm2, %v1846_v57 }
 0x609   :  { %v5338_v59 = vpop.eup %5337 }
 0x60a   :  { %v1505_v60 = vmul.f32 %v5338_v59, %v6124_v22  ;;  %v1777_v62 = vpop.permute.xlu2 %1776  ;;  %v1784_v22 = vsel %vm312_vm2, %v1779_v27, 0 }
 0x60c   :  { %v1513_v55 = vpack.c.bf16 %v1505_v60, %v1505_v60 }
 0x60e   :  { %4317 = vmatmul.msk.bf16.vlgmr.msra.gmra.mxu0 %vm562_vm5, %v1513_v55 }
 0x612   :  { %v1800_v11 = vpop.permute.xlu2 %1799 }
 0x614   :  { %v1482_v46 = vpop.xlane.xlu1 %1481 }
 0x615   :  { %5339 = vrcp.f32 %v1482_v46 }
 0x61a   :  { %v2028_v28 = vpop.permute.xlu2 %2027 }
 0x61b   :  { %v5340_v48 = vpop.eup %5339  ;;  %v2033_v45 = vsel %vm566_vm3, %v2028_v28, 0 }
 0x61c   :  { %v1504_v44 = vmul.f32 %v5340_v48, %v6129_v17  ;;  %2042 = vmatpush.bf16.msrb.mxu2 %v2033_v45 }
 0x61e   :  { %v1512_v49 = vpack.c.bf16 %v1504_v44, %v1504_v44  ;;  %4321 = vmatmul.msk.bf16.vlgmr.msrb.gmra.mxu0 %vm312_vm2, %v1708_v36 }
 0x620   :  { %4316 = vmatmul.msk.bf16.vlgmr.msrb.gmra.mxu3 %vm562_vm5, %v1512_v49 }
 0x621   :  { %1793 = vmatpush.bf16.xpose.msrb.mxu3 %v1784_v22 }
 0x62c   :  { %v1731_v61 = vpop.permute.xlu1 %1730 }
 0x62d   :  { %4322 = vmatmul.msk.bf16.vlgmr.msrb.gmra.mxu1 %vm312_vm2, %v1731_v61 }
 0x630   :  { %4320 = vmatmul.msk.bf16.vlgmr.msra.gmra.mxu3 %vm312_vm2, %v1685_v21 }
 0x631   :  { %1979 = vmatpush.bf16.msra.mxu3 %v1970_v6 }
 0x634   :  { %v1802_v39 = vpop.permute.xlu1 %1801 }
 0x635   :  { %v1807_v17 = vsel %vm312_vm2, %v1802_v39, 0 }
 0x636   :  { %1816 = vmatpush.bf16.xpose.msra.mxu0 %v1807_v17 }
 0x63c   :  { %v1823_v24 = vpop.permute.xlu1 %1822 }
 0x63d   :  { %4325 = vmatmul.msk.bf16.vlgmr.msra.gmra.mxu0 %vm312_vm2, %v1800_v11  ;;  %4326 = vmatmul.msk.bf16.vlgmr.msra.gmra.mxu1 %vm312_vm2, %v1823_v24 }
 0x640   :  { %4324 = vmatmul.msk.bf16.vlgmr.msrb.gmra.mxu3 %vm312_vm2, %v1777_v62 }
 0x642   :  { %v6183_v27 = vpop.f32.mrf.mxu1 }
 0x644   :  { %v1986_v25 = vpop.permute.xlu1 %1985 }
 0x645   :  { %v1991_v1 = vsel %vm566_vm3, %v1986_v25, 0 }
 0x646   :  { %2000 = vmatpush.bf16.msrb.mxu0 %v1991_v1 }
 0x64a   :  { %v1577_v30 = vpop.f32.mrf.mxu1 }
 0x64b   :  { %v6186_v7 = vpop.f32.mrf.mxu0 }
 0x64c   :  { %v5205_v37 = vpack.i.bf16 %v6183_v27, %v6186_v7 }
 0x650   :  { %v6190_v33 = vpop.f32.mrf.mxu2 }
 0x652   :  { %v6192_v34 = vpop.f32.mrf.mxu1 }
 0x653   :  { %v1556_v9 = vpop.f32.mrf.mxu0 }
 0x658   :  { %v1598_v41 = vpop.f32.mrf.mxu2 }
 0x65a   :  { %v1661_v35 = vpop.f32.mrf.mxu1 }
 0x660   :  { %v6194_v12 = vpop.f32.mrf.mxu3 }
 0x668   :  { %v1535_v13 = vpop.f32.mrf.mxu3  ;;  %v6196_v57 = vpop.f32.mrf.mxu2 }
 0x669   :  { %v5190_v51 = vpack.i.bf16 %v6196_v57, %v6190_v33 }
 0x670   :  { %v1682_v26 = vpop.f32.mrf.mxu2 }
 0x678   :  { %v6200_v36 = vpop.f32.mrf.mxu2 }
 0x679   :  { %v1877_v41 = vsel %vm465_vm4, %v6200_v36, -inf }
 0x680   :  { %v1774_v58 = vpop.f32.mrf.mxu2 }
 0x688   :  { %v6202_v59 = vpop.f32.mrf.mxu2 }
 0x689   :  { %v1889_v58 = vsel %vm465_vm4, %v6202_v59, -inf }
 0x68b   :  { %v6204_v60 = vpop.f32.mrf.mxu0 }
 0x68c   :  { %v5210_v62 = vpack.i.bf16 %v6192_v34, %v6204_v60 }
 0x690   :  { %v1866_v21 = vpop.f32.mrf.mxu2 }
 0x693   :  { %v1640_v55 = vpop.f32.mrf.mxu0 }
 0x69b   :  { %v1726_v11 = vpop.f32.mrf.mxu0 }
 0x69c   :  { %v1871_v46 = vsel %vm465_vm4, %v1726_v11, -inf }
 0x69d   :  { %1872 = vmax.xlane.f32.xlu1 %v1871_v46 }
 0x6a3   :  { %v6209_v28 = vpop.f32.mrf.mxu3  ;;  %v1728_v48 = vpop.f32.mrf.mxu0 }
 0x6a4   :  { %v5235_v45 = vpack.i.bf16 %v6209_v28, %v6194_v12 }
 0x6aa   :  { %v1749_v44 = vpop.f32.mrf.mxu1 }
 0x6ab   :  { %v1619_v49 = vpop.f32.mrf.mxu3  ;;  %v1874_v22 = vsel %vm465_vm4, %v1749_v44, -inf }
 0x6ac   :  { %1875 = vmax.xlane.f32.xlu2 %v1874_v22 }
 0x6b2   :  { %v1751_v61 = vpop.f32.mrf.mxu1 }
 0x6b3   :  { %v1703_v43 = vpop.f32.mrf.mxu3 }
 0x6b4   :  { %v1868_v35 = vsel %vm465_vm4, %v1703_v43, -inf }
 0x6ba   :  { %v1818_v6 = vpop.f32.mrf.mxu0  ;;  %v1841_v39 = vpop.f32.mrf.mxu1 }
 0x6bb   :  { %v1705_v17 = vpop.f32.mrf.mxu3  ;;  %v1886_v24 = vsel %vm465_vm4, %v1841_v39, -inf  ;;  %v1883_v25 = vsel %vm465_vm4, %v1818_v6, -inf }
 0x6bc   :  { %1887 = vmax.xlane.f32.xlu0 %v1886_v24  ;;  %1884 = vmax.xlane.f32.xlu2 %v1883_v25 }
 0x6c2   :  { %v1820_v1 = vpop.f32.mrf.mxu0  ;;  %v1843_v30 = vpop.f32.mrf.mxu1 }
 0x6c3   :  { %v1795_v9 = vpop.f32.mrf.mxu3 }
 0x6c4   :  { %1878 = vmax.xlane.f32.xlu0 %v1877_v41  ;;  %1869 = vmax.xlane.f32.xlu2 %v1868_v35  ;;  %v1880_v13 = vsel %vm465_vm4, %v1795_v9, -inf }
 0x6c5   :  { %1881 = vmax.xlane.f32.xlu1 %v1880_v13 }
 0x6cb   :  { %v1797_v26 = vpop.f32.mrf.mxu3 }
 0x6cc   :  { %1890 = vmax.xlane.f32.xlu0 %v1889_v58 }
 0x6dc   :  { %2111 = vrot.lane.b32.xlu2 %v5800_v10, %s5417_s17 }
 0x6e0   :  { %2006 = vrot.lane.b32.xlu0 %v5809_v47, %s5417_s17 }
 0x710   :  { %v1873_v21 = vpop.xlane.xlu1 %1872 }
 0x711   :  { %v1893_v55 = vsub.f32 %v1726_v11, %v1873_v21 }
 0x713   :  { %v1902_v46 = vmul.f32 1.442695, %v1893_v55 }
 0x715   :  { %5341 = vpow2.f32 %v1902_v46 }
 0x71b   :  { %v6226_v48 = vpop.eup %5341 }
 0x71c   :  { %v1919_v49 = vsel %vm465_vm4, %v6226_v48, 0.0 }
 0x71d   :  { %1920 = vadd.xlane.f32.xlu0 %v1919_v49 }
 0x71f   :  { %v1876_v22 = vpop.xlane.xlu2 %1875 }
 0x720   :  { %v1894_v61 = vsub.f32 %v1749_v44, %v1876_v22 }
 0x722   :  { %v1904_v17 = vmul.f32 1.442695, %v1894_v61 }
 0x724   :  { %5343 = vpow2.f32 %v1904_v17 }
 0x72a   :  { %v6230_v24 = vpop.eup %5343 }
 0x72b   :  { %v1922_v10 = vsel %vm465_vm4, %v6230_v24, 0.0 }
 0x72c   :  { %1923 = vadd.xlane.f32.xlu1 %v1922_v10 }
 0x72f   :  { %v1888_v47 = vpop.xlane.xlu0 %1887  ;;  %v1885_v11 = vpop.xlane.xlu2 %1884 }
 0x730   :  { %v1898_v25 = vsub.f32 %v1841_v39, %v1888_v47  ;;  %v1897_v1 = vsub.f32 %v1818_v6, %v1885_v11 }
 0x732   :  { %v1912_v30 = vmul.f32 1.442695, %v1898_v25  ;;  %v1910_v41 = vmul.f32 1.442695, %v1897_v1 }
 0x734   :  { %5345 = vpow2.f32 %v1912_v30 }
 0x735   :  { %5347 = vpow2.f32 %v1910_v41 }
 0x737   :  { %v1879_v35 = vpop.xlane.xlu0 %1878  ;;  %v1870_v13 = vpop.xlane.xlu2 %1869 }
 0x738   :  { %v1895_v44 = vsub.f32 %v6200_v36, %v1879_v35  ;;  %v1892_v26 = vsub.f32 %v1703_v43, %v1870_v13  ;;  %v1882_v58 = vpop.xlane.xlu1 %1881 }
 0x739   :  { %v1896_v22 = vsub.f32 %v1795_v9, %v1882_v58 }
 0x73a   :  { %v6235_v21 = vpop.eup %5345  ;;  %v1906_v55 = vmul.f32 1.442695, %v1895_v44  ;;  %v1900_v46 = vmul.f32 1.442695, %v1892_v26 }
 0x73b   :  { %v6237_v49 = vpop.eup %5347  ;;  %v1934_v6 = vsel %vm465_vm4, %v6235_v21, 0.0  ;;  %v1908_v36 = vmul.f32 1.442695, %v1896_v22 }
 0x73c   :  { %5349 = vpow2.f32 %v1906_v55  ;;  %1935 = vadd.xlane.f32.xlu1 %v1934_v6  ;;  %v1931_v39 = vsel %vm465_vm4, %v6237_v49, 0.0 }
 0x73d   :  { %5351 = vpow2.f32 %v1900_v46  ;;  %1932 = vadd.xlane.f32.xlu0 %v1931_v39 }
 0x73e   :  { %5353 = vpow2.f32 %v1908_v36 }
 0x73f   :  { %v1891_v43 = vpop.xlane.xlu0 %1890  ;;  %v2112_v61 = vpop.permute.xlu2 %2111 }
 0x740   :  { %v1899_v17 = vsub.f32 %v6202_v59, %v1891_v43  ;;  %v2117_v10 = vsel %vm566_vm3, %v2112_v61, 0 }
 0x741   :  { %2126 = vmatpush.bf16.msra.mxu2 %v2117_v10 }
 0x742   :  { %v5350_v47 = vpop.eup %5349  ;;  %v1914_v9 = vmul.f32 1.442695, %v1899_v17 }
 0x743   :  { %v5352_v11 = vpop.eup %5351  ;;  %v1925_v25 = vsel %vm465_vm4, %v5350_v47, 0.0 }
 0x744   :  { %5355 = vpow2.f32 %v1914_v9  ;;  %1926 = vadd.xlane.f32.xlu1 %v1925_v25  ;;  %v1916_v1 = vsel %vm465_vm4, %v5352_v11, 0.0  ;;  %v6247_v30 = vpop.eup %5353 }
 0x745   :  { %1917 = vadd.xlane.f32.xlu2 %v1916_v1  ;;  %v1928_v35 = vsel %vm465_vm4, %v6247_v30, 0.0 }
 0x74a   :  { %v6249_v41 = vpop.eup %5355 }
 0x74b   :  { %v1937_v59 = vsel %vm465_vm4, %v6249_v41, 0.0 }
 0x74c   :  { %1938 = vadd.xlane.f32.xlu1 %v1937_v59 }
 0x74d   :  { %1929 = vadd.xlane.f32.xlu2 %v1928_v35 }
 0x751   :  { %2048 = vrot.lane.b32.xlu0 %v5814_v18, %s5417_s17 }
 0x752   :  { %v2007_v13 = vpop.permute.xlu0 %2006 }
 0x753   :  { %v2012_v44 = vsel %vm566_vm3, %v2007_v13, 0 }
 0x754   :  { %2021 = vmatpush.bf16.msrb.mxu1 %v2012_v44 }
 0x759   :  { %5186 = vrot.lane.b32.xlu0 %v5185_v3, %s5418_s18 }
 0x761   :  { %5196 = vrot.lane.b32.xlu0 %v5195_v23, %s5418_s18 }
 0x765   :  { %2090 = vrot.lane.b32.xlu2 %v5820_v15, %s5417_s17  ;;  %2069 = vrot.lane.b32.xlu1 %v5795_v8, %s5417_s17 }
 0x769   :  { %5206 = vrot.lane.b32.xlu0 %v5205_v37, %s5419_s19 }
 0x76d   :  { %5191 = vrot.lane.b32.xlu2 %v5190_v51, %s5419_s19  ;;  %5201 = vrot.lane.b32.xlu1 %v5200_v50, %s5418_s18 }
 0x775   :  { %5216 = vrot.lane.b32.xlu2 %v5215_v19, %s5418_s18  ;;  %5211 = vrot.lane.b32.xlu1 %v5210_v62, %s5419_s19  ;;  %s5422_s18 = smov [#allocation2]  }
 0x790   :  { %v1921_v8 = vpop.xlane.xlu0 %1920 }
 0x791   :  { %5357 = vrcp.f32 %v1921_v8 }
 0x797   :  { %v5358_v18 = vpop.eup %5357 }
 0x798   :  { %v1949_v15 = vmul.f32 %v5358_v18, %v6226_v48 }
 0x79a   :  { %v1957_v53 = vpack.c.bf16 %v1949_v15, %v1949_v15 }
 0x79c   :  { %4329 = vmatmul.msk.bf16.vlgmr.msrb.gmra.mxu0 %vm562_vm5, %v1957_v53 }
 0x79f   :  { %v1924_v40 = vpop.xlane.xlu1 %1923 }
 0x7a0   :  { %5359 = vrcp.f32 %v1924_v40 }
 0x7a6   :  { %v5360_v23 = vpop.eup %5359 }
 0x7a7   :  { %v1950_v14 = vmul.f32 %v5360_v23, %v6230_v24 }
 0x7a9   :  { %v1958_v54 = vpack.c.bf16 %v1950_v14, %v1950_v14 }
 0x7ab   :  { %4330 = vmatmul.msk.bf16.vlgmr.msrb.gmra.mxu1 %vm562_vm5, %v1958_v54 }
 0x7af   :  { %v1936_v42 = vpop.xlane.xlu1 %1935 }
 0x7b0   :  { %v1933_v63 = vpop.xlane.xlu0 %1932 }
 0x7b7   :  { %v1927_v16 = vpop.xlane.xlu1 %1926 }
 0x7b8   :  { %5361 = vrcp.f32 %v1927_v16  ;;  %v1918_v19 = vpop.xlane.xlu2 %1917 }
 0x7b9   :  { %5363 = vrcp.f32 %v1918_v19 }
 0x7ba   :  { %5365 = vrcp.f32 %v1936_v42 }
 0x7be   :  { %v5362_v50 = vpop.eup %5361 }
 0x7bf   :  { %v5364_v56 = vpop.eup %5363  ;;  %v1951_v3 = vmul.f32 %v5362_v50, %v5350_v47  ;;  %v1939_v33 = vpop.xlane.xlu1 %1938  ;;  %v5012_v50 = vld [vmem:[%s7067_s1 + $0x38] sm:$0xff] }
 0x7c0   :  { %v1948_v27 = vmul.f32 %v5364_v56, %v5352_v11  ;;  %v1930_v7 = vpop.xlane.xlu2 %1929  ;;  %v5366_v51 = vpop.eup %5365  ;;  %5367 = vrcp.f32 %v1939_v33 }
 0x7c1   :  { %v1959_v37 = vpack.c.bf16 %v1951_v3, %v1951_v3  ;;  %5369 = vrcp.f32 %v1930_v7  ;;  %v1954_v62 = vmul.f32 %v5366_v51, %v6235_v21 }
 0x7c2   :  { %v1956_v34 = vpack.c.bf16 %v1948_v27, %v1948_v27  ;;  %5371 = vrcp.f32 %v1933_v63  ;;  %v5011_v27 = vld [vmem:[%s7067_s1 + $0x30] sm:$0xff] }
 0x7c3   :  { %v2049_v57 = vpop.permute.xlu0 %2048  ;;  %4331 = vmatmul.msk.bf16.vlgmr.msrb.gmra.mxu2 %vm562_vm5, %v1959_v37  ;;  %v1962_v55 = vpack.c.bf16 %v1954_v62, %v1954_v62 }
 0x7c4   :  { %v2054_v60 = vsel %vm566_vm3, %v2049_v57, 0  ;;  %4328 = vmatmul.msk.bf16.vlgmr.msra.gmra.mxu3 %vm562_vm5, %v1956_v34 }
 0x7c5   :  { %2063 = vmatpush.bf16.msrb.mxu3 %v2054_v60 }
 0x7c6   :  { %v5368_v26 = vpop.eup %5367 }
 0x7c7   :  { %v5370_v58 = vpop.eup %5369  ;;  %v1955_v46 = vmul.f32 %v5368_v26, %v6249_v41 }
 0x7c8   :  { %v2091_v48 = vpop.permute.xlu2 %2090  ;;  %v1952_v22 = vmul.f32 %v5370_v58, %v6247_v30  ;;  %v5372_v36 = vpop.eup %5371 }
 0x7c9   :  { %v2096_v24 = vsel %vm566_vm3, %v2091_v48, 0  ;;  %v1963_v6 = vpack.c.bf16 %v1955_v46, %v1955_v46  ;;  %v1953_v21 = vmul.f32 %v5372_v36, %v6237_v49  ;;  %2322 = vmatpush.bf16.msra.mxu3 %v5012_v50 }
 0x7ca   :  { %2105 = vmatpush.bf16.msra.mxu1 %v2096_v24  ;;  %v1960_v39 = vpack.c.bf16 %v1952_v22, %v1952_v22 }
 0x7cb   :  { %v1961_v17 = vpack.c.bf16 %v1953_v21, %v1953_v21  ;;  %v5187_v54 = vpop.permute.xlu0 %5186 }
 0x7cc   :  { %v5188_v7 = vunpack.i.l.bf16 %v5187_v54  ;;  %v5189_v51 = vunpack.i.h.bf16 %v5187_v54 }
 0x7cd   :  { %4334 = vmatmul.msk.bf16.vlgmr.msra.gmra.mxu1 %vm562_vm5, %v1962_v55  ;;  %2323 = vmatpush.bf16.msra.mxu3 %v5011_v27 }
 0x7d0   :  { %v5192_v42 = vpop.permute.xlu2 %5191 }
 0x7d1   :  { %v5193_v12 = vunpack.i.l.bf16 %v5192_v42  ;;  %v5194_v55 = vunpack.i.h.bf16 %v5192_v42 }
 0x7d3   :  { %4335 = vmatmul.msk.bf16.vlgmr.msra.gmra.mxu2 %vm562_vm5, %v1963_v6  ;;  %v5197_v16 = vpop.permute.xlu0 %5196  ;;  %v2235_v6 = vsel %vm312_vm2, %v5882_v52, %v5189_v51 }
 0x7d4   :  { %4332 = vmatmul.msk.bf16.vlgmr.msrb.gmra.mxu3 %vm562_vm5, %v1960_v39  ;;  %v5198_v34 = vunpack.i.l.bf16 %v5197_v16  ;;  %v5199_v62 = vunpack.i.h.bf16 %v5197_v16 }
 0x7d6   :  { %v2229_v46 = vsel %vm312_vm2, %v5869_v0, %v5198_v34 }
 0x7d7   :  { %v2070_v43 = vpop.permute.xlu1 %2069 }
 0x7d8   :  { %v2075_v61 = vsel %vm566_vm3, %v2070_v43, 0  ;;  %v5217_v19 = vpop.permute.xlu2 %5216  ;;  %v2230_v43 = vsel %vm312_vm2, %v5867_v4, %v5199_v62 }
 0x7d9   :  { %2084 = vmatpush.bf16.msra.mxu0 %v2075_v61  ;;  %v5219_v39 = vunpack.i.h.bf16 %v5217_v19  ;;  %v5218_v36 = vunpack.i.l.bf16 %v5217_v19 }
 0x7db   :  { %v5207_v63 = vpop.permute.xlu0 %5206  ;;  %v2228_v4 = vsel %vm312_vm2, %v5873_v31, %v5218_v36  ;;  %v5385_v36 = vld [vmem:[%s7066_s0 + $0x8] sm:$0xff] }
 0x7dc   :  { %4333 = vmatmul.msk.bf16.vlgmr.msra.gmra.mxu0 %vm562_vm5, %v1961_v17  ;;  %v5208_v60 = vunpack.i.l.bf16 %v5207_v63  ;;  %v5209_v24 = vunpack.i.h.bf16 %v5207_v63 }
 0x7de   :  { %v2238_v21 = vsel %vm2236_vm6, %v2229_v46, %v5208_v60 }
 0x7df   :  { %v5202_v56 = vpop.permute.xlu1 %5201 }
 0x7e0   :  { %v5204_v61 = vunpack.i.h.bf16 %v5202_v56 }
 0x7e7   :  { %v5212_v26 = vpop.permute.xlu1 %5211 }
 0x819   :  { %v2002_v10 = vpop.f32.mrf.mxu0 }
 0x821   :  { %v2004_v47 = vpop.f32.mrf.mxu0 }
 0x822   :  { %v2239_v47 = vsel %vm2236_vm6, %v2230_v43, %v5209_v24 }
 0x828   :  { %v2023_v9 = vpop.f32.mrf.mxu1 }
 0x829   :  { %v5220_v11 = vpack.i.bf16 %v2023_v9, %v2002_v10  ;;  %v5203_v9 = vunpack.i.l.bf16 %v5202_v56 }
 0x82b   :  { %5221 = vrot.lane.b32.xlu0 %v5220_v11, %s5420_s20 }
 0x830   :  { %v2025_v25 = vpop.f32.mrf.mxu1 }
 0x831   :  { %v2244_v25 = vsel %vm2236_vm6, %v2235_v6, %v5194_v55 }
 0x846   :  { %v2044_v1 = vpop.f32.mrf.mxu2 }
 0x847   :  { %v1981_v30 = vpop.f32.mrf.mxu3 }
 0x84a   :  { %v2107_v41 = vpop.f32.mrf.mxu1 }
 0x84e   :  { %v2046_v59 = vpop.f32.mrf.mxu2 }
 0x84f   :  { %v1983_v35 = vpop.f32.mrf.mxu3 }
 0x850   :  { %v2234_v35 = vsel %vm312_vm2, %v5877_v38, %v5204_v61  ;;  %v5421_v61 = vmov 32.0  }
 0x851   :  { %5373 = vrcp.f32 %v5421_v61  ;;  %v5023_v61 = vld [vmem:[%s7068_s2 + $0x4c] sm:$0xf0] }
 0x852   :  { %v2109_v49 = vpop.f32.mrf.mxu1 }
 0x856   :  { %v2128_v13 = vpop.f32.mrf.mxu2 }
 0x857   :  { %v2065_v44 = vpop.f32.mrf.mxu3  ;;  %v5230_v8 = vpack.i.bf16 %v2128_v13, %v2044_v1  ;;  %v2232_v1 = vsel %vm312_vm2, %v5875_v5, %v5219_v39 }
 0x858   :  { %v5240_v18 = vpack.i.bf16 %v2065_v44, %v1981_v30  ;;  %v5214_v30 = vunpack.i.h.bf16 %v5212_v26 }
 0x859   :  { %5231 = vrot.lane.b32.xlu2 %v5230_v8, %s5420_s20  ;;  %v2086_v15 = vpop.f32.mrf.mxu0  ;;  %v2233_v8 = vsel %vm312_vm2, %v5879_v29, %v5203_v9 }
 0x85a   :  { %5241 = vrot.lane.b32.xlu0 %v5240_v18, %s5420_s20  ;;  %v5225_v53 = vpack.i.bf16 %v2107_v41, %v2086_v15  ;;  %v5213_v41 = vunpack.i.l.bf16 %v5212_v26  ;;  %v2243_v54 = vsel %vm2236_vm6, %v2234_v35, %v5214_v30 }
 0x85c   :  { %5226 = vrot.lane.b32.xlu1 %v5225_v53, %s5420_s20  ;;  %v2242_v38 = vsel %vm2236_vm6, %v2233_v8, %v5213_v41 }
 0x85e   :  { %v2130_v40 = vpop.f32.mrf.mxu2 }
 0x85f   :  { %v2067_v23 = vpop.f32.mrf.mxu3 }
 0x861   :  { %5236 = vrot.lane.b32.xlu2 %v5235_v45, %s5419_s19  ;;  %v2088_v14 = vpop.f32.mrf.mxu0  ;;  %v2231_v45 = vsel %vm312_vm2, %v5871_v2, %v5188_v7  ;;  %s4226_s19 = sshll.u32 %s5422_s18, 4  ;;  %s4227_s19 = int_to_ptr.vmem [resolvable:$true] %s4226_s19 }
 0x862   :  { %v2240_v37 = vsel %vm2236_vm6, %v2231_v45, %v5193_v12 }
 0x89d   :  { %v5222_v33 = vpop.permute.xlu0 %5221 }
 0x89e   :  { %v5223_v48 = vunpack.i.l.bf16 %v5222_v33  ;;  %v5224_v22 = vunpack.i.h.bf16 %v5222_v33 }
 0x8a0   :  { %v2247_v17 = vsel %vm2245_vm7, %v2238_v21, %v5223_v48  ;;  %v2248_v52 = vsel %vm2245_vm7, %v2239_v47, %v5224_v22 }
 0x8a1   :  { %v2254_v18 = vrot.slane %v2248_v52, 4 }
 0x8b3   :  { %v5232_v3 = vpop.permute.xlu2 %5231 }
 0x8b4   :  { %v5233_v28 = vunpack.i.l.bf16 %v5232_v3  ;;  %v5234_v10 = vunpack.i.h.bf16 %v5232_v3 }
 0x8b6   :  { %v2249_v57 = vsel %vm2245_vm7, %v2240_v37, %v5233_v28  ;;  %v2253_v49 = vsel %vm2245_vm7, %v2244_v25, %v5234_v10 }
 0x8b7   :  { %v2260_v58 = vrot.slane %v2249_v57, 4  ;;  %v2272_v42 = vrot.slane %v2253_v49, 4 }
 0x8b9   :  { %v2261_v0 = vsel %vm132_vm1, %v2260_v58, %v2247_v17  ;;  %v5374_v17 = vpop.eup %5373 }
 0x8ba   :  { %v2265_v13 = vperm.slane %v2261_v0, %v5492_v20  ;;  %v2339_v10 = vmul.f32 32.0, %v5374_v17  ;;  %vm2343_vm8 = vweird.f32 %v5374_v17 }
 0x8bb   :  { %v5237_v2 = vpop.permute.xlu2 %5236 }
 0x8bc   :  { %v5238_v11 = vunpack.i.l.bf16 %v5237_v2  ;;  %v5239_v15 = vunpack.i.h.bf16 %v5237_v2  ;;  %v2278_v19 = vrot.slane %v2265_v13, 4  ;;  %v2340_v47 = vsub.f32 1.0, %v2339_v10  ;;  %v4369_v10 = vld [vmem:[%s7068_s2 + $0x50] sm:$0xf0] }
 0x8be   :  { %v2237_v5 = vsel %vm2236_vm6, %v2228_v4, %v5238_v11  ;;  %v2241_v56 = vsel %vm2236_vm6, %v2232_v1, %v5239_v15  ;;  %v2341_v9 = vmul.f32 %v5374_v17, %v2340_v47  ;;  %v4415_v15 = vld [vmem:[%s7068_s2 + $0x80] sm:$0xf]  ;;  %vm4216_vm6 = vcmask 1041409  }
 0x8c0   :  { %v2342_v0 = vadd.f32 %v5374_v17, %v2341_v9 }
 0x8c2   :  { %v6374_v11 = vsel %vm2343_vm8, %v5374_v17, %v2342_v0  ;;  %v5015_v17 = vld [vmem:[%s7068_s2 + $0x14] sm:$0xf]  ;;  %v4375_v0 = vld [vmem:[%s7068_s2 + $0x18] sm:$0xf] }
 0x8c3   :  { %v4372_v9 = vor.u32 %v5015_v17, %v4369_v10  ;;  %v4399_v10 = vld [vmem:[%s7068_s2 + $0x30] sm:$0xf] }
 0x8cc   :  { %v5242_v59 = vpop.permute.xlu0 %5241 }
 0x8cd   :  { %v5243_v44 = vunpack.i.l.bf16 %v5242_v59  ;;  %v5244_v31 = vunpack.i.h.bf16 %v5242_v59 }
 0x8ce   :  { %v5227_v53 = vpop.permute.xlu1 %5226 }
 0x8cf   :  { %v2246_v40 = vsel %vm2245_vm7, %v2237_v5, %v5243_v44  ;;  %v5229_v23 = vunpack.i.h.bf16 %v5227_v53  ;;  %v5228_v14 = vunpack.i.l.bf16 %v5227_v53  ;;  %v2250_v7 = vsel %vm2245_vm7, %v2241_v56, %v5244_v31  ;;  %v5037_v5 = vld [vmem:[%s7068_s2 + $0xbc] sm:$0xf0]  ;;  %v5029_v53 = vld [vmem:[%s7068_s2 + $0x84] sm:$0xf] }
 0x8d0   :  { %v2255_v16 = vsel %vm132_vm1, %v2254_v18, %v2246_v40  ;;  %v4416_v31 = vor.u32 %v5037_v5, %v4415_v15  ;;  %v4417_v40 = vld [vmem:[%s7068_s2 + $0xc0] sm:$0xf0] }
 0x8d1   :  { %v2259_v29 = vperm.slane %v2255_v16, %v5492_v20  ;;  %v2252_v63 = vsel %vm2245_vm7, %v2243_v54, %v5229_v23  ;;  %v2251_v50 = vsel %vm2245_vm7, %v2242_v38, %v5228_v14  ;;  %v4423_v23 = vld [vmem:[%s7068_s2 + $0x88] sm:$0xf]  ;;  %v4420_v38 = vor.u32 %v5029_v53, %v4417_v40  ;;  %v4425_v16 = vld [vmem:[%s7068_s2 + $0xc8] sm:$0xf0]  ;;  %v5013_v56 = vld [vmem:[%s7068_s2 + $0x4] sm:$0xf] }
 0x8d2   :  { %v2266_v3 = vrot.slane %v2252_v63, 4  ;;  %v2273_v27 = vsel %vm132_vm1, %v2272_v42, %v2251_v50  ;;  %v5038_v14 = vld [vmem:[%s7068_s2 + $0xc4] sm:$0xf0]  ;;  %v5030_v42 = vld [vmem:[%s7068_s2 + $0x8c] sm:$0xf]  ;;  %2627 = vmatpush.bf16.msrb.mxu0 %v4416_v31  ;;  %vm4219_vm7 = vcmask 58368  }
 0x8d3   :  { %v2279_v12 = vsel %vm132_vm1, %v2278_v19, %v2259_v29  ;;  %v2277_v28 = vperm.slane %v2273_v27, %v5492_v20  ;;  %v4424_v54 = vor.u32 %v5038_v14, %v4423_v23  ;;  %v4351_v19 = vld [vmem:[%s7068_s2] sm:$0xf]  ;;  %v4428_v63 = vor.u32 %v5030_v42, %v4425_v16  ;;  %2641 = vmatpush.bf16.msrb.mxu1 %v4420_v38 }
 0x8d4   :  { %v2267_v45 = vsel %vm132_vm1, %v2266_v3, %v2250_v7  ;;  %v2283_v34 = vperm.slane %v2279_v12, %v5498_v32  ;;  %v5021_v50 = vld [vmem:[%s7068_s2 + $0x3c] sm:$0xf0]  ;;  %v4353_v3 = vld [vmem:[%s7068_s2 + $0x40] sm:$0xf0] }
 0x8d5   :  { %v2271_v37 = vperm.slane %v2267_v45, %v5492_v20  ;;  %v2284_v33 = vrot.slane %v2277_v28, 4  ;;  %v6363_v20 = vld [vmem:[%s7070_s4] sm:$0xff]  ;;  %2655 = vmatpush.bf16.msrb.mxu2 %v4424_v54  ;;  %v4352_v7 = vor.u32 %v5021_v50, %v4351_v19  ;;  %v4356_v12 = vor.u32 %v5013_v56, %v4353_v3  ;;  %v4359_v28 = vld [vmem:[%s7068_s2 + $0x8] sm:$0xf]  ;;  %2669 = vmatpush.bf16.msrb.mxu3 %v4428_v63  ;;  %v5034_v3 = vld [vmem:[%s7068_s2 + $0xac] sm:$0xf] }
 0x8d6   :  { %v2292_v60 = vrot.slane %v2283_v34, 4  ;;  %v2300_v58 = vperm.slane %v6363_v20, 3  ;;  %v5022_v45 = vld [vmem:[%s7068_s2 + $0x44] sm:$0xf0]  ;;  %v2383_v40 = vperm.slane %v6363_v20, 4  ;;  %v2386_v54 = vperm.slane %v6363_v20, 5 }
 0x8d7   :  { %v2285_v57 = vsel %vm132_vm1, %v2284_v33, %v2271_v37  ;;  %v5014_v37 = vld [vmem:[%s7068_s2 + $0xc] sm:$0xf]  ;;  %v4360_v33 = vor.u32 %v5022_v45, %v4359_v28  ;;  %2628 = vmatpush.bf16.msrb.mxu0 %v4352_v7  ;;  %2642 = vmatpush.bf16.msrb.mxu1 %v4356_v12  ;;  %v4447_v19 = vld [vmem:[%s7068_s2 + $0xa0] sm:$0xf]  ;;  %v4449_v20 = vld [vmem:[%s7068_s2 + $0xe0] sm:$0xf0] }
 0x8d8   :  { %v2289_v51 = vperm.slane %v2285_v57, %v5498_v32  ;;  %v5384_v32 = vld [vmem:[%s7066_s0] sm:$0xff]  ;;  %v4431_v57 = vld [vmem:[%s7068_s2 + $0x90] sm:$0xf]  ;;  %v5042_v56 = vld [vmem:[%s7068_s2 + $0xe4] sm:$0xf0] }
 0x8d9   :  { %2656 = vmatpush.bf16.msrb.mxu2 %v4360_v33  ;;  %v4383_v45 = vld [vmem:[%s7068_s2 + $0x20] sm:$0xf] }
 0x8da   :  { %v2290_v62 = vrot.slane %v2289_v51, 4  ;;  %v2293_v24 = vsel %vm132_vm1, %v2289_v51, %v2292_v60  ;;  %v5039_v51 = vld [vmem:[%s7068_s2 + $0xcc] sm:$0xf0] }
 0x8dc   :  { %v2291_v48 = vsel %vm132_vm1, %v2290_v62, %v2283_v34  ;;  %v4361_v34 = vld [vmem:[%s7068_s2 + $0x48] sm:$0xf0] }
 0x8dd   :  { %v2294_v26 = vpack.c.bf16 %v2293_v24, %v2291_v48  ;;  %v4364_v48 = vor.u32 %v5014_v37, %v4361_v34  ;;  %v4432_v24 = vor.u32 %v5039_v51, %v4431_v57  ;;  %v5025_v37 = vld [vmem:[%s7068_s2 + $0x5c] sm:$0xf0]  ;;  %v5017_v57 = vld [vmem:[%s7068_s2 + $0x24] sm:$0xf] }
 0x8de   :  { %v4385_v51 = vld [vmem:[%s7068_s2 + $0x60] sm:$0xf0] }
 0x8df   :  { %4348 = vmatmul.msk.bf16.vlgmr.msra.gmra.mxu3 %vm47_vm0, %v2294_v26  ;;  %v5031_v26 = vld [vmem:[%s7068_s2 + $0x94] sm:$0xf]  ;;  %2683 = vmatpush.bf16.msra.mxu0 %v4432_v24  ;;  %v4393_v24 = vld [vmem:[%s7068_s2 + $0x68] sm:$0xf0] }
 0x8e0   :  { %2670 = vmatpush.bf16.msrb.mxu3 %v4364_v48  ;;  %v5018_v48 = vld [vmem:[%s7068_s2 + $0x2c] sm:$0xf] }
 0x962   :  { %v2325_v55 = vpop.f32.mrf.mxu3 }
 0x963   :  { %v2326_v46 = vadd.f32 %v2325_v55, %v2300_v58 }
 0x965   :  { %v2330_v22 = vadd.f32 %v5384_v32, %v2326_v46  ;;  %v4439_v32 = vld [vmem:[%s7068_s2 + $0x98] sm:$0xf] }
 0x967   :  { %v2332_v2 = vsel %vm47_vm0, %v2330_v22, 0.0 }
 0x968   :  { %2333 = vadd.xlane.f32.xlu1 %v2332_v2  ;;  %v5032_v2 = vld [vmem:[%s7068_s2 + $0x9c] sm:$0xf] }
 0x96a   :  { %v2327_v6 = vpop.f32.mrf.mxu3 }
 0x96b   :  { %v2328_v39 = vadd.f32 %v2327_v6, %v2300_v58  ;;  %v4433_v58 = vld [vmem:[%s7068_s2 + $0xd0] sm:$0xf0] }
 0x96c   :  { %v4436_v46 = vor.u32 %v5031_v26, %v4433_v58  ;;  %v4384_v26 = vor.u32 %v5025_v37, %v4383_v45  ;;  %v4388_v58 = vor.u32 %v5017_v57, %v4385_v51  ;;  %v5063_v45 = vld [vmem:[%s7069_s3 + $0x90] sm:$0xff]  ;;  %v5046_v37 = vld [vmem:[%s7069_s3 + $0x8] sm:$0xff]  ;;  %v5045_v51 = vld [vmem:[%s7069_s3] sm:$0xff] }
 0x96d   :  { %v2331_v21 = vadd.f32 %v5385_v36, %v2328_v39  ;;  %v4441_v39 = vld [vmem:[%s7068_s2 + $0xd8] sm:$0xf0]  ;;  %v4367_v36 = vld [vmem:[%s7068_s2 + $0x10] sm:$0xf]  ;;  %v5070_v57 = vld [vmem:[%s7069_s3 + $0xc8] sm:$0xff] }
 0x96e   :  { %2697 = vmatpush.bf16.msra.mxu1 %v4436_v46  ;;  %v4368_v47 = vor.u32 %v5023_v61, %v4367_v36  ;;  %v4396_v46 = vor.u32 %v5018_v48, %v4393_v24  ;;  %v5044_v36 = vld [vmem:[%s7068_s2 + $0xf4] sm:$0xf0]  ;;  %v5061_v24 = vld [vmem:[%s7069_s3 + $0x80] sm:$0xff] }
 0x96f   :  { %v2335_v43 = vsel %vm47_vm0, %v2331_v21, 0.0  ;;  %v5092_v48 = vld [vmem:[%s7069_s3 + $0x178] sm:$0xff] }
 0x970   :  { %2336 = vadd.xlane.f32.xlu2 %v2335_v43  ;;  %v4444_v43 = vor.u32 %v5032_v2, %v4441_v39  ;;  %2684 = vmatpush.bf16.msra.mxu0 %v4368_v47  ;;  %v5035_v2 = vld [vmem:[%s7068_s2 + $0xb4] sm:$0xf]  ;;  %v4471_v39 = vld [vmem:[%s7068_s2 + $0xb8] sm:$0xf]  ;;  %v5027_v47 = vld [vmem:[%s7068_s2 + $0x6c] sm:$0xf0] }
 0x972   :  { %2725 = vmatpush.bf16.msra.mxu3 %v4444_v43  ;;  %2698 = vmatpush.bf16.msra.mxu1 %v4372_v9  ;;  %v4473_v43 = vld [vmem:[%s7068_s2 + $0xf8] sm:$0xf0]  ;;  %v4472_v9 = vor.u32 %v5044_v36, %v4471_v39  ;;  %v5090_v39 = vld [vmem:[%s7069_s3 + $0x168] sm:$0xff]  ;;  %v5081_v36 = vld [vmem:[%s7069_s3 + $0x120] sm:$0xff] }
 0x9db   :  { %v2334_v25 = vpop.xlane.xlu1 %2333 }
 0x9dc   :  { %v2345_v52 = vmul.f32 %v6374_v11, %v2334_v25  ;;  %v5024_v25 = vld [vmem:[%s7068_s2 + $0x54] sm:$0xf0] }
 0x9de   :  { %v6377_v1 = vsub.f32 %v2330_v22, %v2345_v52  ;;  %v5040_v22 = vld [vmem:[%s7068_s2 + $0xd4] sm:$0xf0]  ;;  %v5016_v52 = vld [vmem:[%s7068_s2 + $0x1c] sm:$0xf] }
 0x9df   :  { %v4440_v6 = vor.u32 %v5040_v22, %v4439_v32  ;;  %v4463_v32 = vld [vmem:[%s7068_s2 + $0xb0] sm:$0xf] }
 0x9e0   :  { %v2349_v4 = vmul.f32 %v6377_v1, %v6377_v1  ;;  %v5043_v22 = vld [vmem:[%s7068_s2 + $0xec] sm:$0xf0] }
 0x9e1   :  { %2711 = vmatpush.bf16.msra.mxu2 %v4440_v6  ;;  %v4465_v6 = vld [vmem:[%s7068_s2 + $0xf0] sm:$0xf0]  ;;  %v4464_v61 = vor.u32 %v5043_v22, %v4463_v32 }
 0x9e2   :  { %v2351_v30 = vsel %vm47_vm0, %v2349_v4, 0.0  ;;  %v4468_v17 = vor.u32 %v5035_v2, %v4465_v6  ;;  %v5091_v32 = vld [vmem:[%s7069_s3 + $0x170] sm:$0xff]  ;;  %v5082_v6 = vld [vmem:[%s7069_s3 + $0x128] sm:$0xff] }
 0x9e3   :  { %v2337_v41 = vpop.xlane.xlu2 %2336  ;;  %2352 = vadd.xlane.f32.xlu0 %v2351_v30  ;;  %v4376_v30 = vor.u32 %v5024_v25, %v4375_v0  ;;  %v5019_v25 = vld [vmem:[%s7068_s2 + $0x34] sm:$0xf] }
 0x9e4   :  { %v2346_v59 = vmul.f32 %v6374_v11, %v2337_v41  ;;  %v4377_v41 = vld [vmem:[%s7068_s2 + $0x58] sm:$0xf0]  ;;  %v5099_v22 = vld [vmem:[%s7069_s3 + $0x1b0] sm:$0xff] }
 0x9e5   :  { %2712 = vmatpush.bf16.msra.mxu2 %v4376_v30  ;;  %v5028_v30 = vld [vmem:[%s7068_s2 + $0x74] sm:$0xf0]  ;;  %v5107_v2 = vld [vmem:[%s7069_s3 + $0x1f0] sm:$0xff] }
 0x9e6   :  { %v6383_v35 = vsub.f32 %v2331_v21, %v2346_v59  ;;  %v4380_v59 = vor.u32 %v5016_v52, %v4377_v41  ;;  %v4401_v52 = vld [vmem:[%s7068_s2 + $0x70] sm:$0xf0]  ;;  %v5020_v41 = vld [vmem:[%s7068_s2 + $0x3c] sm:$0xf] }
 0x9e8   :  { %v2350_v49 = vmul.f32 %v6383_v35, %v6383_v35  ;;  %2726 = vmatpush.bf16.msra.mxu3 %v4380_v59  ;;  %v4409_v59 = vld [vmem:[%s7068_s2 + $0x78] sm:$0xf0] }
 0x9ea   :  { %v2354_v13 = vsel %vm47_vm0, %v2350_v49, 0.0 }
 0x9eb   :  { %2355 = vadd.xlane.f32.xlu1 %v2354_v13 }
 0xa56   :  { %v2353_v44 = vpop.xlane.xlu0 %2352 }
 0xa57   :  { %v2357_v8 = vmul.f32 %v2353_v44, %v6374_v11 }
 0xa59   :  { %v6389_v18 = vadd.f32 1e-05, %v2357_v8 }
 0xa5b   :  { %5375 = vrsqrt.f32 %v6389_v18  ;;  %vm2367_vm10 = vweird.f32 %v6389_v18 }
 0xa5e   :  { %v2356_v29 = vpop.xlane.xlu1 %2355 }
 0xa5f   :  { %v2358_v27 = vmul.f32 %v2356_v29, %v6374_v11  ;;  %v5041_v29 = vld [vmem:[%s7068_s2 + $0xdc] sm:$0xf0] }
 0xa60   :  { %v4448_v12 = vor.u32 %v5041_v29, %v4447_v19  ;;  %v5049_v19 = vld [vmem:[%s7069_s3 + $0x20] sm:$0xff] }
 0xa61   :  { %v5376_v60 = vpop.eup %5375  ;;  %v2360_v62 = vadd.f32 1e-05, %v2358_v27  ;;  %v4457_v27 = vld [vmem:[%s7068_s2 + $0xe8] sm:$0xf0]  ;;  %v5057_v29 = vld [vmem:[%s7069_s3 + $0x60] sm:$0xff] }
 0xa62   :  { %v2362_v55 = vmul.f32 %v5376_v60, %v6389_v18  ;;  %vm2368_vm9 = vweird.f32 %v5376_v60  ;;  %v4460_v34 = vor.u32 %v5034_v3, %v4457_v27  ;;  %v5064_v3 = vld [vmem:[%s7069_s3 + $0x98] sm:$0xff] }
 0xa63   :  { %5377 = vrsqrt.f32 %v2360_v62  ;;  %vm2369_vm11 = vmor %vm2367_vm10, %vm2368_vm9  ;;  %vm2377_vm13 = vweird.f32 %v2360_v62  ;;  %v5072_v27 = vld [vmem:[%s7069_s3 + $0xd8] sm:$0xff] }
 0xa64   :  { %v2363_v21 = vmul.f32 %v5376_v60, %v2362_v55 }
 0xa66   :  { %v2364_v4 = vmul.f32 0.5, %v2363_v21  ;;  %v5036_v21 = vld [vmem:[%s7068_s2 + $0xbc] sm:$0xf] }
 0xa67   :  { %v4476_v0 = vor.u32 %v5036_v21, %v4473_v43  ;;  %v5089_v21 = vld [vmem:[%s7069_s3 + $0x160] sm:$0xff]  ;;  %v5098_v43 = vld [vmem:[%s7069_s3 + $0x1a8] sm:$0xff] }
 0xa68   :  { %v2365_v49 = vsub.f32 1.5, %v2364_v4  ;;  %v4407_v4 = vld [vmem:[%s7068_s2 + $0x38] sm:$0xf] }
 0xa69   :  { %v5378_v13 = vpop.eup %5377 }
 0xa6a   :  { %v2366_v44 = vmul.f32 %v5376_v60, %v2365_v49  ;;  %v2372_v8 = vmul.f32 %v5378_v13, %v2360_v62  ;;  %vm2378_vm12 = vweird.f32 %v5378_v13  ;;  %v5026_v62 = vld [vmem:[%s7068_s2 + $0x64] sm:$0xf0]  ;;  %v4400_v49 = vor.u32 %v5027_v47, %v4399_v10  ;;  %v5088_v10 = vld [vmem:[%s7069_s3 + $0x158] sm:$0xff]  ;;  %v5097_v47 = vld [vmem:[%s7069_s3 + $0x1a0] sm:$0xff] }
 0xa6b   :  { %vm2379_vm14 = vmor %vm2377_vm13, %vm2378_vm12 }
 0xa6c   :  { %v2373_v15 = vmul.f32 %v5378_v13, %v2372_v8  ;;  %v2370_v5 = vsel %vm2369_vm11, %v5376_v60, %v2366_v44  ;;  %v4391_v60 = vld [vmem:[%s7068_s2 + $0x28] sm:$0xf]  ;;  %v4408_v44 = vor.u32 %v5028_v30, %v4407_v4  ;;  %v4412_v8 = vor.u32 %v5020_v41, %v4409_v59  ;;  %v5104_v4 = vld [vmem:[%s7069_s3 + $0x1d8] sm:$0xff]  ;;  %v5095_v59 = vld [vmem:[%s7069_s3 + $0x190] sm:$0xff] }
 0xa6d   :  { %v2381_v23 = vmul.f32 %v2370_v5, %v6377_v1  ;;  %v5033_v1 = vld [vmem:[%s7068_s2 + $0xa4] sm:$0xf]  ;;  %v4392_v55 = vor.u32 %v5026_v62, %v4391_v60  ;;  %v5060_v5 = vld [vmem:[%s7069_s3 + $0x78] sm:$0xff]  ;;  %v5078_v30 = vld [vmem:[%s7069_s3 + $0x108] sm:$0xff] }
 0xa6e   :  { %v2374_v53 = vmul.f32 0.5, %v2373_v15  ;;  %v4452_v28 = vor.u32 %v5033_v1, %v4449_v20  ;;  %v5052_v15 = vld [vmem:[%s7069_s3 + $0x38] sm:$0xff]  ;;  %v5065_v1 = vld [vmem:[%s7069_s3 + $0xa0] sm:$0xff]  ;;  %v5086_v41 = vld [vmem:[%s7069_s3 + $0x148] sm:$0xff] }
 0xa6f   :  { %v2384_v42 = vmul.f32 %v2383_v40, %v2381_v23  ;;  %v5059_v23 = vld [vmem:[%s7069_s3 + $0x70] sm:$0xff]  ;;  %v5073_v20 = vld [vmem:[%s7069_s3 + $0xe0] sm:$0xff]  ;;  %v5084_v62 = vld [vmem:[%s7069_s3 + $0x138] sm:$0xff] }
 0xa70   :  { %v2375_v31 = vsub.f32 1.5, %v2374_v53  ;;  %v5068_v53 = vld [vmem:[%s7069_s3 + $0xb8] sm:$0xff]  ;;  %v5053_v60 = vld [vmem:[%s7069_s3 + $0x40] sm:$0xff] }
 0xa71   :  { %v6510_v63 = vadd.f32 %v2386_v54, %v2384_v42  ;;  %v5058_v42 = vld [vmem:[%s7069_s3 + $0x68] sm:$0xff] }
 0xa72   :  { %v2376_v14 = vmul.f32 %v5378_v13, %v2375_v31  ;;  %v5076_v31 = vld [vmem:[%s7069_s3 + $0xf8] sm:$0xff] }
 0xa74   :  { %v2380_v38 = vsel %vm2379_vm14, %v5378_v13, %v2376_v14  ;;  %v4404_v13 = vor.u32 %v5019_v25, %v4401_v52  ;;  %v5067_v14 = vld [vmem:[%s7069_s3 + $0xb0] sm:$0xff]  ;;  %v5096_v52 = vld [vmem:[%s7069_s3 + $0x198] sm:$0xff] }
 0xa75   :  { %v2382_v16 = vmul.f32 %v2380_v38, %v6383_v35  ;;  %v4455_v35 = vld [vmem:[%s7068_s2 + $0xa8] sm:$0xf]  ;;  %v5075_v38 = vld [vmem:[%s7069_s3 + $0xf0] sm:$0xff] }
 0xa76   :  { %v4456_v33 = vor.u32 %v5042_v56, %v4455_v35  ;;  %v5048_v35 = vld [vmem:[%s7069_s3 + $0x18] sm:$0xff]  ;;  %v5087_v25 = vld [vmem:[%s7069_s3 + $0x150] sm:$0xff] }
 0xa77   :  { %v2385_v18 = vmul.f32 %v2383_v40, %v2382_v16  ;;  %v5051_v40 = vld [vmem:[%s7069_s3 + $0x30] sm:$0xff]  ;;  %v5066_v16 = vld [vmem:[%s7069_s3 + $0xa8] sm:$0xff]  ;;  %v5056_v56 = vld [vmem:[%s7069_s3 + $0x58] sm:$0xff] }
 0xa79   :  { %v6512_v50 = vadd.f32 %v2386_v54, %v2385_v18  ;;  %v5050_v54 = vld [vmem:[%s7069_s3 + $0x28] sm:$0xff] }
 0xa7a   :  { %v5074_v18 = vld [vmem:[%s7069_s3 + $0xe8] sm:$0xff] }
 0xa7b   :  { %v6525_v7 = vpack.c.bf16 %v6512_v50, %v6510_v63 }
 0xa7d   :  { %4477 = vmatmul.msk.bf16.vlgmr.msrb.gmra.mxu0 %vm47_vm0, %v6525_v7  ;;  %4478 = vmatmul.msk.bf16.vlgmr.msrb.gmra.mxu1 %vm47_vm0, %v6525_v7 }
 0xa7e   :  { %4479 = vmatmul.msk.bf16.vlgmr.msrb.gmra.mxu2 %vm47_vm0, %v6525_v7  ;;  %4480 = vmatmul.msk.bf16.vlgmr.msrb.gmra.mxu3 %vm47_vm0, %v6525_v7 }
 0xa7f   :  { %2739 = vmatpush.bf16.msrb.mxu0 %v4448_v12  ;;  %2753 = vmatpush.bf16.msrb.mxu1 %v4452_v28  ;;  %v5047_v12 = vld [vmem:[%s7069_s3 + $0x10] sm:$0xff] }
 0xa80   :  { %2767 = vmatpush.bf16.msrb.mxu2 %v4456_v33  ;;  %2781 = vmatpush.bf16.msrb.mxu3 %v4460_v34  ;;  %v5055_v28 = vld [vmem:[%s7069_s3 + $0x50] sm:$0xff]  ;;  %v5054_v33 = vld [vmem:[%s7069_s3 + $0x48] sm:$0xff] }
 0xa81   :  { %v5062_v34 = vld [vmem:[%s7069_s3 + $0x88] sm:$0xff] }
 0xa83   :  { %2740 = vmatpush.bf16.msrb.mxu0 %v4384_v26  ;;  %2754 = vmatpush.bf16.msrb.mxu1 %v4388_v58  ;;  %v5069_v26 = vld [vmem:[%s7069_s3 + $0xc0] sm:$0xff]  ;;  %v5100_v58 = vld [vmem:[%s7069_s3 + $0x1b8] sm:$0xff] }
 0xa84   :  { %2768 = vmatpush.bf16.msrb.mxu2 %v4392_v55  ;;  %2782 = vmatpush.bf16.msrb.mxu3 %v4396_v46  ;;  %v5108_v55 = vld [vmem:[%s7069_s3 + $0x1f8] sm:$0xff]  ;;  %v5083_v46 = vld [vmem:[%s7069_s3 + $0x130] sm:$0xff] }
 0xa8d   :  { %4481 = vmatmul.msk.bf16.vlgmr.msra.gmra.mxu0 %vm47_vm0, %v6525_v7  ;;  %4482 = vmatmul.msk.bf16.vlgmr.msra.gmra.mxu1 %vm47_vm0, %v6525_v7 }
 0xa8e   :  { %4483 = vmatmul.msk.bf16.vlgmr.msra.gmra.mxu2 %vm47_vm0, %v6525_v7  ;;  %4484 = vmatmul.msk.bf16.vlgmr.msra.gmra.mxu3 %vm47_vm0, %v6525_v7 }
 0xa8f   :  { %2795 = vmatpush.bf16.msra.mxu0 %v4464_v61  ;;  %2809 = vmatpush.bf16.msra.mxu1 %v4468_v17  ;;  %v5106_v61 = vld [vmem:[%s7069_s3 + $0x1e8] sm:$0xff]  ;;  %v5080_v17 = vld [vmem:[%s7069_s3 + $0x118] sm:$0xff] }
 0xa90   :  { %2823 = vmatpush.bf16.msra.mxu2 %v4472_v9  ;;  %2837 = vmatpush.bf16.msra.mxu3 %v4476_v0  ;;  %v5105_v9 = vld [vmem:[%s7069_s3 + $0x1e0] sm:$0xff]  ;;  %v5079_v0 = vld [vmem:[%s7069_s3 + $0x110] sm:$0xff] }
 0xa93   :  { %2796 = vmatpush.bf16.msra.mxu0 %v4400_v49  ;;  %2810 = vmatpush.bf16.msra.mxu1 %v4404_v13  ;;  %v5103_v49 = vld [vmem:[%s7069_s3 + $0x1d0] sm:$0xff]  ;;  %v5077_v13 = vld [vmem:[%s7069_s3 + $0x100] sm:$0xff] }
 0xa94   :  { %2824 = vmatpush.bf16.msra.mxu2 %v4408_v44  ;;  %2838 = vmatpush.bf16.msra.mxu3 %v4412_v8  ;;  %v5085_v44 = vld [vmem:[%s7069_s3 + $0x140] sm:$0xff]  ;;  %v5094_v8 = vld [vmem:[%s7069_s3 + $0x188] sm:$0xff] }
 0xa9d   :  { %4485 = vmatmul.msk.bf16.vlgmr.msrb.gmra.mxu0 %vm47_vm0, %v6525_v7  ;;  %4486 = vmatmul.msk.bf16.vlgmr.msrb.gmra.mxu1 %vm47_vm0, %v6525_v7 }
 0xa9e   :  { %4487 = vmatmul.msk.bf16.vlgmr.msrb.gmra.mxu2 %vm47_vm0, %v6525_v7  ;;  %4488 = vmatmul.msk.bf16.vlgmr.msrb.gmra.mxu3 %vm47_vm0, %v6525_v7 }
 0xa9f   :  { %3918 = vmatpush.bf16.msrb.mxu0 %v5052_v15  ;;  %3932 = vmatpush.bf16.msrb.mxu1 %v5060_v5  ;;  %v5102_v15 = vld [vmem:[%s7069_s3 + $0x1c8] sm:$0xff]  ;;  %v5093_v5 = vld [vmem:[%s7069_s3 + $0x180] sm:$0xff] }
 0xaa0   :  { %3946 = vmatpush.bf16.msrb.mxu2 %v5068_v53  ;;  %3960 = vmatpush.bf16.msrb.mxu3 %v5076_v31  ;;  %v5101_v53 = vld [vmem:[%s7069_s3 + $0x1c0] sm:$0xff] }
 0xaa1   :  { %v6826_v31 = vld [vmem:[%s7071_s5] sm:$0xff] }
 0xaa3   :  { %3919 = vmatpush.bf16.msrb.mxu0 %v5051_v40  ;;  %3933 = vmatpush.bf16.msrb.mxu1 %v5059_v23 }
 0xaa4   :  { %3947 = vmatpush.bf16.msrb.mxu2 %v5067_v14  ;;  %3961 = vmatpush.bf16.msrb.mxu3 %v5075_v38  ;;  %v2426_v14 = vperm.slane %v6826_v31, 0  ;;  %v2427_v38 = vperm.slane %v6826_v31, 1 }
 0xaa7   :  { %3920 = vmatpush.bf16.msrb.mxu0 %v5050_v54  ;;  %3934 = vmatpush.bf16.msrb.mxu1 %v5058_v42 }
 0xaa8   :  { %3948 = vmatpush.bf16.msrb.mxu2 %v5066_v16  ;;  %3962 = vmatpush.bf16.msrb.mxu3 %v5074_v18 }
 0xaab   :  { %3921 = vmatpush.bf16.msrb.mxu0 %v5049_v19  ;;  %3935 = vmatpush.bf16.msrb.mxu1 %v5057_v29 }
 0xaac   :  { %3949 = vmatpush.bf16.msrb.mxu2 %v5065_v1  ;;  %3963 = vmatpush.bf16.msrb.mxu3 %v5073_v20 }
 0xaad   :  { %4489 = vmatmul.msk.bf16.vlgmr.msra.gmra.mxu0 %vm47_vm0, %v6525_v7  ;;  %4490 = vmatmul.msk.bf16.vlgmr.msra.gmra.mxu1 %vm47_vm0, %v6525_v7 }
 0xaae   :  { %4491 = vmatmul.msk.bf16.vlgmr.msra.gmra.mxu2 %vm47_vm0, %v6525_v7  ;;  %4492 = vmatmul.msk.bf16.vlgmr.msra.gmra.mxu3 %vm47_vm0, %v6525_v7  ;;  %v5071_v7 = vld [vmem:[%s7069_s3 + $0xd0] sm:$0xff] }
 0xaaf   :  { %3922 = vmatpush.bf16.msrb.mxu0 %v5048_v35  ;;  %3936 = vmatpush.bf16.msrb.mxu1 %v5056_v56  ;;  %v2428_v35 = vperm.slane %v6826_v31, 2  ;;  %v2429_v56 = vperm.slane %v6826_v31, 3 }
 0xab0   :  { %3950 = vmatpush.bf16.msrb.mxu2 %v5064_v3  ;;  %3964 = vmatpush.bf16.msrb.mxu3 %v5072_v27 }
 0xab3   :  { %3923 = vmatpush.bf16.msrb.mxu0 %v5047_v12  ;;  %3937 = vmatpush.bf16.msrb.mxu1 %v5055_v28 }
 0xab4   :  { %3951 = vmatpush.bf16.msrb.mxu2 %v5063_v45  ;;  %3965 = vmatpush.bf16.msrb.mxu3 %v5071_v7  ;;  %v5116_v45 = vld [vmem:[%s7069_s3 + $0x238] sm:$0xff] }
 0xab5   :  { %v5124_v7 = vld [vmem:[%s7069_s3 + $0x278] sm:$0xff] }
 0xab7   :  { %3924 = vmatpush.bf16.msrb.mxu0 %v5046_v37  ;;  %3938 = vmatpush.bf16.msrb.mxu1 %v5054_v33 }
 0xab8   :  { %3952 = vmatpush.bf16.msrb.mxu2 %v5062_v34  ;;  %3966 = vmatpush.bf16.msrb.mxu3 %v5070_v57 }
 0xabb   :  { %3925 = vmatpush.bf16.msrb.mxu0 %v5045_v51  ;;  %3939 = vmatpush.bf16.msrb.mxu1 %v5053_v60 }
 0xabc   :  { %3953 = vmatpush.bf16.msrb.mxu2 %v5061_v24  ;;  %3967 = vmatpush.bf16.msrb.mxu3 %v5069_v26 }
 0xabf   :  { %3974 = vmatpush.bf16.msra.mxu0 %v5084_v62  ;;  %3988 = vmatpush.bf16.msra.mxu1 %v5092_v48 }
 0xac0   :  { %4002 = vmatpush.bf16.msra.mxu2 %v5100_v58  ;;  %4016 = vmatpush.bf16.msra.mxu3 %v5108_v55  ;;  %v5115_v58 = vld [vmem:[%s7069_s3 + $0x230] sm:$0xff] }
 0xac1   :  { %v5123_v55 = vld [vmem:[%s7069_s3 + $0x270] sm:$0xff] }
 0xac3   :  { %3975 = vmatpush.bf16.msra.mxu0 %v5083_v46  ;;  %3989 = vmatpush.bf16.msra.mxu1 %v5091_v32 }
 0xac4   :  { %4003 = vmatpush.bf16.msra.mxu2 %v5099_v22  ;;  %4017 = vmatpush.bf16.msra.mxu3 %v5107_v2 }
 0xac7   :  { %3976 = vmatpush.bf16.msra.mxu0 %v5082_v6  ;;  %3990 = vmatpush.bf16.msra.mxu1 %v5090_v39  ;;  %v2430_v6 = vperm.slane %v6826_v31, 4  ;;  %v2431_v39 = vperm.slane %v6826_v31, 5 }
 0xac8   :  { %4004 = vmatpush.bf16.msra.mxu2 %v5098_v43  ;;  %4018 = vmatpush.bf16.msra.mxu3 %v5106_v61 }
 0xacb   :  { %3977 = vmatpush.bf16.msra.mxu0 %v5081_v36  ;;  %3991 = vmatpush.bf16.msra.mxu1 %v5089_v21  ;;  %v5132_v36 = vld [vmem:[%s7069_s3 + $0x2b8] sm:$0xff] }
 0xacc   :  { %4005 = vmatpush.bf16.msra.mxu2 %v5097_v47  ;;  %4019 = vmatpush.bf16.msra.mxu3 %v5105_v9  ;;  %v5140_v21 = vld [vmem:[%s7069_s3 + $0x2f8] sm:$0xff] }
 0xacf   :  { %3978 = vmatpush.bf16.msra.mxu0 %v5080_v17  ;;  %3992 = vmatpush.bf16.msra.mxu1 %v5088_v10  ;;  %v5114_v17 = vld [vmem:[%s7069_s3 + $0x228] sm:$0xff] }
 0xad0   :  { %4006 = vmatpush.bf16.msra.mxu2 %v5096_v52  ;;  %4020 = vmatpush.bf16.msra.mxu3 %v5104_v4  ;;  %v5122_v10 = vld [vmem:[%s7069_s3 + $0x268] sm:$0xff]  ;;  %v5131_v52 = vld [vmem:[%s7069_s3 + $0x2b0] sm:$0xff] }
 0xad1   :  { %v5139_v4 = vld [vmem:[%s7069_s3 + $0x2f0] sm:$0xff] }
 0xad3   :  { %3979 = vmatpush.bf16.msra.mxu0 %v5079_v0  ;;  %3993 = vmatpush.bf16.msra.mxu1 %v5087_v25 }
 0xad4   :  { %4007 = vmatpush.bf16.msra.mxu2 %v5095_v59  ;;  %4021 = vmatpush.bf16.msra.mxu3 %v5103_v49  ;;  %v5113_v59 = vld [vmem:[%s7069_s3 + $0x220] sm:$0xff] }
 0xad5   :  { %v5121_v49 = vld [vmem:[%s7069_s3 + $0x260] sm:$0xff] }
 0xad7   :  { %3980 = vmatpush.bf16.msra.mxu0 %v5078_v30  ;;  %3994 = vmatpush.bf16.msra.mxu1 %v5086_v41 }
 0xad8   :  { %4008 = vmatpush.bf16.msra.mxu2 %v5094_v8  ;;  %4022 = vmatpush.bf16.msra.mxu3 %v5102_v15  ;;  %v2432_v8 = vperm.slane %v6826_v31, 6  ;;  %v2433_v15 = vperm.slane %v6826_v31, 7  ;;  %v5112_v31 = vld [vmem:[%s7069_s3 + $0x218] sm:$0xff] }
 0xadb   :  { %3981 = vmatpush.bf16.msra.mxu0 %v5077_v13  ;;  %3995 = vmatpush.bf16.msra.mxu1 %v5085_v44 }
 0xadc   :  { %4009 = vmatpush.bf16.msra.mxu2 %v5093_v5  ;;  %4023 = vmatpush.bf16.msra.mxu3 %v5101_v53 }
 0xafa   :  { %v2630_v40 = vpop.f32.mrf.mxu0  ;;  %v2644_v23 = vpop.f32.mrf.mxu1 }
 0xafb   :  { %v2631_v54 = vadd.f32 %v2630_v40, %v2426_v14  ;;  %v2645_v42 = vadd.f32 %v2644_v23, %v2427_v38 }
 0xafd   :  { %v2845_v3 = vmax.f32 %v2631_v54, 0.0  ;;  %v2846_v27 = vmax.f32 %v2645_v42, 0.0 }
 0xb01   :  { %v2658_v16 = vpop.f32.mrf.mxu2  ;;  %v2672_v18 = vpop.f32.mrf.mxu3 }
 0xb02   :  { %v2632_v19 = vpop.f32.mrf.mxu0  ;;  %v2646_v29 = vpop.f32.mrf.mxu1  ;;  %v2659_v34 = vadd.f32 %v2658_v16, %v2428_v35  ;;  %v2673_v57 = vadd.f32 %v2672_v18, %v2429_v56  ;;  %v5120_v16 = vld [vmem:[%s7069_s3 + $0x258] sm:$0xff] }
 0xb03   :  { %v2633_v1 = vadd.f32 %v2632_v19, %v2426_v14  ;;  %v2647_v20 = vadd.f32 %v2646_v29, %v2427_v38  ;;  %v5130_v14 = vld [vmem:[%s7069_s3 + $0x2a8] sm:$0xff] }
 0xb04   :  { %v2847_v46 = vmax.f32 %v2659_v34, 0.0  ;;  %v2848_v32 = vmax.f32 %v2673_v57, 0.0  ;;  %v5138_v38 = vld [vmem:[%s7069_s3 + $0x2e8] sm:$0xff] }
 0xb05   :  { %v2861_v12 = vmax.f32 %v2633_v1, 0.0  ;;  %v2862_v28 = vmax.f32 %v2647_v20, 0.0  ;;  %v5129_v20 = vld [vmem:[%s7069_s3 + $0x2a0] sm:$0xff] }
 0xb07   :  { %v2877_v37 = vpack.c.bf16 %v2861_v12, %v2845_v3  ;;  %v2878_v33 = vpack.c.bf16 %v2862_v28, %v2846_v27  ;;  %v6893_v27 = vld [vmem:[%s7071_s5 + $0x8] sm:$0xff] }
 0xb09   :  { %v2660_v51 = vpop.f32.mrf.mxu2  ;;  %v2674_v60 = vpop.f32.mrf.mxu3  ;;  %3926 = vmatmul.bf16.vlgmr.msrb.gmra.mxu0 %v2877_v37  ;;  %3940 = vmatmul.bf16.vlgmr.msrb.gmra.mxu1 %v2878_v33 }
 0xb0a   :  { %v2661_v62 = vadd.f32 %v2660_v51, %v2428_v35  ;;  %v2675_v48 = vadd.f32 %v2674_v60, %v2429_v56  ;;  %4030 = vmatpush.bf16.msrb.mxu0 %v5116_v45  ;;  %4044 = vmatpush.bf16.msrb.mxu1 %v5124_v7  ;;  %v2686_v24 = vpop.f32.mrf.mxu0  ;;  %v2700_v26 = vpop.f32.mrf.mxu1  ;;  %v5137_v35 = vld [vmem:[%s7069_s3 + $0x2e0] sm:$0xff]  ;;  %v5111_v45 = vld [vmem:[%s7069_s3 + $0x210] sm:$0xff]  ;;  %v2434_v51 = vperm.slane %v6893_v27, 0  ;;  %v2435_v60 = vperm.slane %v6893_v27, 1 }
 0xb0b   :  { %v2687_v47 = vadd.f32 %v2686_v24, %v2430_v6  ;;  %v2701_v9 = vadd.f32 %v2700_v26, %v2431_v39  ;;  %v5119_v7 = vld [vmem:[%s7069_s3 + $0x250] sm:$0xff] }
 0xb0c   :  { %v2863_v22 = vmax.f32 %v2661_v62, 0.0  ;;  %v2864_v2 = vmax.f32 %v2675_v48, 0.0  ;;  %v5128_v62 = vld [vmem:[%s7069_s3 + $0x298] sm:$0xff] }
 0xb0d   :  { %v2849_v5 = vmax.f32 %v2687_v47, 0.0  ;;  %v2850_v53 = vmax.f32 %v2701_v9, 0.0  ;;  %v5136_v48 = vld [vmem:[%s7069_s3 + $0x2d8] sm:$0xff]  ;;  %v2436_v47 = vperm.slane %v6893_v27, 2  ;;  %v2437_v9 = vperm.slane %v6893_v27, 3 }
 0xb0e   :  { %v2879_v43 = vpack.c.bf16 %v2863_v22, %v2847_v46  ;;  %v2880_v61 = vpack.c.bf16 %v2864_v2, %v2848_v32  ;;  %4031 = vmatpush.bf16.msrb.mxu0 %v5115_v58  ;;  %4045 = vmatpush.bf16.msrb.mxu1 %v5123_v55  ;;  %v5110_v58 = vld [vmem:[%s7069_s3 + $0x208] sm:$0xff] }
 0xb0f   :  { %v5118_v55 = vld [vmem:[%s7069_s3 + $0x248] sm:$0xff] }
 0xb10   :  { %3954 = vmatmul.bf16.vlgmr.msrb.gmra.mxu2 %v2879_v43  ;;  %3968 = vmatmul.bf16.vlgmr.msrb.gmra.mxu3 %v2880_v61 }
 0xb11   :  { %4058 = vmatpush.bf16.msrb.mxu2 %v5132_v36  ;;  %4072 = vmatpush.bf16.msrb.mxu3 %v5140_v21  ;;  %v2714_v0 = vpop.f32.mrf.mxu2  ;;  %v2728_v25 = vpop.f32.mrf.mxu3 }
 0xb12   :  { %4032 = vmatpush.bf16.msrb.mxu0 %v5114_v17  ;;  %4046 = vmatpush.bf16.msrb.mxu1 %v5122_v10  ;;  %v2688_v30 = vpop.f32.mrf.mxu0  ;;  %v2702_v41 = vpop.f32.mrf.mxu1  ;;  %v2715_v18 = vadd.f32 %v2714_v0, %v2432_v8  ;;  %v2729_v19 = vadd.f32 %v2728_v25, %v2433_v15  ;;  %v5109_v17 = vld [vmem:[%s7069_s3 + $0x200] sm:$0xff]  ;;  %v5148_v0 = vld [vmem:[%s7069_s3 + $0x338] sm:$0xff] }
 0xb13   :  { %v2689_v13 = vadd.f32 %v2688_v30, %v2430_v6  ;;  %v2703_v44 = vadd.f32 %v2702_v41, %v2431_v39  ;;  %v5127_v6 = vld [vmem:[%s7069_s3 + $0x290] sm:$0xff]  ;;  %v5117_v10 = vld [vmem:[%s7069_s3 + $0x240] sm:$0xff]  ;;  %v5156_v25 = vld [vmem:[%s7069_s3 + $0x378] sm:$0xff] }
 0xb14   :  { %v2851_v37 = vmax.f32 %v2715_v18, 0.0  ;;  %v2852_v33 = vmax.f32 %v2729_v19, 0.0  ;;  %v5135_v39 = vld [vmem:[%s7069_s3 + $0x2d0] sm:$0xff] }
 0xb15   :  { %v2865_v40 = vmax.f32 %v2689_v13, 0.0  ;;  %v2866_v23 = vmax.f32 %v2703_v44, 0.0  ;;  %4059 = vmatpush.bf16.msrb.mxu2 %v5131_v52  ;;  %4073 = vmatpush.bf16.msrb.mxu3 %v5139_v4 }
 0xb16   :  { %4033 = vmatpush.bf16.msrb.mxu0 %v5113_v59  ;;  %4047 = vmatpush.bf16.msrb.mxu1 %v5121_v49  ;;  %v5126_v59 = vld [vmem:[%s7069_s3 + $0x288] sm:$0xff] }
 0xb17   :  { %v2881_v54 = vpack.c.bf16 %v2865_v40, %v2849_v5  ;;  %v2882_v42 = vpack.c.bf16 %v2866_v23, %v2850_v53  ;;  %v5134_v49 = vld [vmem:[%s7069_s3 + $0x2c8] sm:$0xff]  ;;  %v5147_v5 = vld [vmem:[%s7069_s3 + $0x330] sm:$0xff] }
 0xb18   :  { %v5155_v53 = vld [vmem:[%s7069_s3 + $0x370] sm:$0xff] }
 0xb19   :  { %4060 = vmatpush.bf16.msrb.mxu2 %v5130_v14  ;;  %4074 = vmatpush.bf16.msrb.mxu3 %v5138_v38  ;;  %v2716_v29 = vpop.f32.mrf.mxu2  ;;  %v2730_v1 = vpop.f32.mrf.mxu3  ;;  %v5125_v14 = vld [vmem:[%s7069_s3 + $0x280] sm:$0xff] }
 0xb1a   :  { %v2717_v56 = vadd.f32 %v2716_v29, %v2432_v8  ;;  %v2731_v3 = vadd.f32 %v2730_v1, %v2433_v15  ;;  %3982 = vmatmul.bf16.vlgmr.msra.gmra.mxu0 %v2881_v54  ;;  %3996 = vmatmul.bf16.vlgmr.msra.gmra.mxu1 %v2882_v42  ;;  %v2742_v12 = vpop.f32.mrf.mxu0  ;;  %v2756_v28 = vpop.f32.mrf.mxu1  ;;  %v5133_v38 = vld [vmem:[%s7069_s3 + $0x2c0] sm:$0xff] }
 0xb1b   :  { %4034 = vmatpush.bf16.msrb.mxu0 %v5112_v31  ;;  %4048 = vmatpush.bf16.msrb.mxu1 %v5120_v16  ;;  %v2743_v46 = vadd.f32 %v2742_v12, %v2434_v51  ;;  %v2757_v32 = vadd.f32 %v2756_v28, %v2435_v60  ;;  %v5164_v31 = vld [vmem:[%s7069_s3 + $0x3b8] sm:$0xff]  ;;  %v5163_v12 = vld [vmem:[%s7069_s3 + $0x3b0] sm:$0xff] }
 0xb1c   :  { %v2867_v34 = vmax.f32 %v2717_v56, 0.0  ;;  %v2868_v57 = vmax.f32 %v2731_v3, 0.0  ;;  %v5172_v16 = vld [vmem:[%s7069_s3 + $0x3f8] sm:$0xff]  ;;  %v5171_v28 = vld [vmem:[%s7069_s3 + $0x3f0] sm:$0xff] }
 0xb1d   :  { %4061 = vmatpush.bf16.msrb.mxu2 %v5129_v20  ;;  %4075 = vmatpush.bf16.msrb.mxu3 %v5137_v35  ;;  %v2853_v52 = vmax.f32 %v2743_v46, 0.0  ;;  %v2854_v4 = vmax.f32 %v2757_v32, 0.0  ;;  %v5146_v20 = vld [vmem:[%s7069_s3 + $0x328] sm:$0xff] }
 0xb1e   :  { %v2883_v24 = vpack.c.bf16 %v2867_v34, %v2851_v37  ;;  %v2884_v26 = vpack.c.bf16 %v2868_v57, %v2852_v33  ;;  %v5154_v35 = vld [vmem:[%s7069_s3 + $0x368] sm:$0xff]  ;;  %v5145_v37 = vld [vmem:[%s7069_s3 + $0x320] sm:$0xff] }
 0xb1f   :  { %4035 = vmatpush.bf16.msrb.mxu0 %v5111_v45  ;;  %4049 = vmatpush.bf16.msrb.mxu1 %v5119_v7  ;;  %v5153_v33 = vld [vmem:[%s7069_s3 + $0x360] sm:$0xff]  ;;  %v5162_v34 = vld [vmem:[%s7069_s3 + $0x3a8] sm:$0xff] }
 0xb20   :  { %4010 = vmatmul.bf16.vlgmr.msra.gmra.mxu2 %v2883_v24  ;;  %4024 = vmatmul.bf16.vlgmr.msra.gmra.mxu3 %v2884_v26  ;;  %v5170_v57 = vld [vmem:[%s7069_s3 + $0x3e8] sm:$0xff]  ;;  %v5161_v24 = vld [vmem:[%s7069_s3 + $0x3a0] sm:$0xff] }
 0xb21   :  { %4062 = vmatpush.bf16.msrb.mxu2 %v5128_v62  ;;  %4076 = vmatpush.bf16.msrb.mxu3 %v5136_v48  ;;  %v2770_v22 = vpop.f32.mrf.mxu2  ;;  %v2784_v2 = vpop.f32.mrf.mxu3  ;;  %v5169_v26 = vld [vmem:[%s7069_s3 + $0x3e0] sm:$0xff] }
 0xb22   :  { %v2744_v36 = vpop.f32.mrf.mxu0  ;;  %v2758_v21 = vpop.f32.mrf.mxu1  ;;  %v2771_v8 = vadd.f32 %v2770_v22, %v2436_v47  ;;  %v2785_v15 = vadd.f32 %v2784_v2, %v2437_v9  ;;  %v5160_v22 = vld [vmem:[%s7069_s3 + $0x398] sm:$0xff] }
 0xb23   :  { %4036 = vmatpush.bf16.msrb.mxu0 %v5110_v58  ;;  %4050 = vmatpush.bf16.msrb.mxu1 %v5118_v55  ;;  %v2745_v43 = vadd.f32 %v2744_v36, %v2434_v51  ;;  %v2759_v61 = vadd.f32 %v2758_v21, %v2435_v60  ;;  %v5144_v51 = vld [vmem:[%s7069_s3 + $0x318] sm:$0xff]  ;;  %v5143_v58 = vld [vmem:[%s7069_s3 + $0x310] sm:$0xff]  ;;  %v5142_v36 = vld [vmem:[%s7069_s3 + $0x308] sm:$0xff] }
 0xb24   :  { %v2855_v18 = vmax.f32 %v2771_v8, 0.0  ;;  %v2856_v19 = vmax.f32 %v2785_v15, 0.0  ;;  %v5152_v60 = vld [vmem:[%s7069_s3 + $0x358] sm:$0xff]  ;;  %v5151_v55 = vld [vmem:[%s7069_s3 + $0x350] sm:$0xff]  ;;  %v5150_v21 = vld [vmem:[%s7069_s3 + $0x348] sm:$0xff] }
 0xb25   :  { %v2869_v30 = vmax.f32 %v2745_v43, 0.0  ;;  %v2870_v41 = vmax.f32 %v2759_v61, 0.0  ;;  %4063 = vmatpush.bf16.msrb.mxu2 %v5127_v6  ;;  %4077 = vmatpush.bf16.msrb.mxu3 %v5135_v39  ;;  %v5168_v2 = vld [vmem:[%s7069_s3 + $0x3d8] sm:$0xff]  ;;  %v2438_v6 = vperm.slane %v6893_v27, 4  ;;  %v2439_v39 = vperm.slane %v6893_v27, 5 }
 0xb27   :  { %v2885_v13 = vpack.c.bf16 %v2869_v30, %v2853_v52  ;;  %v2886_v44 = vpack.c.bf16 %v2870_v41, %v2854_v4  ;;  %4037 = vmatpush.bf16.msrb.mxu0 %v5109_v17  ;;  %4051 = vmatpush.bf16.msrb.mxu1 %v5117_v10  ;;  %v5159_v17 = vld [vmem:[%s7069_s3 + $0x390] sm:$0xff]  ;;  %v5141_v52 = vld [vmem:[%s7069_s3 + $0x300] sm:$0xff]  ;;  %v2440_v30 = vperm.slane %v6893_v27, 6  ;;  %v2441_v41 = vperm.slane %v6893_v27, 7 }
 0xb28   :  { %v5167_v10 = vld [vmem:[%s7069_s3 + $0x3d0] sm:$0xff]  ;;  %v5149_v4 = vld [vmem:[%s7069_s3 + $0x340] sm:$0xff] }
 0xb29   :  { %4064 = vmatpush.bf16.msrb.mxu2 %v5126_v59  ;;  %4078 = vmatpush.bf16.msrb.mxu3 %v5134_v49  ;;  %v2772_v40 = vpop.f32.mrf.mxu2  ;;  %v2786_v23 = vpop.f32.mrf.mxu3 }
 0xb2a   :  { %v2773_v54 = vadd.f32 %v2772_v40, %v2436_v47  ;;  %v2787_v42 = vadd.f32 %v2786_v23, %v2437_v9  ;;  %4038 = vmatmul.bf16.vlgmr.msrb.gmra.mxu0 %v2885_v13  ;;  %4052 = vmatmul.bf16.vlgmr.msrb.gmra.mxu1 %v2886_v44  ;;  %v2798_v45 = vpop.f32.mrf.mxu0  ;;  %v2812_v7 = vpop.f32.mrf.mxu1  ;;  %v5158_v13 = vld [vmem:[%s7069_s3 + $0x388] sm:$0xff] }
 0xb2b   :  { %4086 = vmatpush.bf16.msra.mxu0 %v5148_v0  ;;  %4100 = vmatpush.bf16.msra.mxu1 %v5156_v25  ;;  %v2799_v47 = vadd.f32 %v2798_v45, %v2438_v6  ;;  %v2813_v9 = vadd.f32 %v2812_v7, %v2439_v39  ;;  %v5166_v44 = vld [vmem:[%s7069_s3 + $0x3c8] sm:$0xff] }
 0xb2c   :  { %v2871_v29 = vmax.f32 %v2773_v54, 0.0  ;;  %v2872_v1 = vmax.f32 %v2787_v42, 0.0  ;;  %v5165_v54 = vld [vmem:[%s7069_s3 + $0x3c0] sm:$0xff] }
 0xb2d   :  { %4065 = vmatpush.bf16.msrb.mxu2 %v5125_v14  ;;  %4079 = vmatpush.bf16.msrb.mxu3 %v5133_v38  ;;  %v2857_v8 = vmax.f32 %v2799_v47, 0.0  ;;  %v2858_v15 = vmax.f32 %v2813_v9, 0.0  ;;  %v5157_v38 = vld [vmem:[%s7069_s3 + $0x380] sm:$0xff] }
 0xb2e   :  { %v2887_v56 = vpack.c.bf16 %v2871_v29, %v2855_v18  ;;  %v2888_v3 = vpack.c.bf16 %v2872_v1, %v2856_v19 }
 0xb2f   :  { %4087 = vmatpush.bf16.msra.mxu0 %v5147_v5  ;;  %4101 = vmatpush.bf16.msra.mxu1 %v5155_v53 }
 0xb30   :  { %4066 = vmatmul.bf16.vlgmr.msrb.gmra.mxu2 %v2887_v56  ;;  %4080 = vmatmul.bf16.vlgmr.msrb.gmra.mxu3 %v2888_v3 }
 0xb31   :  { %4114 = vmatpush.bf16.msra.mxu2 %v5164_v31  ;;  %4128 = vmatpush.bf16.msra.mxu3 %v5172_v16  ;;  %v2826_v62 = vpop.f32.mrf.mxu2  ;;  %v2840_v48 = vpop.f32.mrf.mxu3 }
 0xb32   :  { %v2800_v46 = vpop.f32.mrf.mxu0  ;;  %v2814_v32 = vpop.f32.mrf.mxu1  ;;  %v2827_v40 = vadd.f32 %v2826_v62, %v2440_v30  ;;  %v2841_v27 = vadd.f32 %v2840_v48, %v2441_v41 }
 0xb33   :  { %4088 = vmatpush.bf16.msra.mxu0 %v5146_v20  ;;  %4102 = vmatpush.bf16.msra.mxu1 %v5154_v35  ;;  %v2801_v43 = vadd.f32 %v2800_v46, %v2438_v6  ;;  %v2815_v61 = vadd.f32 %v2814_v32, %v2439_v39 }
 0xb34   :  { %v2859_v16 = vmax.f32 %v2827_v40, 0.0  ;;  %v2860_v18 = vmax.f32 %v2841_v27, 0.0 }
 0xb35   :  { %4115 = vmatpush.bf16.msra.mxu2 %v5163_v12  ;;  %4129 = vmatpush.bf16.msra.mxu3 %v5171_v28  ;;  %v2873_v59 = vmax.f32 %v2801_v43, 0.0  ;;  %v2874_v49 = vmax.f32 %v2815_v61, 0.0  ;;  %v7044_v28 = vld [vmem:[%s7070_s4] sm:$0xff] }
 0xb36   :  { %v3149_v45 = vperm.slane %v7044_v28, 6 }
 0xb37   :  { %4089 = vmatpush.bf16.msra.mxu0 %v5145_v37  ;;  %4103 = vmatpush.bf16.msra.mxu1 %v5153_v33  ;;  %v2889_v23 = vpack.c.bf16 %v2873_v59, %v2857_v8  ;;  %v2890_v14 = vpack.c.bf16 %v2874_v49, %v2858_v15 }
 0xb39   :  { %4116 = vmatpush.bf16.msra.mxu2 %v5162_v34  ;;  %4130 = vmatpush.bf16.msra.mxu3 %v5170_v57  ;;  %v2828_v0 = vpop.f32.mrf.mxu2  ;;  %v2842_v25 = vpop.f32.mrf.mxu3 }
 0xb3a   :  { %v2829_v5 = vadd.f32 %v2828_v0, %v2440_v30  ;;  %v2843_v53 = vadd.f32 %v2842_v25, %v2441_v41 }
 0xb3b   :  { %4090 = vmatpush.bf16.msra.mxu0 %v5144_v51  ;;  %4104 = vmatpush.bf16.msra.mxu1 %v5152_v60 }
 0xb3c   :  { %v2875_v42 = vmax.f32 %v2829_v5, 0.0  ;;  %v2876_v31 = vmax.f32 %v2843_v53, 0.0 }
 0xb3d   :  { %4117 = vmatpush.bf16.msra.mxu2 %v5161_v24  ;;  %4131 = vmatpush.bf16.msra.mxu3 %v5169_v26 }
 0xb3e   :  { %v2891_v19 = vpack.c.bf16 %v2875_v42, %v2859_v16  ;;  %v2892_v29 = vpack.c.bf16 %v2876_v31, %v2860_v18 }
 0xb3f   :  { %4091 = vmatpush.bf16.msra.mxu0 %v5143_v58  ;;  %4105 = vmatpush.bf16.msra.mxu1 %v5151_v55 }
 0xb41   :  { %4118 = vmatpush.bf16.msra.mxu2 %v5160_v22  ;;  %4132 = vmatpush.bf16.msra.mxu3 %v5168_v2 }
 0xb43   :  { %4092 = vmatpush.bf16.msra.mxu0 %v5142_v36  ;;  %4106 = vmatpush.bf16.msra.mxu1 %v5150_v21 }
 0xb45   :  { %4119 = vmatpush.bf16.msra.mxu2 %v5159_v17  ;;  %4133 = vmatpush.bf16.msra.mxu3 %v5167_v10 }
 0xb47   :  { %4093 = vmatpush.bf16.msra.mxu0 %v5141_v52  ;;  %4107 = vmatpush.bf16.msra.mxu1 %v5149_v4 }
 0xb49   :  { %4120 = vmatpush.bf16.msra.mxu2 %v5158_v13  ;;  %4134 = vmatpush.bf16.msra.mxu3 %v5166_v44 }
 0xb4a   :  { %4094 = vmatmul.bf16.vlgmr.msra.gmra.mxu0 %v2889_v23  ;;  %4108 = vmatmul.bf16.vlgmr.msra.gmra.mxu1 %v2890_v14 }
 0xb4d   :  { %4121 = vmatpush.bf16.msra.mxu2 %v5157_v38  ;;  %4135 = vmatpush.bf16.msra.mxu3 %v5165_v54 }
 0xb50   :  { %4122 = vmatmul.bf16.vlgmr.msra.gmra.mxu2 %v2891_v19  ;;  %4136 = vmatmul.bf16.vlgmr.msra.gmra.mxu3 %v2892_v29 }
 0xb86   :  { %v3927_v1 = vpop.f32.mrf.mxu0  ;;  %v3941_v20 = vpop.f32.mrf.mxu1 }
 0xb87   :  { %v3928_v34 = vadd.f32 %v3927_v1, %v3149_v45 }
 0xb89   :  { %v3942_v51 = vadd.f32 %v3941_v20, %v3928_v34 }
 0xb8e   :  { %v3929_v35 = vpop.f32.mrf.mxu0  ;;  %v3943_v12 = vpop.f32.mrf.mxu1 }
 0xb8f   :  { %v3930_v26 = vadd.f32 %v3929_v35, %v3149_v45 }
 0xb91   :  { %v3944_v55 = vadd.f32 %v3943_v12, %v3930_v26 }
 0xb93   :  { %v3955_v56 = vpop.f32.mrf.mxu2  ;;  %v3969_v3 = vpop.f32.mrf.mxu3 }
 0xb94   :  { %v3956_v60 = vadd.f32 %v3955_v56, %v3942_v51 }
 0xb96   :  { %v3970_v58 = vadd.f32 %v3969_v3, %v3956_v60 }
 0xb97   :  { %v3983_v7 = vpop.f32.mrf.mxu0  ;;  %v3997_v57 = vpop.f32.mrf.mxu1 }
 0xb98   :  { %v3984_v32 = vadd.f32 %v3983_v7, %v3970_v58 }
 0xb9a   :  { %v3998_v36 = vadd.f32 %v3997_v57, %v3984_v32 }
 0xb9b   :  { %v3957_v37 = vpop.f32.mrf.mxu2  ;;  %v3971_v33 = vpop.f32.mrf.mxu3 }
 0xb9c   :  { %v3958_v22 = vadd.f32 %v3957_v37, %v3944_v55 }
 0xb9e   :  { %v3972_v21 = vadd.f32 %v3971_v33, %v3958_v22 }
 0xb9f   :  { %v3985_v62 = vpop.f32.mrf.mxu0  ;;  %v3999_v46 = vpop.f32.mrf.mxu1 }
 0xba0   :  { %v3986_v61 = vadd.f32 %v3985_v62, %v3972_v21 }
 0xba2   :  { %v4000_v47 = vadd.f32 %v3999_v46, %v3986_v61  ;;  %v26_v46 = vld [vmem:[%s7070_s4 + $0x8] sm:$0x7] }
 0xba3   :  { %v4011_v48 = vpop.f32.mrf.mxu2  ;;  %v4025_v24 = vpop.f32.mrf.mxu3  ;;  %v4204_v22 = vrot.slane %v26_v46, 2 }
 0xba4   :  { %v4012_v43 = vadd.f32 %v4011_v48, %v3998_v36 }
 0xba5   :  { %5173 = vpush %v4204_v22 }
 0xba6   :  { %v4026_v10 = vadd.f32 %v4025_v24, %v4012_v43 }
 0xba7   :  { %v4039_v2 = vpop.f32.mrf.mxu0  ;;  %v4053_v17 = vpop.f32.mrf.mxu1 }
 0xba8   :  { %v4040_v52 = vadd.f32 %v4039_v2, %v4026_v10 }
 0xbaa   :  { %v4054_v30 = vadd.f32 %v4053_v17, %v4040_v52 }
 0xbab   :  { %v4013_v6 = vpop.f32.mrf.mxu2  ;;  %v4027_v39 = vpop.f32.mrf.mxu3 }
 0xbac   :  { %v4014_v4 = vadd.f32 %v4013_v6, %v4000_v47 }
 0xbae   :  { %v4028_v41 = vadd.f32 %v4027_v39, %v4014_v4 }
 0xbaf   :  { %v4041_v9 = vpop.f32.mrf.mxu0  ;;  %v4055_v59 = vpop.f32.mrf.mxu1 }
 0xbb0   :  { %v4042_v44 = vadd.f32 %v4041_v9, %v4028_v41  ;;  %v4188_v9 = vperm.slane %v7044_v28, 7  ;;  %v4194_v41 = vperm.slane %v26_v46, 1 }
 0xbb2   :  { %v4056_v53 = vadd.f32 %v4055_v59, %v4042_v44 }
 0xbb3   :  { %v4067_v0 = vpop.f32.mrf.mxu2  ;;  %v4081_v25 = vpop.f32.mrf.mxu3 }
 0xbb4   :  { %v4068_v49 = vadd.f32 %v4067_v0, %v4054_v30 }
 0xbb6   :  { %v4082_v5 = vadd.f32 %v4081_v25, %v4068_v49 }
 0xbbb   :  { %v4069_v8 = vpop.f32.mrf.mxu2  ;;  %v4083_v15 = vpop.f32.mrf.mxu3 }
 0xbbc   :  { %v4070_v23 = vadd.f32 %v4069_v8, %v4056_v53 }
 0xbbe   :  { %v4084_v31 = vadd.f32 %v4083_v15, %v4070_v23  ;;  %v4212_v23 = vlaneseq }
 0xbc7   :  { %v4095_v13 = vpop.f32.mrf.mxu0  ;;  %v4109_v27 = vpop.f32.mrf.mxu1 }
 0xbc8   :  { %v4096_v40 = vadd.f32 %v4095_v13, %v4082_v5 }
 0xbca   :  { %v4110_v14 = vadd.f32 %v4109_v27, %v4096_v40 }
 0xbcf   :  { %v4097_v38 = vpop.f32.mrf.mxu0  ;;  %v4111_v1 = vpop.f32.mrf.mxu1 }
 0xbd0   :  { %v4098_v18 = vadd.f32 %v4097_v38, %v4084_v31 }
 0xbd2   :  { %v4112_v20 = vadd.f32 %v4111_v1, %v4098_v18 }
 0xbd3   :  { %v4123_v54 = vpop.f32.mrf.mxu2  ;;  %v4137_v42 = vpop.f32.mrf.mxu3 }
 0xbd4   :  { %v4124_v16 = vadd.f32 %v4123_v54, %v4110_v14  ;;  %v4213_v54 = vand.u32 127, %v4212_v23 }
 0xbd6   :  { %v4138_v19 = vadd.f32 %v4137_v42, %v4124_v16  ;;  %s5174_s4 = spop %5173 }
 0xbd7   :  { %v4206_v14 = vstv %s5174_s4 }
 0xbd8   :  { %v4142_v29 = vadd.f32 %v4138_v19, %v6510_v63 }
 0xbda   :  { %v4144_v35 = vsel %vm47_vm0, %v4142_v29, 0.0 }
 0xbdb   :  { %v4125_v56 = vpop.f32.mrf.mxu2  ;;  %4145 = vadd.xlane.f32.xlu2 %v4144_v35  ;;  %v4139_v12 = vpop.f32.mrf.mxu3 }
 0xbdc   :  { %v4126_v3 = vadd.f32 %v4125_v56, %v4112_v20 }
 0xbde   :  { %v4140_v45 = vadd.f32 %v4139_v12, %v4126_v3 }
 0xbe0   :  { %v4143_v7 = vadd.f32 %v4140_v45, %v6512_v50 }
 0xbe2   :  { %v4147_v37 = vsel %vm47_vm0, %v4143_v7, 0.0 }
 0xbe3   :  { %4148 = vadd.xlane.f32.xlu0 %v4147_v37 }
 0xc4e   :  { %v4146_v33 = vpop.xlane.xlu2 %4145 }
 0xc4f   :  { %v4150_v34 = vmul.f32 %v4146_v33, %v6374_v11 }
 0xc51   :  { %v4152_v57 = vsub.f32 %v4142_v29, %v4150_v34 }
 0xc53   :  { %v4154_v51 = vmul.f32 %v4152_v57, %v4152_v57 }
 0xc55   :  { %v4156_v63 = vsel %vm47_vm0, %v4154_v51, 0.0 }
 0xc56   :  { %v4149_v60 = vpop.xlane.xlu0 %4148  ;;  %4157 = vadd.xlane.f32.xlu1 %v4156_v63 }
 0xc57   :  { %v4151_v62 = vmul.f32 %v4149_v60, %v6374_v11 }
 0xc59   :  { %v4153_v48 = vsub.f32 %v4143_v7, %v4151_v62 }
 0xc5b   :  { %v4155_v24 = vmul.f32 %v4153_v48, %v4153_v48 }
 0xc5d   :  { %v4159_v26 = vsel %vm47_vm0, %v4155_v24, 0.0 }
 0xc5e   :  { %4160 = vadd.xlane.f32.xlu2 %v4159_v26 }
 0xcc9   :  { %v4158_v50 = vpop.xlane.xlu1 %4157 }
 0xcca   :  { %v4162_v58 = vmul.f32 %v4158_v50, %v6374_v11 }
 0xccc   :  { %v4164_v55 = vadd.f32 1e-05, %v4162_v58 }
 0xcce   :  { %5379 = vrsqrt.f32 %v4164_v55  ;;  %vm4172_vm1 = vweird.f32 %v4164_v55 }
 0xcd1   :  { %v4161_v32 = vpop.xlane.xlu2 %4160 }
 0xcd2   :  { %v4163_v2 = vmul.f32 %v4161_v32, %v6374_v11  ;;  %v4191_v11 = vperm.slane %v26_v46, 0 }
 0xcd4   :  { %v5380_v6 = vpop.eup %5379  ;;  %v4165_v39 = vadd.f32 1e-05, %v4163_v2 }
 0xcd5   :  { %v4167_v36 = vmul.f32 %v5380_v6, %v4164_v55  ;;  %vm4173_vm15 = vweird.f32 %v5380_v6 }
 0xcd6   :  { %5381 = vrsqrt.f32 %v4165_v39  ;;  %vm4174_vm2 = vmor %vm4172_vm1, %vm4173_vm15  ;;  %vm4182_vm4 = vweird.f32 %v4165_v39 }
 0xcd7   :  { %v4168_v21 = vmul.f32 %v5380_v6, %v4167_v36 }
 0xcd9   :  { %v4169_v43 = vmul.f32 0.5, %v4168_v21 }
 0xcdb   :  { %v4170_v61 = vsub.f32 1.5, %v4169_v43 }
 0xcdc   :  { %v5382_v17 = vpop.eup %5381 }
 0xcdd   :  { %v4171_v10 = vmul.f32 %v5380_v6, %v4170_v61  ;;  %v4177_v47 = vmul.f32 %v5382_v17, %v4165_v39  ;;  %vm4183_vm3 = vweird.f32 %v5382_v17 }
 0xcde   :  { %vm4184_vm5 = vmor %vm4182_vm4, %vm4183_vm3 }
 0xcdf   :  { %v4175_v0 = vsel %vm4174_vm2, %v5380_v6, %v4171_v10  ;;  %v4178_v25 = vmul.f32 %v5382_v17, %v4177_v47 }
 0xce0   :  { %v4186_v52 = vmul.f32 %v4175_v0, %v4152_v57 }
 0xce1   :  { %v4179_v4 = vmul.f32 0.5, %v4178_v25 }
 0xce2   :  { %v4189_v30 = vmul.f32 %v4188_v9, %v4186_v52 }
 0xce3   :  { %v4180_v59 = vsub.f32 1.5, %v4179_v4 }
 0xce4   :  { %v4192_v49 = vadd.f32 %v4191_v11, %v4189_v30 }
 0xce5   :  { %v4181_v13 = vmul.f32 %v5382_v17, %v4180_v59 }
 0xce6   :  { %v4195_v44 = vmul.f32 %v4194_v41, %v4192_v49 }
 0xce7   :  { %v4185_v8 = vsel %vm4184_vm5, %v5382_v17, %v4181_v13 }
 0xce8   :  { %v4197_v15 = vsel %vm47_vm0, %v4195_v44, 0.0  ;;  %v4187_v5 = vmul.f32 %v4185_v8, %v4153_v48 }
 0xce9   :  { %4198 = vadd.xlane.f32.xlu0 %v4197_v15 }
 0xcea   :  { %v4190_v28 = vmul.f32 %v4188_v9, %v4187_v5 }
 0xcec   :  { %v4193_v53 = vadd.f32 %v4191_v11, %v4190_v28 }
 0xcee   :  { %v4196_v40 = vmul.f32 %v4194_v41, %v4193_v53 }
 0xcf0   :  { %v4200_v27 = vsel %vm47_vm0, %v4196_v40, 0.0 }
 0xcf1   :  { %4201 = vadd.xlane.f32.xlu1 %v4200_v27 }
 0xd5c   :  { %v4199_v38 = vpop.xlane.xlu0 %4198 }
 0xd5d   :  { %v4208_v42 = vadd.f32 %v4206_v14, %v4199_v38 }
 0xd5f   :  { %v4214_v18 = vperm.slane %v4208_v42, %v4213_v54 }
 0xd64   :  { %v4202_v31 = vpop.xlane.xlu1 %4201 }
 0xd65   :  { %v4209_v16 = vadd.f32 %v4206_v14, %v4202_v31 }
 0xd67   :  { %v4215_v19 = vperm.slane %v4209_v16, %v4213_v54 }
 0xd69   :  { %v4217_v29 = vsel %vm4216_vm6, %v4215_v19, %v4214_v18 }
 0xd6a   :  { %4220 = vst.msk [vmem:[#allocation2] sm:$0x3] %vm4219_vm7, %v4217_v29 }
 0xd6b   :  { %4231 = dma.vmem_to_hbm [thread:$0]  %s4227_s19, 32, %s4229_s22, [#allocation3]  }
 0xd6c   :  { %5411 = dma.done.wait [#allocation3], 32  }
 0xd6d   :  { %5412 = vsyncadd [#allocation3], 4294967264 }
 0xd6e   :  { %4236 = vsyncpa [#allocation3], 1 }

// kernel: tpu_custom_call.1
= control target key start
LH: loop header
LB: loop body
LE: loop exit
PB: predicated region body
PF: predicated region fallthrough
CT: control target
= control target key end

     0   :  { %s7066_s0 = inlined_call_operand.vmem [shape: f32[2,8,32], index: 0, kind: input, shape index: {}]   ;;  %s7067_s1 = inlined_call_operand.vmem [shape: bf16[4,32,32], index: 1, kind: input, shape index: {}]   ;;  %s7068_s2 = inlined_call_operand.vmem [shape: bf16[32,2048], index: 2, kind: input, shape index: {}]   ;;  %s7069_s3 = inlined_call_operand.vmem [shape: bf16[2048,32], index: 3, kind: input, shape index: {}]   ;;  %s7070_s4 = inlined_call_operand.vmem [shape: f32[11,32], index: 4, kind: input, shape index: {}]   ;;  %s7071_s5 = inlined_call_operand.vmem [shape: f32[1,2048], index: 5, kind: input, shape index: {}]   ;;  %s7072_s6 = inlined_call_operand.hbm [shape: f32[2,8], index: 6, kind: output, shape index: {}]  }
   0x1   :  { %v5006_v0 = vld [vmem:[%s7067_s1 + $0x8] sm:$0xff]  ;;  %v5008_v1 = vld [vmem:[%s7067_s1 + $0x18] sm:$0xff]  ;;  %v5005_v2 = vld [vmem:[%s7067_s1] sm:$0xff] }
   0x2   :  { %v5007_v3 = vld [vmem:[%s7067_s1 + $0x10] sm:$0xff]  ;;  %57 = vmatpush.bf16.msra.mxu0 %v5006_v0  ;;  %89 = vmatpush.bf16.msra.mxu1 %v5008_v1  ;;  %v27_v4 = vld [vmem:[%s7066_s0] sm:$0xff]  ;;  %v28_v5 = vld [vmem:[%s7066_s0 + $0x8] sm:$0xff] }
   0x3   :  { %11 = vsyncpa [#allocation3], 0  ;;  %v29_v6 = vpack.c.bf16 %v28_v5, %v27_v4  ;;  %vm47_vm0 = vcmask 261120   ;;  %v5010_v7 = vld [vmem:[%s7067_s1 + $0x28] sm:$0xff]  ;;  %v5009_v8 = vld [vmem:[%s7067_s1 + $0x20] sm:$0xff]  ;;  %vm132_vm1 = vcmask 1047556  }
   0x4   :  { %121 = vmatpush.bf16.msra.mxu2 %v5010_v7  ;;  %v5488_v9 = vld [vmem:[%s7070_s4] sm:$0xff]  ;;  %v5413_v13 = vmov 1983009808   ;;  %v5414_v22 = vmov 1934713408   ;;  %vm312_vm2 = vcmask 64512  }
   0x5   :  { %v34_v10 = vperm.slane %v5488_v9, 0  ;;  %v70_v11 = vperm.slane %v5488_v9, 1  ;;  %v135_v14 = vunpack.c.l.s4 %v5413_v13  ;;  %v157_v23 = vunpack.c.l.s4 %v5414_v22  ;;  %s5415_s15 = smov 120   ;;  %s5416_s16 = smov 112  }
   0x6   :  { %58 = vmatpush.bf16.msra.mxu0 %v5005_v2  ;;  %90 = vmatpush.bf16.msra.mxu1 %v5007_v3  ;;  %vm566_vm3 = vcmask 1040384   ;;  %vm465_vm4 = vcmask 9216   ;;  %vm562_vm5 = vcmask 15360   ;;  %s5417_s17 = smov 104   ;;  %s5418_s18 = smov 8   ;;  %vm2236_vm6 = vcmask 130048  }
   0x7   :  { %v5492_v20 = vunpack.c.0.s8 %v135_v14  ;;  %v5498_v32 = vunpack.c.0.s8 %v157_v23  ;;  %s5419_s19 = smov 16   ;;  %s5420_s20 = smov 24   ;;  %vm2245_vm7 = vcmask 195584  }
   0x8   :  { %122 = vmatpush.bf16.msra.mxu2 %v5009_v8  ;;  %s4228_s22 = sshll.u32 %s7072_s6, 4  ;;  %s4229_s22 = int_to_ptr.hbm [resolvable:$true] %s4228_s22 }
   0x9   :  { %4245 = vmatmul.msk.bf16.vlgmr.msra.gmra.mxu0 %vm47_vm0, %v29_v6  ;;  %4258 = vmatmul.msk.bf16.vlgmr.msra.gmra.mxu1 %vm47_vm0, %v29_v6 }
   0xb   :  { %4271 = vmatmul.msk.bf16.vlgmr.msra.gmra.mxu2 %vm47_vm0, %v29_v6 }
  0x86   :  { %v60_v12 = vpop.f32.mrf.mxu0  ;;  %v92_v15 = vpop.f32.mrf.mxu1 }
  0x87   :  { %v61_v16 = vadd.f32 %v60_v12, %v34_v10  ;;  %v93_v17 = vadd.f32 %v92_v15, %v70_v11 }
  0x89   :  { %v192_v18 = vrot.slane %v93_v17, 4  ;;  %v129_v19 = vmul.f32 0.35355338, %v61_v16  ;;  %v197_v25 = vperm.slane %v93_v17, %v5492_v20 }
  0x8b   :  { %v193_v21 = vsel %vm132_vm1, 0.0, %v192_v18  ;;  %v137_v24 = vperm.slane %v129_v19, %v5492_v20  ;;  %v214_v36 = vrot.slane %v197_v25, 4  ;;  %v131_v37 = vrot.slane %v129_v19, 4 }
  0x8c   :  { %v201_v30 = vperm.slane %v193_v21, %v5492_v20 }
  0x8d   :  { %v154_v35 = vrot.slane %v137_v24, 4  ;;  %v133_v54 = vsel %vm132_vm1, 0.0, %v131_v37 }
  0x8e   :  { %v62_v26 = vpop.f32.mrf.mxu0  ;;  %v94_v27 = vpop.f32.mrf.mxu1  ;;  %v226_v41 = vrot.slane %v201_v30, 4  ;;  %v141_v2 = vperm.slane %v133_v54, %v5492_v20 }
  0x8f   :  { %v63_v28 = vadd.f32 %v62_v26, %v34_v10  ;;  %v95_v29 = vadd.f32 %v94_v27, %v70_v11 }
  0x91   :  { %v130_v31 = vmul.f32 0.35355338, %v63_v28  ;;  %v202_v33 = vrot.slane %v95_v29, 4  ;;  %v207_v34 = vperm.slane %v95_v29, %v5492_v20 }
  0x93   :  { %v147_v38 = vperm.slane %v130_v31, %v5492_v20  ;;  %v203_v39 = vsel %vm132_vm1, 0.0, %v202_v33  ;;  %v212_v40 = vrot.slane %v207_v34, 4  ;;  %v142_v42 = vrot.slane %v130_v31, 4 }
  0x94   :  { %v211_v43 = vperm.slane %v203_v39, %v5492_v20  ;;  %v215_v44 = vsel %vm132_vm1, %v207_v34, %v214_v36 }
  0x95   :  { %v223_v45 = vperm.slane %v215_v44, %v5498_v32  ;;  %v155_v46 = vsel %vm132_vm1, %v147_v38, %v154_v35  ;;  %v213_v48 = vsel %vm132_vm1, %v212_v40, %v197_v25  ;;  %v143_v55 = vsel %vm132_vm1, 0.0, %v142_v42 }
  0x96   :  { %v224_v47 = vrot.slane %v211_v43, 4  ;;  %v227_v49 = vsel %vm132_vm1, %v211_v43, %v226_v41  ;;  %v219_v51 = vperm.slane %v213_v48, %v5498_v32  ;;  %v152_v56 = vrot.slane %v147_v38, 4 }
  0x97   :  { %v5509_v50 = vpack.c.bf16 %v223_v45, %v223_v45  ;;  %v238_v52 = vrot.slane %v223_v45, 4  ;;  %v235_v53 = vperm.slane %v227_v49, %v5498_v32  ;;  %v163_v61 = vperm.slane %v155_v46, %v5498_v32 }
  0x98   :  { %v225_v57 = vsel %vm132_vm1, %v224_v47, %v201_v30  ;;  %v5518_v59 = vpack.c.bf16 %v219_v51, %v219_v51  ;;  %v236_v0 = vrot.slane %v219_v51, 4  ;;  %v151_v3 = vperm.slane %v143_v55, %v5492_v20  ;;  %v124_v47 = vpop.f32.mrf.mxu2 }
  0x99   :  { %v355_v58 = vsel %vm312_vm2, %v5509_v50, 0  ;;  %v239_v60 = vsel %vm132_vm1, 0.0, %v238_v52  ;;  %v5524_v63 = vpack.c.bf16 %v235_v53, %v235_v53  ;;  %v231_v1 = vperm.slane %v225_v57, %v5498_v32 }
  0x9a   :  { %364 = vmatpush.bf16.xpose.msrb.mxu1 %v355_v58  ;;  %v5522_v62 = vpack.c.bf16 %v239_v60, %v239_v60  ;;  %v317_v4 = vsel %vm312_vm2, %v5518_v59, 0  ;;  %v242_v5 = vrot.slane %v235_v53, 4  ;;  %v237_v8 = vsel %vm132_vm1, 0.0, %v236_v0 }
  0x9b   :  { %326 = vmatpush.bf16.xpose.msra.mxu3 %v317_v4  ;;  %v431_v7 = vsel %vm312_vm2, %v5524_v63, 0  ;;  %v240_v10 = vrot.slane %v231_v1, 4  ;;  %v5536_v11 = vpack.c.bf16 %v237_v8, %v237_v8  ;;  %v5538_v12 = vpack.c.bf16 %v231_v1, %v231_v1 }
  0x9c   :  { %v374_v6 = vsel %vm312_vm2, %v5522_v62, 0  ;;  %v243_v13 = vsel %vm132_vm1, 0.0, %v242_v5  ;;  %v153_v14 = vsel %vm132_vm1, %v152_v56, %v137_v24  ;;  %v178_v18 = vrot.slane %v163_v61, 4 }
  0x9d   :  { %383 = vmatpush.bf16.xpose.msrb.mxu2 %v374_v6  ;;  %v5542_v15 = vpack.c.bf16 %v243_v13, %v243_v13  ;;  %v241_v16 = vsel %vm132_vm1, 0.0, %v240_v10  ;;  %v159_v17 = vperm.slane %v153_v14, %v5498_v32  ;;  %v336_v19 = vsel %vm312_vm2, %v5536_v11, 0 }
  0x9e   :  { %v393_v21 = vsel %vm312_vm2, %v5538_v12, 0  ;;  %v5550_v22 = vpack.c.bf16 %v163_v61, %v163_v61  ;;  %v5552_v23 = vpack.c.bf16 %v241_v16, %v241_v16  ;;  %v166_v25 = vrot.slane %v141_v2, 4  ;;  %345 = vmatpush.bf16.xpose.msrb.mxu0 %v336_v19 }
  0x9f   :  { %v450_v24 = vsel %vm312_vm2, %v5542_v15, 0  ;;  %v176_v26 = vrot.slane %v159_v17, 4  ;;  %v179_v27 = vsel %vm132_vm1, 0.0, %v178_v18  ;;  %v5561_v29 = vpack.c.bf16 %v159_v17, %v159_v17 }
  0xa0   :  { %v412_v28 = vsel %vm312_vm2, %v5552_v23, 0  ;;  %v5563_v30 = vpack.c.bf16 %v179_v27, %v179_v27  ;;  %v164_v33 = vrot.slane %v151_v3, 4  ;;  %v167_v34 = vsel %vm132_vm1, %v151_v3, %v166_v25  ;;  %v126_v51 = vpop.f32.mrf.mxu2 }
  0xa1   :  { %4274 = vmatmul.msk.bf16.vlgmr.msrb.gmra.mxu1 %vm312_vm2, %v5550_v22  ;;  %v177_v31 = vsel %vm132_vm1, 0.0, %v176_v26  ;;  %v175_v36 = vperm.slane %v167_v34, %v5498_v32  ;;  %v102_v48 = vperm.slane %v5488_v9, 2 }
  0xa2   :  { %440 = vmatpush.bf16.xpose.msra.mxu1 %v431_v7  ;;  %4272 = vmatmul.msk.bf16.vlgmr.msra.gmra.mxu3 %vm312_vm2, %v5561_v29  ;;  %v5571_v35 = vpack.c.bf16 %v177_v31, %v177_v31  ;;  %v165_v37 = vsel %vm132_vm1, %v164_v33, %v141_v2 }
  0xa3   :  { %402 = vmatpush.bf16.xpose.msrb.mxu3 %v393_v21  ;;  %v171_v38 = vperm.slane %v165_v37, %v5498_v32  ;;  %v182_v39 = vrot.slane %v175_v36, 4  ;;  %v5578_v41 = vpack.c.bf16 %v175_v36, %v175_v36  ;;  %v125_v49 = vadd.f32 %v124_v47, %v102_v48 }
  0xa4   :  { %4275 = vmatmul.msk.bf16.vlgmr.msrb.gmra.mxu2 %vm312_vm2, %v5563_v30  ;;  %v127_v52 = vadd.f32 %v126_v51, %v102_v48 }
  0xa5   :  { %459 = vmatpush.bf16.xpose.msra.mxu2 %v450_v24  ;;  %4273 = vmatmul.msk.bf16.vlgmr.msrb.gmra.mxu0 %vm312_vm2, %v5571_v35  ;;  %v180_v40 = vrot.slane %v171_v38, 4  ;;  %v183_v42 = vsel %vm132_vm1, 0.0, %v182_v39  ;;  %v5583_v43 = vpack.c.bf16 %v171_v38, %v171_v38  ;;  %v257_v53 = vperm.slane %v125_v49, %v5492_v20 }
  0xa6   :  { %421 = vmatpush.bf16.xpose.msra.mxu0 %v412_v28  ;;  %v5585_v44 = vpack.c.bf16 %v183_v42, %v183_v42  ;;  %v252_v54 = vrot.slane %v125_v49, 4  ;;  %v262_v55 = vrot.slane %v127_v52, 4  ;;  %v267_v56 = vperm.slane %v127_v52, %v5492_v20 }
  0xa7   :  { %v181_v45 = vsel %vm132_vm1, 0.0, %v180_v40  ;;  %v274_v57 = vrot.slane %v257_v53, 4 }
  0xa8   :  { %v5592_v46 = vpack.c.bf16 %v181_v45, %v181_v45  ;;  %v263_v58 = vsel %vm132_vm1, 0.0, %v262_v55  ;;  %v253_v60 = vsel %vm132_vm1, 0.0, %v252_v54  ;;  %v272_v0 = vrot.slane %v267_v56, 4 }
  0xa9   :  { %v271_v61 = vperm.slane %v263_v58, %v5492_v20  ;;  %v261_v1 = vperm.slane %v253_v60, %v5492_v20  ;;  %v275_v9 = vsel %vm132_vm1, %v267_v56, %v274_v57 }
  0xaa   :  { %v273_v3 = vsel %vm132_vm1, %v272_v0, %v257_v53  ;;  %v283_v4 = vperm.slane %v275_v9, %v5498_v32 }
  0xab   :  { %v284_v2 = vrot.slane %v271_v61, 4  ;;  %v286_v5 = vrot.slane %v261_v1, 4  ;;  %v279_v6 = vperm.slane %v273_v3, %v5498_v32 }
  0xac   :  { %v5607_v7 = vpack.c.bf16 %v283_v4, %v283_v4  ;;  %v298_v14 = vrot.slane %v283_v4, 4 }
  0xad   :  { %v5609_v8 = vpack.c.bf16 %v279_v6, %v279_v6  ;;  %v296_v13 = vrot.slane %v279_v6, 4  ;;  %v285_v16 = vsel %vm132_vm1, %v284_v2, %v261_v1  ;;  %v287_v19 = vsel %vm132_vm1, %v271_v61, %v286_v5 }
  0xae   :  { %v606_v10 = vsel %vm566_vm3, %v5607_v7, 0  ;;  %v291_v18 = vperm.slane %v285_v16, %v5498_v32  ;;  %v299_v25 = vsel %vm132_vm1, 0.0, %v298_v14  ;;  %v295_v24 = vperm.slane %v287_v19, %v5498_v32 }
  0xaf   :  { %v568_v17 = vsel %vm566_vm3, %v5609_v8, 0  ;;  %615 = vmatpush.bf16.msrb.mxu1 %v606_v10  ;;  %v297_v21 = vsel %vm132_vm1, 0.0, %v296_v13  ;;  %v5623_v27 = vpack.c.bf16 %v299_v25, %v299_v25  ;;  %v809_v13 = vunpack.c.l.b16 %v5522_v62 }
  0xb0   :  { %577 = vmatpush.bf16.msra.mxu3 %v568_v17  ;;  %v5621_v26 = vpack.c.bf16 %v297_v21, %v297_v21  ;;  %v5625_v28 = vpack.c.bf16 %v291_v18, %v291_v18  ;;  %v300_v31 = vrot.slane %v291_v18, 4  ;;  %v5627_v33 = vpack.c.bf16 %v295_v24, %v295_v24 }
  0xb1   :  { %4278 = vmatmul.msk.bf16.vlgmr.msra.gmra.mxu1 %vm312_vm2, %v5578_v41  ;;  %v302_v34 = vrot.slane %v295_v24, 4  ;;  %v625_v37 = vsel %vm566_vm3, %v5623_v27, 0  ;;  %v5661_v17 = vpack.c.b16 %v809_v13, %v809_v13  ;;  %v722_v21 = vunpack.c.l.b16 %v5518_v59 }
  0xb2   :  { %4276 = vmatmul.msk.bf16.vlgmr.msrb.gmra.mxu3 %vm312_vm2, %v5583_v43  ;;  %v587_v36 = vsel %vm566_vm3, %v5621_v26, 0  ;;  %v644_v38 = vsel %vm566_vm3, %v5625_v28, 0  ;;  %v301_v39 = vsel %vm132_vm1, 0.0, %v300_v31  ;;  %634 = vmatpush.bf16.msrb.mxu2 %v625_v37  ;;  %v682_v40 = vsel %vm566_vm3, %v5627_v33, 0 }
  0xb3   :  { %596 = vmatpush.bf16.msrb.mxu0 %v587_v36  ;;  %v5638_v42 = vpack.c.bf16 %v301_v39, %v301_v39  ;;  %v303_v45 = vsel %vm132_vm1, 0.0, %v302_v34  ;;  %691 = vmatpush.bf16.msra.mxu1 %v682_v40  ;;  %v5670_v62 = vpack.c.b16 %v722_v21, %v722_v21 }
  0xb4   :  { %4279 = vmatmul.msk.bf16.vlgmr.msra.gmra.mxu2 %vm312_vm2, %v5585_v44  ;;  %653 = vmatpush.bf16.msrb.mxu3 %v644_v38  ;;  %v5641_v47 = vpack.c.bf16 %v303_v45, %v303_v45 }
  0xb5   :  { %4277 = vmatmul.msk.bf16.vlgmr.msra.gmra.mxu0 %vm312_vm2, %v5592_v46  ;;  %v663_v48 = vsel %vm566_vm3, %v5638_v42, 0 }
  0xb6   :  { %v701_v49 = vsel %vm566_vm3, %v5641_v47, 0 }
  0xb7   :  { %672 = vmatpush.bf16.msra.mxu0 %v663_v48  ;;  %710 = vmatpush.bf16.msra.mxu2 %v701_v49 }
 0x11e   :  { %v366_v51 = vpop.f32.mrf.mxu1 }
 0x11f   :  { %v472_v52 = vsel %vm465_vm4, %v366_v51, -inf }
 0x120   :  { %473 = vmax.xlane.f32.xlu2 %v472_v52 }
 0x122   :  { %v347_v53 = vpop.f32.mrf.mxu0 }
 0x123   :  { %v469_v58 = vsel %vm465_vm4, %v347_v53, -inf }
 0x125   :  { %v328_v54 = vpop.f32.mrf.mxu3 }
 0x126   :  { %v368_v55 = vpop.f32.mrf.mxu1  ;;  %v466_v57 = vsel %vm465_vm4, %v328_v54, -inf }
 0x127   :  { %v385_v56 = vpop.f32.mrf.mxu2  ;;  %467 = vmax.xlane.f32.xlu0 %v466_v57 }
 0x128   :  { %470 = vmax.xlane.f32.xlu2 %v469_v58  ;;  %v475_v9 = vsel %vm465_vm4, %v385_v56, -inf }
 0x12a   :  { %v349_v60 = vpop.f32.mrf.mxu0 }
 0x12d   :  { %v330_v61 = vpop.f32.mrf.mxu3 }
 0x12e   :  { %v5650_v0 = vpop.f32.mrf.mxu1 }
 0x12f   :  { %v387_v1 = vpop.f32.mrf.mxu2  ;;  %476 = vmax.xlane.f32.xlu0 %v475_v9  ;;  %v484_v25 = vsel %vm465_vm4, %v5650_v0, -inf }
 0x132   :  { %v5653_v2 = vpop.f32.mrf.mxu0 }
 0x133   :  { %v481_v10 = vsel %vm465_vm4, %v5653_v2, -inf }
 0x135   :  { %v404_v3 = vpop.f32.mrf.mxu3 }
 0x136   :  { %v444_v4 = vpop.f32.mrf.mxu1  ;;  %v478_v6 = vsel %vm465_vm4, %v404_v3, -inf }
 0x137   :  { %v5655_v5 = vpop.f32.mrf.mxu2  ;;  %479 = vmax.xlane.f32.xlu1 %v478_v6  ;;  %482 = vmax.xlane.f32.xlu0 %v481_v10 }
 0x138   :  { %v487_v19 = vsel %vm465_vm4, %v5655_v5, -inf }
 0x13a   :  { %v425_v14 = vpop.f32.mrf.mxu0 }
 0x13d   :  { %v406_v16 = vpop.f32.mrf.mxu3 }
 0x13f   :  { %v463_v18 = vpop.f32.mrf.mxu2  ;;  %488 = vmax.xlane.f32.xlu1 %v487_v19 }
 0x140   :  { %811 = vrot.lane.b32.xlu2 %v5661_v17, %s5415_s15  ;;  %v925_v18 = vunpack.c.l.b16 %v5542_v15  ;;  %v717_v15 = vunpack.c.l.b16 %v5561_v29  ;;  %v838_v29 = vunpack.c.l.b16 %v5538_v12  ;;  %v751_v12 = vunpack.c.l.b16 %v5536_v11 }
 0x142   :  { %v5697_v21 = vpack.c.b16 %v925_v18, %v925_v18 }
 0x147   :  { %485 = vmax.xlane.f32.xlu1 %v484_v25 }
 0x14b   :  { %724 = vrot.lane.b32.xlu0 %v5670_v62, %s5415_s15 }
 0x193   :  { %v474_v24 = vpop.xlane.xlu2 %473 }
 0x194   :  { %v492_v31 = vsub.f32 %v366_v51, %v474_v24 }
 0x196   :  { %v502_v34 = vmul.f32 1.442695, %v492_v31 }
 0x198   :  { %5245 = vpow2.f32 %v502_v34 }
 0x19a   :  { %v468_v36 = vpop.xlane.xlu0 %467 }
 0x19b   :  { %v471_v37 = vpop.xlane.xlu2 %470  ;;  %v490_v59 = vsub.f32 %v328_v54, %v468_v36 }
 0x19c   :  { %v491_v38 = vsub.f32 %v347_v53, %v471_v37  ;;  %v5714_v37 = vpack.c.b16 %v717_v15, %v717_v15 }
 0x19d   :  { %v498_v48 = vmul.f32 1.442695, %v490_v59  ;;  %v5728_v59 = vpack.c.b16 %v838_v29, %v838_v29 }
 0x19e   :  { %v5674_v39 = vpop.eup %5245  ;;  %v500_v40 = vmul.f32 1.442695, %v491_v38  ;;  %v780_v38 = vunpack.c.l.b16 %v5509_v50  ;;  %v775_v50 = vunpack.c.l.b16 %v5550_v22  ;;  %v833_v22 = vunpack.c.l.b16 %v5583_v43 }
 0x19f   :  { %v520_v45 = vsel %vm465_vm4, %v5674_v39, 0.0 }
 0x1a0   :  { %521 = vadd.xlane.f32.xlu1 %v520_v45  ;;  %5247 = vpow2.f32 %v500_v40  ;;  %v5750_v11 = vpack.c.b16 %v833_v22, %v833_v22 }
 0x1a1   :  { %5249 = vpow2.f32 %v498_v48  ;;  %v5736_v48 = vpack.c.b16 %v775_v50, %v775_v50 }
 0x1a2   :  { %v477_v49 = vpop.xlane.xlu0 %476 }
 0x1a3   :  { %v493_v52 = vsub.f32 %v385_v56, %v477_v49  ;;  %v5740_v49 = vpack.c.b16 %v751_v12, %v751_v12 }
 0x1a5   :  { %v504_v55 = vmul.f32 1.442695, %v493_v52  ;;  %v862_v52 = vunpack.c.l.b16 %v5592_v46 }
 0x1a6   :  { %v5678_v57 = vpop.eup %5247 }
 0x1a7   :  { %5251 = vpow2.f32 %v504_v55  ;;  %v517_v51 = vsel %vm465_vm4, %v5678_v57, 0.0  ;;  %v5682_v54 = vpop.eup %5249  ;;  %v5746_v55 = vpack.c.b16 %v862_v52, %v862_v52 }
 0x1a8   :  { %518 = vadd.xlane.f32.xlu0 %v517_v51  ;;  %v514_v56 = vsel %vm465_vm4, %v5682_v54, 0.0  ;;  %v1117_v51 = vunpack.c.l.b16 %v5623_v27  ;;  %v891_v27 = vunpack.c.l.b16 %v5578_v41  ;;  %v896_v41 = vunpack.c.l.b16 %v5524_v63 }
 0x1a9   :  { %v1069_v63 = vunpack.c.l.b16 %v5621_v26  ;;  %v1141_v26 = vunpack.c.l.b16 %v5625_v28 }
 0x1aa   :  { %v480_v53 = vpop.xlane.xlu1 %479  ;;  %v483_v6 = vpop.xlane.xlu0 %482  ;;  %v5756_v46 = vpack.c.b16 %v1117_v51, %v1117_v51 }
 0x1ab   :  { %v494_v58 = vsub.f32 %v404_v3, %v480_v53  ;;  %v495_v14 = vsub.f32 %v5653_v2, %v483_v6  ;;  %v920_v2 = vunpack.c.l.b16 %v5585_v44  ;;  %v5722_v44 = vpack.c.b16 %v780_v38, %v780_v38 }
 0x1ac   :  { %v867_v53 = vunpack.c.l.b16 %v5552_v23  ;;  %v746_v23 = vunpack.c.l.b16 %v5571_v35  ;;  %v1213_v6 = vunpack.c.l.b16 %v5641_v47  ;;  %v5814_v18 = vpack.c.b16 %v1141_v26, %v1141_v26 }
 0x1ad   :  { %v5684_v60 = vpop.eup %5251  ;;  %v506_v61 = vmul.f32 1.442695, %v494_v58  ;;  %v508_v19 = vmul.f32 1.442695, %v495_v14  ;;  %v5708_v34 = vpack.c.b16 %v920_v2, %v920_v2  ;;  %v804_v58 = vunpack.c.l.b16 %v5563_v30 }
 0x1ae   :  { %v523_v1 = vsel %vm465_vm4, %v5684_v60, 0.0  ;;  %v5761_v43 = vpack.c.b16 %v867_v53, %v867_v53  ;;  %v5773_v30 = vpack.c.b16 %v891_v27, %v891_v27 }
 0x1af   :  { %5253 = vpow2.f32 %v506_v61  ;;  %524 = vadd.xlane.f32.xlu2 %v523_v1  ;;  %v5763_v61 = vpack.c.b16 %v804_v58, %v804_v58  ;;  %v5775_v1 = vpack.c.b16 %v746_v23, %v746_v23 }
 0x1b0   :  { %515 = vadd.xlane.f32.xlu0 %v514_v56  ;;  %v1045_v56 = vunpack.c.l.b16 %v5609_v8 }
 0x1b2   :  { %v489_v9 = vpop.xlane.xlu1 %488  ;;  %v5785_v35 = vpack.c.b16 %v1045_v56, %v1045_v56 }
 0x1b3   :  { %v497_v24 = vsub.f32 %v5655_v5, %v489_v9  ;;  %v5787_v9 = vpack.c.b16 %v896_v41, %v896_v41 }
 0x1b5   :  { %v5690_v4 = vpop.eup %5253  ;;  %v512_v31 = vmul.f32 1.442695, %v497_v24  ;;  %v1189_v24 = vunpack.c.l.b16 %v5627_v33 }
 0x1b6   :  { %v526_v3 = vsel %vm465_vm4, %v5690_v4, 0.0 }
 0x1b7   :  { %527 = vadd.xlane.f32.xlu2 %v526_v3  ;;  %v1165_v3 = vunpack.c.l.b16 %v5638_v42  ;;  %v1093_v42 = vunpack.c.l.b16 %v5607_v7  ;;  %v5820_v15 = vpack.c.b16 %v1189_v24, %v1189_v24 }
 0x1b9   :  { %v5795_v8 = vpack.c.b16 %v1165_v3, %v1165_v3  ;;  %v5809_v47 = vpack.c.b16 %v1093_v42, %v1093_v42 }
 0x1ba   :  { %v486_v10 = vpop.xlane.xlu1 %485 }
 0x1bb   :  { %v496_v13 = vsub.f32 %v5650_v0, %v486_v10  ;;  %v5800_v10 = vpack.c.b16 %v1213_v6, %v1213_v6 }
 0x1bd   :  { %v510_v16 = vmul.f32 1.442695, %v496_v13  ;;  %v5802_v13 = vpack.c.b16 %v1069_v63, %v1069_v63 }
 0x1bf   :  { %5255 = vpow2.f32 %v510_v16  ;;  %v725_v16 = vpop.permute.xlu0 %724 }
 0x1c0   :  { %5257 = vpow2.f32 %v508_v19 }
 0x1c1   :  { %5259 = vpow2.f32 %v512_v31 }
 0x1c4   :  { %927 = vrot.lane.b32.xlu0 %v5697_v21, %s5415_s15 }
 0x1c5   :  { %v5701_v25 = vpop.eup %5255 }
 0x1c6   :  { %v532_v0 = vsel %vm465_vm4, %v5701_v25, 0.0  ;;  %v5710_v36 = vpop.eup %5257 }
 0x1c7   :  { %533 = vadd.xlane.f32.xlu1 %v532_v0  ;;  %v529_v5 = vsel %vm465_vm4, %v5710_v36, 0.0  ;;  %v5724_v40 = vpop.eup %5259  ;;  %v812_v0 = vpop.permute.xlu2 %811 }
 0x1c8   :  { %v535_v45 = vsel %vm465_vm4, %v5724_v40, 0.0  ;;  %v817_v53 = vsel %vm312_vm2, %v812_v0, 0 }
 0x1cc   :  { %922 = vrot.lane.b32.xlu0 %v5708_v34, %s5415_s15 }
 0x1cf   :  { %719 = vrot.lane.b32.xlu2 %v5714_v37, %s5415_s15  ;;  %530 = vadd.xlane.f32.xlu1 %v529_v5 }
 0x1d4   :  { %782 = vrot.lane.b32.xlu0 %v5722_v44, %s5415_s15 }
 0x1d7   :  { %840 = vrot.lane.b32.xlu2 %v5728_v59, %s5415_s15  ;;  %536 = vadd.xlane.f32.xlu1 %v535_v45 }
 0x1dc   :  { %777 = vrot.lane.b32.xlu0 %v5736_v48, %s5415_s15 }
 0x1df   :  { %753 = vrot.lane.b32.xlu2 %v5740_v49, %s5415_s15 }
 0x1e4   :  { %864 = vrot.lane.b32.xlu0 %v5746_v55, %s5415_s15 }
 0x1e7   :  { %835 = vrot.lane.b32.xlu2 %v5750_v11, %s5415_s15 }
 0x1ec   :  { %1119 = vrot.lane.b32.xlu0 %v5756_v46, %s5415_s15 }
 0x1ef   :  { %869 = vrot.lane.b32.xlu2 %v5761_v43, %s5415_s15 }
 0x1f0   :  { %806 = vrot.lane.b32.xlu1 %v5763_v61, %s5415_s15 }
 0x1f4   :  { %1307 = vrot.lane.b32.xlu0 %v5661_v17, %s5416_s16 }
 0x1f7   :  { %893 = vrot.lane.b32.xlu2 %v5773_v30, %s5415_s15 }
 0x1f8   :  { %748 = vrot.lane.b32.xlu1 %v5775_v1, %s5415_s15 }
 0x1fc   :  { %1238 = vrot.lane.b32.xlu0 %v5670_v62, %s5416_s16 }
 0x1ff   :  { %1047 = vrot.lane.b32.xlu2 %v5785_v35, %s5415_s15 }
 0x200   :  { %898 = vrot.lane.b32.xlu1 %v5787_v9, %s5415_s15 }
 0x204   :  { %1167 = vrot.lane.b32.xlu0 %v5795_v8, %s5415_s15 }
 0x207   :  { %1215 = vrot.lane.b32.xlu2 %v5800_v10, %s5415_s15 }
 0x208   :  { %1071 = vrot.lane.b32.xlu1 %v5802_v13, %s5415_s15 }
 0x20f   :  { %1095 = vrot.lane.b32.xlu2 %v5809_v47, %s5415_s15 }
 0x213   :  { %v522_v14 = vpop.xlane.xlu1 %521 }
 0x214   :  { %5261 = vrcp.f32 %v522_v14 }
 0x217   :  { %1143 = vrot.lane.b32.xlu2 %v5814_v18, %s5415_s15 }
 0x21a   :  { %v5262_v19 = vpop.eup %5261 }
 0x21b   :  { %v548_v7 = vmul.f32 %v5262_v19, %v5674_v39  ;;  %v519_v2 = vpop.xlane.xlu0 %518 }
 0x21c   :  { %5263 = vrcp.f32 %v519_v2 }
 0x21d   :  { %v556_v31 = vpack.c.bf16 %v548_v7, %v548_v7 }
 0x21f   :  { %4282 = vmatmul.msk.bf16.vlgmr.msrb.gmra.mxu1 %vm562_vm5, %v556_v31  ;;  %1191 = vrot.lane.b32.xlu2 %v5820_v15, %s5415_s15 }
 0x222   :  { %v5264_v28 = vpop.eup %5263  ;;  %v525_v5 = vpop.xlane.xlu2 %524 }
 0x223   :  { %v547_v38 = vmul.f32 %v5264_v28, %v5678_v57  ;;  %5265 = vrcp.f32 %v525_v5  ;;  %v516_v33 = vpop.xlane.xlu0 %515  ;;  %v730_v57 = vsel %vm312_vm2, %v725_v16, 0 }
 0x224   :  { %5267 = vrcp.f32 %v516_v33 }
 0x225   :  { %v555_v29 = vpack.c.bf16 %v547_v38, %v547_v38 }
 0x227   :  { %4281 = vmatmul.msk.bf16.vlgmr.msrb.gmra.mxu0 %vm562_vm5, %v555_v29 }
 0x229   :  { %v5266_v39 = vpop.eup %5265 }
 0x22a   :  { %v5268_v45 = vpop.eup %5267  ;;  %v549_v50 = vmul.f32 %v5266_v39, %v5684_v60  ;;  %v528_v12 = vpop.xlane.xlu2 %527 }
 0x22b   :  { %v546_v52 = vmul.f32 %v5268_v45, %v5682_v54  ;;  %5269 = vrcp.f32 %v528_v12 }
 0x22c   :  { %v557_v22 = vpack.c.bf16 %v549_v50, %v549_v50 }
 0x22d   :  { %v554_v51 = vpack.c.bf16 %v546_v52, %v546_v52 }
 0x22e   :  { %4283 = vmatmul.msk.bf16.vlgmr.msrb.gmra.mxu2 %vm562_vm5, %v557_v22 }
 0x22f   :  { %4280 = vmatmul.msk.bf16.vlgmr.msra.gmra.mxu3 %vm562_vm5, %v554_v51  ;;  %826 = vmatpush.bf16.xpose.msrb.mxu2 %v817_v53 }
 0x230   :  { %739 = vmatpush.bf16.xpose.msra.mxu3 %v730_v57 }
 0x231   :  { %v5270_v27 = vpop.eup %5269 }
 0x232   :  { %v720_v58 = vpop.permute.xlu2 %719  ;;  %v550_v60 = vmul.f32 %v5270_v27, %v5690_v4 }
 0x234   :  { %v558_v41 = vpack.c.bf16 %v550_v60, %v550_v60 }
 0x236   :  { %v928_v23 = vpop.permute.xlu0 %927 }
 0x237   :  { %v933_v45 = vsel %vm312_vm2, %v928_v23, 0 }
 0x23a   :  { %v841_v56 = vpop.permute.xlu2 %840  ;;  %v534_v54 = vpop.xlane.xlu1 %533 }
 0x23b   :  { %5271 = vrcp.f32 %v534_v54  ;;  %v846_v6 = vsel %vm312_vm2, %v841_v56, 0 }
 0x23e   :  { %v923_v3 = vpop.permute.xlu0 %922 }
 0x23f   :  { %4284 = vmatmul.msk.bf16.vlgmr.msrb.gmra.mxu3 %vm562_vm5, %v558_v41 }
 0x240   :  { %855 = vmatpush.bf16.xpose.msrb.mxu3 %v846_v6 }
 0x241   :  { %v5272_v63 = vpop.eup %5271 }
 0x242   :  { %v552_v42 = vmul.f32 %v5272_v63, %v5701_v25  ;;  %v754_v26 = vpop.permute.xlu2 %753  ;;  %v531_v14 = vpop.xlane.xlu1 %530 }
 0x243   :  { %v759_v16 = vsel %vm312_vm2, %v754_v26, 0  ;;  %5273 = vrcp.f32 %v531_v14 }
 0x244   :  { %v560_v19 = vpack.c.bf16 %v552_v42, %v552_v42  ;;  %768 = vmatpush.bf16.xpose.msrb.mxu0 %v759_v16 }
 0x246   :  { %v783_v4 = vpop.permute.xlu0 %782  ;;  %4286 = vmatmul.msk.bf16.vlgmr.msra.gmra.mxu1 %vm562_vm5, %v560_v19 }
 0x247   :  { %v788_v24 = vsel %vm312_vm2, %v783_v4, 0 }
 0x248   :  { %797 = vmatpush.bf16.xpose.msrb.mxu1 %v788_v24 }
 0x249   :  { %v5274_v0 = vpop.eup %5273 }
 0x24a   :  { %v551_v7 = vmul.f32 %v5274_v0, %v5710_v36  ;;  %v836_v2 = vpop.permute.xlu2 %835  ;;  %v537_v31 = vpop.xlane.xlu1 %536 }
 0x24b   :  { %5275 = vrcp.f32 %v537_v31 }
 0x24c   :  { %v559_v25 = vpack.c.bf16 %v551_v7, %v551_v7 }
 0x24e   :  { %v778_v28 = vpop.permute.xlu0 %777  ;;  %4285 = vmatmul.msk.bf16.vlgmr.msra.gmra.mxu0 %vm562_vm5, %v559_v25 }
 0x24f   :  { %4288 = vmatmul.msk.bf16.vlgmr.msra.gmra.mxu3 %vm312_vm2, %v720_v58 }
 0x251   :  { %v5276_v5 = vpop.eup %5275 }
 0x252   :  { %v553_v38 = vmul.f32 %v5276_v5, %v5724_v40  ;;  %v870_v33 = vpop.permute.xlu2 %869 }
 0x253   :  { %v875_v29 = vsel %vm312_vm2, %v870_v33, 0 }
 0x254   :  { %v561_v39 = vpack.c.bf16 %v553_v38, %v553_v38  ;;  %884 = vmatpush.bf16.xpose.msra.mxu0 %v875_v29 }
 0x256   :  { %v865_v36 = vpop.permute.xlu0 %864  ;;  %4287 = vmatmul.msk.bf16.vlgmr.msra.gmra.mxu2 %vm562_vm5, %v561_v39  ;;  %4290 = vmatmul.msk.bf16.vlgmr.msrb.gmra.mxu1 %vm312_vm2, %v778_v28 }
 0x257   :  { %942 = vmatpush.bf16.xpose.msra.mxu2 %v933_v45 }
 0x25a   :  { %v894_v50 = vpop.permute.xlu2 %893 }
 0x25e   :  { %v1120_v12 = vpop.permute.xlu0 %1119 }
 0x25f   :  { %4292 = vmatmul.msk.bf16.vlgmr.msrb.gmra.mxu3 %vm312_vm2, %v836_v2  ;;  %v1125_v51 = vsel %vm566_vm3, %v1120_v12, 0 }
 0x262   :  { %v1048_v52 = vpop.permute.xlu2 %1047  ;;  %v807_v22 = vpop.permute.xlu1 %806 }
 0x263   :  { %v1053_v40 = vsel %vm566_vm3, %v1048_v52, 0 }
 0x264   :  { %1062 = vmatpush.bf16.msra.mxu3 %v1053_v40 }
 0x266   :  { %v5851_v53 = vpop.permute.xlu0 %1307  ;;  %4291 = vmatmul.msk.bf16.vlgmr.msrb.gmra.mxu2 %vm312_vm2, %v807_v22 }
 0x267   :  { %1134 = vmatpush.bf16.msrb.mxu2 %v1125_v51 }
 0x26a   :  { %v1216_v57 = vpop.permute.xlu2 %1215  ;;  %v749_v58 = vpop.permute.xlu1 %748 }
 0x26b   :  { %4289 = vmatmul.msk.bf16.vlgmr.msrb.gmra.mxu0 %vm312_vm2, %v749_v58  ;;  %v1221_v41 = vsel %vm566_vm3, %v1216_v57, 0 }
 0x26e   :  { %v5855_v27 = vpop.permute.xlu0 %1238 }
 0x272   :  { %v1096_v23 = vpop.permute.xlu2 %1095  ;;  %v899_v60 = vpop.permute.xlu1 %898 }
 0x273   :  { %v1101_v56 = vsel %vm566_vm3, %v1096_v23, 0  ;;  %v904_v54 = vsel %vm312_vm2, %v899_v60, 0 }
 0x274   :  { %913 = vmatpush.bf16.xpose.msra.mxu1 %v904_v54 }
 0x276   :  { %4295 = vmatmul.msk.bf16.vlgmr.msra.gmra.mxu2 %vm312_vm2, %v923_v3  ;;  %v1168_v6 = vpop.permute.xlu0 %1167 }
 0x277   :  { %1230 = vmatpush.bf16.msra.mxu2 %v1221_v41  ;;  %v1173_v16 = vsel %vm566_vm3, %v1168_v6, 0 }
 0x27a   :  { %v1144_v63 = vpop.permute.xlu2 %1143  ;;  %v1072_v42 = vpop.permute.xlu1 %1071 }
 0x27b   :  { %v1149_v26 = vsel %vm566_vm3, %v1144_v63, 0  ;;  %v1077_v14 = vsel %vm566_vm3, %v1072_v42, 0  ;;  %4293 = vmatmul.msk.bf16.vlgmr.msra.gmra.mxu0 %vm312_vm2, %v865_v36  ;;  %4294 = vmatmul.msk.bf16.vlgmr.msra.gmra.mxu1 %vm312_vm2, %v894_v50 }
 0x27c   :  { %1110 = vmatpush.bf16.msrb.mxu1 %v1101_v56  ;;  %1086 = vmatpush.bf16.msrb.mxu0 %v1077_v14 }
 0x27d   :  { %1158 = vmatpush.bf16.msrb.mxu3 %v1149_v26 }
 0x280   :  { %1182 = vmatpush.bf16.msra.mxu0 %v1173_v16 }
 0x282   :  { %v1192_v19 = vpop.permute.xlu2 %1191 }
 0x283   :  { %v1197_v3 = vsel %vm566_vm3, %v1192_v19, 0 }
 0x284   :  { %1206 = vmatpush.bf16.msra.mxu1 %v1197_v3 }
 0x29c   :  { %v5867_v4 = vpop.f32.mrf.mxu1 }
 0x2a4   :  { %v619_v24 = vpop.f32.mrf.mxu1  ;;  %v5869_v0 = vpop.f32.mrf.mxu0 }
 0x2ac   :  { %v600_v7 = vpop.f32.mrf.mxu0 }
 0x2b1   :  { %v5871_v2 = vpop.f32.mrf.mxu2 }
 0x2b2   :  { %v5873_v31 = vpop.f32.mrf.mxu3 }
 0x2b9   :  { %v638_v25 = vpop.f32.mrf.mxu2 }
 0x2ba   :  { %v581_v28 = vpop.f32.mrf.mxu3 }
 0x2c2   :  { %v5875_v5 = vpop.f32.mrf.mxu3 }
 0x2c3   :  { %v5877_v38 = vpop.f32.mrf.mxu1 }
 0x2ca   :  { %v657_v33 = vpop.f32.mrf.mxu3 }
 0x2cb   :  { %v5879_v29 = vpop.f32.mrf.mxu0  ;;  %v695_v39 = vpop.f32.mrf.mxu1 }
 0x2d2   :  { %v741_v45 = vpop.f32.mrf.mxu3 }
 0x2d3   :  { %v676_v36 = vpop.f32.mrf.mxu0  ;;  %v799_v50 = vpop.f32.mrf.mxu1  ;;  %v948_v51 = vsel %vm465_vm4, %v741_v45, -inf }
 0x2d4   :  { %v954_v12 = vsel %vm465_vm4, %v799_v50, -inf }
 0x2d5   :  { %955 = vmax.xlane.f32.xlu0 %v954_v12 }
 0x2d9   :  { %v5882_v52 = vpop.f32.mrf.mxu2 }
 0x2da   :  { %v743_v22 = vpop.f32.mrf.mxu3 }
 0x2db   :  { %v801_v40 = vpop.f32.mrf.mxu1 }
 0x2dd   :  { %949 = vmax.xlane.f32.xlu0 %v948_v51 }
 0x2e1   :  { %v714_v57 = vpop.f32.mrf.mxu2 }
 0x2e2   :  { %v5885_v58 = vpop.f32.mrf.mxu3 }
 0x2e3   :  { %v960_v23 = vsel %vm465_vm4, %v5885_v58, -inf }
 0x2e4   :  { %961 = vmax.xlane.f32.xlu2 %v960_v23 }
 0x2e8   :  { %v770_v60 = vpop.f32.mrf.mxu0 }
 0x2e9   :  { %v828_v56 = vpop.f32.mrf.mxu2  ;;  %v951_v54 = vsel %vm465_vm4, %v770_v60, -inf }
 0x2ea   :  { %v859_v41 = vpop.f32.mrf.mxu3  ;;  %952 = vmax.xlane.f32.xlu1 %v951_v54  ;;  %v957_v42 = vsel %vm465_vm4, %v828_v56, -inf }
 0x2f0   :  { %v772_v6 = vpop.f32.mrf.mxu0 }
 0x2f1   :  { %v830_v63 = vpop.f32.mrf.mxu2  ;;  %1236 = vrot.lane.b32.xlu0 %v5714_v37, %s5416_s16 }
 0x2f2   :  { %958 = vmax.xlane.f32.xlu1 %v957_v42 }
 0x2f8   :  { %v5893_v26 = vpop.f32.mrf.mxu0  ;;  %v915_v14 = vpop.f32.mrf.mxu1 }
 0x2f9   :  { %v5895_v16 = vpop.f32.mrf.mxu2  ;;  %1399 = vrot.lane.b32.xlu0 %v5697_v21, %s5416_s16  ;;  %v966_v25 = vsel %vm465_vm4, %v915_v14, -inf  ;;  %v963_v28 = vsel %vm465_vm4, %v5893_v26, -inf }
 0x2fa   :  { %v969_v19 = vsel %vm465_vm4, %v5895_v16, -inf }
 0x2fb   :  { %970 = vmax.xlane.f32.xlu2 %v969_v19 }
 0x300   :  { %v888_v3 = vpop.f32.mrf.mxu0  ;;  %v917_v24 = vpop.f32.mrf.mxu1 }
 0x301   :  { %v946_v7 = vpop.f32.mrf.mxu2 }
 0x30b   :  { %1305 = vrot.lane.b32.xlu1 %v5763_v61, %s5416_s16 }
 0x323   :  { %967 = vmax.xlane.f32.xlu0 %v966_v25 }
 0x335   :  { %964 = vmax.xlane.f32.xlu1 %v963_v28 }
 0x337   :  { %1261 = vrot.lane.b32.xlu0 %v5740_v49, %s5416_s16 }
 0x348   :  { %v956_v33 = vpop.xlane.xlu0 %955 }
 0x349   :  { %v974_v39 = vsub.f32 %v799_v50, %v956_v33 }
 0x34b   :  { %v984_v36 = vmul.f32 1.442695, %v974_v39 }
 0x34d   :  { %5277 = vpow2.f32 %v984_v36 }
 0x350   :  { %v950_v22 = vpop.xlane.xlu0 %949 }
 0x351   :  { %v972_v57 = vsub.f32 %v741_v45, %v950_v22 }
 0x353   :  { %v5908_v12 = vpop.eup %5277  ;;  %v980_v41 = vmul.f32 1.442695, %v972_v57 }
 0x354   :  { %v1002_v54 = vsel %vm465_vm4, %v5908_v12, 0.0 }
 0x357   :  { %v962_v25 = vpop.xlane.xlu2 %961 }
 0x358   :  { %v976_v39 = vsub.f32 %v5885_v58, %v962_v25 }
 0x35a   :  { %v988_v22 = vmul.f32 1.442695, %v976_v39 }
 0x35d   :  { %v953_v40 = vpop.xlane.xlu1 %952 }
 0x35e   :  { %v973_v51 = vsub.f32 %v770_v60, %v953_v40 }
 0x360   :  { %v982_v23 = vmul.f32 1.442695, %v973_v51 }
 0x361   :  { %1003 = vadd.xlane.f32.xlu0 %v1002_v54 }
 0x362   :  { %5279 = vpow2.f32 %v982_v23 }
 0x363   :  { %5281 = vpow2.f32 %v980_v41 }
 0x365   :  { %v959_v6 = vpop.xlane.xlu1 %958 }
 0x366   :  { %v975_v63 = vsub.f32 %v828_v56, %v959_v6  ;;  %v5928_v56 = vpop.permute.xlu0 %1236 }
 0x368   :  { %v5912_v42 = vpop.eup %5279  ;;  %v986_v50 = vmul.f32 1.442695, %v975_v63 }
 0x369   :  { %v999_v19 = vsel %vm465_vm4, %v5912_v42, 0.0  ;;  %v5916_v60 = vpop.eup %5281 }
 0x36a   :  { %5283 = vpow2.f32 %v986_v50  ;;  %1000 = vadd.xlane.f32.xlu1 %v999_v19  ;;  %v996_v24 = vsel %vm465_vm4, %v5916_v60, 0.0 }
 0x36e   :  { %v5936_v7 = vpop.permute.xlu0 %1399  ;;  %v971_v40 = vpop.xlane.xlu2 %970 }
 0x36f   :  { %v979_v23 = vsub.f32 %v5895_v16, %v971_v40 }
 0x370   :  { %v5918_v45 = vpop.eup %5283 }
 0x371   :  { %v1005_v3 = vsel %vm465_vm4, %v5918_v45, 0.0 }
 0x372   :  { %1006 = vadd.xlane.f32.xlu2 %v1005_v3  ;;  %997 = vadd.xlane.f32.xlu1 %v996_v24 }
 0x375   :  { %1397 = vrot.lane.b32.xlu0 %v5708_v34, %s5416_s16 }
 0x37d   :  { %1328 = vrot.lane.b32.xlu0 %v5750_v11, %s5416_s16  ;;  %v5943_v51 = vpop.permute.xlu1 %1305 }
 0x385   :  { %1351 = vrot.lane.b32.xlu0 %v5746_v55, %s5416_s16 }
 0x38a   :  { %1284 = vrot.lane.b32.xlu2 %v5722_v44, %s5416_s16 }
 0x38d   :  { %1579 = vrot.lane.b32.xlu0 %v5756_v46, %s5416_s16 }
 0x395   :  { %1755 = vrot.lane.b32.xlu0 %v5661_v17, %s5417_s17 }
 0x396   :  { %v968_v28 = vpop.xlane.xlu0 %967 }
 0x397   :  { %v978_v33 = vsub.f32 %v915_v14, %v968_v28  ;;  %v994_v14 = vmul.f32 1.442695, %v979_v23 }
 0x399   :  { %v992_v36 = vmul.f32 1.442695, %v978_v33 }
 0x39b   :  { %5285 = vpow2.f32 %v992_v36 }
 0x39c   :  { %5287 = vpow2.f32 %v988_v22 }
 0x39d   :  { %1621 = vrot.lane.b32.xlu0 %v5795_v8, %s5416_s16  ;;  %5289 = vpow2.f32 %v994_v14 }
 0x3a1   :  { %v5945_v57 = vpop.eup %5285 }
 0x3a2   :  { %v1014_v17 = vsel %vm465_vm4, %v5945_v57, 0.0  ;;  %v5952_v58 = vpop.eup %5287 }
 0x3a3   :  { %1015 = vadd.xlane.f32.xlu1 %v1014_v17  ;;  %v1008_v6 = vsel %vm465_vm4, %v5952_v58, 0.0  ;;  %v5959_v16 = vpop.eup %5289 }
 0x3a4   :  { %v1017_v50 = vsel %vm465_vm4, %v5959_v16, 0.0 }
 0x3a5   :  { %1642 = vrot.lane.b32.xlu0 %v5820_v15, %s5416_s16 }
 0x3a8   :  { %v965_v54 = vpop.xlane.xlu1 %964 }
 0x3a9   :  { %v977_v41 = vsub.f32 %v5893_v26, %v965_v54  ;;  %v1262_v3 = vpop.permute.xlu0 %1261 }
 0x3aa   :  { %v1267_v23 = vsel %vm312_vm2, %v1262_v3, 0  ;;  %v1244_v3 = vsel %vm312_vm2, %v5855_v27, 0 }
 0x3ab   :  { %v990_v63 = vmul.f32 1.442695, %v977_v41  ;;  %1009 = vadd.xlane.f32.xlu1 %v1008_v6 }
 0x3ad   :  { %5291 = vpow2.f32 %v990_v63  ;;  %1753 = vrot.lane.b32.xlu0 %v5763_v61, %s5417_s17 }
 0x3b3   :  { %v5963_v19 = vpop.eup %5291  ;;  %1018 = vadd.xlane.f32.xlu1 %v1017_v50 }
 0x3b4   :  { %v1011_v26 = vsel %vm465_vm4, %v5963_v19, 0.0 }
 0x3b5   :  { %1012 = vadd.xlane.f32.xlu2 %v1011_v26  ;;  %v1313_v26 = vsel %vm312_vm2, %v5851_v53, 0 }
 0x3cc   :  { %1330 = vrot.lane.b32.xlu1 %v5728_v59, %s5416_s16 }
 0x3cd   :  { %1259 = vrot.lane.b32.xlu2 %v5775_v1, %s5416_s16 }
 0x3d4   :  { %v1004_v61 = vpop.xlane.xlu0 %1003  ;;  %1282 = vrot.lane.b32.xlu1 %v5736_v48, %s5416_s16 }
 0x3d5   :  { %5293 = vrcp.f32 %v1004_v61  ;;  %1353 = vrot.lane.b32.xlu2 %v5761_v43, %s5416_s16 }
 0x3db   :  { %v5294_v24 = vpop.eup %5293 }
 0x3dc   :  { %v1030_v25 = vmul.f32 %v5294_v24, %v5908_v12  ;;  %1376 = vrot.lane.b32.xlu1 %v5787_v9, %s5416_s16 }
 0x3dd   :  { %1374 = vrot.lane.b32.xlu2 %v5773_v30, %s5416_s16  ;;  %v1001_v28 = vpop.xlane.xlu1 %1000 }
 0x3de   :  { %v1038_v33 = vpack.c.bf16 %v1030_v25, %v1030_v25  ;;  %5295 = vrcp.f32 %v1001_v28 }
 0x3e0   :  { %4298 = vmatmul.msk.bf16.vlgmr.msrb.gmra.mxu1 %vm562_vm5, %v1038_v33 }
 0x3e4   :  { %v5296_v39 = vpop.eup %5295  ;;  %1558 = vrot.lane.b32.xlu1 %v5809_v47, %s5416_s16 }
 0x3e5   :  { %v1029_v36 = vmul.f32 %v5296_v39, %v5912_v42  ;;  %v1007_v22 = vpop.xlane.xlu2 %1006  ;;  %1516 = vrot.lane.b32.xlu2 %v5785_v35, %s5416_s16  ;;  %v998_v12 = vpop.xlane.xlu1 %997 }
 0x3e6   :  { %5297 = vrcp.f32 %v1007_v22 }
 0x3e7   :  { %v1037_v40 = vpack.c.bf16 %v1029_v36, %v1029_v36  ;;  %5299 = vrcp.f32 %v998_v12  ;;  %v1398_v53 = vpop.permute.xlu0 %1397 }
 0x3e9   :  { %4297 = vmatmul.msk.bf16.vlgmr.msrb.gmra.mxu0 %vm562_vm5, %v1037_v40 }
 0x3ea   :  { %1276 = vmatpush.bf16.xpose.msrb.mxu0 %v1267_v23 }
 0x3ec   :  { %v5298_v17 = vpop.eup %5297 }
 0x3ed   :  { %v5300_v14 = vpop.eup %5299  ;;  %v1031_v54 = vmul.f32 %v5298_v17, %v5918_v45  ;;  %v1285_v41 = vpop.permute.xlu2 %1284  ;;  %1537 = vrot.lane.b32.xlu2 %v5802_v13, %s5416_s16 }
 0x3ee   :  { %v1028_v42 = vmul.f32 %v5300_v14, %v5916_v60  ;;  %v1290_v6 = vsel %vm312_vm2, %v1285_v41, 0 }
 0x3ef   :  { %v1039_v63 = vpack.c.bf16 %v1031_v54, %v1031_v54  ;;  %1299 = vmatpush.bf16.xpose.msrb.mxu1 %v1290_v6  ;;  %v1329_v25 = vpop.permute.xlu0 %1328  ;;  %v1405_v54 = vsel %vm312_vm2, %v5936_v7, 0 }
 0x3f0   :  { %v1036_v50 = vpack.c.bf16 %v1028_v42, %v1028_v42 }
 0x3f1   :  { %4299 = vmatmul.msk.bf16.vlgmr.msrb.gmra.mxu2 %vm562_vm5, %v1039_v63 }
 0x3f2   :  { %4296 = vmatmul.msk.bf16.vlgmr.msra.gmra.mxu3 %vm562_vm5, %v1036_v50  ;;  %1322 = vmatpush.bf16.xpose.msrb.mxu2 %v1313_v26 }
 0x3f3   :  { %1253 = vmatpush.bf16.xpose.msra.mxu3 %v1244_v3 }
 0x3f5   :  { %1663 = vrot.lane.b32.xlu2 %v5800_v10, %s5416_s16 }
 0x3f7   :  { %v1352_v12 = vpop.permute.xlu0 %1351 }
 0x3fd   :  { %1600 = vrot.lane.b32.xlu2 %v5814_v18, %s5416_s16 }
 0x3ff   :  { %v1580_v41 = vpop.permute.xlu0 %1579 }
 0x400   :  { %v1585_v50 = vsel %vm566_vm3, %v1580_v41, 0 }
 0x405   :  { %1686 = vrot.lane.b32.xlu2 %v5670_v62, %s5417_s17 }
 0x407   :  { %v6019_v7 = vpop.permute.xlu0 %1755 }
 0x416   :  { %v1016_v60 = vpop.xlane.xlu1 %1015 }
 0x417   :  { %5301 = vrcp.f32 %v1016_v60  ;;  %v1622_v60 = vpop.permute.xlu0 %1621 }
 0x41d   :  { %v5302_v45 = vpop.eup %5301 }
 0x41e   :  { %v1034_v61 = vmul.f32 %v5302_v45, %v5945_v57  ;;  %v1010_v27 = vpop.xlane.xlu1 %1009 }
 0x41f   :  { %5303 = vrcp.f32 %v1010_v27 }
 0x420   :  { %v1042_v24 = vpack.c.bf16 %v1034_v61, %v1034_v61 }
 0x422   :  { %4302 = vmatmul.msk.bf16.vlgmr.msra.gmra.mxu1 %vm562_vm5, %v1042_v24  ;;  %v1627_v24 = vsel %vm566_vm3, %v1622_v60, 0 }
 0x425   :  { %v5304_v28 = vpop.eup %5303 }
 0x426   :  { %v1032_v33 = vmul.f32 %v5304_v28, %v5952_v58  ;;  %v1019_v39 = vpop.xlane.xlu1 %1018  ;;  %v1643_v28 = vpop.permute.xlu0 %1642 }
 0x427   :  { %5305 = vrcp.f32 %v1019_v39  ;;  %v1648_v39 = vsel %vm566_vm3, %v1643_v28, 0 }
 0x428   :  { %v1040_v36 = vpack.c.bf16 %v1032_v33, %v1032_v33  ;;  %v1013_v22 = vpop.xlane.xlu2 %1012 }
 0x429   :  { %5307 = vrcp.f32 %v1013_v22 }
 0x42a   :  { %4300 = vmatmul.msk.bf16.vlgmr.msrb.gmra.mxu3 %vm562_vm5, %v1040_v36 }
 0x42d   :  { %v5306_v62 = vpop.eup %5305 }
 0x42e   :  { %v1035_v57 = vmul.f32 %v5306_v62, %v5959_v16 }
 0x42f   :  { %v5308_v40 = vpop.eup %5307 }
 0x430   :  { %v1043_v23 = vpack.c.bf16 %v1035_v57, %v1035_v57  ;;  %v1033_v17 = vmul.f32 %v5308_v40, %v5963_v19  ;;  %v1260_v14 = vpop.permute.xlu2 %1259 }
 0x432   :  { %v1041_v58 = vpack.c.bf16 %v1033_v17, %v1033_v17  ;;  %4303 = vmatmul.msk.bf16.vlgmr.msra.gmra.mxu2 %vm562_vm5, %v1043_v23 }
 0x433   :  { %1414 = vmatpush.bf16.xpose.msra.mxu2 %v1405_v54 }
 0x434   :  { %4301 = vmatmul.msk.bf16.vlgmr.msra.gmra.mxu0 %vm562_vm5, %v1041_v58 }
 0x438   :  { %v1354_v42 = vpop.permute.xlu2 %1353 }
 0x439   :  { %v1359_v6 = vsel %vm312_vm2, %v1354_v42, 0 }
 0x43a   :  { %4304 = vmatmul.msk.bf16.vlgmr.msra.gmra.mxu3 %vm312_vm2, %v5928_v56  ;;  %1368 = vmatpush.bf16.xpose.msra.mxu0 %v1359_v6 }
 0x43e   :  { %v1331_v16 = vpop.permute.xlu1 %1330 }
 0x43f   :  { %v1336_v19 = vsel %vm312_vm2, %v1331_v16, 0 }
 0x440   :  { %v1375_v63 = vpop.permute.xlu2 %1374  ;;  %1345 = vmatpush.bf16.xpose.msrb.mxu3 %v1336_v19 }
 0x442   :  { %4307 = vmatmul.msk.bf16.vlgmr.msrb.gmra.mxu2 %vm312_vm2, %v5943_v51 }
 0x443   :  { %1594 = vmatpush.bf16.msrb.mxu2 %v1585_v50 }
 0x444   :  { %4305 = vmatmul.msk.bf16.vlgmr.msrb.gmra.mxu0 %vm312_vm2, %v1260_v14 }
 0x446   :  { %v1283_v26 = vpop.permute.xlu1 %1282 }
 0x447   :  { %4306 = vmatmul.msk.bf16.vlgmr.msrb.gmra.mxu1 %vm312_vm2, %v1283_v26 }
 0x448   :  { %v1517_v56 = vpop.permute.xlu2 %1516 }
 0x449   :  { %v1522_v3 = vsel %vm566_vm3, %v1517_v56, 0 }
 0x44a   :  { %4308 = vmatmul.msk.bf16.vlgmr.msrb.gmra.mxu3 %vm312_vm2, %v1329_v25 }
 0x44b   :  { %1531 = vmatpush.bf16.msra.mxu3 %v1522_v3 }
 0x44e   :  { %v1377_v45 = vpop.permute.xlu1 %1376 }
 0x44f   :  { %v1382_v61 = vsel %vm312_vm2, %v1377_v45, 0 }
 0x450   :  { %v1538_v27 = vpop.permute.xlu2 %1537  ;;  %1391 = vmatpush.bf16.xpose.msra.mxu1 %v1382_v61 }
 0x451   :  { %v1543_v51 = vsel %vm566_vm3, %v1538_v27, 0 }
 0x452   :  { %4311 = vmatmul.msk.bf16.vlgmr.msra.gmra.mxu2 %vm312_vm2, %v1398_v53  ;;  %1552 = vmatpush.bf16.msrb.mxu0 %v1543_v51 }
 0x454   :  { %4309 = vmatmul.msk.bf16.vlgmr.msra.gmra.mxu0 %vm312_vm2, %v1352_v12 }
 0x456   :  { %1636 = vmatpush.bf16.msra.mxu0 %v1627_v24  ;;  %v1559_v33 = vpop.permute.xlu1 %1558 }
 0x457   :  { %v1564_v25 = vsel %vm566_vm3, %v1559_v33, 0  ;;  %4310 = vmatmul.msk.bf16.vlgmr.msra.gmra.mxu1 %vm312_vm2, %v1375_v63 }
 0x458   :  { %v1664_v36 = vpop.permute.xlu2 %1663  ;;  %1573 = vmatpush.bf16.msrb.mxu1 %v1564_v25 }
 0x459   :  { %v1669_v22 = vsel %vm566_vm3, %v1664_v36, 0 }
 0x45a   :  { %1678 = vmatpush.bf16.msra.mxu2 %v1669_v22 }
 0x45c   :  { %1657 = vmatpush.bf16.msra.mxu1 %v1648_v39 }
 0x45d   :  { %v6037_v53 = vpop.f32.mrf.mxu1 }
 0x460   :  { %v1601_v62 = vpop.permute.xlu2 %1600 }
 0x461   :  { %v1606_v12 = vsel %vm566_vm3, %v1601_v62, 0 }
 0x462   :  { %1615 = vmatpush.bf16.msrb.mxu3 %v1606_v12 }
 0x465   :  { %v1114_v57 = vpop.f32.mrf.mxu1 }
 0x466   :  { %v6040_v40 = vpop.f32.mrf.mxu0 }
 0x467   :  { %v5195_v23 = vpack.i.bf16 %v6037_v53, %v6040_v40 }
 0x46e   :  { %v1090_v17 = vpop.f32.mrf.mxu0 }
 0x474   :  { %v6044_v14 = vpop.f32.mrf.mxu2 }
 0x475   :  { %v6046_v54 = vpop.f32.mrf.mxu3 }
 0x47c   :  { %v1138_v58 = vpop.f32.mrf.mxu2 }
 0x47d   :  { %v1066_v41 = vpop.f32.mrf.mxu3 }
 0x49f   :  { %v6048_v42 = vpop.f32.mrf.mxu1 }
 0x4a7   :  { %v1210_v6 = vpop.f32.mrf.mxu1 }
 0x4ad   :  { %v6050_v16 = vpop.f32.mrf.mxu3 }
 0x4ae   :  { %v5215_v19 = vpack.i.bf16 %v6050_v16, %v6046_v54 }
 0x4b1   :  { %v6054_v63 = vpop.f32.mrf.mxu0 }
 0x4b2   :  { %v5200_v50 = vpack.i.bf16 %v6048_v42, %v6054_v63 }
 0x4b5   :  { %v1162_v26 = vpop.f32.mrf.mxu3  ;;  %v6058_v56 = vpop.f32.mrf.mxu2 }
 0x4b6   :  { %v5185_v3 = vpack.i.bf16 %v6058_v56, %v6044_v14 }
 0x4b9   :  { %v1186_v60 = vpop.f32.mrf.mxu0 }
 0x4bd   :  { %v1234_v45 = vpop.f32.mrf.mxu2  ;;  %v6062_v61 = vpop.f32.mrf.mxu3 }
 0x4c1   :  { %v1278_v27 = vpop.f32.mrf.mxu0 }
 0x4c2   :  { %v1423_v51 = vsel %vm465_vm4, %v1278_v27, -inf }
 0x4c3   :  { %1424 = vmax.xlane.f32.xlu2 %v1423_v51 }
 0x4c4   :  { %v1301_v24 = vpop.f32.mrf.mxu1 }
 0x4c5   :  { %v1257_v28 = vpop.f32.mrf.mxu3  ;;  %v1324_v33 = vpop.f32.mrf.mxu2  ;;  %v1426_v25 = vsel %vm465_vm4, %v1301_v24, -inf }
 0x4c6   :  { %1427 = vmax.xlane.f32.xlu1 %v1426_v25  ;;  %v1429_v12 = vsel %vm465_vm4, %v1324_v33, -inf  ;;  %v1420_v25 = vsel %vm465_vm4, %v6062_v61, -inf }
 0x4c9   :  { %v1280_v39 = vpop.f32.mrf.mxu0 }
 0x4cc   :  { %v1303_v36 = vpop.f32.mrf.mxu1 }
 0x4cd   :  { %v1326_v22 = vpop.f32.mrf.mxu2  ;;  %v6066_v62 = vpop.f32.mrf.mxu3 }
 0x4ce   :  { %1430 = vmax.xlane.f32.xlu1 %v1429_v12  ;;  %v1432_v57 = vsel %vm465_vm4, %v6066_v62, -inf  ;;  %v6087_v36 = vpop.permute.xlu2 %1686 }
 0x4cf   :  { %1433 = vmax.xlane.f32.xlu2 %v1432_v57 }
 0x4d1   :  { %v6071_v17 = vpop.f32.mrf.mxu0 }
 0x4d2   :  { %v1435_v60 = vsel %vm465_vm4, %v6071_v17, -inf }
 0x4d4   :  { %v1393_v58 = vpop.f32.mrf.mxu1 }
 0x4d5   :  { %v1349_v41 = vpop.f32.mrf.mxu3  ;;  %v1416_v6 = vpop.f32.mrf.mxu2  ;;  %v1438_v26 = vsel %vm465_vm4, %v1393_v58, -inf }
 0x4d6   :  { %1439 = vmax.xlane.f32.xlu0 %v1438_v26  ;;  %1436 = vmax.xlane.f32.xlu1 %v1435_v60  ;;  %v1441_v39 = vsel %vm465_vm4, %v1416_v6, -inf }
 0x4d9   :  { %v1372_v45 = vpop.f32.mrf.mxu0 }
 0x4da   :  { %v6089_v45 = vpop.permute.xlu0 %1753 }
 0x4dc   :  { %v1395_v51 = vpop.f32.mrf.mxu1 }
 0x4dd   :  { %v1418_v28 = vpop.f32.mrf.mxu2 }
 0x4de   :  { %1421 = vmax.xlane.f32.xlu0 %v1420_v25 }
 0x4e6   :  { %1442 = vmax.xlane.f32.xlu0 %v1441_v39 }
 0x4e7   :  { %1847 = vrot.lane.b32.xlu2 %v5697_v21, %s5417_s17 }
 0x4fa   :  { %1709 = vrot.lane.b32.xlu0 %v5740_v49, %s5417_s17 }
 0x502   :  { %1732 = vrot.lane.b32.xlu0 %v5722_v44, %s5417_s17 }
 0x50a   :  { %1778 = vrot.lane.b32.xlu0 %v5728_v59, %s5417_s17 }
 0x536   :  { %v1425_v22 = vpop.xlane.xlu2 %1424 }
 0x537   :  { %v1445_v41 = vsub.f32 %v1278_v27, %v1425_v22 }
 0x539   :  { %v1428_v12 = vpop.xlane.xlu1 %1427  ;;  %v1454_v60 = vmul.f32 1.442695, %v1445_v41 }
 0x53a   :  { %v1446_v57 = vsub.f32 %v1301_v24, %v1428_v12 }
 0x53c   :  { %v1456_v26 = vmul.f32 1.442695, %v1446_v57 }
 0x53e   :  { %5309 = vpow2.f32 %v1456_v26 }
 0x53f   :  { %5311 = vpow2.f32 %v1454_v60 }
 0x541   :  { %v1431_v21 = vpop.xlane.xlu1 %1430 }
 0x542   :  { %v1447_v51 = vsub.f32 %v1324_v33, %v1431_v21 }
 0x544   :  { %v5310_v49 = vpop.eup %5309  ;;  %v1458_v28 = vmul.f32 1.442695, %v1447_v51 }
 0x545   :  { %v1474_v44 = vsel %vm465_vm4, %v5310_v49, 0.0  ;;  %v6092_v25 = vpop.eup %5311 }
 0x546   :  { %5313 = vpow2.f32 %v1458_v28  ;;  %1475 = vadd.xlane.f32.xlu1 %v1474_v44  ;;  %v1471_v33 = vsel %vm465_vm4, %v6092_v25, 0.0 }
 0x549   :  { %v1440_v59 = vpop.xlane.xlu0 %1439 }
 0x54a   :  { %v1450_v39 = vsub.f32 %v1393_v58, %v1440_v59 }
 0x54c   :  { %v6094_v24 = vpop.eup %5313  ;;  %v1464_v27 = vmul.f32 1.442695, %v1450_v39 }
 0x54d   :  { %v1477_v22 = vsel %vm465_vm4, %v6094_v24, 0.0 }
 0x54e   :  { %5315 = vpow2.f32 %v1464_v27  ;;  %1478 = vadd.xlane.f32.xlu2 %v1477_v22  ;;  %1472 = vadd.xlane.f32.xlu1 %v1471_v33 }
 0x551   :  { %v1422_v12 = vpop.xlane.xlu0 %1421 }
 0x552   :  { %v1444_v57 = vsub.f32 %v6062_v61, %v1422_v12 }
 0x554   :  { %v6101_v41 = vpop.eup %5315  ;;  %v1452_v26 = vmul.f32 1.442695, %v1444_v57 }
 0x555   :  { %v1486_v58 = vsel %vm465_vm4, %v6101_v41, 0.0 }
 0x556   :  { %5317 = vpow2.f32 %v1452_v26  ;;  %1487 = vadd.xlane.f32.xlu1 %v1486_v58 }
 0x559   :  { %v1443_v60 = vpop.xlane.xlu0 %1442 }
 0x55a   :  { %v1451_v21 = vsub.f32 %v1416_v6, %v1443_v60  ;;  %v1437_v6 = vpop.xlane.xlu1 %1436 }
 0x55b   :  { %v1449_v39 = vsub.f32 %v6071_v17, %v1437_v6  ;;  %v1761_v6 = vsel %vm312_vm2, %v6019_v7, 0 }
 0x55c   :  { %v6105_v51 = vpop.eup %5317  ;;  %v1466_v28 = vmul.f32 1.442695, %v1451_v21 }
 0x55d   :  { %v1468_v44 = vsel %vm465_vm4, %v6105_v51, 0.0  ;;  %v1462_v27 = vmul.f32 1.442695, %v1449_v39 }
 0x55e   :  { %5319 = vpow2.f32 %v1466_v28  ;;  %1469 = vadd.xlane.f32.xlu1 %v1468_v44 }
 0x55f   :  { %5321 = vpow2.f32 %v1462_v27 }
 0x564   :  { %v6109_v59 = vpop.eup %5319 }
 0x565   :  { %v1489_v61 = vsel %vm465_vm4, %v6109_v59, 0.0  ;;  %v6124_v22 = vpop.eup %5321 }
 0x566   :  { %1490 = vadd.xlane.f32.xlu0 %v1489_v61  ;;  %1707 = vrot.lane.b32.xlu2 %v5775_v1, %s5417_s17  ;;  %v1434_v1 = vpop.xlane.xlu2 %1433 }
 0x567   :  { %v1448_v33 = vsub.f32 %v6066_v62, %v1434_v1 }
 0x56e   :  { %v1848_v62 = vpop.permute.xlu2 %1847 }
 0x577   :  { %1684 = vrot.lane.b32.xlu1 %v5714_v37, %s5417_s17  ;;  %v1483_v37 = vsel %vm465_vm4, %v6124_v22, 0.0 }
 0x57a   :  { %1845 = vrot.lane.b32.xlu0 %v5708_v34, %s5417_s17  ;;  %v1460_v34 = vmul.f32 1.442695, %v1448_v33 }
 0x57c   :  { %5323 = vpow2.f32 %v1460_v34 }
 0x582   :  { %1824 = vrot.lane.b32.xlu0 %v5787_v9, %s5417_s17  ;;  %v6129_v17 = vpop.eup %5323 }
 0x583   :  { %v1480_v9 = vsel %vm465_vm4, %v6129_v17, 0.0 }
 0x58a   :  { %1964 = vrot.lane.b32.xlu0 %v5785_v35, %s5417_s17  ;;  %v1710_v35 = vpop.permute.xlu0 %1709 }
 0x58b   :  { %v1715_v39 = vsel %vm312_vm2, %v1710_v35, 0 }
 0x58f   :  { %1484 = vadd.xlane.f32.xlu2 %v1483_v37 }
 0x592   :  { %v1733_v21 = vpop.permute.xlu0 %1732 }
 0x59a   :  { %v1779_v27 = vpop.permute.xlu0 %1778 }
 0x5a1   :  { %1481 = vadd.xlane.f32.xlu1 %v1480_v9  ;;  %v1692_v9 = vsel %vm312_vm2, %v6087_v36, 0 }
 0x5a7   :  { %1776 = vrot.lane.b32.xlu2 %v5750_v11, %s5417_s17  ;;  %v1738_v11 = vsel %vm312_vm2, %v1733_v21, 0 }
 0x5af   :  { %1799 = vrot.lane.b32.xlu2 %v5746_v55, %s5417_s17 }
 0x5b7   :  { %2027 = vrot.lane.b32.xlu2 %v5756_v46, %s5417_s17 }
 0x5b9   :  { %v1476_v12 = vpop.xlane.xlu1 %1475 }
 0x5ba   :  { %5325 = vrcp.f32 %v1476_v12  ;;  %1730 = vrot.lane.b32.xlu1 %v5736_v48, %s5417_s17 }
 0x5c0   :  { %v5326_v57 = vpop.eup %5325 }
 0x5c1   :  { %v1502_v26 = vmul.f32 %v5326_v57, %v5310_v49  ;;  %v1479_v58 = vpop.xlane.xlu2 %1478  ;;  %v1473_v60 = vpop.xlane.xlu1 %1472 }
 0x5c2   :  { %5327 = vrcp.f32 %v1479_v58  ;;  %1801 = vrot.lane.b32.xlu1 %v5761_v43, %s5417_s17 }
 0x5c3   :  { %v1510_v55 = vpack.c.bf16 %v1502_v26, %v1502_v26  ;;  %5329 = vrcp.f32 %v1473_v60 }
 0x5c5   :  { %4314 = vmatmul.msk.bf16.vlgmr.msrb.gmra.mxu1 %vm562_vm5, %v1510_v55 }
 0x5c6   :  { %1747 = vmatpush.bf16.xpose.msrb.mxu1 %v1738_v11 }
 0x5c8   :  { %v5328_v46 = vpop.eup %5327 }
 0x5c9   :  { %v5330_v28 = vpop.eup %5329  ;;  %v1503_v48 = vmul.f32 %v5328_v46, %v6094_v24  ;;  %v1488_v44 = vpop.xlane.xlu1 %1487 }
 0x5ca   :  { %v1501_v49 = vmul.f32 %v5330_v28, %v6092_v25  ;;  %5331 = vrcp.f32 %v1488_v44  ;;  %1822 = vrot.lane.b32.xlu1 %v5773_v30, %s5417_s17  ;;  %v1708_v36 = vpop.permute.xlu2 %1707 }
 0x5cb   :  { %v1511_v61 = vpack.c.bf16 %v1503_v48, %v1503_v48 }
 0x5cc   :  { %v1509_v43 = vpack.c.bf16 %v1501_v49, %v1501_v49 }
 0x5cd   :  { %4315 = vmatmul.msk.bf16.vlgmr.msrb.gmra.mxu2 %vm562_vm5, %v1511_v61 }
 0x5ce   :  { %4313 = vmatmul.msk.bf16.vlgmr.msrb.gmra.mxu0 %vm562_vm5, %v1509_v43  ;;  %1770 = vmatpush.bf16.xpose.msrb.mxu2 %v1761_v6 }
 0x5cf   :  { %1724 = vmatpush.bf16.xpose.msrb.mxu0 %v1715_v39 }
 0x5d0   :  { %v5332_v24 = vpop.eup %5331 }
 0x5d1   :  { %v1506_v25 = vmul.f32 %v5332_v24, %v6101_v41  ;;  %v1470_v1 = vpop.xlane.xlu1 %1469 }
 0x5d2   :  { %5333 = vrcp.f32 %v1470_v1  ;;  %1985 = vrot.lane.b32.xlu1 %v5802_v13, %s5417_s17  ;;  %v1853_v13 = vsel %vm312_vm2, %v1848_v62, 0 }
 0x5d3   :  { %v1514_v30 = vpack.c.bf16 %v1506_v25, %v1506_v25 }
 0x5d5   :  { %4318 = vmatmul.msk.bf16.vlgmr.msra.gmra.mxu1 %vm562_vm5, %v1514_v30 }
 0x5d8   :  { %v5334_v7 = vpop.eup %5333 }
 0x5d9   :  { %v1500_v37 = vmul.f32 %v5334_v7, %v6105_v51  ;;  %v1491_v33 = vpop.xlane.xlu0 %1490 }
 0x5da   :  { %5335 = vrcp.f32 %v1491_v33 }
 0x5db   :  { %v1508_v34 = vpack.c.bf16 %v1500_v37, %v1500_v37 }
 0x5dd   :  { %4312 = vmatmul.msk.bf16.vlgmr.msra.gmra.mxu3 %vm562_vm5, %v1508_v34 }
 0x5de   :  { %1701 = vmatpush.bf16.xpose.msra.mxu3 %v1692_v9 }
 0x5e0   :  { %v5336_v41 = vpop.eup %5335 }
 0x5e1   :  { %v1507_v35 = vmul.f32 %v5336_v41, %v6109_v59 }
 0x5e3   :  { %v1515_v12 = vpack.c.bf16 %v1507_v35, %v1507_v35 }
 0x5e5   :  { %4319 = vmatmul.msk.bf16.vlgmr.msra.gmra.mxu2 %vm562_vm5, %v1515_v12 }
 0x5e6   :  { %1862 = vmatpush.bf16.xpose.msra.mxu2 %v1853_v13 }
 0x5e9   :  { %v1685_v21 = vpop.permute.xlu1 %1684 }
 0x5ec   :  { %v1846_v57 = vpop.permute.xlu0 %1845 }
 0x5f4   :  { %v1825_v51 = vpop.permute.xlu0 %1824 }
 0x5f5   :  { %v1830_v26 = vsel %vm312_vm2, %v1825_v51, 0  ;;  %4323 = vmatmul.msk.bf16.vlgmr.msrb.gmra.mxu2 %vm312_vm2, %v6089_v45 }
 0x5f6   :  { %1839 = vmatpush.bf16.xpose.msra.mxu1 %v1830_v26 }
 0x5fc   :  { %v1965_v43 = vpop.permute.xlu0 %1964 }
 0x5fd   :  { %v1970_v6 = vsel %vm566_vm3, %v1965_v43, 0 }
 0x602   :  { %v1485_v58 = vpop.xlane.xlu2 %1484 }
 0x603   :  { %5337 = vrcp.f32 %v1485_v58 }
 0x605   :  { %4327 = vmatmul.msk.bf16.vlgmr.msra.gmra.mxu2 %vm312_vm2, %v1846_v57 }
 0x609   :  { %v5338_v59 = vpop.eup %5337 }
 0x60a   :  { %v1505_v60 = vmul.f32 %v5338_v59, %v6124_v22  ;;  %v1777_v62 = vpop.permute.xlu2 %1776  ;;  %v1784_v22 = vsel %vm312_vm2, %v1779_v27, 0 }
 0x60c   :  { %v1513_v55 = vpack.c.bf16 %v1505_v60, %v1505_v60 }
 0x60e   :  { %4317 = vmatmul.msk.bf16.vlgmr.msra.gmra.mxu0 %vm562_vm5, %v1513_v55 }
 0x612   :  { %v1800_v11 = vpop.permute.xlu2 %1799 }
 0x614   :  { %v1482_v46 = vpop.xlane.xlu1 %1481 }
 0x615   :  { %5339 = vrcp.f32 %v1482_v46 }
 0x61a   :  { %v2028_v28 = vpop.permute.xlu2 %2027 }
 0x61b   :  { %v5340_v48 = vpop.eup %5339  ;;  %v2033_v45 = vsel %vm566_vm3, %v2028_v28, 0 }
 0x61c   :  { %v1504_v44 = vmul.f32 %v5340_v48, %v6129_v17  ;;  %2042 = vmatpush.bf16.msrb.mxu2 %v2033_v45 }
 0x61e   :  { %v1512_v49 = vpack.c.bf16 %v1504_v44, %v1504_v44  ;;  %4321 = vmatmul.msk.bf16.vlgmr.msrb.gmra.mxu0 %vm312_vm2, %v1708_v36 }
 0x620   :  { %4316 = vmatmul.msk.bf16.vlgmr.msrb.gmra.mxu3 %vm562_vm5, %v1512_v49 }
 0x621   :  { %1793 = vmatpush.bf16.xpose.msrb.mxu3 %v1784_v22 }
 0x62c   :  { %v1731_v61 = vpop.permute.xlu1 %1730 }
 0x62d   :  { %4322 = vmatmul.msk.bf16.vlgmr.msrb.gmra.mxu1 %vm312_vm2, %v1731_v61 }
 0x630   :  { %4320 = vmatmul.msk.bf16.vlgmr.msra.gmra.mxu3 %vm312_vm2, %v1685_v21 }
 0x631   :  { %1979 = vmatpush.bf16.msra.mxu3 %v1970_v6 }
 0x634   :  { %v1802_v39 = vpop.permute.xlu1 %1801 }
 0x635   :  { %v1807_v17 = vsel %vm312_vm2, %v1802_v39, 0 }
 0x636   :  { %1816 = vmatpush.bf16.xpose.msra.mxu0 %v1807_v17 }
 0x63c   :  { %v1823_v24 = vpop.permute.xlu1 %1822 }
 0x63d   :  { %4325 = vmatmul.msk.bf16.vlgmr.msra.gmra.mxu0 %vm312_vm2, %v1800_v11  ;;  %4326 = vmatmul.msk.bf16.vlgmr.msra.gmra.mxu1 %vm312_vm2, %v1823_v24 }
 0x640   :  { %4324 = vmatmul.msk.bf16.vlgmr.msrb.gmra.mxu3 %vm312_vm2, %v1777_v62 }
 0x642   :  { %v6183_v27 = vpop.f32.mrf.mxu1 }
 0x644   :  { %v1986_v25 = vpop.permute.xlu1 %1985 }
 0x645   :  { %v1991_v1 = vsel %vm566_vm3, %v1986_v25, 0 }
 0x646   :  { %2000 = vmatpush.bf16.msrb.mxu0 %v1991_v1 }
 0x64a   :  { %v1577_v30 = vpop.f32.mrf.mxu1 }
 0x64b   :  { %v6186_v7 = vpop.f32.mrf.mxu0 }
 0x64c   :  { %v5205_v37 = vpack.i.bf16 %v6183_v27, %v6186_v7 }
 0x650   :  { %v6190_v33 = vpop.f32.mrf.mxu2 }
 0x652   :  { %v6192_v34 = vpop.f32.mrf.mxu1 }
 0x653   :  { %v1556_v9 = vpop.f32.mrf.mxu0 }
 0x658   :  { %v1598_v41 = vpop.f32.mrf.mxu2 }
 0x65a   :  { %v1661_v35 = vpop.f32.mrf.mxu1 }
 0x660   :  { %v6194_v12 = vpop.f32.mrf.mxu3 }
 0x668   :  { %v1535_v13 = vpop.f32.mrf.mxu3  ;;  %v6196_v57 = vpop.f32.mrf.mxu2 }
 0x669   :  { %v5190_v51 = vpack.i.bf16 %v6196_v57, %v6190_v33 }
 0x670   :  { %v1682_v26 = vpop.f32.mrf.mxu2 }
 0x678   :  { %v6200_v36 = vpop.f32.mrf.mxu2 }
 0x679   :  { %v1877_v41 = vsel %vm465_vm4, %v6200_v36, -inf }
 0x680   :  { %v1774_v58 = vpop.f32.mrf.mxu2 }
 0x688   :  { %v6202_v59 = vpop.f32.mrf.mxu2 }
 0x689   :  { %v1889_v58 = vsel %vm465_vm4, %v6202_v59, -inf }
 0x68b   :  { %v6204_v60 = vpop.f32.mrf.mxu0 }
 0x68c   :  { %v5210_v62 = vpack.i.bf16 %v6192_v34, %v6204_v60 }
 0x690   :  { %v1866_v21 = vpop.f32.mrf.mxu2 }
 0x693   :  { %v1640_v55 = vpop.f32.mrf.mxu0 }
 0x69b   :  { %v1726_v11 = vpop.f32.mrf.mxu0 }
 0x69c   :  { %v1871_v46 = vsel %vm465_vm4, %v1726_v11, -inf }
 0x69d   :  { %1872 = vmax.xlane.f32.xlu1 %v1871_v46 }
 0x6a3   :  { %v6209_v28 = vpop.f32.mrf.mxu3  ;;  %v1728_v48 = vpop.f32.mrf.mxu0 }
 0x6a4   :  { %v5235_v45 = vpack.i.bf16 %v6209_v28, %v6194_v12 }
 0x6aa   :  { %v1749_v44 = vpop.f32.mrf.mxu1 }
 0x6ab   :  { %v1619_v49 = vpop.f32.mrf.mxu3  ;;  %v1874_v22 = vsel %vm465_vm4, %v1749_v44, -inf }
 0x6ac   :  { %1875 = vmax.xlane.f32.xlu2 %v1874_v22 }
 0x6b2   :  { %v1751_v61 = vpop.f32.mrf.mxu1 }
 0x6b3   :  { %v1703_v43 = vpop.f32.mrf.mxu3 }
 0x6b4   :  { %v1868_v35 = vsel %vm465_vm4, %v1703_v43, -inf }
 0x6ba   :  { %v1818_v6 = vpop.f32.mrf.mxu0  ;;  %v1841_v39 = vpop.f32.mrf.mxu1 }
 0x6bb   :  { %v1705_v17 = vpop.f32.mrf.mxu3  ;;  %v1886_v24 = vsel %vm465_vm4, %v1841_v39, -inf  ;;  %v1883_v25 = vsel %vm465_vm4, %v1818_v6, -inf }
 0x6bc   :  { %1887 = vmax.xlane.f32.xlu0 %v1886_v24  ;;  %1884 = vmax.xlane.f32.xlu2 %v1883_v25 }
 0x6c2   :  { %v1820_v1 = vpop.f32.mrf.mxu0  ;;  %v1843_v30 = vpop.f32.mrf.mxu1 }
 0x6c3   :  { %v1795_v9 = vpop.f32.mrf.mxu3 }
 0x6c4   :  { %1878 = vmax.xlane.f32.xlu0 %v1877_v41  ;;  %1869 = vmax.xlane.f32.xlu2 %v1868_v35  ;;  %v1880_v13 = vsel %vm465_vm4, %v1795_v9, -inf }
 0x6c5   :  { %1881 = vmax.xlane.f32.xlu1 %v1880_v13 }
 0x6cb   :  { %v1797_v26 = vpop.f32.mrf.mxu3 }
 0x6cc   :  { %1890 = vmax.xlane.f32.xlu0 %v1889_v58 }
 0x6dc   :  { %2111 = vrot.lane.b32.xlu2 %v5800_v10, %s5417_s17 }
 0x6e0   :  { %2006 = vrot.lane.b32.xlu0 %v5809_v47, %s5417_s17 }
 0x710   :  { %v1873_v21 = vpop.xlane.xlu1 %1872 }
 0x711   :  { %v1893_v55 = vsub.f32 %v1726_v11, %v1873_v21 }
 0x713   :  { %v1902_v46 = vmul.f32 1.442695, %v1893_v55 }
 0x715   :  { %5341 = vpow2.f32 %v1902_v46 }
 0x71b   :  { %v6226_v48 = vpop.eup %5341 }
 0x71c   :  { %v1919_v49 = vsel %vm465_vm4, %v6226_v48, 0.0 }
 0x71d   :  { %1920 = vadd.xlane.f32.xlu0 %v1919_v49 }
 0x71f   :  { %v1876_v22 = vpop.xlane.xlu2 %1875 }
 0x720   :  { %v1894_v61 = vsub.f32 %v1749_v44, %v1876_v22 }
 0x722   :  { %v1904_v17 = vmul.f32 1.442695, %v1894_v61 }
 0x724   :  { %5343 = vpow2.f32 %v1904_v17 }
 0x72a   :  { %v6230_v24 = vpop.eup %5343 }
 0x72b   :  { %v1922_v10 = vsel %vm465_vm4, %v6230_v24, 0.0 }
 0x72c   :  { %1923 = vadd.xlane.f32.xlu1 %v1922_v10 }
 0x72f   :  { %v1888_v47 = vpop.xlane.xlu0 %1887  ;;  %v1885_v11 = vpop.xlane.xlu2 %1884 }
 0x730   :  { %v1898_v25 = vsub.f32 %v1841_v39, %v1888_v47  ;;  %v1897_v1 = vsub.f32 %v1818_v6, %v1885_v11 }
 0x732   :  { %v1912_v30 = vmul.f32 1.442695, %v1898_v25  ;;  %v1910_v41 = vmul.f32 1.442695, %v1897_v1 }
 0x734   :  { %5345 = vpow2.f32 %v1912_v30 }
 0x735   :  { %5347 = vpow2.f32 %v1910_v41 }
 0x737   :  { %v1879_v35 = vpop.xlane.xlu0 %1878  ;;  %v1870_v13 = vpop.xlane.xlu2 %1869 }
 0x738   :  { %v1895_v44 = vsub.f32 %v6200_v36, %v1879_v35  ;;  %v1892_v26 = vsub.f32 %v1703_v43, %v1870_v13  ;;  %v1882_v58 = vpop.xlane.xlu1 %1881 }
 0x739   :  { %v1896_v22 = vsub.f32 %v1795_v9, %v1882_v58 }
 0x73a   :  { %v6235_v21 = vpop.eup %5345  ;;  %v1906_v55 = vmul.f32 1.442695, %v1895_v44  ;;  %v1900_v46 = vmul.f32 1.442695, %v1892_v26 }
 0x73b   :  { %v6237_v49 = vpop.eup %5347  ;;  %v1934_v6 = vsel %vm465_vm4, %v6235_v21, 0.0  ;;  %v1908_v36 = vmul.f32 1.442695, %v1896_v22 }
 0x73c   :  { %5349 = vpow2.f32 %v1906_v55  ;;  %1935 = vadd.xlane.f32.xlu1 %v1934_v6  ;;  %v1931_v39 = vsel %vm465_vm4, %v6237_v49, 0.0 }
 0x73d   :  { %5351 = vpow2.f32 %v1900_v46  ;;  %1932 = vadd.xlane.f32.xlu0 %v1931_v39 }
 0x73e   :  { %5353 = vpow2.f32 %v1908_v36 }
 0x73f   :  { %v1891_v43 = vpop.xlane.xlu0 %1890  ;;  %v2112_v61 = vpop.permute.xlu2 %2111 }
 0x740   :  { %v1899_v17 = vsub.f32 %v6202_v59, %v1891_v43  ;;  %v2117_v10 = vsel %vm566_vm3, %v2112_v61, 0 }
 0x741   :  { %2126 = vmatpush.bf16.msra.mxu2 %v2117_v10 }
 0x742   :  { %v5350_v47 = vpop.eup %5349  ;;  %v1914_v9 = vmul.f32 1.442695, %v1899_v17 }
 0x743   :  { %v5352_v11 = vpop.eup %5351  ;;  %v1925_v25 = vsel %vm465_vm4, %v5350_v47, 0.0 }
 0x744   :  { %5355 = vpow2.f32 %v1914_v9  ;;  %1926 = vadd.xlane.f32.xlu1 %v1925_v25  ;;  %v1916_v1 = vsel %vm465_vm4, %v5352_v11, 0.0  ;;  %v6247_v30 = vpop.eup %5353 }
 0x745   :  { %1917 = vadd.xlane.f32.xlu2 %v1916_v1  ;;  %v1928_v35 = vsel %vm465_vm4, %v6247_v30, 0.0 }
 0x74a   :  { %v6249_v41 = vpop.eup %5355 }
 0x74b   :  { %v1937_v59 = vsel %vm465_vm4, %v6249_v41, 0.0 }
 0x74c   :  { %1938 = vadd.xlane.f32.xlu1 %v1937_v59 }
 0x74d   :  { %1929 = vadd.xlane.f32.xlu2 %v1928_v35 }
 0x751   :  { %2048 = vrot.lane.b32.xlu0 %v5814_v18, %s5417_s17 }
 0x752   :  { %v2007_v13 = vpop.permute.xlu0 %2006 }
 0x753   :  { %v2012_v44 = vsel %vm566_vm3, %v2007_v13, 0 }
 0x754   :  { %2021 = vmatpush.bf16.msrb.mxu1 %v2012_v44 }
 0x759   :  { %5186 = vrot.lane.b32.xlu0 %v5185_v3, %s5418_s18 }
 0x761   :  { %5196 = vrot.lane.b32.xlu0 %v5195_v23, %s5418_s18 }
 0x765   :  { %2090 = vrot.lane.b32.xlu2 %v5820_v15, %s5417_s17  ;;  %2069 = vrot.lane.b32.xlu1 %v5795_v8, %s5417_s17 }
 0x769   :  { %5206 = vrot.lane.b32.xlu0 %v5205_v37, %s5419_s19 }
 0x76d   :  { %5191 = vrot.lane.b32.xlu2 %v5190_v51, %s5419_s19  ;;  %5201 = vrot.lane.b32.xlu1 %v5200_v50, %s5418_s18 }
 0x775   :  { %5216 = vrot.lane.b32.xlu2 %v5215_v19, %s5418_s18  ;;  %5211 = vrot.lane.b32.xlu1 %v5210_v62, %s5419_s19  ;;  %s5422_s18 = smov [#allocation2]  }
 0x790   :  { %v1921_v8 = vpop.xlane.xlu0 %1920 }
 0x791   :  { %5357 = vrcp.f32 %v1921_v8 }
 0x797   :  { %v5358_v18 = vpop.eup %5357 }
 0x798   :  { %v1949_v15 = vmul.f32 %v5358_v18, %v6226_v48 }
 0x79a   :  { %v1957_v53 = vpack.c.bf16 %v1949_v15, %v1949_v15 }
 0x79c   :  { %4329 = vmatmul.msk.bf16.vlgmr.msrb.gmra.mxu0 %vm562_vm5, %v1957_v53 }
 0x79f   :  { %v1924_v40 = vpop.xlane.xlu1 %1923 }
 0x7a0   :  { %5359 = vrcp.f32 %v1924_v40 }
 0x7a6   :  { %v5360_v23 = vpop.eup %5359 }
 0x7a7   :  { %v1950_v14 = vmul.f32 %v5360_v23, %v6230_v24 }
 0x7a9   :  { %v1958_v54 = vpack.c.bf16 %v1950_v14, %v1950_v14 }
 0x7ab   :  { %4330 = vmatmul.msk.bf16.vlgmr.msrb.gmra.mxu1 %vm562_vm5, %v1958_v54 }
 0x7af   :  { %v1936_v42 = vpop.xlane.xlu1 %1935 }
 0x7b0   :  { %v1933_v63 = vpop.xlane.xlu0 %1932 }
 0x7b7   :  { %v1927_v16 = vpop.xlane.xlu1 %1926 }
 0x7b8   :  { %5361 = vrcp.f32 %v1927_v16  ;;  %v1918_v19 = vpop.xlane.xlu2 %1917 }
 0x7b9   :  { %5363 = vrcp.f32 %v1918_v19 }
 0x7ba   :  { %5365 = vrcp.f32 %v1936_v42 }
 0x7be   :  { %v5362_v50 = vpop.eup %5361 }
 0x7bf   :  { %v5364_v56 = vpop.eup %5363  ;;  %v1951_v3 = vmul.f32 %v5362_v50, %v5350_v47  ;;  %v1939_v33 = vpop.xlane.xlu1 %1938  ;;  %v5012_v50 = vld [vmem:[%s7067_s1 + $0x38] sm:$0xff] }
 0x7c0   :  { %v1948_v27 = vmul.f32 %v5364_v56, %v5352_v11  ;;  %v1930_v7 = vpop.xlane.xlu2 %1929  ;;  %v5366_v51 = vpop.eup %5365  ;;  %5367 = vrcp.f32 %v1939_v33 }
 0x7c1   :  { %v1959_v37 = vpack.c.bf16 %v1951_v3, %v1951_v3  ;;  %5369 = vrcp.f32 %v1930_v7  ;;  %v1954_v62 = vmul.f32 %v5366_v51, %v6235_v21 }
 0x7c2   :  { %v1956_v34 = vpack.c.bf16 %v1948_v27, %v1948_v27  ;;  %5371 = vrcp.f32 %v1933_v63  ;;  %v5011_v27 = vld [vmem:[%s7067_s1 + $0x30] sm:$0xff] }
 0x7c3   :  { %v2049_v57 = vpop.permute.xlu0 %2048  ;;  %4331 = vmatmul.msk.bf16.vlgmr.msrb.gmra.mxu2 %vm562_vm5, %v1959_v37  ;;  %v1962_v55 = vpack.c.bf16 %v1954_v62, %v1954_v62 }
 0x7c4   :  { %v2054_v60 = vsel %vm566_vm3, %v2049_v57, 0  ;;  %4328 = vmatmul.msk.bf16.vlgmr.msra.gmra.mxu3 %vm562_vm5, %v1956_v34 }
 0x7c5   :  { %2063 = vmatpush.bf16.msrb.mxu3 %v2054_v60 }
 0x7c6   :  { %v5368_v26 = vpop.eup %5367 }
 0x7c7   :  { %v5370_v58 = vpop.eup %5369  ;;  %v1955_v46 = vmul.f32 %v5368_v26, %v6249_v41 }
 0x7c8   :  { %v2091_v48 = vpop.permute.xlu2 %2090  ;;  %v1952_v22 = vmul.f32 %v5370_v58, %v6247_v30  ;;  %v5372_v36 = vpop.eup %5371 }
 0x7c9   :  { %v2096_v24 = vsel %vm566_vm3, %v2091_v48, 0  ;;  %v1963_v6 = vpack.c.bf16 %v1955_v46, %v1955_v46  ;;  %v1953_v21 = vmul.f32 %v5372_v36, %v6237_v49  ;;  %2322 = vmatpush.bf16.msra.mxu3 %v5012_v50 }
 0x7ca   :  { %2105 = vmatpush.bf16.msra.mxu1 %v2096_v24  ;;  %v1960_v39 = vpack.c.bf16 %v1952_v22, %v1952_v22 }
 0x7cb   :  { %v1961_v17 = vpack.c.bf16 %v1953_v21, %v1953_v21  ;;  %v5187_v54 = vpop.permute.xlu0 %5186 }
 0x7cc   :  { %v5188_v7 = vunpack.i.l.bf16 %v5187_v54  ;;  %v5189_v51 = vunpack.i.h.bf16 %v5187_v54 }
 0x7cd   :  { %4334 = vmatmul.msk.bf16.vlgmr.msra.gmra.mxu1 %vm562_vm5, %v1962_v55  ;;  %2323 = vmatpush.bf16.msra.mxu3 %v5011_v27 }
 0x7d0   :  { %v5192_v42 = vpop.permute.xlu2 %5191 }
 0x7d1   :  { %v5193_v12 = vunpack.i.l.bf16 %v5192_v42  ;;  %v5194_v55 = vunpack.i.h.bf16 %v5192_v42 }
 0x7d3   :  { %4335 = vmatmul.msk.bf16.vlgmr.msra.gmra.mxu2 %vm562_vm5, %v1963_v6  ;;  %v5197_v16 = vpop.permute.xlu0 %5196  ;;  %v2235_v6 = vsel %vm312_vm2, %v5882_v52, %v5189_v51 }
 0x7d4   :  { %4332 = vmatmul.msk.bf16.vlgmr.msrb.gmra.mxu3 %vm562_vm5, %v1960_v39  ;;  %v5198_v34 = vunpack.i.l.bf16 %v5197_v16  ;;  %v5199_v62 = vunpack.i.h.bf16 %v5197_v16 }
 0x7d6   :  { %v2229_v46 = vsel %vm312_vm2, %v5869_v0, %v5198_v34 }
 0x7d7   :  { %v2070_v43 = vpop.permute.xlu1 %2069 }
 0x7d8   :  { %v2075_v61 = vsel %vm566_vm3, %v2070_v43, 0  ;;  %v5217_v19 = vpop.permute.xlu2 %5216  ;;  %v2230_v43 = vsel %vm312_vm2, %v5867_v4, %v5199_v62 }
 0x7d9   :  { %2084 = vmatpush.bf16.msra.mxu0 %v2075_v61  ;;  %v5219_v39 = vunpack.i.h.bf16 %v5217_v19  ;;  %v5218_v36 = vunpack.i.l.bf16 %v5217_v19 }
 0x7db   :  { %v5207_v63 = vpop.permute.xlu0 %5206  ;;  %v2228_v4 = vsel %vm312_vm2, %v5873_v31, %v5218_v36  ;;  %v5385_v36 = vld [vmem:[%s7066_s0 + $0x8] sm:$0xff] }
 0x7dc   :  { %4333 = vmatmul.msk.bf16.vlgmr.msra.gmra.mxu0 %vm562_vm5, %v1961_v17  ;;  %v5208_v60 = vunpack.i.l.bf16 %v5207_v63  ;;  %v5209_v24 = vunpack.i.h.bf16 %v5207_v63 }
 0x7de   :  { %v2238_v21 = vsel %vm2236_vm6, %v2229_v46, %v5208_v60 }
 0x7df   :  { %v5202_v56 = vpop.permute.xlu1 %5201 }
 0x7e0   :  { %v5204_v61 = vunpack.i.h.bf16 %v5202_v56 }
 0x7e7   :  { %v5212_v26 = vpop.permute.xlu1 %5211 }
 0x819   :  { %v2002_v10 = vpop.f32.mrf.mxu0 }
 0x821   :  { %v2004_v47 = vpop.f32.mrf.mxu0 }
 0x822   :  { %v2239_v47 = vsel %vm2236_vm6, %v2230_v43, %v5209_v24 }
 0x828   :  { %v2023_v9 = vpop.f32.mrf.mxu1 }
 0x829   :  { %v5220_v11 = vpack.i.bf16 %v2023_v9, %v2002_v10  ;;  %v5203_v9 = vunpack.i.l.bf16 %v5202_v56 }
 0x82b   :  { %5221 = vrot.lane.b32.xlu0 %v5220_v11, %s5420_s20 }
 0x830   :  { %v2025_v25 = vpop.f32.mrf.mxu1 }
 0x831   :  { %v2244_v25 = vsel %vm2236_vm6, %v2235_v6, %v5194_v55 }
 0x846   :  { %v2044_v1 = vpop.f32.mrf.mxu2 }
 0x847   :  { %v1981_v30 = vpop.f32.mrf.mxu3 }
 0x84a   :  { %v2107_v41 = vpop.f32.mrf.mxu1 }
 0x84e   :  { %v2046_v59 = vpop.f32.mrf.mxu2 }
 0x84f   :  { %v1983_v35 = vpop.f32.mrf.mxu3 }
 0x850   :  { %v2234_v35 = vsel %vm312_vm2, %v5877_v38, %v5204_v61  ;;  %v5421_v61 = vmov 32.0  }
 0x851   :  { %5373 = vrcp.f32 %v5421_v61  ;;  %v5023_v61 = vld [vmem:[%s7068_s2 + $0x4c] sm:$0xf0] }
 0x852   :  { %v2109_v49 = vpop.f32.mrf.mxu1 }
 0x856   :  { %v2128_v13 = vpop.f32.mrf.mxu2 }
 0x857   :  { %v2065_v44 = vpop.f32.mrf.mxu3  ;;  %v5230_v8 = vpack.i.bf16 %v2128_v13, %v2044_v1  ;;  %v2232_v1 = vsel %vm312_vm2, %v5875_v5, %v5219_v39 }
 0x858   :  { %v5240_v18 = vpack.i.bf16 %v2065_v44, %v1981_v30  ;;  %v5214_v30 = vunpack.i.h.bf16 %v5212_v26 }
 0x859   :  { %5231 = vrot.lane.b32.xlu2 %v5230_v8, %s5420_s20  ;;  %v2086_v15 = vpop.f32.mrf.mxu0  ;;  %v2233_v8 = vsel %vm312_vm2, %v5879_v29, %v5203_v9 }
 0x85a   :  { %5241 = vrot.lane.b32.xlu0 %v5240_v18, %s5420_s20  ;;  %v5225_v53 = vpack.i.bf16 %v2107_v41, %v2086_v15  ;;  %v5213_v41 = vunpack.i.l.bf16 %v5212_v26  ;;  %v2243_v54 = vsel %vm2236_vm6, %v2234_v35, %v5214_v30 }
 0x85c   :  { %5226 = vrot.lane.b32.xlu1 %v5225_v53, %s5420_s20  ;;  %v2242_v38 = vsel %vm2236_vm6, %v2233_v8, %v5213_v41 }
 0x85e   :  { %v2130_v40 = vpop.f32.mrf.mxu2 }
 0x85f   :  { %v2067_v23 = vpop.f32.mrf.mxu3 }
 0x861   :  { %5236 = vrot.lane.b32.xlu2 %v5235_v45, %s5419_s19  ;;  %v2088_v14 = vpop.f32.mrf.mxu0  ;;  %v2231_v45 = vsel %vm312_vm2, %v5871_v2, %v5188_v7  ;;  %s4226_s19 = sshll.u32 %s5422_s18, 4  ;;  %s4227_s19 = int_to_ptr.vmem [resolvable:$true] %s4226_s19 }
 0x862   :  { %v2240_v37 = vsel %vm2236_vm6, %v2231_v45, %v5193_v12 }
 0x89d   :  { %v5222_v33 = vpop.permute.xlu0 %5221 }
 0x89e   :  { %v5223_v48 = vunpack.i.l.bf16 %v5222_v33  ;;  %v5224_v22 = vunpack.i.h.bf16 %v5222_v33 }
 0x8a0   :  { %v2247_v17 = vsel %vm2245_vm7, %v2238_v21, %v5223_v48  ;;  %v2248_v52 = vsel %vm2245_vm7, %v2239_v47, %v5224_v22 }
 0x8a1   :  { %v2254_v18 = vrot.slane %v2248_v52, 4 }
 0x8b3   :  { %v5232_v3 = vpop.permute.xlu2 %5231 }
 0x8b4   :  { %v5233_v28 = vunpack.i.l.bf16 %v5232_v3  ;;  %v5234_v10 = vunpack.i.h.bf16 %v5232_v3 }
 0x8b6   :  { %v2249_v57 = vsel %vm2245_vm7, %v2240_v37, %v5233_v28  ;;  %v2253_v49 = vsel %vm2245_vm7, %v2244_v25, %v5234_v10 }
 0x8b7   :  { %v2260_v58 = vrot.slane %v2249_v57, 4  ;;  %v2272_v42 = vrot.slane %v2253_v49, 4 }
 0x8b9   :  { %v2261_v0 = vsel %vm132_vm1, %v2260_v58, %v2247_v17  ;;  %v5374_v17 = vpop.eup %5373 }
 0x8ba   :  { %v2265_v13 = vperm.slane %v2261_v0, %v5492_v20  ;;  %v2339_v10 = vmul.f32 32.0, %v5374_v17  ;;  %vm2343_vm8 = vweird.f32 %v5374_v17 }
 0x8bb   :  { %v5237_v2 = vpop.permute.xlu2 %5236 }
 0x8bc   :  { %v5238_v11 = vunpack.i.l.bf16 %v5237_v2  ;;  %v5239_v15 = vunpack.i.h.bf16 %v5237_v2  ;;  %v2278_v19 = vrot.slane %v2265_v13, 4  ;;  %v2340_v47 = vsub.f32 1.0, %v2339_v10  ;;  %v4369_v10 = vld [vmem:[%s7068_s2 + $0x50] sm:$0xf0] }
 0x8be   :  { %v2237_v5 = vsel %vm2236_vm6, %v2228_v4, %v5238_v11  ;;  %v2241_v56 = vsel %vm2236_vm6, %v2232_v1, %v5239_v15  ;;  %v2341_v9 = vmul.f32 %v5374_v17, %v2340_v47  ;;  %v4415_v15 = vld [vmem:[%s7068_s2 + $0x80] sm:$0xf]  ;;  %vm4216_vm6 = vcmask 1041409  }
 0x8c0   :  { %v2342_v0 = vadd.f32 %v5374_v17, %v2341_v9 }
 0x8c2   :  { %v6374_v11 = vsel %vm2343_vm8, %v5374_v17, %v2342_v0  ;;  %v5015_v17 = vld [vmem:[%s7068_s2 + $0x14] sm:$0xf]  ;;  %v4375_v0 = vld [vmem:[%s7068_s2 + $0x18] sm:$0xf] }
 0x8c3   :  { %v4372_v9 = vor.u32 %v5015_v17, %v4369_v10  ;;  %v4399_v10 = vld [vmem:[%s7068_s2 + $0x30] sm:$0xf] }
 0x8cc   :  { %v5242_v59 = vpop.permute.xlu0 %5241 }
 0x8cd   :  { %v5243_v44 = vunpack.i.l.bf16 %v5242_v59  ;;  %v5244_v31 = vunpack.i.h.bf16 %v5242_v59 }
 0x8ce   :  { %v5227_v53 = vpop.permute.xlu1 %5226 }
 0x8cf   :  { %v2246_v40 = vsel %vm2245_vm7, %v2237_v5, %v5243_v44  ;;  %v5229_v23 = vunpack.i.h.bf16 %v5227_v53  ;;  %v5228_v14 = vunpack.i.l.bf16 %v5227_v53  ;;  %v2250_v7 = vsel %vm2245_vm7, %v2241_v56, %v5244_v31  ;;  %v5037_v5 = vld [vmem:[%s7068_s2 + $0xbc] sm:$0xf0]  ;;  %v5029_v53 = vld [vmem:[%s7068_s2 + $0x84] sm:$0xf] }
 0x8d0   :  { %v2255_v16 = vsel %vm132_vm1, %v2254_v18, %v2246_v40  ;;  %v4416_v31 = vor.u32 %v5037_v5, %v4415_v15  ;;  %v4417_v40 = vld [vmem:[%s7068_s2 + $0xc0] sm:$0xf0] }
 0x8d1   :  { %v2259_v29 = vperm.slane %v2255_v16, %v5492_v20  ;;  %v2252_v63 = vsel %vm2245_vm7, %v2243_v54, %v5229_v23  ;;  %v2251_v50 = vsel %vm2245_vm7, %v2242_v38, %v5228_v14  ;;  %v4423_v23 = vld [vmem:[%s7068_s2 + $0x88] sm:$0xf]  ;;  %v4420_v38 = vor.u32 %v5029_v53, %v4417_v40  ;;  %v4425_v16 = vld [vmem:[%s7068_s2 + $0xc8] sm:$0xf0]  ;;  %v5013_v56 = vld [vmem:[%s7068_s2 + $0x4] sm:$0xf] }
 0x8d2   :  { %v2266_v3 = vrot.slane %v2252_v63, 4  ;;  %v2273_v27 = vsel %vm132_vm1, %v2272_v42, %v2251_v50  ;;  %v5038_v14 = vld [vmem:[%s7068_s2 + $0xc4] sm:$0xf0]  ;;  %v5030_v42 = vld [vmem:[%s7068_s2 + $0x8c] sm:$0xf]  ;;  %2627 = vmatpush.bf16.msrb.mxu0 %v4416_v31  ;;  %vm4219_vm7 = vcmask 58368  }
 0x8d3   :  { %v2279_v12 = vsel %vm132_vm1, %v2278_v19, %v2259_v29  ;;  %v2277_v28 = vperm.slane %v2273_v27, %v5492_v20  ;;  %v4424_v54 = vor.u32 %v5038_v14, %v4423_v23  ;;  %v4351_v19 = vld [vmem:[%s7068_s2] sm:$0xf]  ;;  %v4428_v63 = vor.u32 %v5030_v42, %v4425_v16  ;;  %2641 = vmatpush.bf16.msrb.mxu1 %v4420_v38 }
 0x8d4   :  { %v2267_v45 = vsel %vm132_vm1, %v2266_v3, %v2250_v7  ;;  %v2283_v34 = vperm.slane %v2279_v12, %v5498_v32  ;;  %v5021_v50 = vld [vmem:[%s7068_s2 + $0x3c] sm:$0xf0]  ;;  %v4353_v3 = vld [vmem:[%s7068_s2 + $0x40] sm:$0xf0] }
 0x8d5   :  { %v2271_v37 = vperm.slane %v2267_v45, %v5492_v20  ;;  %v2284_v33 = vrot.slane %v2277_v28, 4  ;;  %v6363_v20 = vld [vmem:[%s7070_s4] sm:$0xff]  ;;  %2655 = vmatpush.bf16.msrb.mxu2 %v4424_v54  ;;  %v4352_v7 = vor.u32 %v5021_v50, %v4351_v19  ;;  %v4356_v12 = vor.u32 %v5013_v56, %v4353_v3  ;;  %v4359_v28 = vld [vmem:[%s7068_s2 + $0x8] sm:$0xf]  ;;  %2669 = vmatpush.bf16.msrb.mxu3 %v4428_v63  ;;  %v5034_v3 = vld [vmem:[%s7068_s2 + $0xac] sm:$0xf] }
 0x8d6   :  { %v2292_v60 = vrot.slane %v2283_v34, 4  ;;  %v2300_v58 = vperm.slane %v6363_v20, 3  ;;  %v5022_v45 = vld [vmem:[%s7068_s2 + $0x44] sm:$0xf0]  ;;  %v2383_v40 = vperm.slane %v6363_v20, 4  ;;  %v2386_v54 = vperm.slane %v6363_v20, 5 }
 0x8d7   :  { %v2285_v57 = vsel %vm132_vm1, %v2284_v33, %v2271_v37  ;;  %v5014_v37 = vld [vmem:[%s7068_s2 + $0xc] sm:$0xf]  ;;  %v4360_v33 = vor.u32 %v5022_v45, %v4359_v28  ;;  %2628 = vmatpush.bf16.msrb.mxu0 %v4352_v7  ;;  %2642 = vmatpush.bf16.msrb.mxu1 %v4356_v12  ;;  %v4447_v19 = vld [vmem:[%s7068_s2 + $0xa0] sm:$0xf]  ;;  %v4449_v20 = vld [vmem:[%s7068_s2 + $0xe0] sm:$0xf0] }
 0x8d8   :  { %v2289_v51 = vperm.slane %v2285_v57, %v5498_v32  ;;  %v5384_v32 = vld [vmem:[%s7066_s0] sm:$0xff]  ;;  %v4431_v57 = vld [vmem:[%s7068_s2 + $0x90] sm:$0xf]  ;;  %v5042_v56 = vld [vmem:[%s7068_s2 + $0xe4] sm:$0xf0] }
 0x8d9   :  { %2656 = vmatpush.bf16.msrb.mxu2 %v4360_v33  ;;  %v4383_v45 = vld [vmem:[%s7068_s2 + $0x20] sm:$0xf] }
 0x8da   :  { %v2290_v62 = vrot.slane %v2289_v51, 4  ;;  %v2293_v24 = vsel %vm132_vm1, %v2289_v51, %v2292_v60  ;;  %v5039_v51 = vld [vmem:[%s7068_s2 + $0xcc] sm:$0xf0] }
 0x8dc   :  { %v2291_v48 = vsel %vm132_vm1, %v2290_v62, %v2283_v34  ;;  %v4361_v34 = vld [vmem:[%s7068_s2 + $0x48] sm:$0xf0] }
 0x8dd   :  { %v2294_v26 = vpack.c.bf16 %v2293_v24, %v2291_v48  ;;  %v4364_v48 = vor.u32 %v5014_v37, %v4361_v34  ;;  %v4432_v24 = vor.u32 %v5039_v51, %v4431_v57  ;;  %v5025_v37 = vld [vmem:[%s7068_s2 + $0x5c] sm:$0xf0]  ;;  %v5017_v57 = vld [vmem:[%s7068_s2 + $0x24] sm:$0xf] }
 0x8de   :  { %v4385_v51 = vld [vmem:[%s7068_s2 + $0x60] sm:$0xf0] }
 0x8df   :  { %4348 = vmatmul.msk.bf16.vlgmr.msra.gmra.mxu3 %vm47_vm0, %v2294_v26  ;;  %v5031_v26 = vld [vmem:[%s7068_s2 + $0x94] sm:$0xf]  ;;  %2683 = vmatpush.bf16.msra.mxu0 %v4432_v24  ;;  %v4393_v24 = vld [vmem:[%s7068_s2 + $0x68] sm:$0xf0] }
 0x8e0   :  { %2670 = vmatpush.bf16.msrb.mxu3 %v4364_v48  ;;  %v5018_v48 = vld [vmem:[%s7068_s2 + $0x2c] sm:$0xf] }
 0x962   :  { %v2325_v55 = vpop.f32.mrf.mxu3 }
 0x963   :  { %v2326_v46 = vadd.f32 %v2325_v55, %v2300_v58 }
 0x965   :  { %v2330_v22 = vadd.f32 %v5384_v32, %v2326_v46  ;;  %v4439_v32 = vld [vmem:[%s7068_s2 + $0x98] sm:$0xf] }
 0x967   :  { %v2332_v2 = vsel %vm47_vm0, %v2330_v22, 0.0 }
 0x968   :  { %2333 = vadd.xlane.f32.xlu1 %v2332_v2  ;;  %v5032_v2 = vld [vmem:[%s7068_s2 + $0x9c] sm:$0xf] }
 0x96a   :  { %v2327_v6 = vpop.f32.mrf.mxu3 }
 0x96b   :  { %v2328_v39 = vadd.f32 %v2327_v6, %v2300_v58  ;;  %v4433_v58 = vld [vmem:[%s7068_s2 + $0xd0] sm:$0xf0] }
 0x96c   :  { %v4436_v46 = vor.u32 %v5031_v26, %v4433_v58  ;;  %v4384_v26 = vor.u32 %v5025_v37, %v4383_v45  ;;  %v4388_v58 = vor.u32 %v5017_v57, %v4385_v51  ;;  %v5063_v45 = vld [vmem:[%s7069_s3 + $0x90] sm:$0xff]  ;;  %v5046_v37 = vld [vmem:[%s7069_s3 + $0x8] sm:$0xff]  ;;  %v5045_v51 = vld [vmem:[%s7069_s3] sm:$0xff] }
 0x96d   :  { %v2331_v21 = vadd.f32 %v5385_v36, %v2328_v39  ;;  %v4441_v39 = vld [vmem:[%s7068_s2 + $0xd8] sm:$0xf0]  ;;  %v4367_v36 = vld [vmem:[%s7068_s2 + $0x10] sm:$0xf]  ;;  %v5070_v57 = vld [vmem:[%s7069_s3 + $0xc8] sm:$0xff] }
 0x96e   :  { %2697 = vmatpush.bf16.msra.mxu1 %v4436_v46  ;;  %v4368_v47 = vor.u32 %v5023_v61, %v4367_v36  ;;  %v4396_v46 = vor.u32 %v5018_v48, %v4393_v24  ;;  %v5044_v36 = vld [vmem:[%s7068_s2 + $0xf4] sm:$0xf0]  ;;  %v5061_v24 = vld [vmem:[%s7069_s3 + $0x80] sm:$0xff] }
 0x96f   :  { %v2335_v43 = vsel %vm47_vm0, %v2331_v21, 0.0  ;;  %v5092_v48 = vld [vmem:[%s7069_s3 + $0x178] sm:$0xff] }
 0x970   :  { %2336 = vadd.xlane.f32.xlu2 %v2335_v43  ;;  %v4444_v43 = vor.u32 %v5032_v2, %v4441_v39  ;;  %2684 = vmatpush.bf16.msra.mxu0 %v4368_v47  ;;  %v5035_v2 = vld [vmem:[%s7068_s2 + $0xb4] sm:$0xf]  ;;  %v4471_v39 = vld [vmem:[%s7068_s2 + $0xb8] sm:$0xf]  ;;  %v5027_v47 = vld [vmem:[%s7068_s2 + $0x6c] sm:$0xf0] }
 0x972   :  { %2725 = vmatpush.bf16.msra.mxu3 %v4444_v43  ;;  %2698 = vmatpush.bf16.msra.mxu1 %v4372_v9  ;;  %v4473_v43 = vld [vmem:[%s7068_s2 + $0xf8] sm:$0xf0]  ;;  %v4472_v9 = vor.u32 %v5044_v36, %v4471_v39  ;;  %v5090_v39 = vld [vmem:[%s7069_s3 + $0x168] sm:$0xff]  ;;  %v5081_v36 = vld [vmem:[%s7069_s3 + $0x120] sm:$0xff] }
 0x9db   :  { %v2334_v25 = vpop.xlane.xlu1 %2333 }
 0x9dc   :  { %v2345_v52 = vmul.f32 %v6374_v11, %v2334_v25  ;;  %v5024_v25 = vld [vmem:[%s7068_s2 + $0x54] sm:$0xf0] }
 0x9de   :  { %v6377_v1 = vsub.f32 %v2330_v22, %v2345_v52  ;;  %v5040_v22 = vld [vmem:[%s7068_s2 + $0xd4] sm:$0xf0]  ;;  %v5016_v52 = vld [vmem:[%s7068_s2 + $0x1c] sm:$0xf] }
 0x9df   :  { %v4440_v6 = vor.u32 %v5040_v22, %v4439_v32  ;;  %v4463_v32 = vld [vmem:[%s7068_s2 + $0xb0] sm:$0xf] }
 0x9e0   :  { %v2349_v4 = vmul.f32 %v6377_v1, %v6377_v1  ;;  %v5043_v22 = vld [vmem:[%s7068_s2 + $0xec] sm:$0xf0] }
 0x9e1   :  { %2711 = vmatpush.bf16.msra.mxu2 %v4440_v6  ;;  %v4465_v6 = vld [vmem:[%s7068_s2 + $0xf0] sm:$0xf0]  ;;  %v4464_v61 = vor.u32 %v5043_v22, %v4463_v32 }
 0x9e2   :  { %v2351_v30 = vsel %vm47_vm0, %v2349_v4, 0.0  ;;  %v4468_v17 = vor.u32 %v5035_v2, %v4465_v6  ;;  %v5091_v32 = vld [vmem:[%s7069_s3 + $0x170] sm:$0xff]  ;;  %v5082_v6 = vld [vmem:[%s7069_s3 + $0x128] sm:$0xff] }
 0x9e3   :  { %v2337_v41 = vpop.xlane.xlu2 %2336  ;;  %2352 = vadd.xlane.f32.xlu0 %v2351_v30  ;;  %v4376_v30 = vor.u32 %v5024_v25, %v4375_v0  ;;  %v5019_v25 = vld [vmem:[%s7068_s2 + $0x34] sm:$0xf] }
 0x9e4   :  { %v2346_v59 = vmul.f32 %v6374_v11, %v2337_v41  ;;  %v4377_v41 = vld [vmem:[%s7068_s2 + $0x58] sm:$0xf0]  ;;  %v5099_v22 = vld [vmem:[%s7069_s3 + $0x1b0] sm:$0xff] }
 0x9e5   :  { %2712 = vmatpush.bf16.msra.mxu2 %v4376_v30  ;;  %v5028_v30 = vld [vmem:[%s7068_s2 + $0x74] sm:$0xf0]  ;;  %v5107_v2 = vld [vmem:[%s7069_s3 + $0x1f0] sm:$0xff] }
 0x9e6   :  { %v6383_v35 = vsub.f32 %v2331_v21, %v2346_v59  ;;  %v4380_v59 = vor.u32 %v5016_v52, %v4377_v41  ;;  %v4401_v52 = vld [vmem:[%s7068_s2 + $0x70] sm:$0xf0]  ;;  %v5020_v41 = vld [vmem:[%s7068_s2 + $0x3c] sm:$0xf] }
 0x9e8   :  { %v2350_v49 = vmul.f32 %v6383_v35, %v6383_v35  ;;  %2726 = vmatpush.bf16.msra.mxu3 %v4380_v59  ;;  %v4409_v59 = vld [vmem:[%s7068_s2 + $0x78] sm:$0xf0] }
 0x9ea   :  { %v2354_v13 = vsel %vm47_vm0, %v2350_v49, 0.0 }
 0x9eb   :  { %2355 = vadd.xlane.f32.xlu1 %v2354_v13 }
 0xa56   :  { %v2353_v44 = vpop.xlane.xlu0 %2352 }
 0xa57   :  { %v2357_v8 = vmul.f32 %v2353_v44, %v6374_v11 }
 0xa59   :  { %v6389_v18 = vadd.f32 1e-05, %v2357_v8 }
 0xa5b   :  { %5375 = vrsqrt.f32 %v6389_v18  ;;  %vm2367_vm10 = vweird.f32 %v6389_v18 }
 0xa5e   :  { %v2356_v29 = vpop.xlane.xlu1 %2355 }
 0xa5f   :  { %v2358_v27 = vmul.f32 %v2356_v29, %v6374_v11  ;;  %v5041_v29 = vld [vmem:[%s7068_s2 + $0xdc] sm:$0xf0] }
 0xa60   :  { %v4448_v12 = vor.u32 %v5041_v29, %v4447_v19  ;;  %v5049_v19 = vld [vmem:[%s7069_s3 + $0x20] sm:$0xff] }
 0xa61   :  { %v5376_v60 = vpop.eup %5375  ;;  %v2360_v62 = vadd.f32 1e-05, %v2358_v27  ;;  %v4457_v27 = vld [vmem:[%s7068_s2 + $0xe8] sm:$0xf0]  ;;  %v5057_v29 = vld [vmem:[%s7069_s3 + $0x60] sm:$0xff] }
 0xa62   :  { %v2362_v55 = vmul.f32 %v5376_v60, %v6389_v18  ;;  %vm2368_vm9 = vweird.f32 %v5376_v60  ;;  %v4460_v34 = vor.u32 %v5034_v3, %v4457_v27  ;;  %v5064_v3 = vld [vmem:[%s7069_s3 + $0x98] sm:$0xff] }
 0xa63   :  { %5377 = vrsqrt.f32 %v2360_v62  ;;  %vm2369_vm11 = vmor %vm2367_vm10, %vm2368_vm9  ;;  %vm2377_vm13 = vweird.f32 %v2360_v62  ;;  %v5072_v27 = vld [vmem:[%s7069_s3 + $0xd8] sm:$0xff] }
 0xa64   :  { %v2363_v21 = vmul.f32 %v5376_v60, %v2362_v55 }
 0xa66   :  { %v2364_v4 = vmul.f32 0.5, %v2363_v21  ;;  %v5036_v21 = vld [vmem:[%s7068_s2 + $0xbc] sm:$0xf] }
 0xa67   :  { %v4476_v0 = vor.u32 %v5036_v21, %v4473_v43  ;;  %v5089_v21 = vld [vmem:[%s7069_s3 + $0x160] sm:$0xff]  ;;  %v5098_v43 = vld [vmem:[%s7069_s3 + $0x1a8] sm:$0xff] }
 0xa68   :  { %v2365_v49 = vsub.f32 1.5, %v2364_v4  ;;  %v4407_v4 = vld [vmem:[%s7068_s2 + $0x38] sm:$0xf] }
 0xa69   :  { %v5378_v13 = vpop.eup %5377 }
 0xa6a   :  { %v2366_v44 = vmul.f32 %v5376_v60, %v2365_v49  ;;  %v2372_v8 = vmul.f32 %v5378_v13, %v2360_v62  ;;  %vm2378_vm12 = vweird.f32 %v5378_v13  ;;  %v5026_v62 = vld [vmem:[%s7068_s2 + $0x64] sm:$0xf0]  ;;  %v4400_v49 = vor.u32 %v5027_v47, %v4399_v10  ;;  %v5088_v10 = vld [vmem:[%s7069_s3 + $0x158] sm:$0xff]  ;;  %v5097_v47 = vld [vmem:[%s7069_s3 + $0x1a0] sm:$0xff] }
 0xa6b   :  { %vm2379_vm14 = vmor %vm2377_vm13, %vm2378_vm12 }
 0xa6c   :  { %v2373_v15 = vmul.f32 %v5378_v13, %v2372_v8  ;;  %v2370_v5 = vsel %vm2369_vm11, %v5376_v60, %v2366_v44  ;;  %v4391_v60 = vld [vmem:[%s7068_s2 + $0x28] sm:$0xf]  ;;  %v4408_v44 = vor.u32 %v5028_v30, %v4407_v4  ;;  %v4412_v8 = vor.u32 %v5020_v41, %v4409_v59  ;;  %v5104_v4 = vld [vmem:[%s7069_s3 + $0x1d8] sm:$0xff]  ;;  %v5095_v59 = vld [vmem:[%s7069_s3 + $0x190] sm:$0xff] }
 0xa6d   :  { %v2381_v23 = vmul.f32 %v2370_v5, %v6377_v1  ;;  %v5033_v1 = vld [vmem:[%s7068_s2 + $0xa4] sm:$0xf]  ;;  %v4392_v55 = vor.u32 %v5026_v62, %v4391_v60  ;;  %v5060_v5 = vld [vmem:[%s7069_s3 + $0x78] sm:$0xff]  ;;  %v5078_v30 = vld [vmem:[%s7069_s3 + $0x108] sm:$0xff] }
 0xa6e   :  { %v2374_v53 = vmul.f32 0.5, %v2373_v15  ;;  %v4452_v28 = vor.u32 %v5033_v1, %v4449_v20  ;;  %v5052_v15 = vld [vmem:[%s7069_s3 + $0x38] sm:$0xff]  ;;  %v5065_v1 = vld [vmem:[%s7069_s3 + $0xa0] sm:$0xff]  ;;  %v5086_v41 = vld [vmem:[%s7069_s3 + $0x148] sm:$0xff] }
 0xa6f   :  { %v2384_v42 = vmul.f32 %v2383_v40, %v2381_v23  ;;  %v5059_v23 = vld [vmem:[%s7069_s3 + $0x70] sm:$0xff]  ;;  %v5073_v20 = vld [vmem:[%s7069_s3 + $0xe0] sm:$0xff]  ;;  %v5084_v62 = vld [vmem:[%s7069_s3 + $0x138] sm:$0xff] }
 0xa70   :  { %v2375_v31 = vsub.f32 1.5, %v2374_v53  ;;  %v5068_v53 = vld [vmem:[%s7069_s3 + $0xb8] sm:$0xff]  ;;  %v5053_v60 = vld [vmem:[%s7069_s3 + $0x40] sm:$0xff] }
 0xa71   :  { %v6510_v63 = vadd.f32 %v2386_v54, %v2384_v42  ;;  %v5058_v42 = vld [vmem:[%s7069_s3 + $0x68] sm:$0xff] }
 0xa72   :  { %v2376_v14 = vmul.f32 %v5378_v13, %v2375_v31  ;;  %v5076_v31 = vld [vmem:[%s7069_s3 + $0xf8] sm:$0xff] }
 0xa74   :  { %v2380_v38 = vsel %vm2379_vm14, %v5378_v13, %v2376_v14  ;;  %v4404_v13 = vor.u32 %v5019_v25, %v4401_v52  ;;  %v5067_v14 = vld [vmem:[%s7069_s3 + $0xb0] sm:$0xff]  ;;  %v5096_v52 = vld [vmem:[%s7069_s3 + $0x198] sm:$0xff] }
 0xa75   :  { %v2382_v16 = vmul.f32 %v2380_v38, %v6383_v35  ;;  %v4455_v35 = vld [vmem:[%s7068_s2 + $0xa8] sm:$0xf]  ;;  %v5075_v38 = vld [vmem:[%s7069_s3 + $0xf0] sm:$0xff] }
 0xa76   :  { %v4456_v33 = vor.u32 %v5042_v56, %v4455_v35  ;;  %v5048_v35 = vld [vmem:[%s7069_s3 + $0x18] sm:$0xff]  ;;  %v5087_v25 = vld [vmem:[%s7069_s3 + $0x150] sm:$0xff] }
 0xa77   :  { %v2385_v18 = vmul.f32 %v2383_v40, %v2382_v16  ;;  %v5051_v40 = vld [vmem:[%s7069_s3 + $0x30] sm:$0xff]  ;;  %v5066_v16 = vld [vmem:[%s7069_s3 + $0xa8] sm:$0xff]  ;;  %v5056_v56 = vld [vmem:[%s7069_s3 + $0x58] sm:$0xff] }
 0xa79   :  { %v6512_v50 = vadd.f32 %v2386_v54, %v2385_v18  ;;  %v5050_v54 = vld [vmem:[%s7069_s3 + $0x28] sm:$0xff] }
 0xa7a   :  { %v5074_v18 = vld [vmem:[%s7069_s3 + $0xe8] sm:$0xff] }
 0xa7b   :  { %v6525_v7 = vpack.c.bf16 %v6512_v50, %v6510_v63 }
 0xa7d   :  { %4477 = vmatmul.msk.bf16.vlgmr.msrb.gmra.mxu0 %vm47_vm0, %v6525_v7  ;;  %4478 = vmatmul.msk.bf16.vlgmr.msrb.gmra.mxu1 %vm47_vm0, %v6525_v7 }
 0xa7e   :  { %4479 = vmatmul.msk.bf16.vlgmr.msrb.gmra.mxu2 %vm47_vm0, %v6525_v7  ;;  %4480 = vmatmul.msk.bf16.vlgmr.msrb.gmra.mxu3 %vm47_vm0, %v6525_v7 }
 0xa7f   :  { %2739 = vmatpush.bf16.msrb.mxu0 %v4448_v12  ;;  %2753 = vmatpush.bf16.msrb.mxu1 %v4452_v28  ;;  %v5047_v12 = vld [vmem:[%s7069_s3 + $0x10] sm:$0xff] }
 0xa80   :  { %2767 = vmatpush.bf16.msrb.mxu2 %v4456_v33  ;;  %2781 = vmatpush.bf16.msrb.mxu3 %v4460_v34  ;;  %v5055_v28 = vld [vmem:[%s7069_s3 + $0x50] sm:$0xff]  ;;  %v5054_v33 = vld [vmem:[%s7069_s3 + $0x48] sm:$0xff] }
 0xa81   :  { %v5062_v34 = vld [vmem:[%s7069_s3 + $0x88] sm:$0xff] }
 0xa83   :  { %2740 = vmatpush.bf16.msrb.mxu0 %v4384_v26  ;;  %2754 = vmatpush.bf16.msrb.mxu1 %v4388_v58  ;;  %v5069_v26 = vld [vmem:[%s7069_s3 + $0xc0] sm:$0xff]  ;;  %v5100_v58 = vld [vmem:[%s7069_s3 + $0x1b8] sm:$0xff] }
 0xa84   :  { %2768 = vmatpush.bf16.msrb.mxu2 %v4392_v55  ;;  %2782 = vmatpush.bf16.msrb.mxu3 %v4396_v46  ;;  %v5108_v55 = vld [vmem:[%s7069_s3 + $0x1f8] sm:$0xff]  ;;  %v5083_v46 = vld [vmem:[%s7069_s3 + $0x130] sm:$0xff] }
 0xa8d   :  { %4481 = vmatmul.msk.bf16.vlgmr.msra.gmra.mxu0 %vm47_vm0, %v6525_v7  ;;  %4482 = vmatmul.msk.bf16.vlgmr.msra.gmra.mxu1 %vm47_vm0, %v6525_v7 }
 0xa8e   :  { %4483 = vmatmul.msk.bf16.vlgmr.msra.gmra.mxu2 %vm47_vm0, %v6525_v7  ;;  %4484 = vmatmul.msk.bf16.vlgmr.msra.gmra.mxu3 %vm47_vm0, %v6525_v7 }
 0xa8f   :  { %2795 = vmatpush.bf16.msra.mxu0 %v4464_v61  ;;  %2809 = vmatpush.bf16.msra.mxu1 %v4468_v17  ;;  %v5106_v61 = vld [vmem:[%s7069_s3 + $0x1e8] sm:$0xff]  ;;  %v5080_v17 = vld [vmem:[%s7069_s3 + $0x118] sm:$0xff] }
 0xa90   :  { %2823 = vmatpush.bf16.msra.mxu2 %v4472_v9  ;;  %2837 = vmatpush.bf16.msra.mxu3 %v4476_v0  ;;  %v5105_v9 = vld [vmem:[%s7069_s3 + $0x1e0] sm:$0xff]  ;;  %v5079_v0 = vld [vmem:[%s7069_s3 + $0x110] sm:$0xff] }
 0xa93   :  { %2796 = vmatpush.bf16.msra.mxu0 %v4400_v49  ;;  %2810 = vmatpush.bf16.msra.mxu1 %v4404_v13  ;;  %v5103_v49 = vld [vmem:[%s7069_s3 + $0x1d0] sm:$0xff]  ;;  %v5077_v13 = vld [vmem:[%s7069_s3 + $0x100] sm:$0xff] }
 0xa94   :  { %2824 = vmatpush.bf16.msra.mxu2 %v4408_v44  ;;  %2838 = vmatpush.bf16.msra.mxu3 %v4412_v8  ;;  %v5085_v44 = vld [vmem:[%s7069_s3 + $0x140] sm:$0xff]  ;;  %v5094_v8 = vld [vmem:[%s7069_s3 + $0x188] sm:$0xff] }
 0xa9d   :  { %4485 = vmatmul.msk.bf16.vlgmr.msrb.gmra.mxu0 %vm47_vm0, %v6525_v7  ;;  %4486 = vmatmul.msk.bf16.vlgmr.msrb.gmra.mxu1 %vm47_vm0, %v6525_v7 }
 0xa9e   :  { %4487 = vmatmul.msk.bf16.vlgmr.msrb.gmra.mxu2 %vm47_vm0, %v6525_v7  ;;  %4488 = vmatmul.msk.bf16.vlgmr.msrb.gmra.mxu3 %vm47_vm0, %v6525_v7 }
 0xa9f   :  { %3918 = vmatpush.bf16.msrb.mxu0 %v5052_v15  ;;  %3932 = vmatpush.bf16.msrb.mxu1 %v5060_v5  ;;  %v5102_v15 = vld [vmem:[%s7069_s3 + $0x1c8] sm:$0xff]  ;;  %v5093_v5 = vld [vmem:[%s7069_s3 + $0x180] sm:$0xff] }
 0xaa0   :  { %3946 = vmatpush.bf16.msrb.mxu2 %v5068_v53  ;;  %3960 = vmatpush.bf16.msrb.mxu3 %v5076_v31  ;;  %v5101_v53 = vld [vmem:[%s7069_s3 + $0x1c0] sm:$0xff] }
 0xaa1   :  { %v6826_v31 = vld [vmem:[%s7071_s5] sm:$0xff] }
 0xaa3   :  { %3919 = vmatpush.bf16.msrb.mxu0 %v5051_v40  ;;  %3933 = vmatpush.bf16.msrb.mxu1 %v5059_v23 }
 0xaa4   :  { %3947 = vmatpush.bf16.msrb.mxu2 %v5067_v14  ;;  %3961 = vmatpush.bf16.msrb.mxu3 %v5075_v38  ;;  %v2426_v14 = vperm.slane %v6826_v31, 0  ;;  %v2427_v38 = vperm.slane %v6826_v31, 1 }
 0xaa7   :  { %3920 = vmatpush.bf16.msrb.mxu0 %v5050_v54  ;;  %3934 = vmatpush.bf16.msrb.mxu1 %v5058_v42 }
 0xaa8   :  { %3948 = vmatpush.bf16.msrb.mxu2 %v5066_v16  ;;  %3962 = vmatpush.bf16.msrb.mxu3 %v5074_v18 }
 0xaab   :  { %3921 = vmatpush.bf16.msrb.mxu0 %v5049_v19  ;;  %3935 = vmatpush.bf16.msrb.mxu1 %v5057_v29 }
 0xaac   :  { %3949 = vmatpush.bf16.msrb.mxu2 %v5065_v1  ;;  %3963 = vmatpush.bf16.msrb.mxu3 %v5073_v20 }
 0xaad   :  { %4489 = vmatmul.msk.bf16.vlgmr.msra.gmra.mxu0 %vm47_vm0, %v6525_v7  ;;  %4490 = vmatmul.msk.bf16.vlgmr.msra.gmra.mxu1 %vm47_vm0, %v6525_v7 }
 0xaae   :  { %4491 = vmatmul.msk.bf16.vlgmr.msra.gmra.mxu2 %vm47_vm0, %v6525_v7  ;;  %4492 = vmatmul.msk.bf16.vlgmr.msra.gmra.mxu3 %vm47_vm0, %v6525_v7  ;;  %v5071_v7 = vld [vmem:[%s7069_s3 + $0xd0] sm:$0xff] }
 0xaaf   :  { %3922 = vmatpush.bf16.msrb.mxu0 %v5048_v35  ;;  %3936 = vmatpush.bf16.msrb.mxu1 %v5056_v56  ;;  %v2428_v35 = vperm.slane %v6826_v31, 2  ;;  %v2429_v56 = vperm.slane %v6826_v31, 3 }
 0xab0   :  { %3950 = vmatpush.bf16.msrb.mxu2 %v5064_v3  ;;  %3964 = vmatpush.bf16.msrb.mxu3 %v5072_v27 }
 0xab3   :  { %3923 = vmatpush.bf16.msrb.mxu0 %v5047_v12  ;;  %3937 = vmatpush.bf16.msrb.mxu1 %v5055_v28 }
 0xab4   :  { %3951 = vmatpush.bf16.msrb.mxu2 %v5063_v45  ;;  %3965 = vmatpush.bf16.msrb.mxu3 %v5071_v7  ;;  %v5116_v45 = vld [vmem:[%s7069_s3 + $0x238] sm:$0xff] }
 0xab5   :  { %v5124_v7 = vld [vmem:[%s7069_s3 + $0x278] sm:$0xff] }
 0xab7   :  { %3924 = vmatpush.bf16.msrb.mxu0 %v5046_v37  ;;  %3938 = vmatpush.bf16.msrb.mxu1 %v5054_v33 }
 0xab8   :  { %3952 = vmatpush.bf16.msrb.mxu2 %v5062_v34  ;;  %3966 = vmatpush.bf16.msrb.mxu3 %v5070_v57 }
 0xabb   :  { %3925 = vmatpush.bf16.msrb.mxu0 %v5045_v51  ;;  %3939 = vmatpush.bf16.msrb.mxu1 %v5053_v60 }
 0xabc   :  { %3953 = vmatpush.bf16.msrb.mxu2 %v5061_v24  ;;  %3967 = vmatpush.bf16.msrb.mxu3 %v5069_v26 }
 0xabf   :  { %3974 = vmatpush.bf16.msra.mxu0 %v5084_v62  ;;  %3988 = vmatpush.bf16.msra.mxu1 %v5092_v48 }
 0xac0   :  { %4002 = vmatpush.bf16.msra.mxu2 %v5100_v58  ;;  %4016 = vmatpush.bf16.msra.mxu3 %v5108_v55  ;;  %v5115_v58 = vld [vmem:[%s7069_s3 + $0x230] sm:$0xff] }
 0xac1   :  { %v5123_v55 = vld [vmem:[%s7069_s3 + $0x270] sm:$0xff] }
 0xac3   :  { %3975 = vmatpush.bf16.msra.mxu0 %v5083_v46  ;;  %3989 = vmatpush.bf16.msra.mxu1 %v5091_v32 }
 0xac4   :  { %4003 = vmatpush.bf16.msra.mxu2 %v5099_v22  ;;  %4017 = vmatpush.bf16.msra.mxu3 %v5107_v2 }
 0xac7   :  { %3976 = vmatpush.bf16.msra.mxu0 %v5082_v6  ;;  %3990 = vmatpush.bf16.msra.mxu1 %v5090_v39  ;;  %v2430_v6 = vperm.slane %v6826_v31, 4  ;;  %v2431_v39 = vperm.slane %v6826_v31, 5 }
 0xac8   :  { %4004 = vmatpush.bf16.msra.mxu2 %v5098_v43  ;;  %4018 = vmatpush.bf16.msra.mxu3 %v5106_v61 }
 0xacb   :  { %3977 = vmatpush.bf16.msra.mxu0 %v5081_v36  ;;  %3991 = vmatpush.bf16.msra.mxu1 %v5089_v21  ;;  %v5132_v36 = vld [vmem:[%s7069_s3 + $0x2b8] sm:$0xff] }
 0xacc   :  { %4005 = vmatpush.bf16.msra.mxu2 %v5097_v47  ;;  %4019 = vmatpush.bf16.msra.mxu3 %v5105_v9  ;;  %v5140_v21 = vld [vmem:[%s7069_s3 + $0x2f8] sm:$0xff] }
 0xacf   :  { %3978 = vmatpush.bf16.msra.mxu0 %v5080_v17  ;;  %3992 = vmatpush.bf16.msra.mxu1 %v5088_v10  ;;  %v5114_v17 = vld [vmem:[%s7069_s3 + $0x228] sm:$0xff] }
 0xad0   :  { %4006 = vmatpush.bf16.msra.mxu2 %v5096_v52  ;;  %4020 = vmatpush.bf16.msra.mxu3 %v5104_v4  ;;  %v5122_v10 = vld [vmem:[%s7069_s3 + $0x268] sm:$0xff]  ;;  %v5131_v52 = vld [vmem:[%s7069_s3 + $0x2b0] sm:$0xff] }
 0xad1   :  { %v5139_v4 = vld [vmem:[%s7069_s3 + $0x2f0] sm:$0xff] }
 0xad3   :  { %3979 = vmatpush.bf16.msra.mxu0 %v5079_v0  ;;  %3993 = vmatpush.bf16.msra.mxu1 %v5087_v25 }
 0xad4   :  { %4007 = vmatpush.bf16.msra.mxu2 %v5095_v59  ;;  %4021 = vmatpush.bf16.msra.mxu3 %v5103_v49  ;;  %v5113_v59 = vld [vmem:[%s7069_s3 + $0x220] sm:$0xff] }
 0xad5   :  { %v5121_v49 = vld [vmem:[%s7069_s3 + $0x260] sm:$0xff] }
 0xad7   :  { %3980 = vmatpush.bf16.msra.mxu0 %v5078_v30  ;;  %3994 = vmatpush.bf16.msra.mxu1 %v5086_v41 }
 0xad8   :  { %4008 = vmatpush.bf16.msra.mxu2 %v5094_v8  ;;  %4022 = vmatpush.bf16.msra.mxu3 %v5102_v15  ;;  %v2432_v8 = vperm.slane %v6826_v31, 6  ;;  %v2433_v15 = vperm.slane %v6826_v31, 7  ;;  %v5112_v31 = vld [vmem:[%s7069_s3 + $0x218] sm:$0xff] }
 0xadb   :  { %3981 = vmatpush.bf16.msra.mxu0 %v5077_v13  ;;  %3995 = vmatpush.bf16.msra.mxu1 %v5085_v44 }
 0xadc   :  { %4009 = vmatpush.bf16.msra.mxu2 %v5093_v5  ;;  %4023 = vmatpush.bf16.msra.mxu3 %v5101_v53 }
 0xafa   :  { %v2630_v40 = vpop.f32.mrf.mxu0  ;;  %v2644_v23 = vpop.f32.mrf.mxu1 }
 0xafb   :  { %v2631_v54 = vadd.f32 %v2630_v40, %v2426_v14  ;;  %v2645_v42 = vadd.f32 %v2644_v23, %v2427_v38 }
 0xafd   :  { %v2845_v3 = vmax.f32 %v2631_v54, 0.0  ;;  %v2846_v27 = vmax.f32 %v2645_v42, 0.0 }
 0xb01   :  { %v2658_v16 = vpop.f32.mrf.mxu2  ;;  %v2672_v18 = vpop.f32.mrf.mxu3 }
 0xb02   :  { %v2632_v19 = vpop.f32.mrf.mxu0  ;;  %v2646_v29 = vpop.f32.mrf.mxu1  ;;  %v2659_v34 = vadd.f32 %v2658_v16, %v2428_v35  ;;  %v2673_v57 = vadd.f32 %v2672_v18, %v2429_v56  ;;  %v5120_v16 = vld [vmem:[%s7069_s3 + $0x258] sm:$0xff] }
 0xb03   :  { %v2633_v1 = vadd.f32 %v2632_v19, %v2426_v14  ;;  %v2647_v20 = vadd.f32 %v2646_v29, %v2427_v38  ;;  %v5130_v14 = vld [vmem:[%s7069_s3 + $0x2a8] sm:$0xff] }
 0xb04   :  { %v2847_v46 = vmax.f32 %v2659_v34, 0.0  ;;  %v2848_v32 = vmax.f32 %v2673_v57, 0.0  ;;  %v5138_v38 = vld [vmem:[%s7069_s3 + $0x2e8] sm:$0xff] }
 0xb05   :  { %v2861_v12 = vmax.f32 %v2633_v1, 0.0  ;;  %v2862_v28 = vmax.f32 %v2647_v20, 0.0  ;;  %v5129_v20 = vld [vmem:[%s7069_s3 + $0x2a0] sm:$0xff] }
 0xb07   :  { %v2877_v37 = vpack.c.bf16 %v2861_v12, %v2845_v3  ;;  %v2878_v33 = vpack.c.bf16 %v2862_v28, %v2846_v27  ;;  %v6893_v27 = vld [vmem:[%s7071_s5 + $0x8] sm:$0xff] }
 0xb09   :  { %v2660_v51 = vpop.f32.mrf.mxu2  ;;  %v2674_v60 = vpop.f32.mrf.mxu3  ;;  %3926 = vmatmul.bf16.vlgmr.msrb.gmra.mxu0 %v2877_v37  ;;  %3940 = vmatmul.bf16.vlgmr.msrb.gmra.mxu1 %v2878_v33 }
 0xb0a   :  { %v2661_v62 = vadd.f32 %v2660_v51, %v2428_v35  ;;  %v2675_v48 = vadd.f32 %v2674_v60, %v2429_v56  ;;  %4030 = vmatpush.bf16.msrb.mxu0 %v5116_v45  ;;  %4044 = vmatpush.bf16.msrb.mxu1 %v5124_v7  ;;  %v2686_v24 = vpop.f32.mrf.mxu0  ;;  %v2700_v26 = vpop.f32.mrf.mxu1  ;;  %v5137_v35 = vld [vmem:[%s7069_s3 + $0x2e0] sm:$0xff]  ;;  %v5111_v45 = vld [vmem:[%s7069_s3 + $0x210] sm:$0xff]  ;;  %v2434_v51 = vperm.slane %v6893_v27, 0  ;;  %v2435_v60 = vperm.slane %v6893_v27, 1 }
 0xb0b   :  { %v2687_v47 = vadd.f32 %v2686_v24, %v2430_v6  ;;  %v2701_v9 = vadd.f32 %v2700_v26, %v2431_v39  ;;  %v5119_v7 = vld [vmem:[%s7069_s3 + $0x250] sm:$0xff] }
 0xb0c   :  { %v2863_v22 = vmax.f32 %v2661_v62, 0.0  ;;  %v2864_v2 = vmax.f32 %v2675_v48, 0.0  ;;  %v5128_v62 = vld [vmem:[%s7069_s3 + $0x298] sm:$0xff] }
 0xb0d   :  { %v2849_v5 = vmax.f32 %v2687_v47, 0.0  ;;  %v2850_v53 = vmax.f32 %v2701_v9, 0.0  ;;  %v5136_v48 = vld [vmem:[%s7069_s3 + $0x2d8] sm:$0xff]  ;;  %v2436_v47 = vperm.slane %v6893_v27, 2  ;;  %v2437_v9 = vperm.slane %v6893_v27, 3 }
 0xb0e   :  { %v2879_v43 = vpack.c.bf16 %v2863_v22, %v2847_v46  ;;  %v2880_v61 = vpack.c.bf16 %v2864_v2, %v2848_v32  ;;  %4031 = vmatpush.bf16.msrb.mxu0 %v5115_v58  ;;  %4045 = vmatpush.bf16.msrb.mxu1 %v5123_v55  ;;  %v5110_v58 = vld [vmem:[%s7069_s3 + $0x208] sm:$0xff] }
 0xb0f   :  { %v5118_v55 = vld [vmem:[%s7069_s3 + $0x248] sm:$0xff] }
 0xb10   :  { %3954 = vmatmul.bf16.vlgmr.msrb.gmra.mxu2 %v2879_v43  ;;  %3968 = vmatmul.bf16.vlgmr.msrb.gmra.mxu3 %v2880_v61 }
 0xb11   :  { %4058 = vmatpush.bf16.msrb.mxu2 %v5132_v36  ;;  %4072 = vmatpush.bf16.msrb.mxu3 %v5140_v21  ;;  %v2714_v0 = vpop.f32.mrf.mxu2  ;;  %v2728_v25 = vpop.f32.mrf.mxu3 }
 0xb12   :  { %4032 = vmatpush.bf16.msrb.mxu0 %v5114_v17  ;;  %4046 = vmatpush.bf16.msrb.mxu1 %v5122_v10  ;;  %v2688_v30 = vpop.f32.mrf.mxu0  ;;  %v2702_v41 = vpop.f32.mrf.mxu1  ;;  %v2715_v18 = vadd.f32 %v2714_v0, %v2432_v8  ;;  %v2729_v19 = vadd.f32 %v2728_v25, %v2433_v15  ;;  %v5109_v17 = vld [vmem:[%s7069_s3 + $0x200] sm:$0xff]  ;;  %v5148_v0 = vld [vmem:[%s7069_s3 + $0x338] sm:$0xff] }
 0xb13   :  { %v2689_v13 = vadd.f32 %v2688_v30, %v2430_v6  ;;  %v2703_v44 = vadd.f32 %v2702_v41, %v2431_v39  ;;  %v5127_v6 = vld [vmem:[%s7069_s3 + $0x290] sm:$0xff]  ;;  %v5117_v10 = vld [vmem:[%s7069_s3 + $0x240] sm:$0xff]  ;;  %v5156_v25 = vld [vmem:[%s7069_s3 + $0x378] sm:$0xff] }
 0xb14   :  { %v2851_v37 = vmax.f32 %v2715_v18, 0.0  ;;  %v2852_v33 = vmax.f32 %v2729_v19, 0.0  ;;  %v5135_v39 = vld [vmem:[%s7069_s3 + $0x2d0] sm:$0xff] }
 0xb15   :  { %v2865_v40 = vmax.f32 %v2689_v13, 0.0  ;;  %v2866_v23 = vmax.f32 %v2703_v44, 0.0  ;;  %4059 = vmatpush.bf16.msrb.mxu2 %v5131_v52  ;;  %4073 = vmatpush.bf16.msrb.mxu3 %v5139_v4 }
 0xb16   :  { %4033 = vmatpush.bf16.msrb.mxu0 %v5113_v59  ;;  %4047 = vmatpush.bf16.msrb.mxu1 %v5121_v49  ;;  %v5126_v59 = vld [vmem:[%s7069_s3 + $0x288] sm:$0xff] }
 0xb17   :  { %v2881_v54 = vpack.c.bf16 %v2865_v40, %v2849_v5  ;;  %v2882_v42 = vpack.c.bf16 %v2866_v23, %v2850_v53  ;;  %v5134_v49 = vld [vmem:[%s7069_s3 + $0x2c8] sm:$0xff]  ;;  %v5147_v5 = vld [vmem:[%s7069_s3 + $0x330] sm:$0xff] }
 0xb18   :  { %v5155_v53 = vld [vmem:[%s7069_s3 + $0x370] sm:$0xff] }
 0xb19   :  { %4060 = vmatpush.bf16.msrb.mxu2 %v5130_v14  ;;  %4074 = vmatpush.bf16.msrb.mxu3 %v5138_v38  ;;  %v2716_v29 = vpop.f32.mrf.mxu2  ;;  %v2730_v1 = vpop.f32.mrf.mxu3  ;;  %v5125_v14 = vld [vmem:[%s7069_s3 + $0x280] sm:$0xff] }
 0xb1a   :  { %v2717_v56 = vadd.f32 %v2716_v29, %v2432_v8  ;;  %v2731_v3 = vadd.f32 %v2730_v1, %v2433_v15  ;;  %3982 = vmatmul.bf16.vlgmr.msra.gmra.mxu0 %v2881_v54  ;;  %3996 = vmatmul.bf16.vlgmr.msra.gmra.mxu1 %v2882_v42  ;;  %v2742_v12 = vpop.f32.mrf.mxu0  ;;  %v2756_v28 = vpop.f32.mrf.mxu1  ;;  %v5133_v38 = vld [vmem:[%s7069_s3 + $0x2c0] sm:$0xff] }
 0xb1b   :  { %4034 = vmatpush.bf16.msrb.mxu0 %v5112_v31  ;;  %4048 = vmatpush.bf16.msrb.mxu1 %v5120_v16  ;;  %v2743_v46 = vadd.f32 %v2742_v12, %v2434_v51  ;;  %v2757_v32 = vadd.f32 %v2756_v28, %v2435_v60  ;;  %v5164_v31 = vld [vmem:[%s7069_s3 + $0x3b8] sm:$0xff]  ;;  %v5163_v12 = vld [vmem:[%s7069_s3 + $0x3b0] sm:$0xff] }
 0xb1c   :  { %v2867_v34 = vmax.f32 %v2717_v56, 0.0  ;;  %v2868_v57 = vmax.f32 %v2731_v3, 0.0  ;;  %v5172_v16 = vld [vmem:[%s7069_s3 + $0x3f8] sm:$0xff]  ;;  %v5171_v28 = vld [vmem:[%s7069_s3 + $0x3f0] sm:$0xff] }
 0xb1d   :  { %4061 = vmatpush.bf16.msrb.mxu2 %v5129_v20  ;;  %4075 = vmatpush.bf16.msrb.mxu3 %v5137_v35  ;;  %v2853_v52 = vmax.f32 %v2743_v46, 0.0  ;;  %v2854_v4 = vmax.f32 %v2757_v32, 0.0  ;;  %v5146_v20 = vld [vmem:[%s7069_s3 + $0x328] sm:$0xff] }
 0xb1e   :  { %v2883_v24 = vpack.c.bf16 %v2867_v34, %v2851_v37  ;;  %v2884_v26 = vpack.c.bf16 %v2868_v57, %v2852_v33  ;;  %v5154_v35 = vld [vmem:[%s7069_s3 + $0x368] sm:$0xff]  ;;  %v5145_v37 = vld [vmem:[%s7069_s3 + $0x320] sm:$0xff] }
 0xb1f   :  { %4035 = vmatpush.bf16.msrb.mxu0 %v5111_v45  ;;  %4049 = vmatpush.bf16.msrb.mxu1 %v5119_v7  ;;  %v5153_v33 = vld [vmem:[%s7069_s3 + $0x360] sm:$0xff]  ;;  %v5162_v34 = vld [vmem:[%s7069_s3 + $0x3a8] sm:$0xff] }
 0xb20   :  { %4010 = vmatmul.bf16.vlgmr.msra.gmra.mxu2 %v2883_v24  ;;  %4024 = vmatmul.bf16.vlgmr.msra.gmra.mxu3 %v2884_v26  ;;  %v5170_v57 = vld [vmem:[%s7069_s3 + $0x3e8] sm:$0xff]  ;;  %v5161_v24 = vld [vmem:[%s7069_s3 + $0x3a0] sm:$0xff] }
 0xb21   :  { %4062 = vmatpush.bf16.msrb.mxu2 %v5128_v62  ;;  %4076 = vmatpush.bf16.msrb.mxu3 %v5136_v48  ;;  %v2770_v22 = vpop.f32.mrf.mxu2  ;;  %v2784_v2 = vpop.f32.mrf.mxu3  ;;  %v5169_v26 = vld [vmem:[%s7069_s3 + $0x3e0] sm:$0xff] }
 0xb22   :  { %v2744_v36 = vpop.f32.mrf.mxu0  ;;  %v2758_v21 = vpop.f32.mrf.mxu1  ;;  %v2771_v8 = vadd.f32 %v2770_v22, %v2436_v47  ;;  %v2785_v15 = vadd.f32 %v2784_v2, %v2437_v9  ;;  %v5160_v22 = vld [vmem:[%s7069_s3 + $0x398] sm:$0xff] }
 0xb23   :  { %4036 = vmatpush.bf16.msrb.mxu0 %v5110_v58  ;;  %4050 = vmatpush.bf16.msrb.mxu1 %v5118_v55  ;;  %v2745_v43 = vadd.f32 %v2744_v36, %v2434_v51  ;;  %v2759_v61 = vadd.f32 %v2758_v21, %v2435_v60  ;;  %v5144_v51 = vld [vmem:[%s7069_s3 + $0x318] sm:$0xff]  ;;  %v5143_v58 = vld [vmem:[%s7069_s3 + $0x310] sm:$0xff]  ;;  %v5142_v36 = vld [vmem:[%s7069_s3 + $0x308] sm:$0xff] }
 0xb24   :  { %v2855_v18 = vmax.f32 %v2771_v8, 0.0  ;;  %v2856_v19 = vmax.f32 %v2785_v15, 0.0  ;;  %v5152_v60 = vld [vmem:[%s7069_s3 + $0x358] sm:$0xff]  ;;  %v5151_v55 = vld [vmem:[%s7069_s3 + $0x350] sm:$0xff]  ;;  %v5150_v21 = vld [vmem:[%s7069_s3 + $0x348] sm:$0xff] }
 0xb25   :  { %v2869_v30 = vmax.f32 %v2745_v43, 0.0  ;;  %v2870_v41 = vmax.f32 %v2759_v61, 0.0  ;;  %4063 = vmatpush.bf16.msrb.mxu2 %v5127_v6  ;;  %4077 = vmatpush.bf16.msrb.mxu3 %v5135_v39  ;;  %v5168_v2 = vld [vmem:[%s7069_s3 + $0x3d8] sm:$0xff]  ;;  %v2438_v6 = vperm.slane %v6893_v27, 4  ;;  %v2439_v39 = vperm.slane %v6893_v27, 5 }
 0xb27   :  { %v2885_v13 = vpack.c.bf16 %v2869_v30, %v2853_v52  ;;  %v2886_v44 = vpack.c.bf16 %v2870_v41, %v2854_v4  ;;  %4037 = vmatpush.bf16.msrb.mxu0 %v5109_v17  ;;  %4051 = vmatpush.bf16.msrb.mxu1 %v5117_v10  ;;  %v5159_v17 = vld [vmem:[%s7069_s3 + $0x390] sm:$0xff]  ;;  %v5141_v52 = vld [vmem:[%s7069_s3 + $0x300] sm:$0xff]  ;;  %v2440_v30 = vperm.slane %v6893_v27, 6  ;;  %v2441_v41 = vperm.slane %v6893_v27, 7 }
 0xb28   :  { %v5167_v10 = vld [vmem:[%s7069_s3 + $0x3d0] sm:$0xff]  ;;  %v5149_v4 = vld [vmem:[%s7069_s3 + $0x340] sm:$0xff] }
 0xb29   :  { %4064 = vmatpush.bf16.msrb.mxu2 %v5126_v59  ;;  %4078 = vmatpush.bf16.msrb.mxu3 %v5134_v49  ;;  %v2772_v40 = vpop.f32.mrf.mxu2  ;;  %v2786_v23 = vpop.f32.mrf.mxu3 }
 0xb2a   :  { %v2773_v54 = vadd.f32 %v2772_v40, %v2436_v47  ;;  %v2787_v42 = vadd.f32 %v2786_v23, %v2437_v9  ;;  %4038 = vmatmul.bf16.vlgmr.msrb.gmra.mxu0 %v2885_v13  ;;  %4052 = vmatmul.bf16.vlgmr.msrb.gmra.mxu1 %v2886_v44  ;;  %v2798_v45 = vpop.f32.mrf.mxu0  ;;  %v2812_v7 = vpop.f32.mrf.mxu1  ;;  %v5158_v13 = vld [vmem:[%s7069_s3 + $0x388] sm:$0xff] }
 0xb2b   :  { %4086 = vmatpush.bf16.msra.mxu0 %v5148_v0  ;;  %4100 = vmatpush.bf16.msra.mxu1 %v5156_v25  ;;  %v2799_v47 = vadd.f32 %v2798_v45, %v2438_v6  ;;  %v2813_v9 = vadd.f32 %v2812_v7, %v2439_v39  ;;  %v5166_v44 = vld [vmem:[%s7069_s3 + $0x3c8] sm:$0xff] }
 0xb2c   :  { %v2871_v29 = vmax.f32 %v2773_v54, 0.0  ;;  %v2872_v1 = vmax.f32 %v2787_v42, 0.0  ;;  %v5165_v54 = vld [vmem:[%s7069_s3 + $0x3c0] sm:$0xff] }
 0xb2d   :  { %4065 = vmatpush.bf16.msrb.mxu2 %v5125_v14  ;;  %4079 = vmatpush.bf16.msrb.mxu3 %v5133_v38  ;;  %v2857_v8 = vmax.f32 %v2799_v47, 0.0  ;;  %v2858_v15 = vmax.f32 %v2813_v9, 0.0  ;;  %v5157_v38 = vld [vmem:[%s7069_s3 + $0x380] sm:$0xff] }
 0xb2e   :  { %v2887_v56 = vpack.c.bf16 %v2871_v29, %v2855_v18  ;;  %v2888_v3 = vpack.c.bf16 %v2872_v1, %v2856_v19 }
 0xb2f   :  { %4087 = vmatpush.bf16.msra.mxu0 %v5147_v5  ;;  %4101 = vmatpush.bf16.msra.mxu1 %v5155_v53 }
 0xb30   :  { %4066 = vmatmul.bf16.vlgmr.msrb.gmra.mxu2 %v2887_v56  ;;  %4080 = vmatmul.bf16.vlgmr.msrb.gmra.mxu3 %v2888_v3 }
 0xb31   :  { %4114 = vmatpush.bf16.msra.mxu2 %v5164_v31  ;;  %4128 = vmatpush.bf16.msra.mxu3 %v5172_v16  ;;  %v2826_v62 = vpop.f32.mrf.mxu2  ;;  %v2840_v48 = vpop.f32.mrf.mxu3 }
 0xb32   :  { %v2800_v46 = vpop.f32.mrf.mxu0  ;;  %v2814_v32 = vpop.f32.mrf.mxu1  ;;  %v2827_v40 = vadd.f32 %v2826_v62, %v2440_v30  ;;  %v2841_v27 = vadd.f32 %v2840_v48, %v2441_v41 }
 0xb33   :  { %4088 = vmatpush.bf16.msra.mxu0 %v5146_v20  ;;  %4102 = vmatpush.bf16.msra.mxu1 %v5154_v35  ;;  %v2801_v43 = vadd.f32 %v2800_v46, %v2438_v6  ;;  %v2815_v61 = vadd.f32 %v2814_v32, %v2439_v39 }
 0xb34   :  { %v2859_v16 = vmax.f32 %v2827_v40, 0.0  ;;  %v2860_v18 = vmax.f32 %v2841_v27, 0.0 }
 0xb35   :  { %4115 = vmatpush.bf16.msra.mxu2 %v5163_v12  ;;  %4129 = vmatpush.bf16.msra.mxu3 %v5171_v28  ;;  %v2873_v59 = vmax.f32 %v2801_v43, 0.0  ;;  %v2874_v49 = vmax.f32 %v2815_v61, 0.0  ;;  %v7044_v28 = vld [vmem:[%s7070_s4] sm:$0xff] }
 0xb36   :  { %v3149_v45 = vperm.slane %v7044_v28, 6 }
 0xb37   :  { %4089 = vmatpush.bf16.msra.mxu0 %v5145_v37  ;;  %4103 = vmatpush.bf16.msra.mxu1 %v5153_v33  ;;  %v2889_v23 = vpack.c.bf16 %v2873_v59, %v2857_v8  ;;  %v2890_v14 = vpack.c.bf16 %v2874_v49, %v2858_v15 }
 0xb39   :  { %4116 = vmatpush.bf16.msra.mxu2 %v5162_v34  ;;  %4130 = vmatpush.bf16.msra.mxu3 %v5170_v57  ;;  %v2828_v0 = vpop.f32.mrf.mxu2  ;;  %v2842_v25 = vpop.f32.mrf.mxu3 }
 0xb3a   :  { %v2829_v5 = vadd.f32 %v2828_v0, %v2440_v30  ;;  %v2843_v53 = vadd.f32 %v2842_v25, %v2441_v41 }
 0xb3b   :  { %4090 = vmatpush.bf16.msra.mxu0 %v5144_v51  ;;  %4104 = vmatpush.bf16.msra.mxu1 %v5152_v60 }
 0xb3c   :  { %v2875_v42 = vmax.f32 %v2829_v5, 0.0  ;;  %v2876_v31 = vmax.f32 %v2843_v53, 0.0 }
 0xb3d   :  { %4117 = vmatpush.bf16.msra.mxu2 %v5161_v24  ;;  %4131 = vmatpush.bf16.msra.mxu3 %v5169_v26 }
 0xb3e   :  { %v2891_v19 = vpack.c.bf16 %v2875_v42, %v2859_v16  ;;  %v2892_v29 = vpack.c.bf16 %v2876_v31, %v2860_v18 }
 0xb3f   :  { %4091 = vmatpush.bf16.msra.mxu0 %v5143_v58  ;;  %4105 = vmatpush.bf16.msra.mxu1 %v5151_v55 }
 0xb41   :  { %4118 = vmatpush.bf16.msra.mxu2 %v5160_v22  ;;  %4132 = vmatpush.bf16.msra.mxu3 %v5168_v2 }
 0xb43   :  { %4092 = vmatpush.bf16.msra.mxu0 %v5142_v36  ;;  %4106 = vmatpush.bf16.msra.mxu1 %v5150_v21 }
 0xb45   :  { %4119 = vmatpush.bf16.msra.mxu2 %v5159_v17  ;;  %4133 = vmatpush.bf16.msra.mxu3 %v5167_v10 }
 0xb47   :  { %4093 = vmatpush.bf16.msra.mxu0 %v5141_v52  ;;  %4107 = vmatpush.bf16.msra.mxu1 %v5149_v4 }
 0xb49   :  { %4120 = vmatpush.bf16.msra.mxu2 %v5158_v13  ;;  %4134 = vmatpush.bf16.msra.mxu3 %v5166_v44 }
 0xb4a   :  { %4094 = vmatmul.bf16.vlgmr.msra.gmra.mxu0 %v2889_v23  ;;  %4108 = vmatmul.bf16.vlgmr.msra.gmra.mxu1 %v2890_v14 }
 0xb4d   :  { %4121 = vmatpush.bf16.msra.mxu2 %v5157_v38  ;;  %4135 = vmatpush.bf16.msra.mxu3 %v5165_v54 }
 0xb50   :  { %4122 = vmatmul.bf16.vlgmr.msra.gmra.mxu2 %v2891_v19  ;;  %4136 = vmatmul.bf16.vlgmr.msra.gmra.mxu3 %v2892_v29 }
 0xb86   :  { %v3927_v1 = vpop.f32.mrf.mxu0  ;;  %v3941_v20 = vpop.f32.mrf.mxu1 }
 0xb87   :  { %v3928_v34 = vadd.f32 %v3927_v1, %v3149_v45 }
 0xb89   :  { %v3942_v51 = vadd.f32 %v3941_v20, %v3928_v34 }
 0xb8e   :  { %v3929_v35 = vpop.f32.mrf.mxu0  ;;  %v3943_v12 = vpop.f32.mrf.mxu1 }
 0xb8f   :  { %v3930_v26 = vadd.f32 %v3929_v35, %v3149_v45 }
 0xb91   :  { %v3944_v55 = vadd.f32 %v3943_v12, %v3930_v26 }
 0xb93   :  { %v3955_v56 = vpop.f32.mrf.mxu2  ;;  %v3969_v3 = vpop.f32.mrf.mxu3 }
 0xb94   :  { %v3956_v60 = vadd.f32 %v3955_v56, %v3942_v51 }
 0xb96   :  { %v3970_v58 = vadd.f32 %v3969_v3, %v3956_v60 }
 0xb97   :  { %v3983_v7 = vpop.f32.mrf.mxu0  ;;  %v3997_v57 = vpop.f32.mrf.mxu1 }
 0xb98   :  { %v3984_v32 = vadd.f32 %v3983_v7, %v3970_v58 }
 0xb9a   :  { %v3998_v36 = vadd.f32 %v3997_v57, %v3984_v32 }
 0xb9b   :  { %v3957_v37 = vpop.f32.mrf.mxu2  ;;  %v3971_v33 = vpop.f32.mrf.mxu3 }
 0xb9c   :  { %v3958_v22 = vadd.f32 %v3957_v37, %v3944_v55 }
 0xb9e   :  { %v3972_v21 = vadd.f32 %v3971_v33, %v3958_v22 }
 0xb9f   :  { %v3985_v62 = vpop.f32.mrf.mxu0  ;;  %v3999_v46 = vpop.f32.mrf.mxu1 }
 0xba0   :  { %v3986_v61 = vadd.f32 %v3985_v62, %v3972_v21 }
 0xba2   :  { %v4000_v47 = vadd.f32 %v3999_v46, %v3986_v61  ;;  %v26_v46 = vld [vmem:[%s7070_s4 + $0x8] sm:$0x7] }
 0xba3   :  { %v4011_v48 = vpop.f32.mrf.mxu2  ;;  %v4025_v24 = vpop.f32.mrf.mxu3  ;;  %v4204_v22 = vrot.slane %v26_v46, 2 }
 0xba4   :  { %v4012_v43 = vadd.f32 %v4011_v48, %v3998_v36 }
 0xba5   :  { %5173 = vpush %v4204_v22 }
 0xba6   :  { %v4026_v10 = vadd.f32 %v4025_v24, %v4012_v43 }
 0xba7   :  { %v4039_v2 = vpop.f32.mrf.mxu0  ;;  %v4053_v17 = vpop.f32.mrf.mxu1 }
 0xba8   :  { %v4040_v52 = vadd.f32 %v4039_v2, %v4026_v10 }
 0xbaa   :  { %v4054_v30 = vadd.f32 %v4053_v17, %v4040_v52 }
 0xbab   :  { %v4013_v6 = vpop.f32.mrf.mxu2  ;;  %v4027_v39 = vpop.f32.mrf.mxu3 }
 0xbac   :  { %v4014_v4 = vadd.f32 %v4013_v6, %v4000_v47 }
 0xbae   :  { %v4028_v41 = vadd.f32 %v4027_v39, %v4014_v4 }
 0xbaf   :  { %v4041_v9 = vpop.f32.mrf.mxu0  ;;  %v4055_v59 = vpop.f32.mrf.mxu1 }
 0xbb0   :  { %v4042_v44 = vadd.f32 %v4041_v9, %v4028_v41  ;;  %v4188_v9 = vperm.slane %v7044_v28, 7  ;;  %v4194_v41 = vperm.slane %v26_v46, 1 }
 0xbb2   :  { %v4056_v53 = vadd.f32 %v4055_v59, %v4042_v44 }
 0xbb3   :  { %v4067_v0 = vpop.f32.mrf.mxu2  ;;  %v4081_v25 = vpop.f32.mrf.mxu3 }
 0xbb4   :  { %v4068_v49 = vadd.f32 %v4067_v0, %v4054_v30 }
 0xbb6   :  { %v4082_v5 = vadd.f32 %v4081_v25, %v4068_v49 }
 0xbbb   :  { %v4069_v8 = vpop.f32.mrf.mxu2  ;;  %v4083_v15 = vpop.f32.mrf.mxu3 }
 0xbbc   :  { %v4070_v23 = vadd.f32 %v4069_v8, %v4056_v53 }
 0xbbe   :  { %v4084_v31 = vadd.f32 %v4083_v15, %v4070_v23  ;;  %v4212_v23 = vlaneseq }
 0xbc7   :  { %v4095_v13 = vpop.f32.mrf.mxu0  ;;  %v4109_v27 = vpop.f32.mrf.mxu1 }
 0xbc8   :  { %v4096_v40 = vadd.f32 %v4095_v13, %v4082_v5 }
 0xbca   :  { %v4110_v14 = vadd.f32 %v4109_v27, %v4096_v40 }
 0xbcf   :  { %v4097_v38 = vpop.f32.mrf.mxu0  ;;  %v4111_v1 = vpop.f32.mrf.mxu1 }
 0xbd0   :  { %v4098_v18 = vadd.f32 %v4097_v38, %v4084_v31 }
 0xbd2   :  { %v4112_v20 = vadd.f32 %v4111_v1, %v4098_v18 }
 0xbd3   :  { %v4123_v54 = vpop.f32.mrf.mxu2  ;;  %v4137_v42 = vpop.f32.mrf.mxu3 }
 0xbd4   :  { %v4124_v16 = vadd.f32 %v4123_v54, %v4110_v14  ;;  %v4213_v54 = vand.u32 127, %v4212_v23 }
 0xbd6   :  { %v4138_v19 = vadd.f32 %v4137_v42, %v4124_v16  ;;  %s5174_s4 = spop %5173 }
 0xbd7   :  { %v4206_v14 = vstv %s5174_s4 }
 0xbd8   :  { %v4142_v29 = vadd.f32 %v4138_v19, %v6510_v63 }
 0xbda   :  { %v4144_v35 = vsel %vm47_vm0, %v4142_v29, 0.0 }
 0xbdb   :  { %v4125_v56 = vpop.f32.mrf.mxu2  ;;  %4145 = vadd.xlane.f32.xlu2 %v4144_v35  ;;  %v4139_v12 = vpop.f32.mrf.mxu3 }
 0xbdc   :  { %v4126_v3 = vadd.f32 %v4125_v56, %v4112_v20 }
 0xbde   :  { %v4140_v45 = vadd.f32 %v4139_v12, %v4126_v3 }
 0xbe0   :  { %v4143_v7 = vadd.f32 %v4140_v45, %v6512_v50 }
 0xbe2   :  { %v4147_v37 = vsel %vm47_vm0, %v4143_v7, 0.0 }
 0xbe3   :  { %4148 = vadd.xlane.f32.xlu0 %v4147_v37 }
 0xc4e   :  { %v4146_v33 = vpop.xlane.xlu2 %4145 }
 0xc4f   :  { %v4150_v34 = vmul.f32 %v4146_v33, %v6374_v11 }
 0xc51   :  { %v4152_v57 = vsub.f32 %v4142_v29, %v4150_v34 }
 0xc53   :  { %v4154_v51 = vmul.f32 %v4152_v57, %v4152_v57 }
 0xc55   :  { %v4156_v63 = vsel %vm47_vm0, %v4154_v51, 0.0 }
 0xc56   :  { %v4149_v60 = vpop.xlane.xlu0 %4148  ;;  %4157 = vadd.xlane.f32.xlu1 %v4156_v63 }
 0xc57   :  { %v4151_v62 = vmul.f32 %v4149_v60, %v6374_v11 }
 0xc59   :  { %v4153_v48 = vsub.f32 %v4143_v7, %v4151_v62 }
 0xc5b   :  { %v4155_v24 = vmul.f32 %v4153_v48, %v4153_v48 }
 0xc5d   :  { %v4159_v26 = vsel %vm47_vm0, %v4155_v24, 0.0 }
 0xc5e   :  { %4160 = vadd.xlane.f32.xlu2 %v4159_v26 }
 0xcc9   :  { %v4158_v50 = vpop.xlane.xlu1 %4157 }
 0xcca   :  { %v4162_v58 = vmul.f32 %v4158_v50, %v6374_v11 }
 0xccc   :  { %v4164_v55 = vadd.f32 1e-05, %v4162_v58 }
 0xcce   :  { %5379 = vrsqrt.f32 %v4164_v55  ;;  %vm4172_vm1 = vweird.f32 %v4164_v55 }
 0xcd1   :  { %v4161_v32 = vpop.xlane.xlu2 %4160 }
 0xcd2   :  { %v4163_v2 = vmul.f32 %v4161_v32, %v6374_v11  ;;  %v4191_v11 = vperm.slane %v26_v46, 0 }
 0xcd4   :  { %v5380_v6 = vpop.eup %5379  ;;  %v4165_v39 = vadd.f32 1e-05, %v4163_v2 }
 0xcd5   :  { %v4167_v36 = vmul.f32 %v5380_v6, %v4164_v55  ;;  %vm4173_vm15 = vweird.f32 %v5380_v6 }
 0xcd6   :  { %5381 = vrsqrt.f32 %v4165_v39  ;;  %vm4174_vm2 = vmor %vm4172_vm1, %vm4173_vm15  ;;  %vm4182_vm4 = vweird.f32 %v4165_v39 }
 0xcd7   :  { %v4168_v21 = vmul.f32 %v5380_v6, %v4167_v36 }
 0xcd9   :  { %v4169_v43 = vmul.f32 0.5, %v4168_v21 }
 0xcdb   :  { %v4170_v61 = vsub.f32 1.5, %v4169_v43 }
 0xcdc   :  { %v5382_v17 = vpop.eup %5381 }
 0xcdd   :  { %v4171_v10 = vmul.f32 %v5380_v6, %v4170_v61  ;;  %v4177_v47 = vmul.f32 %v5382_v17, %v4165_v39  ;;  %vm4183_vm3 = vweird.f32 %v5382_v17 }
 0xcde   :  { %vm4184_vm5 = vmor %vm4182_vm4, %vm4183_vm3 }
 0xcdf   :  { %v4175_v0 = vsel %vm4174_vm2, %v5380_v6, %v4171_v10  ;;  %v4178_v25 = vmul.f32 %v5382_v17, %v4177_v47 }
 0xce0   :  { %v4186_v52 = vmul.f32 %v4175_v0, %v4152_v57 }
 0xce1   :  { %v4179_v4 = vmul.f32 0.5, %v4178_v25 }
 0xce2   :  { %v4189_v30 = vmul.f32 %v4188_v9, %v4186_v52 }
 0xce3   :  { %v4180_v59 = vsub.f32 1.5, %v4179_v4 }
 0xce4   :  { %v4192_v49 = vadd.f32 %v4191_v11, %v4189_v30 }
 0xce5   :  { %v4181_v13 = vmul.f32 %v5382_v17, %v4180_v59 }
 0xce6   :  { %v4195_v44 = vmul.f32 %v4194_v41, %v4192_v49 }
 0xce7   :  { %v4185_v8 = vsel %vm4184_vm5, %v5382_v17, %v4181_v13 }
 0xce8   :  { %v4197_v15 = vsel %vm47_vm0, %v4195_v44, 0.0  ;;  %v4187_v5 = vmul.f32 %v4185_v8, %v4153_v48 }
 0xce9   :  { %4198 = vadd.xlane.f32.xlu0 %v4197_v15 }
 0xcea   :  { %v4190_v28 = vmul.f32 %v4188_v9, %v4187_v5 }
 0xcec   :  { %v4193_v53 = vadd.f32 %v4191_v11, %v4190_v28 }
 0xcee   :  { %v4196_v40 = vmul.f32 %v4194_v41, %v4193_v53 }
 0xcf0   :  { %v4200_v27 = vsel %vm47_vm0, %v4196_v40, 0.0 }
 0xcf1   :  { %4201 = vadd.xlane.f32.xlu1 %v4200_v27 }
 0xd5c   :  { %v4199_v38 = vpop.xlane.xlu0 %4198 }
 0xd5d   :  { %v4208_v42 = vadd.f32 %v4206_v14, %v4199_v38 }
 0xd5f   :  { %v4214_v18 = vperm.slane %v4208_v42, %v4213_v54 }
 0xd64   :  { %v4202_v31 = vpop.xlane.xlu1 %4201 }
 0xd65   :  { %v4209_v16 = vadd.f32 %v4206_v14, %v4202_v31 }
 0xd67   :  { %v4215_v19 = vperm.slane %v4209_v16, %v4213_v54 }
 0xd69   :  { %v4217_v29 = vsel %vm4216_vm6, %v4215_v19, %v4214_v18 }
 0xd6a   :  { %4220 = vst.msk [vmem:[#allocation2] sm:$0x3] %vm4219_vm7, %v4217_v29 }
 0xd6b   :  { %4231 = dma.vmem_to_hbm [thread:$0]  %s4227_s19, 32, %s4229_s22, [#allocation3]  }
 0xd6c   :  { %5411 = dma.done.wait [#allocation3], 32  }
 0xd6d   :  { %5412 = vsyncadd [#allocation3], 4294967264 }
 0xd6e   :  { %4236 = vsyncpa [#allocation3], 1 }

</bundles_post_ra>
